<compile_context>
chip_gen: v6e
topology: v6e:2x2x1
jax: 0.10.0
libtpu: 0.0.40
codegen_flags: <defaults>
</compile_context>

<pallas_src>
import functools

import jax
import jax.numpy as jnp
from jax.experimental import pallas as pl
from jax.experimental.pallas import tpu as pltpu

COMPUTE_DTYPE = jnp.bfloat16          # A / W stream dtype (accumulate in f32)
TM_MATMUL = 512                       # row tile for the fused matmul (deconv) kernel
VMEM_LIMIT_BYTES = 32 * 1024 * 1024   # > v5e's 16 MiB default, <= physical VMEM everywhere


# --------------------------------------------------------------------------- #
# Fused 3x3 conv + folded-BN + ReLU (im2col fused in-kernel)
# --------------------------------------------------------------------------- #
def _conv3x3_bn_relu_kernel(x_ref, w_ref, s_ref, b_ref, o_ref, *,
                            stride, th, wo, cin, cout, direct_reshape):
    """One (batch, row-tile) step of a fused 3x3 conv + BN + ReLU.

    x_ref : (stride*stride, Hq, Wq, Cin)  phase-decomposed padded input (bf16)
    w_ref : (3, 3, Cin, Cout)             per-tap weight matrices (bf16)
    s_ref : (1, Cout), b_ref : (1, Cout)  folded BatchNorm scale / bias (f32)
    o_ref : (th*wo, Cout)                 output rows, row-major over (i, j) (bf16)
    """
    t = pl.program_id(1)
    r0 = pl.multiple_of(t * th, th)
    acc = jnp.zeros((th * wo, cout), jnp.float32)
    for kh in range(3):
        for kw in range(3):
            # phase holding padded rows (kh % s)::s and cols (kw % s)::s
            ph = (kh % stride) * stride + (kw % stride)
            a = x_ref[ph,
                      pl.ds(r0 + kh // stride, th),
                      pl.ds(kw // stride, wo),
                      :]
            if direct_reshape:
                a2 = a.reshape(th * wo, cin)
            else:
                # Go through f32 so the (th, wo, cin) -> (th*wo, cin) merge is a
                # clean sublane retile even when wo is not a multiple of the
                # bf16 packing (16); cast back so the matmul stays bf16.
                a2 = a.astype(jnp.float32).reshape(th * wo, cin).astype(a.dtype)
            acc = acc + jnp.dot(a2, w_ref[kh, kw],
                                preferred_element_type=jnp.float32)
    y = jnp.maximum(acc * s_ref[...] + b_ref[...], 0.0)
    o_ref[...] = y.astype(o_ref.dtype)


def _pick_row_tile(ho, wo, max_rows=1024):
    """Largest divisor of `ho` whose rows*wo tile fits `max_rows` rows,
    preferring tiles whose row count is a multiple of 8 (clean sublane tiling
    for the f32 accumulator and the output block)."""
    cap = min(ho, max(max_rows // max(wo, 1), 1))
    for th in range(cap, 0, -1):
        if ho % th == 0 and (th * wo) % 8 == 0:
            return th
    for th in range(cap, 0, -1):
        if ho % th == 0:
            return th
    return 1


def conv3x3_bn_relu(x, w_taps, scale, bias, stride):
    """ZeroPad2d(1) + Conv2d(k=3, stride, pad=0, bias=False) + BN + ReLU, fused.

    x      : (N, H, W, Cin) NHWC activation (bf16)
    w_taps : (3, 3, Cin, Cout) weights (bf16)
    scale  : (Cout,) f32 folded-BN scale;  bias : (Cout,) f32 folded-BN bias
    """
    N, H, W, Cin = x.shape
    Cout = w_taps.shape[-1]
    s = int(stride)
    Ho = (H + 2 - 3) // s + 1
    Wo = (W + 2 - 3) // s + 1
    Hp = -(-(H + 2) // s) * s        # padded height, rounded up to a multiple of s
    Wp = -(-(W + 2) // s) * s
    Hq, Wq = Hp // s, Wp // s

    # ZeroPad2d(1) (+ right/bottom rounding pad) and stride-phase decomposition:
    # phase (p, q) holds padded rows p::s and cols q::s, so every conv tap is a
    # contiguous window of exactly one phase.  For stride == 1 this degenerates
    # to the padded input itself (free under jit).
    xp = jnp.pad(x, ((0, 0), (1, Hp - H - 1), (1, Wp - W - 1), (0, 0)))
    xph = jnp.stack([xp[:, p::s, q::s, :] for p in range(s) for q in range(s)],
                    axis=1).reshape(N * s * s, Hq, Wq, Cin)

    th = _pick_row_tile(Ho, Wo)
    nt = Ho // th
    itemsize = x.dtype.itemsize
    direct_reshape = (Wo % (8 * max(4 // itemsize, 1)) == 0)

    kernel = functools.partial(
        _conv3x3_bn_relu_kernel, stride=s, th=th, wo=Wo, cin=Cin, cout=Cout,
        direct_reshape=direct_reshape)

    cost = pl.CostEstimate(
        flops=2 * N * Ho * Wo * 9 * Cin * Cout,
        transcendentals=0,
        bytes_accessed=(xph.size * itemsize + w_taps.size * itemsize
                        + scale.size * 4 + bias.size * 4
                        + N * Ho * Wo * Cout * itemsize))

    out = pl.pallas_call(
        kernel,
        out_shape=jax.ShapeDtypeStruct((N * Ho * Wo, Cout), x.dtype),
        grid_spec=pltpu.PrefetchScalarGridSpec(
            num_scalar_prefetch=0,
            grid=(N, nt),
            in_specs=[
                # Whole (phase-decomposed) padded image of one batch element;
                # re-used across the row tiles of that element by the pipeline.
                # TODO(synk): production-size BEV maps should row-tile this with
                # a manual halo DMA (pl.ANY + make_async_copy) instead of keeping
                # the full image resident in VMEM.
                pl.BlockSpec((s * s, Hq, Wq, Cin), lambda n, t: (n, 0, 0, 0)),
                pl.BlockSpec((3, 3, Cin, Cout), lambda n, t: (0, 0, 0, 0)),
                pl.BlockSpec((1, Cout), lambda n, t: (0, 0)),
                pl.BlockSpec((1, Cout), lambda n, t: (0, 0)),
            ],
            out_specs=pl.BlockSpec((th * Wo, Cout), lambda n, t: (n * nt + t, 0)),
        ),
        compiler_params=pltpu.CompilerParams(
            dimension_semantics=("parallel", "parallel"),
            vmem_limit_bytes=VMEM_LIMIT_BYTES),
        cost_estimate=cost,
    )(xph, w_taps,
      scale.reshape(1, Cout).astype(jnp.float32),
      bias.reshape(1, Cout).astype(jnp.float32))
    return out.reshape(N, Ho, Wo, Cout)


# --------------------------------------------------------------------------- #
# Fused matmul + folded-BN + ReLU (used by the ConvTranspose / deconv path)
# --------------------------------------------------------------------------- #
def _matmul_bn_relu_kernel(a_ref, w_ref, s_ref, b_ref, o_ref):
    acc = jnp.dot(a_ref[...], w_ref[...], preferred_element_type=jnp.float32)
    o_ref[...] = jnp.maximum(acc * s_ref[...] + b_ref[...], 0.0).astype(o_ref.dtype)


def matmul_bn_relu(a, w, scale, bias):
    """out = relu((a @ w) * scale + bias) in one fused Pallas kernel.

    a: (M, K), w: (K, Nc) in bf16; scale/bias: (Nc,) f32; output bf16.
    No M padding copy: the grid is cdiv(M, tm) and Pallas pads / masks the
    ragged last block.
    """
    M, K = a.shape
    Kw, Nc = w.shape
    assert K == Kw
    tm = min(TM_MATMUL, M)
    cost = pl.CostEstimate(
        flops=2 * M * K * Nc,
        transcendentals=0,
        bytes_accessed=(M * K + K * Nc + M * Nc) * a.dtype.itemsize + 2 * Nc * 4)
    return pl.pallas_call(
        _matmul_bn_relu_kernel,
        out_shape=jax.ShapeDtypeStruct((M, Nc), a.dtype),
        grid_spec=pltpu.PrefetchScalarGridSpec(
            num_scalar_prefetch=0,
            grid=(pl.cdiv(M, tm),),
            in_specs=[
                pl.BlockSpec((tm, K), lambda i: (i, 0)),   # activation rows
                pl.BlockSpec((K, Nc), lambda i: (0, 0)),   # full weight matrix
                pl.BlockSpec((1, Nc), lambda i: (0, 0)),   # folded BN scale
                pl.BlockSpec((1, Nc), lambda i: (0, 0)),   # folded BN bias
            ],
            out_specs=pl.BlockSpec((tm, Nc), lambda i: (i, 0)),
        ),
        compiler_params=pltpu.CompilerParams(
            dimension_semantics=("parallel",),
            vmem_limit_bytes=VMEM_LIMIT_BYTES),
        cost_estimate=cost,
    )(a, w,
      scale.reshape(1, Nc).astype(jnp.float32),
      bias.reshape(1, Nc).astype(jnp.float32))


def deconv_bn_relu(x, w_mat, scale_kk, bias_kk, k):
    """ConvTranspose2d(kernel=k, stride=k, bias=False) + BN + ReLU.

    kernel_size == stride, so every input pixel expands into an independent
    k x k output block -> one fused matmul.  The pixel-shuffle rearrange is
    left to XLA; the whole forward is jitted so it fuses with the final concat
    and NCHW transpose (no standalone HBM round trip)."""
    N, H, W, Cin = x.shape
    kkCout = w_mat.shape[1]
    Cout = kkCout // (k * k)
    y = matmul_bn_relu(x.reshape(N * H * W, Cin), w_mat, scale_kk, bias_kk)
    y = y.reshape(N, H, W, k, k, Cout)
    y = jnp.transpose(y, (0, 1, 3, 2, 4, 5)).reshape(N, H * k, W * k, Cout)
    return y


# --------------------------------------------------------------------------- #
# Parameter init (BatchNorm folded with eval-mode running statistics)
# --------------------------------------------------------------------------- #
def _fold_bn(gamma, beta, mean, var, eps=1e-3):
    scale = gamma / jnp.sqrt(var + eps)
    bias = beta - mean * scale
    return scale, bias


def _init_conv(key, cout, cin):
    w = 0.05 * jax.random.normal(key, (cout, cin, 3, 3), dtype=jnp.float32)
    gamma = jnp.ones((cout,), jnp.float32)
    beta = 0.01 * jnp.arange(cout, dtype=jnp.float32)
    mean = jnp.zeros((cout,), jnp.float32)
    var = jnp.ones((cout,), jnp.float32)
    scale, bias = _fold_bn(gamma, beta, mean, var)
    # PyTorch (Cout, Cin, kh, kw) -> (kh, kw, Cin, Cout): per-tap (Cin, Cout) mats.
    w_taps = jnp.transpose(w, (2, 3, 1, 0)).astype(COMPUTE_DTYPE)
    return w_taps, scale, bias


def _init_deconv(key, cin, cout, k):
    w = 0.05 * jax.random.normal(key, (cin, cout, k, k), dtype=jnp.float32)
    gamma = jnp.ones((cout,), jnp.float32)
    beta = 0.01 * jnp.arange(cout, dtype=jnp.float32)
    mean = jnp.zeros((cout,), jnp.float32)
    var = jnp.ones((cout,), jnp.float32)
    scale, bias = _fold_bn(gamma, beta, mean, var)
    # PyTorch (Cin, Cout, kh, kw) -> (Cin, kh, kw, Cout) -> (Cin, k*k*Cout)
    w_mat = jnp.transpose(w, (0, 2, 3, 1)).reshape(cin, k * k * cout).astype(COMPUTE_DTYPE)
    return w_mat, jnp.tile(scale, k * k), jnp.tile(bias, k * k)


# --------------------------------------------------------------------------- #
# The backbone
# --------------------------------------------------------------------------- #
class BaseBEVBackbonePallas:
    def __init__(self, model_cfg, input_channels, key):
        num_layers = model_cfg.get('NUM_LAYERS', []) or []
        downsample_strides = model_cfg.get('DOWNSAMPLE_STRIDES', []) or []
        downsample_filters = model_cfg.get('DOWNSAMPLE_FILTERS', []) or []
        upsample_strides = model_cfg.get('UPSAMPLE_STRIDES', []) or []
        upsample_filters = model_cfg.get('UPSAMPLE_FILTERS', []) or []

        num_levels = len(num_layers)
        c_in_list = [input_channels, *downsample_filters[:-1]]

        self.block_params = []     # [[(w_taps, scale, bias), ...], ...]   (arrays)
        self.block_strides = []    # [[stride, ...], ...]                  (static)
        self.deblock_params = []   # [(w_mat, scale, bias), ...]           (arrays)
        self.deblock_strides = []  # [k, ...]                              (static)

        keys = jax.random.split(key, 64)
        ki = 0
        for idx in range(num_levels):
            layers, strides = [], []
            layers.append(_init_conv(keys[ki], downsample_filters[idx], c_in_list[idx]))
            ki += 1
            strides.append(int(downsample_strides[idx]))
            for _ in range(num_layers[idx]):
                layers.append(_init_conv(keys[ki], downsample_filters[idx],
                                         downsample_filters[idx]))
                ki += 1
                strides.append(1)
            self.block_params.append(layers)
            self.block_strides.append(strides)
            if len(upsample_strides) > 0:
                stride = int(upsample_strides[idx])
                # TODO(synk): fractional upsample_strides (< 1, stride-conv path) are
                # not exercised by this config; only the ConvTranspose (stride >= 1)
                # path is built.
                self.deblock_params.append(
                    _init_deconv(keys[ki], downsample_filters[idx],
                                 upsample_filters[idx], stride))
                ki += 1
                self.deblock_strides.append(stride)
        # TODO(synk): the optional extra trailing deblock
        # (len(upsample_strides) > num_levels) is not built for this config.
        self.num_bev_features = sum(upsample_filters) if upsample_filters else \
            (downsample_filters[-1] if downsample_filters else input_channels)

        # jit the whole forward so the light XLA glue around the Pallas kernels
        # (pad / phase split / pixel-shuffle / concat / NCHW transpose) fuses
        # instead of doing standalone HBM round trips.
        self._jit_forward = jax.jit(self._forward)

    def _forward(self, params, x_nchw):
        block_params, deblock_params = params
        x = jnp.transpose(x_nchw, (0, 2, 3, 1)).astype(COMPUTE_DTYPE)   # NCHW -> NHWC
        feats = []
        for bi, layers in enumerate(block_params):
            for li, (w, sc, bs) in enumerate(layers):
                x = conv3x3_bn_relu(x, w, sc, bs, self.block_strides[bi][li])
            if deblock_params:
                dw, dsc, dbs = deblock_params[bi]
                feats.append(deconv_bn_relu(x, dw, dsc, dbs, self.deblock_strides[bi]))
            else:
                feats.append(x)
        out = feats[0] if len(feats) == 1 else jnp.concatenate(feats, axis=-1)
        return jnp.transpose(out, (0, 3, 1, 2)).astype(jnp.float32)     # NCHW, f32

    def forward(self, batch_dict):
        params = (self.block_params, self.deblock_params)
        batch_dict['bev_features'] = self._jit_forward(params, batch_dict['pv_features'])
        return batch_dict


# --------------------------------------------------------------------------- #
# main
# --------------------------------------------------------------------------- #
if __name__ == "__main__":
    MODEL_CFG = {
        'NUM_LAYERS': [1, 1],
        'DOWNSAMPLE_STRIDES': [1, 2],
        'DOWNSAMPLE_FILTERS': [8, 16],
        'UPSAMPLE_STRIDES': [1, 2],
        'UPSAMPLE_FILTERS': [8, 8],
    }
    key = jax.random.PRNGKey(0)
    k_params, k_data = jax.random.split(key)

    backbone = BaseBEVBackbonePallas(MODEL_CFG, input_channels=4, key=k_params)

    x = jax.random.normal(k_data, (2, 4, 16, 16), dtype=jnp.float32)   # NCHW
    batch_dict = {'pv_features': x}

    out_dict = backbone.forward(batch_dict)
    bev = jax.block_until_ready(out_dict['bev_features'])

    expected = (2, backbone.num_bev_features, 16, 16)   # (2, 16, 16, 16)
    assert bev.shape == expected, f"shape {bev.shape} != {expected}"
    assert bool(jnp.all(jnp.isfinite(bev)))
    assert bool(jnp.all(bev >= 0.0))                    # ReLU epilogue

    print("KERNEL_OK")
</pallas_src>

<mosaic_0001>
module attributes {stable_mosaic.version = 11 : i64} {
  func.func @_conv3x3_bn_relu_kernel(%arg0: i32, %arg1: i32, %arg2: memref<1x18x18x4xbf16, #tpu.memory_space<vmem>>, %arg3: memref<3x3x4x8xbf16, #tpu.memory_space<vmem>>, %arg4: memref<1x8xf32, #tpu.memory_space<vmem>>, %arg5: memref<1x8xf32, #tpu.memory_space<vmem>>, %arg6: memref<256x8xbf16, #tpu.memory_space<vmem>>) attributes {dimension_semantics = [#tpu.dimension_semantics<parallel>, #tpu.dimension_semantics<parallel>], iteration_bounds = array<i64: 2, 1>, scalar_prefetch = 0 : i64, scratch_operands = 0 : i64, tpu.core_type = #tpu.core_type<tc>, window_params = [{transform_indices = @transform_0, window_bounds = array<i64: 1, 18, 18, 4>}, {pipeline_mode = #tpu.pipeline_mode<synchronous>, transform_indices = @transform_1, window_bounds = array<i64: 3, 3, 4, 8>}, {pipeline_mode = #tpu.pipeline_mode<synchronous>, transform_indices = @transform_2, window_bounds = array<i64: 1, 8>}, {pipeline_mode = #tpu.pipeline_mode<synchronous>, transform_indices = @transform_3, window_bounds = array<i64: 1, 8>}, {transform_indices = @transform_4, window_bounds = array<i64: 256, 8>}]} {
    %c16_i32 = arith.constant 16 : i32
    %0 = arith.muli %arg1, %c16_i32 : i32
    %1 = tpu.assume_multiple %0, 16 : i32
    %cst = arith.constant 0.000000e+00 : f32
    %2 = vector.broadcast %cst : f32 to vector<256x8xf32>
    %c0_i32 = arith.constant 0 : i32
    %3 = arith.addi %1, %c0_i32 : i32
    %c0 = arith.constant 0 : index
    %4 = arith.index_cast %3 : i32 to index
    %c0_0 = arith.constant 0 : index
    %c0_1 = arith.constant 0 : index
    %5 = vector.load %arg2[%c0, %4, %c0_0, %c0_1] : memref<1x18x18x4xbf16, #tpu.memory_space<vmem>>, vector<1x16x16x4xbf16>
    %6 = vector.shape_cast %5 : vector<1x16x16x4xbf16> to vector<16x16x4xbf16>
    %7 = vector.shape_cast %6 : vector<16x16x4xbf16> to vector<256x4xbf16>
    %c0_2 = arith.constant 0 : index
    %c0_3 = arith.constant 0 : index
    %c0_4 = arith.constant 0 : index
    %c0_5 = arith.constant 0 : index
    %8 = vector.load %arg3[%c0_2, %c0_3, %c0_4, %c0_5] : memref<3x3x4x8xbf16, #tpu.memory_space<vmem>>, vector<1x1x4x8xbf16>
    %9 = vector.shape_cast %8 : vector<1x1x4x8xbf16> to vector<4x8xbf16>
    %cst_6 = arith.constant dense<0.000000e+00> : vector<256x8xf32>
    %10 = tpu.matmul %7, %9, %cst_6 {dimension_numbers = #tpu.dot_dimension_numbers<[1], [0], [0], [1], [0, 0, 1, 1], [], []>} : vector<256x4xbf16>, vector<4x8xbf16>, vector<256x8xf32> -> vector<256x8xf32>
    %11 = arith.addf %2, %10 : vector<256x8xf32>
    %c0_i32_7 = arith.constant 0 : i32
    %12 = arith.addi %1, %c0_i32_7 : i32
    %c0_8 = arith.constant 0 : index
    %13 = arith.index_cast %12 : i32 to index
    %c1 = arith.constant 1 : index
    %c0_9 = arith.constant 0 : index
    %14 = vector.load %arg2[%c0_8, %13, %c1, %c0_9] : memref<1x18x18x4xbf16, #tpu.memory_space<vmem>>, vector<1x16x16x4xbf16>
    %15 = vector.shape_cast %14 : vector<1x16x16x4xbf16> to vector<16x16x4xbf16>
    %16 = vector.shape_cast %15 : vector<16x16x4xbf16> to vector<256x4xbf16>
    %c0_10 = arith.constant 0 : index
    %c1_11 = arith.constant 1 : index
    %c0_12 = arith.constant 0 : index
    %c0_13 = arith.constant 0 : index
    %17 = vector.load %arg3[%c0_10, %c1_11, %c0_12, %c0_13] : memref<3x3x4x8xbf16, #tpu.memory_space<vmem>>, vector<1x1x4x8xbf16>
    %18 = vector.shape_cast %17 : vector<1x1x4x8xbf16> to vector<4x8xbf16>
    %cst_14 = arith.constant dense<0.000000e+00> : vector<256x8xf32>
    %19 = tpu.matmul %16, %18, %cst_14 {dimension_numbers = #tpu.dot_dimension_numbers<[1], [0], [0], [1], [0, 0, 1, 1], [], []>} : vector<256x4xbf16>, vector<4x8xbf16>, vector<256x8xf32> -> vector<256x8xf32>
    %20 = arith.addf %11, %19 : vector<256x8xf32>
    %c0_i32_15 = arith.constant 0 : i32
    %21 = arith.addi %1, %c0_i32_15 : i32
    %c0_16 = arith.constant 0 : index
    %22 = arith.index_cast %21 : i32 to index
    %c2 = arith.constant 2 : index
    %c0_17 = arith.constant 0 : index
    %23 = vector.load %arg2[%c0_16, %22, %c2, %c0_17] : memref<1x18x18x4xbf16, #tpu.memory_space<vmem>>, vector<1x16x16x4xbf16>
    %24 = vector.shape_cast %23 : vector<1x16x16x4xbf16> to vector<16x16x4xbf16>
    %25 = vector.shape_cast %24 : vector<16x16x4xbf16> to vector<256x4xbf16>
    %c0_18 = arith.constant 0 : index
    %c2_19 = arith.constant 2 : index
    %c0_20 = arith.constant 0 : index
    %c0_21 = arith.constant 0 : index
    %26 = vector.load %arg3[%c0_18, %c2_19, %c0_20, %c0_21] : memref<3x3x4x8xbf16, #tpu.memory_space<vmem>>, vector<1x1x4x8xbf16>
    %27 = vector.shape_cast %26 : vector<1x1x4x8xbf16> to vector<4x8xbf16>
    %cst_22 = arith.constant dense<0.000000e+00> : vector<256x8xf32>
    %28 = tpu.matmul %25, %27, %cst_22 {dimension_numbers = #tpu.dot_dimension_numbers<[1], [0], [0], [1], [0, 0, 1, 1], [], []>} : vector<256x4xbf16>, vector<4x8xbf16>, vector<256x8xf32> -> vector<256x8xf32>
    %29 = arith.addf %20, %28 : vector<256x8xf32>
    %c1_i32 = arith.constant 1 : i32
    %30 = arith.addi %1, %c1_i32 : i32
    %c0_23 = arith.constant 0 : index
    %31 = arith.index_cast %30 : i32 to index
    %c0_24 = arith.constant 0 : index
    %c0_25 = arith.constant 0 : index
    %32 = vector.load %arg2[%c0_23, %31, %c0_24, %c0_25] : memref<1x18x18x4xbf16, #tpu.memory_space<vmem>>, vector<1x16x16x4xbf16>
    %33 = vector.shape_cast %32 : vector<1x16x16x4xbf16> to vector<16x16x4xbf16>
    %34 = vector.shape_cast %33 : vector<16x16x4xbf16> to vector<256x4xbf16>
    %c1_26 = arith.constant 1 : index
    %c0_27 = arith.constant 0 : index
    %c0_28 = arith.constant 0 : index
    %c0_29 = arith.constant 0 : index
    %35 = vector.load %arg3[%c1_26, %c0_27, %c0_28, %c0_29] : memref<3x3x4x8xbf16, #tpu.memory_space<vmem>>, vector<1x1x4x8xbf16>
    %36 = vector.shape_cast %35 : vector<1x1x4x8xbf16> to vector<4x8xbf16>
    %cst_30 = arith.constant dense<0.000000e+00> : vector<256x8xf32>
    %37 = tpu.matmul %34, %36, %cst_30 {dimension_numbers = #tpu.dot_dimension_numbers<[1], [0], [0], [1], [0, 0, 1, 1], [], []>} : vector<256x4xbf16>, vector<4x8xbf16>, vector<256x8xf32> -> vector<256x8xf32>
    %38 = arith.addf %29, %37 : vector<256x8xf32>
    %c1_i32_31 = arith.constant 1 : i32
    %39 = arith.addi %1, %c1_i32_31 : i32
    %c0_32 = arith.constant 0 : index
    %40 = arith.index_cast %39 : i32 to index
    %c1_33 = arith.constant 1 : index
    %c0_34 = arith.constant 0 : index
    %41 = vector.load %arg2[%c0_32, %40, %c1_33, %c0_34] : memref<1x18x18x4xbf16, #tpu.memory_space<vmem>>, vector<1x16x16x4xbf16>
    %42 = vector.shape_cast %41 : vector<1x16x16x4xbf16> to vector<16x16x4xbf16>
    %43 = vector.shape_cast %42 : vector<16x16x4xbf16> to vector<256x4xbf16>
    %c1_35 = arith.constant 1 : index
    %c1_36 = arith.constant 1 : index
    %c0_37 = arith.constant 0 : index
    %c0_38 = arith.constant 0 : index
    %44 = vector.load %arg3[%c1_35, %c1_36, %c0_37, %c0_38] : memref<3x3x4x8xbf16, #tpu.memory_space<vmem>>, vector<1x1x4x8xbf16>
    %45 = vector.shape_cast %44 : vector<1x1x4x8xbf16> to vector<4x8xbf16>
    %cst_39 = arith.constant dense<0.000000e+00> : vector<256x8xf32>
    %46 = tpu.matmul %43, %45, %cst_39 {dimension_numbers = #tpu.dot_dimension_numbers<[1], [0], [0], [1], [0, 0, 1, 1], [], []>} : vector<256x4xbf16>, vector<4x8xbf16>, vector<256x8xf32> -> vector<256x8xf32>
    %47 = arith.addf %38, %46 : vector<256x8xf32>
    %c1_i32_40 = arith.constant 1 : i32
    %48 = arith.addi %1, %c1_i32_40 : i32
    %c0_41 = arith.constant 0 : index
    %49 = arith.index_cast %48 : i32 to index
    %c2_42 = arith.constant 2 : index
    %c0_43 = arith.constant 0 : index
    %50 = vector.load %arg2[%c0_41, %49, %c2_42, %c0_43] : memref<1x18x18x4xbf16, #tpu.memory_space<vmem>>, vector<1x16x16x4xbf16>
    %51 = vector.shape_cast %50 : vector<1x16x16x4xbf16> to vector<16x16x4xbf16>
    %52 = vector.shape_cast %51 : vector<16x16x4xbf16> to vector<256x4xbf16>
    %c1_44 = arith.constant 1 : index
    %c2_45 = arith.constant 2 : index
    %c0_46 = arith.constant 0 : index
    %c0_47 = arith.constant 0 : index
    %53 = vector.load %arg3[%c1_44, %c2_45, %c0_46, %c0_47] : memref<3x3x4x8xbf16, #tpu.memory_space<vmem>>, vector<1x1x4x8xbf16>
    %54 = vector.shape_cast %53 : vector<1x1x4x8xbf16> to vector<4x8xbf16>
    %cst_48 = arith.constant dense<0.000000e+00> : vector<256x8xf32>
    %55 = tpu.matmul %52, %54, %cst_48 {dimension_numbers = #tpu.dot_dimension_numbers<[1], [0], [0], [1], [0, 0, 1, 1], [], []>} : vector<256x4xbf16>, vector<4x8xbf16>, vector<256x8xf32> -> vector<256x8xf32>
    %56 = arith.addf %47, %55 : vector<256x8xf32>
    %c2_i32 = arith.constant 2 : i32
    %57 = arith.addi %1, %c2_i32 : i32
    %c0_49 = arith.constant 0 : index
    %58 = arith.index_cast %57 : i32 to index
    %c0_50 = arith.constant 0 : index
    %c0_51 = arith.constant 0 : index
    %59 = vector.load %arg2[%c0_49, %58, %c0_50, %c0_51] : memref<1x18x18x4xbf16, #tpu.memory_space<vmem>>, vector<1x16x16x4xbf16>
    %60 = vector.shape_cast %59 : vector<1x16x16x4xbf16> to vector<16x16x4xbf16>
    %61 = vector.shape_cast %60 : vector<16x16x4xbf16> to vector<256x4xbf16>
    %c2_52 = arith.constant 2 : index
    %c0_53 = arith.constant 0 : index
    %c0_54 = arith.constant 0 : index
    %c0_55 = arith.constant 0 : index
    %62 = vector.load %arg3[%c2_52, %c0_53, %c0_54, %c0_55] : memref<3x3x4x8xbf16, #tpu.memory_space<vmem>>, vector<1x1x4x8xbf16>
    %63 = vector.shape_cast %62 : vector<1x1x4x8xbf16> to vector<4x8xbf16>
    %cst_56 = arith.constant dense<0.000000e+00> : vector<256x8xf32>
    %64 = tpu.matmul %61, %63, %cst_56 {dimension_numbers = #tpu.dot_dimension_numbers<[1], [0], [0], [1], [0, 0, 1, 1], [], []>} : vector<256x4xbf16>, vector<4x8xbf16>, vector<256x8xf32> -> vector<256x8xf32>
    %65 = arith.addf %56, %64 : vector<256x8xf32>
    %c2_i32_57 = arith.constant 2 : i32
    %66 = arith.addi %1, %c2_i32_57 : i32
    %c0_58 = arith.constant 0 : index
    %67 = arith.index_cast %66 : i32 to index
    %c1_59 = arith.constant 1 : index
    %c0_60 = arith.constant 0 : index
    %68 = vector.load %arg2[%c0_58, %67, %c1_59, %c0_60] : memref<1x18x18x4xbf16, #tpu.memory_space<vmem>>, vector<1x16x16x4xbf16>
    %69 = vector.shape_cast %68 : vector<1x16x16x4xbf16> to vector<16x16x4xbf16>
    %70 = vector.shape_cast %69 : vector<16x16x4xbf16> to vector<256x4xbf16>
    %c2_61 = arith.constant 2 : index
    %c1_62 = arith.constant 1 : index
    %c0_63 = arith.constant 0 : index
    %c0_64 = arith.constant 0 : index
    %71 = vector.load %arg3[%c2_61, %c1_62, %c0_63, %c0_64] : memref<3x3x4x8xbf16, #tpu.memory_space<vmem>>, vector<1x1x4x8xbf16>
    %72 = vector.shape_cast %71 : vector<1x1x4x8xbf16> to vector<4x8xbf16>
    %cst_65 = arith.constant dense<0.000000e+00> : vector<256x8xf32>
    %73 = tpu.matmul %70, %72, %cst_65 {dimension_numbers = #tpu.dot_dimension_numbers<[1], [0], [0], [1], [0, 0, 1, 1], [], []>} : vector<256x4xbf16>, vector<4x8xbf16>, vector<256x8xf32> -> vector<256x8xf32>
    %74 = arith.addf %65, %73 : vector<256x8xf32>
    %c2_i32_66 = arith.constant 2 : i32
    %75 = arith.addi %1, %c2_i32_66 : i32
    %c0_67 = arith.constant 0 : index
    %76 = arith.index_cast %75 : i32 to index
    %c2_68 = arith.constant 2 : index
    %c0_69 = arith.constant 0 : index
    %77 = vector.load %arg2[%c0_67, %76, %c2_68, %c0_69] : memref<1x18x18x4xbf16, #tpu.memory_space<vmem>>, vector<1x16x16x4xbf16>
    %78 = vector.shape_cast %77 : vector<1x16x16x4xbf16> to vector<16x16x4xbf16>
    %79 = vector.shape_cast %78 : vector<16x16x4xbf16> to vector<256x4xbf16>
    %c2_70 = arith.constant 2 : index
    %c2_71 = arith.constant 2 : index
    %c0_72 = arith.constant 0 : index
    %c0_73 = arith.constant 0 : index
    %80 = vector.load %arg3[%c2_70, %c2_71, %c0_72, %c0_73] : memref<3x3x4x8xbf16, #tpu.memory_space<vmem>>, vector<1x1x4x8xbf16>
    %81 = vector.shape_cast %80 : vector<1x1x4x8xbf16> to vector<4x8xbf16>
    %cst_74 = arith.constant dense<0.000000e+00> : vector<256x8xf32>
    %82 = tpu.matmul %79, %81, %cst_74 {dimension_numbers = #tpu.dot_dimension_numbers<[1], [0], [0], [1], [0, 0, 1, 1], [], []>} : vector<256x4xbf16>, vector<4x8xbf16>, vector<256x8xf32> -> vector<256x8xf32>
    %83 = arith.addf %74, %82 : vector<256x8xf32>
    %c0_75 = arith.constant 0 : index
    %c0_76 = arith.constant 0 : index
    %84 = vector.load %arg4[%c0_75, %c0_76] : memref<1x8xf32, #tpu.memory_space<vmem>>, vector<1x8xf32>
    %85 = vector.broadcast %84 : vector<1x8xf32> to vector<256x8xf32>
    %86 = arith.mulf %83, %85 : vector<256x8xf32>
    %c0_77 = arith.constant 0 : index
    %c0_78 = arith.constant 0 : index
    %87 = vector.load %arg5[%c0_77, %c0_78] : memref<1x8xf32, #tpu.memory_space<vmem>>, vector<1x8xf32>
    %88 = vector.broadcast %87 : vector<1x8xf32> to vector<256x8xf32>
    %89 = arith.addf %86, %88 : vector<256x8xf32>
    %cst_79 = arith.constant 0.000000e+00 : f32
    %90 = vector.broadcast %cst_79 : f32 to vector<256x8xf32>
    %91 = arith.maximumf %89, %90 : vector<256x8xf32>
    %92 = arith.truncf %91 : vector<256x8xf32> to vector<256x8xbf16>
    %c0_80 = arith.constant 0 : index
    %c0_81 = arith.constant 0 : index
    %93 = vector.load %arg6[%c0_80, %c0_81] : memref<256x8xbf16, #tpu.memory_space<vmem>>, vector<256x8xbf16>
    tpu.vector_store %arg6[%c0_80, %c0_81], %92 {strides = array<i32>} : memref<256x8xbf16, #tpu.memory_space<vmem>>, vector<256x8xbf16>,
    return
  }
  func.func @transform_0(%arg0: i32, %arg1: i32) -> (i32, i32, i32, i32) {
    %c0_i32 = arith.constant 0 : i32
    %c0_i32_0 = arith.constant 0 : i32
    %c0_i32_1 = arith.constant 0 : i32
    %c0_i32_2 = arith.constant 0 : i32
    return %arg0, %c0_i32, %c0_i32_0, %c0_i32_1 : i32, i32, i32, i32
  }
  func.func @transform_1(%arg0: i32, %arg1: i32) -> (i32, i32, i32, i32) {
    %c0_i32 = arith.constant 0 : i32
    %c0_i32_0 = arith.constant 0 : i32
    %c0_i32_1 = arith.constant 0 : i32
    %c0_i32_2 = arith.constant 0 : i32
    %c0_i32_3 = arith.constant 0 : i32
    return %c0_i32, %c0_i32_0, %c0_i32_1, %c0_i32_2 : i32, i32, i32, i32
  }
  func.func @transform_2(%arg0: i32, %arg1: i32) -> (i32, i32) {
    %c0_i32 = arith.constant 0 : i32
    %c0_i32_0 = arith.constant 0 : i32
    %c0_i32_1 = arith.constant 0 : i32
    return %c0_i32, %c0_i32_0 : i32, i32
  }
  func.func @transform_3(%arg0: i32, %arg1: i32) -> (i32, i32) {
    %c0_i32 = arith.constant 0 : i32
    %c0_i32_0 = arith.constant 0 : i32
    %c0_i32_1 = arith.constant 0 : i32
    return %c0_i32, %c0_i32_0 : i32, i32
  }
  func.func @transform_4(%arg0: i32, %arg1: i32) -> (i32, i32) {
    %c1_i32 = arith.constant 1 : i32
    %0 = arith.muli %arg0, %c1_i32 : i32
    %1 = arith.addi %0, %arg1 : i32
    %c0_i32 = arith.constant 0 : i32
    %c0_i32_0 = arith.constant 0 : i32
    return %1, %c0_i32 : i32, i32
  }
}

module attributes {stable_mosaic.version = 11 : i64} {
  func.func @_conv3x3_bn_relu_kernel(%arg0: i32, %arg1: i32, %arg2: memref<1x18x18x8xbf16, #tpu.memory_space<vmem>>, %arg3: memref<3x3x8x8xbf16, #tpu.memory_space<vmem>>, %arg4: memref<1x8xf32, #tpu.memory_space<vmem>>, %arg5: memref<1x8xf32, #tpu.memory_space<vmem>>, %arg6: memref<256x8xbf16, #tpu.memory_space<vmem>>) attributes {dimension_semantics = [#tpu.dimension_semantics<parallel>, #tpu.dimension_semantics<parallel>], iteration_bounds = array<i64: 2, 1>, scalar_prefetch = 0 : i64, scratch_operands = 0 : i64, tpu.core_type = #tpu.core_type<tc>, window_params = [{transform_indices = @transform_0, window_bounds = array<i64: 1, 18, 18, 8>}, {pipeline_mode = #tpu.pipeline_mode<synchronous>, transform_indices = @transform_1, window_bounds = array<i64: 3, 3, 8, 8>}, {pipeline_mode = #tpu.pipeline_mode<synchronous>, transform_indices = @transform_2, window_bounds = array<i64: 1, 8>}, {pipeline_mode = #tpu.pipeline_mode<synchronous>, transform_indices = @transform_3, window_bounds = array<i64: 1, 8>}, {transform_indices = @transform_4, window_bounds = array<i64: 256, 8>}]} {
    %c16_i32 = arith.constant 16 : i32
    %0 = arith.muli %arg1, %c16_i32 : i32
    %1 = tpu.assume_multiple %0, 16 : i32
    %cst = arith.constant 0.000000e+00 : f32
    %2 = vector.broadcast %cst : f32 to vector<256x8xf32>
    %c0_i32 = arith.constant 0 : i32
    %3 = arith.addi %1, %c0_i32 : i32
    %c0 = arith.constant 0 : index
    %4 = arith.index_cast %3 : i32 to index
    %c0_0 = arith.constant 0 : index
    %c0_1 = arith.constant 0 : index
    %5 = vector.load %arg2[%c0, %4, %c0_0, %c0_1] : memref<1x18x18x8xbf16, #tpu.memory_space<vmem>>, vector<1x16x16x8xbf16>
    %6 = vector.shape_cast %5 : vector<1x16x16x8xbf16> to vector<16x16x8xbf16>
    %7 = vector.shape_cast %6 : vector<16x16x8xbf16> to vector<256x8xbf16>
    %c0_2 = arith.constant 0 : index
    %c0_3 = arith.constant 0 : index
    %c0_4 = arith.constant 0 : index
    %c0_5 = arith.constant 0 : index
    %8 = vector.load %arg3[%c0_2, %c0_3, %c0_4, %c0_5] : memref<3x3x8x8xbf16, #tpu.memory_space<vmem>>, vector<1x1x8x8xbf16>
    %9 = vector.shape_cast %8 : vector<1x1x8x8xbf16> to vector<8x8xbf16>
    %cst_6 = arith.constant dense<0.000000e+00> : vector<256x8xf32>
    %10 = tpu.matmul %7, %9, %cst_6 {dimension_numbers = #tpu.dot_dimension_numbers<[1], [0], [0], [1], [0, 0, 1, 1], [], []>} : vector<256x8xbf16>, vector<8x8xbf16>, vector<256x8xf32> -> vector<256x8xf32>
    %11 = arith.addf %2, %10 : vector<256x8xf32>
    %c0_i32_7 = arith.constant 0 : i32
    %12 = arith.addi %1, %c0_i32_7 : i32
    %c0_8 = arith.constant 0 : index
    %13 = arith.index_cast %12 : i32 to index
    %c1 = arith.constant 1 : index
    %c0_9 = arith.constant 0 : index
    %14 = vector.load %arg2[%c0_8, %13, %c1, %c0_9] : memref<1x18x18x8xbf16, #tpu.memory_space<vmem>>, vector<1x16x16x8xbf16>
    %15 = vector.shape_cast %14 : vector<1x16x16x8xbf16> to vector<16x16x8xbf16>
    %16 = vector.shape_cast %15 : vector<16x16x8xbf16> to vector<256x8xbf16>
    %c0_10 = arith.constant 0 : index
    %c1_11 = arith.constant 1 : index
    %c0_12 = arith.constant 0 : index
    %c0_13 = arith.constant 0 : index
    %17 = vector.load %arg3[%c0_10, %c1_11, %c0_12, %c0_13] : memref<3x3x8x8xbf16, #tpu.memory_space<vmem>>, vector<1x1x8x8xbf16>
    %18 = vector.shape_cast %17 : vector<1x1x8x8xbf16> to vector<8x8xbf16>
    %cst_14 = arith.constant dense<0.000000e+00> : vector<256x8xf32>
    %19 = tpu.matmul %16, %18, %cst_14 {dimension_numbers = #tpu.dot_dimension_numbers<[1], [0], [0], [1], [0, 0, 1, 1], [], []>} : vector<256x8xbf16>, vector<8x8xbf16>, vector<256x8xf32> -> vector<256x8xf32>
    %20 = arith.addf %11, %19 : vector<256x8xf32>
    %c0_i32_15 = arith.constant 0 : i32
    %21 = arith.addi %1, %c0_i32_15 : i32
    %c0_16 = arith.constant 0 : index
    %22 = arith.index_cast %21 : i32 to index
    %c2 = arith.constant 2 : index
    %c0_17 = arith.constant 0 : index
    %23 = vector.load %arg2[%c0_16, %22, %c2, %c0_17] : memref<1x18x18x8xbf16, #tpu.memory_space<vmem>>, vector<1x16x16x8xbf16>
    %24 = vector.shape_cast %23 : vector<1x16x16x8xbf16> to vector<16x16x8xbf16>
    %25 = vector.shape_cast %24 : vector<16x16x8xbf16> to vector<256x8xbf16>
    %c0_18 = arith.constant 0 : index
    %c2_19 = arith.constant 2 : index
    %c0_20 = arith.constant 0 : index
    %c0_21 = arith.constant 0 : index
    %26 = vector.load %arg3[%c0_18, %c2_19, %c0_20, %c0_21] : memref<3x3x8x8xbf16, #tpu.memory_space<vmem>>, vector<1x1x8x8xbf16>
    %27 = vector.shape_cast %26 : vector<1x1x8x8xbf16> to vector<8x8xbf16>
    %cst_22 = arith.constant dense<0.000000e+00> : vector<256x8xf32>
    %28 = tpu.matmul %25, %27, %cst_22 {dimension_numbers = #tpu.dot_dimension_numbers<[1], [0], [0], [1], [0, 0, 1, 1], [], []>} : vector<256x8xbf16>, vector<8x8xbf16>, vector<256x8xf32> -> vector<256x8xf32>
    %29 = arith.addf %20, %28 : vector<256x8xf32>
    %c1_i32 = arith.constant 1 : i32
    %30 = arith.addi %1, %c1_i32 : i32
    %c0_23 = arith.constant 0 : index
    %31 = arith.index_cast %30 : i32 to index
    %c0_24 = arith.constant 0 : index
    %c0_25 = arith.constant 0 : index
    %32 = vector.load %arg2[%c0_23, %31, %c0_24, %c0_25] : memref<1x18x18x8xbf16, #tpu.memory_space<vmem>>, vector<1x16x16x8xbf16>
    %33 = vector.shape_cast %32 : vector<1x16x16x8xbf16> to vector<16x16x8xbf16>
    %34 = vector.shape_cast %33 : vector<16x16x8xbf16> to vector<256x8xbf16>
    %c1_26 = arith.constant 1 : index
    %c0_27 = arith.constant 0 : index
    %c0_28 = arith.constant 0 : index
    %c0_29 = arith.constant 0 : index
    %35 = vector.load %arg3[%c1_26, %c0_27, %c0_28, %c0_29] : memref<3x3x8x8xbf16, #tpu.memory_space<vmem>>, vector<1x1x8x8xbf16>
    %36 = vector.shape_cast %35 : vector<1x1x8x8xbf16> to vector<8x8xbf16>
    %cst_30 = arith.constant dense<0.000000e+00> : vector<256x8xf32>
    %37 = tpu.matmul %34, %36, %cst_30 {dimension_numbers = #tpu.dot_dimension_numbers<[1], [0], [0], [1], [0, 0, 1, 1], [], []>} : vector<256x8xbf16>, vector<8x8xbf16>, vector<256x8xf32> -> vector<256x8xf32>
    %38 = arith.addf %29, %37 : vector<256x8xf32>
    %c1_i32_31 = arith.constant 1 : i32
    %39 = arith.addi %1, %c1_i32_31 : i32
    %c0_32 = arith.constant 0 : index
    %40 = arith.index_cast %39 : i32 to index
    %c1_33 = arith.constant 1 : index
    %c0_34 = arith.constant 0 : index
    %41 = vector.load %arg2[%c0_32, %40, %c1_33, %c0_34] : memref<1x18x18x8xbf16, #tpu.memory_space<vmem>>, vector<1x16x16x8xbf16>
    %42 = vector.shape_cast %41 : vector<1x16x16x8xbf16> to vector<16x16x8xbf16>
    %43 = vector.shape_cast %42 : vector<16x16x8xbf16> to vector<256x8xbf16>
    %c1_35 = arith.constant 1 : index
    %c1_36 = arith.constant 1 : index
    %c0_37 = arith.constant 0 : index
    %c0_38 = arith.constant 0 : index
    %44 = vector.load %arg3[%c1_35, %c1_36, %c0_37, %c0_38] : memref<3x3x8x8xbf16, #tpu.memory_space<vmem>>, vector<1x1x8x8xbf16>
    %45 = vector.shape_cast %44 : vector<1x1x8x8xbf16> to vector<8x8xbf16>
    %cst_39 = arith.constant dense<0.000000e+00> : vector<256x8xf32>
    %46 = tpu.matmul %43, %45, %cst_39 {dimension_numbers = #tpu.dot_dimension_numbers<[1], [0], [0], [1], [0, 0, 1, 1], [], []>} : vector<256x8xbf16>, vector<8x8xbf16>, vector<256x8xf32> -> vector<256x8xf32>
    %47 = arith.addf %38, %46 : vector<256x8xf32>
    %c1_i32_40 = arith.constant 1 : i32
    %48 = arith.addi %1, %c1_i32_40 : i32
    %c0_41 = arith.constant 0 : index
    %49 = arith.index_cast %48 : i32 to index
    %c2_42 = arith.constant 2 : index
    %c0_43 = arith.constant 0 : index
    %50 = vector.load %arg2[%c0_41, %49, %c2_42, %c0_43] : memref<1x18x18x8xbf16, #tpu.memory_space<vmem>>, vector<1x16x16x8xbf16>
    %51 = vector.shape_cast %50 : vector<1x16x16x8xbf16> to vector<16x16x8xbf16>
    %52 = vector.shape_cast %51 : vector<16x16x8xbf16> to vector<256x8xbf16>
    %c1_44 = arith.constant 1 : index
    %c2_45 = arith.constant 2 : index
    %c0_46 = arith.constant 0 : index
    %c0_47 = arith.constant 0 : index
    %53 = vector.load %arg3[%c1_44, %c2_45, %c0_46, %c0_47] : memref<3x3x8x8xbf16, #tpu.memory_space<vmem>>, vector<1x1x8x8xbf16>
    %54 = vector.shape_cast %53 : vector<1x1x8x8xbf16> to vector<8x8xbf16>
    %cst_48 = arith.constant dense<0.000000e+00> : vector<256x8xf32>
    %55 = tpu.matmul %52, %54, %cst_48 {dimension_numbers = #tpu.dot_dimension_numbers<[1], [0], [0], [1], [0, 0, 1, 1], [], []>} : vector<256x8xbf16>, vector<8x8xbf16>, vector<256x8xf32> -> vector<256x8xf32>
    %56 = arith.addf %47, %55 : vector<256x8xf32>
    %c2_i32 = arith.constant 2 : i32
    %57 = arith.addi %1, %c2_i32 : i32
    %c0_49 = arith.constant 0 : index
    %58 = arith.index_cast %57 : i32 to index
    %c0_50 = arith.constant 0 : index
    %c0_51 = arith.constant 0 : index
    %59 = vector.load %arg2[%c0_49, %58, %c0_50, %c0_51] : memref<1x18x18x8xbf16, #tpu.memory_space<vmem>>, vector<1x16x16x8xbf16>
    %60 = vector.shape_cast %59 : vector<1x16x16x8xbf16> to vector<16x16x8xbf16>
    %61 = vector.shape_cast %60 : vector<16x16x8xbf16> to vector<256x8xbf16>
    %c2_52 = arith.constant 2 : index
    %c0_53 = arith.constant 0 : index
    %c0_54 = arith.constant 0 : index
    %c0_55 = arith.constant 0 : index
    %62 = vector.load %arg3[%c2_52, %c0_53, %c0_54, %c0_55] : memref<3x3x8x8xbf16, #tpu.memory_space<vmem>>, vector<1x1x8x8xbf16>
    %63 = vector.shape_cast %62 : vector<1x1x8x8xbf16> to vector<8x8xbf16>
    %cst_56 = arith.constant dense<0.000000e+00> : vector<256x8xf32>
    %64 = tpu.matmul %61, %63, %cst_56 {dimension_numbers = #tpu.dot_dimension_numbers<[1], [0], [0], [1], [0, 0, 1, 1], [], []>} : vector<256x8xbf16>, vector<8x8xbf16>, vector<256x8xf32> -> vector<256x8xf32>
    %65 = arith.addf %56, %64 : vector<256x8xf32>
    %c2_i32_57 = arith.constant 2 : i32
    %66 = arith.addi %1, %c2_i32_57 : i32
    %c0_58 = arith.constant 0 : index
    %67 = arith.index_cast %66 : i32 to index
    %c1_59 = arith.constant 1 : index
    %c0_60 = arith.constant 0 : index
    %68 = vector.load %arg2[%c0_58, %67, %c1_59, %c0_60] : memref<1x18x18x8xbf16, #tpu.memory_space<vmem>>, vector<1x16x16x8xbf16>
    %69 = vector.shape_cast %68 : vector<1x16x16x8xbf16> to vector<16x16x8xbf16>
    %70 = vector.shape_cast %69 : vector<16x16x8xbf16> to vector<256x8xbf16>
    %c2_61 = arith.constant 2 : index
    %c1_62 = arith.constant 1 : index
    %c0_63 = arith.constant 0 : index
    %c0_64 = arith.constant 0 : index
    %71 = vector.load %arg3[%c2_61, %c1_62, %c0_63, %c0_64] : memref<3x3x8x8xbf16, #tpu.memory_space<vmem>>, vector<1x1x8x8xbf16>
    %72 = vector.shape_cast %71 : vector<1x1x8x8xbf16> to vector<8x8xbf16>
    %cst_65 = arith.constant dense<0.000000e+00> : vector<256x8xf32>
    %73 = tpu.matmul %70, %72, %cst_65 {dimension_numbers = #tpu.dot_dimension_numbers<[1], [0], [0], [1], [0, 0, 1, 1], [], []>} : vector<256x8xbf16>, vector<8x8xbf16>, vector<256x8xf32> -> vector<256x8xf32>
    %74 = arith.addf %65, %73 : vector<256x8xf32>
    %c2_i32_66 = arith.constant 2 : i32
    %75 = arith.addi %1, %c2_i32_66 : i32
    %c0_67 = arith.constant 0 : index
    %76 = arith.index_cast %75 : i32 to index
    %c2_68 = arith.constant 2 : index
    %c0_69 = arith.constant 0 : index
    %77 = vector.load %arg2[%c0_67, %76, %c2_68, %c0_69] : memref<1x18x18x8xbf16, #tpu.memory_space<vmem>>, vector<1x16x16x8xbf16>
    %78 = vector.shape_cast %77 : vector<1x16x16x8xbf16> to vector<16x16x8xbf16>
    %79 = vector.shape_cast %78 : vector<16x16x8xbf16> to vector<256x8xbf16>
    %c2_70 = arith.constant 2 : index
    %c2_71 = arith.constant 2 : index
    %c0_72 = arith.constant 0 : index
    %c0_73 = arith.constant 0 : index
    %80 = vector.load %arg3[%c2_70, %c2_71, %c0_72, %c0_73] : memref<3x3x8x8xbf16, #tpu.memory_space<vmem>>, vector<1x1x8x8xbf16>
    %81 = vector.shape_cast %80 : vector<1x1x8x8xbf16> to vector<8x8xbf16>
    %cst_74 = arith.constant dense<0.000000e+00> : vector<256x8xf32>
    %82 = tpu.matmul %79, %81, %cst_74 {dimension_numbers = #tpu.dot_dimension_numbers<[1], [0], [0], [1], [0, 0, 1, 1], [], []>} : vector<256x8xbf16>, vector<8x8xbf16>, vector<256x8xf32> -> vector<256x8xf32>
    %83 = arith.addf %74, %82 : vector<256x8xf32>
    %c0_75 = arith.constant 0 : index
    %c0_76 = arith.constant 0 : index
    %84 = vector.load %arg4[%c0_75, %c0_76] : memref<1x8xf32, #tpu.memory_space<vmem>>, vector<1x8xf32>
    %85 = vector.broadcast %84 : vector<1x8xf32> to vector<256x8xf32>
    %86 = arith.mulf %83, %85 : vector<256x8xf32>
    %c0_77 = arith.constant 0 : index
    %c0_78 = arith.constant 0 : index
    %87 = vector.load %arg5[%c0_77, %c0_78] : memref<1x8xf32, #tpu.memory_space<vmem>>, vector<1x8xf32>
    %88 = vector.broadcast %87 : vector<1x8xf32> to vector<256x8xf32>
    %89 = arith.addf %86, %88 : vector<256x8xf32>
    %cst_79 = arith.constant 0.000000e+00 : f32
    %90 = vector.broadcast %cst_79 : f32 to vector<256x8xf32>
    %91 = arith.maximumf %89, %90 : vector<256x8xf32>
    %92 = arith.truncf %91 : vector<256x8xf32> to vector<256x8xbf16>
    %c0_80 = arith.constant 0 : index
    %c0_81 = arith.constant 0 : index
    %93 = vector.load %arg6[%c0_80, %c0_81] : memref<256x8xbf16, #tpu.memory_space<vmem>>, vector<256x8xbf16>
    tpu.vector_store %arg6[%c0_80, %c0_81], %92 {strides = array<i32>} : memref<256x8xbf16, #tpu.memory_space<vmem>>, vector<256x8xbf16>,
    return
  }
  func.func @transform_0(%arg0: i32, %arg1: i32) -> (i32, i32, i32, i32) {
    %c0_i32 = arith.constant 0 : i32
    %c0_i32_0 = arith.constant 0 : i32
    %c0_i32_1 = arith.constant 0 : i32
    %c0_i32_2 = arith.constant 0 : i32
    return %arg0, %c0_i32, %c0_i32_0, %c0_i32_1 : i32, i32, i32, i32
  }
  func.func @transform_1(%arg0: i32, %arg1: i32) -> (i32, i32, i32, i32) {
    %c0_i32 = arith.constant 0 : i32
    %c0_i32_0 = arith.constant 0 : i32
    %c0_i32_1 = arith.constant 0 : i32
    %c0_i32_2 = arith.constant 0 : i32
    %c0_i32_3 = arith.constant 0 : i32
    return %c0_i32, %c0_i32_0, %c0_i32_1, %c0_i32_2 : i32, i32, i32, i32
  }
  func.func @transform_2(%arg0: i32, %arg1: i32) -> (i32, i32) {
    %c0_i32 = arith.constant 0 : i32
    %c0_i32_0 = arith.constant 0 : i32
    %c0_i32_1 = arith.constant 0 : i32
    return %c0_i32, %c0_i32_0 : i32, i32
  }
  func.func @transform_3(%arg0: i32, %arg1: i32) -> (i32, i32) {
    %c0_i32 = arith.constant 0 : i32
    %c0_i32_0 = arith.constant 0 : i32
    %c0_i32_1 = arith.constant 0 : i32
    return %c0_i32, %c0_i32_0 : i32, i32
  }
  func.func @transform_4(%arg0: i32, %arg1: i32) -> (i32, i32) {
    %c1_i32 = arith.constant 1 : i32
    %0 = arith.muli %arg0, %c1_i32 : i32
    %1 = arith.addi %0, %arg1 : i32
    %c0_i32 = arith.constant 0 : i32
    %c0_i32_0 = arith.constant 0 : i32
    return %1, %c0_i32 : i32, i32
  }
}

module attributes {stable_mosaic.version = 11 : i64} {
  func.func @_matmul_bn_relu_kernel(%arg0: i32, %arg1: memref<512x8xbf16, #tpu.memory_space<vmem>>, %arg2: memref<8x8xbf16, #tpu.memory_space<vmem>>, %arg3: memref<1x8xf32, #tpu.memory_space<vmem>>, %arg4: memref<1x8xf32, #tpu.memory_space<vmem>>, %arg5: memref<512x8xbf16, #tpu.memory_space<vmem>>) attributes {dimension_semantics = [#tpu.dimension_semantics<parallel>], iteration_bounds = array<i64: 1>, scalar_prefetch = 0 : i64, scratch_operands = 0 : i64, tpu.core_type = #tpu.core_type<tc>, window_params = [{transform_indices = @transform_0, window_bounds = array<i64: 512, 8>}, {pipeline_mode = #tpu.pipeline_mode<synchronous>, transform_indices = @transform_1, window_bounds = array<i64: 8, 8>}, {pipeline_mode = #tpu.pipeline_mode<synchronous>, transform_indices = @transform_2, window_bounds = array<i64: 1, 8>}, {pipeline_mode = #tpu.pipeline_mode<synchronous>, transform_indices = @transform_3, window_bounds = array<i64: 1, 8>}, {transform_indices = @transform_4, window_bounds = array<i64: 512, 8>}]} {
    %c0 = arith.constant 0 : index
    %c0_0 = arith.constant 0 : index
    %0 = vector.load %arg1[%c0, %c0_0] : memref<512x8xbf16, #tpu.memory_space<vmem>>, vector<512x8xbf16>
    %c0_1 = arith.constant 0 : index
    %c0_2 = arith.constant 0 : index
    %1 = vector.load %arg2[%c0_1, %c0_2] : memref<8x8xbf16, #tpu.memory_space<vmem>>, vector<8x8xbf16>
    %cst = arith.constant dense<0.000000e+00> : vector<512x8xf32>
    %2 = tpu.matmul %0, %1, %cst {dimension_numbers = #tpu.dot_dimension_numbers<[1], [0], [0], [1], [0, 0, 1, 1], [], []>} : vector<512x8xbf16>, vector<8x8xbf16>, vector<512x8xf32> -> vector<512x8xf32>
    %c0_3 = arith.constant 0 : index
    %c0_4 = arith.constant 0 : index
    %3 = vector.load %arg3[%c0_3, %c0_4] : memref<1x8xf32, #tpu.memory_space<vmem>>, vector<1x8xf32>
    %4 = vector.broadcast %3 : vector<1x8xf32> to vector<512x8xf32>
    %5 = arith.mulf %2, %4 : vector<512x8xf32>
    %c0_5 = arith.constant 0 : index
    %c0_6 = arith.constant 0 : index
    %6 = vector.load %arg4[%c0_5, %c0_6] : memref<1x8xf32, #tpu.memory_space<vmem>>, vector<1x8xf32>
    %7 = vector.broadcast %6 : vector<1x8xf32> to vector<512x8xf32>
    %8 = arith.addf %5, %7 : vector<512x8xf32>
    %cst_7 = arith.constant 0.000000e+00 : f32
    %9 = vector.broadcast %cst_7 : f32 to vector<512x8xf32>
    %10 = arith.maximumf %8, %9 : vector<512x8xf32>
    %11 = arith.truncf %10 : vector<512x8xf32> to vector<512x8xbf16>
    %c0_8 = arith.constant 0 : index
    %c0_9 = arith.constant 0 : index
    %12 = vector.load %arg5[%c0_8, %c0_9] : memref<512x8xbf16, #tpu.memory_space<vmem>>, vector<512x8xbf16>
    tpu.vector_store %arg5[%c0_8, %c0_9], %11 {strides = array<i32>} : memref<512x8xbf16, #tpu.memory_space<vmem>>, vector<512x8xbf16>,
    return
  }
  func.func @transform_0(%arg0: i32) -> (i32, i32) {
    %c0_i32 = arith.constant 0 : i32
    %c0_i32_0 = arith.constant 0 : i32
    return %arg0, %c0_i32 : i32, i32
  }
  func.func @transform_1(%arg0: i32) -> (i32, i32) {
    %c0_i32 = arith.constant 0 : i32
    %c0_i32_0 = arith.constant 0 : i32
    %c0_i32_1 = arith.constant 0 : i32
    return %c0_i32, %c0_i32_0 : i32, i32
  }
  func.func @transform_2(%arg0: i32) -> (i32, i32) {
    %c0_i32 = arith.constant 0 : i32
    %c0_i32_0 = arith.constant 0 : i32
    %c0_i32_1 = arith.constant 0 : i32
    return %c0_i32, %c0_i32_0 : i32, i32
  }
  func.func @transform_3(%arg0: i32) -> (i32, i32) {
    %c0_i32 = arith.constant 0 : i32
    %c0_i32_0 = arith.constant 0 : i32
    %c0_i32_1 = arith.constant 0 : i32
    return %c0_i32, %c0_i32_0 : i32, i32
  }
  func.func @transform_4(%arg0: i32) -> (i32, i32) {
    %c0_i32 = arith.constant 0 : i32
    %c0_i32_0 = arith.constant 0 : i32
    return %arg0, %c0_i32 : i32, i32
  }
}

module attributes {stable_mosaic.version = 11 : i64} {
  func.func @_conv3x3_bn_relu_kernel(%arg0: i32, %arg1: i32, %arg2: memref<4x9x9x8xbf16, #tpu.memory_space<vmem>>, %arg3: memref<3x3x8x16xbf16, #tpu.memory_space<vmem>>, %arg4: memref<1x16xf32, #tpu.memory_space<vmem>>, %arg5: memref<1x16xf32, #tpu.memory_space<vmem>>, %arg6: memref<64x16xbf16, #tpu.memory_space<vmem>>) attributes {dimension_semantics = [#tpu.dimension_semantics<parallel>, #tpu.dimension_semantics<parallel>], iteration_bounds = array<i64: 2, 1>, scalar_prefetch = 0 : i64, scratch_operands = 0 : i64, tpu.core_type = #tpu.core_type<tc>, window_params = [{transform_indices = @transform_0, window_bounds = array<i64: 4, 9, 9, 8>}, {pipeline_mode = #tpu.pipeline_mode<synchronous>, transform_indices = @transform_1, window_bounds = array<i64: 3, 3, 8, 16>}, {pipeline_mode = #tpu.pipeline_mode<synchronous>, transform_indices = @transform_2, window_bounds = array<i64: 1, 16>}, {pipeline_mode = #tpu.pipeline_mode<synchronous>, transform_indices = @transform_3, window_bounds = array<i64: 1, 16>}, {transform_indices = @transform_4, window_bounds = array<i64: 64, 16>}]} {
    %c8_i32 = arith.constant 8 : i32
    %0 = arith.muli %arg1, %c8_i32 : i32
    %1 = tpu.assume_multiple %0, 8 : i32
    %cst = arith.constant 0.000000e+00 : f32
    %2 = vector.broadcast %cst : f32 to vector<64x16xf32>
    %c0_i32 = arith.constant 0 : i32
    %3 = arith.addi %1, %c0_i32 : i32
    %c0 = arith.constant 0 : index
    %4 = arith.index_cast %3 : i32 to index
    %c0_0 = arith.constant 0 : index
    %c0_1 = arith.constant 0 : index
    %5 = vector.load %arg2[%c0, %4, %c0_0, %c0_1] : memref<4x9x9x8xbf16, #tpu.memory_space<vmem>>, vector<1x8x8x8xbf16>
    %6 = vector.shape_cast %5 : vector<1x8x8x8xbf16> to vector<8x8x8xbf16>
    %7 = arith.extf %6 : vector<8x8x8xbf16> to vector<8x8x8xf32>
    %8 = vector.shape_cast %7 : vector<8x8x8xf32> to vector<64x8xf32>
    %9 = arith.truncf %8 : vector<64x8xf32> to vector<64x8xbf16>
    %c0_2 = arith.constant 0 : index
    %c0_3 = arith.constant 0 : index
    %c0_4 = arith.constant 0 : index
    %c0_5 = arith.constant 0 : index
    %10 = vector.load %arg3[%c0_2, %c0_3, %c0_4, %c0_5] : memref<3x3x8x16xbf16, #tpu.memory_space<vmem>>, vector<1x1x8x16xbf16>
    %11 = vector.shape_cast %10 : vector<1x1x8x16xbf16> to vector<8x16xbf16>
    %cst_6 = arith.constant dense<0.000000e+00> : vector<64x16xf32>
    %12 = tpu.matmul %9, %11, %cst_6 {dimension_numbers = #tpu.dot_dimension_numbers<[1], [0], [0], [1], [0, 0, 1, 1], [], []>} : vector<64x8xbf16>, vector<8x16xbf16>, vector<64x16xf32> -> vector<64x16xf32>
    %13 = arith.addf %2, %12 : vector<64x16xf32>
    %c0_i32_7 = arith.constant 0 : i32
    %14 = arith.addi %1, %c0_i32_7 : i32
    %c1 = arith.constant 1 : index
    %15 = arith.index_cast %14 : i32 to index
    %c0_8 = arith.constant 0 : index
    %c0_9 = arith.constant 0 : index
    %16 = vector.load %arg2[%c1, %15, %c0_8, %c0_9] : memref<4x9x9x8xbf16, #tpu.memory_space<vmem>>, vector<1x8x8x8xbf16>
    %17 = vector.shape_cast %16 : vector<1x8x8x8xbf16> to vector<8x8x8xbf16>
    %18 = arith.extf %17 : vector<8x8x8xbf16> to vector<8x8x8xf32>
    %19 = vector.shape_cast %18 : vector<8x8x8xf32> to vector<64x8xf32>
    %20 = arith.truncf %19 : vector<64x8xf32> to vector<64x8xbf16>
    %c0_10 = arith.constant 0 : index
    %c1_11 = arith.constant 1 : index
    %c0_12 = arith.constant 0 : index
    %c0_13 = arith.constant 0 : index
    %21 = vector.load %arg3[%c0_10, %c1_11, %c0_12, %c0_13] : memref<3x3x8x16xbf16, #tpu.memory_space<vmem>>, vector<1x1x8x16xbf16>
    %22 = vector.shape_cast %21 : vector<1x1x8x16xbf16> to vector<8x16xbf16>
    %cst_14 = arith.constant dense<0.000000e+00> : vector<64x16xf32>
    %23 = tpu.matmul %20, %22, %cst_14 {dimension_numbers = #tpu.dot_dimension_numbers<[1], [0], [0], [1], [0, 0, 1, 1], [], []>} : vector<64x8xbf16>, vector<8x16xbf16>, vector<64x16xf32> -> vector<64x16xf32>
    %24 = arith.addf %13, %23 : vector<64x16xf32>
    %c0_i32_15 = arith.constant 0 : i32
    %25 = arith.addi %1, %c0_i32_15 : i32
    %c0_16 = arith.constant 0 : index
    %26 = arith.index_cast %25 : i32 to index
    %c1_17 = arith.constant 1 : index
    %c0_18 = arith.constant 0 : index
    %27 = vector.load %arg2[%c0_16, %26, %c1_17, %c0_18] : memref<4x9x9x8xbf16, #tpu.memory_space<vmem>>, vector<1x8x8x8xbf16>
    %28 = vector.shape_cast %27 : vector<1x8x8x8xbf16> to vector<8x8x8xbf16>
    %29 = arith.extf %28 : vector<8x8x8xbf16> to vector<8x8x8xf32>
    %30 = vector.shape_cast %29 : vector<8x8x8xf32> to vector<64x8xf32>
    %31 = arith.truncf %30 : vector<64x8xf32> to vector<64x8xbf16>
    %c0_19 = arith.constant 0 : index
    %c2 = arith.constant 2 : index
    %c0_20 = arith.constant 0 : index
    %c0_21 = arith.constant 0 : index
    %32 = vector.load %arg3[%c0_19, %c2, %c0_20, %c0_21] : memref<3x3x8x16xbf16, #tpu.memory_space<vmem>>, vector<1x1x8x16xbf16>
    %33 = vector.shape_cast %32 : vector<1x1x8x16xbf16> to vector<8x16xbf16>
    %cst_22 = arith.constant dense<0.000000e+00> : vector<64x16xf32>
    %34 = tpu.matmul %31, %33, %cst_22 {dimension_numbers = #tpu.dot_dimension_numbers<[1], [0], [0], [1], [0, 0, 1, 1], [], []>} : vector<64x8xbf16>, vector<8x16xbf16>, vector<64x16xf32> -> vector<64x16xf32>
    %35 = arith.addf %24, %34 : vector<64x16xf32>
    %c0_i32_23 = arith.constant 0 : i32
    %36 = arith.addi %1, %c0_i32_23 : i32
    %c2_24 = arith.constant 2 : index
    %37 = arith.index_cast %36 : i32 to index
    %c0_25 = arith.constant 0 : index
    %c0_26 = arith.constant 0 : index
    %38 = vector.load %arg2[%c2_24, %37, %c0_25, %c0_26] : memref<4x9x9x8xbf16, #tpu.memory_space<vmem>>, vector<1x8x8x8xbf16>
    %39 = vector.shape_cast %38 : vector<1x8x8x8xbf16> to vector<8x8x8xbf16>
    %40 = arith.extf %39 : vector<8x8x8xbf16> to vector<8x8x8xf32>
    %41 = vector.shape_cast %40 : vector<8x8x8xf32> to vector<64x8xf32>
    %42 = arith.truncf %41 : vector<64x8xf32> to vector<64x8xbf16>
    %c1_27 = arith.constant 1 : index
    %c0_28 = arith.constant 0 : index
    %c0_29 = arith.constant 0 : index
    %c0_30 = arith.constant 0 : index
    %43 = vector.load %arg3[%c1_27, %c0_28, %c0_29, %c0_30] : memref<3x3x8x16xbf16, #tpu.memory_space<vmem>>, vector<1x1x8x16xbf16>
    %44 = vector.shape_cast %43 : vector<1x1x8x16xbf16> to vector<8x16xbf16>
    %cst_31 = arith.constant dense<0.000000e+00> : vector<64x16xf32>
    %45 = tpu.matmul %42, %44, %cst_31 {dimension_numbers = #tpu.dot_dimension_numbers<[1], [0], [0], [1], [0, 0, 1, 1], [], []>} : vector<64x8xbf16>, vector<8x16xbf16>, vector<64x16xf32> -> vector<64x16xf32>
    %46 = arith.addf %35, %45 : vector<64x16xf32>
    %c0_i32_32 = arith.constant 0 : i32
    %47 = arith.addi %1, %c0_i32_32 : i32
    %c3 = arith.constant 3 : index
    %48 = arith.index_cast %47 : i32 to index
    %c0_33 = arith.constant 0 : index
    %c0_34 = arith.constant 0 : index
    %49 = vector.load %arg2[%c3, %48, %c0_33, %c0_34] : memref<4x9x9x8xbf16, #tpu.memory_space<vmem>>, vector<1x8x8x8xbf16>
    %50 = vector.shape_cast %49 : vector<1x8x8x8xbf16> to vector<8x8x8xbf16>
    %51 = arith.extf %50 : vector<8x8x8xbf16> to vector<8x8x8xf32>
    %52 = vector.shape_cast %51 : vector<8x8x8xf32> to vector<64x8xf32>
    %53 = arith.truncf %52 : vector<64x8xf32> to vector<64x8xbf16>
    %c1_35 = arith.constant 1 : index
    %c1_36 = arith.constant 1 : index
    %c0_37 = arith.constant 0 : index
    %c0_38 = arith.constant 0 : index
    %54 = vector.load %arg3[%c1_35, %c1_36, %c0_37, %c0_38] : memref<3x3x8x16xbf16, #tpu.memory_space<vmem>>, vector<1x1x8x16xbf16>
    %55 = vector.shape_cast %54 : vector<1x1x8x16xbf16> to vector<8x16xbf16>
    %cst_39 = arith.constant dense<0.000000e+00> : vector<64x16xf32>
    %56 = tpu.matmul %53, %55, %cst_39 {dimension_numbers = #tpu.dot_dimension_numbers<[1], [0], [0], [1], [0, 0, 1, 1], [], []>} : vector<64x8xbf16>, vector<8x16xbf16>, vector<64x16xf32> -> vector<64x16xf32>
    %57 = arith.addf %46, %56 : vector<64x16xf32>
    %c0_i32_40 = arith.constant 0 : i32
    %58 = arith.addi %1, %c0_i32_40 : i32
    %c2_41 = arith.constant 2 : index
    %59 = arith.index_cast %58 : i32 to index
    %c1_42 = arith.constant 1 : index
    %c0_43 = arith.constant 0 : index
    %60 = vector.load %arg2[%c2_41, %59, %c1_42, %c0_43] : memref<4x9x9x8xbf16, #tpu.memory_space<vmem>>, vector<1x8x8x8xbf16>
    %61 = vector.shape_cast %60 : vector<1x8x8x8xbf16> to vector<8x8x8xbf16>
    %62 = arith.extf %61 : vector<8x8x8xbf16> to vector<8x8x8xf32>
    %63 = vector.shape_cast %62 : vector<8x8x8xf32> to vector<64x8xf32>
    %64 = arith.truncf %63 : vector<64x8xf32> to vector<64x8xbf16>
    %c1_44 = arith.constant 1 : index
    %c2_45 = arith.constant 2 : index
    %c0_46 = arith.constant 0 : index
    %c0_47 = arith.constant 0 : index
    %65 = vector.load %arg3[%c1_44, %c2_45, %c0_46, %c0_47] : memref<3x3x8x16xbf16, #tpu.memory_space<vmem>>, vector<1x1x8x16xbf16>
    %66 = vector.shape_cast %65 : vector<1x1x8x16xbf16> to vector<8x16xbf16>
    %cst_48 = arith.constant dense<0.000000e+00> : vector<64x16xf32>
    %67 = tpu.matmul %64, %66, %cst_48 {dimension_numbers = #tpu.dot_dimension_numbers<[1], [0], [0], [1], [0, 0, 1, 1], [], []>} : vector<64x8xbf16>, vector<8x16xbf16>, vector<64x16xf32> -> vector<64x16xf32>
    %68 = arith.addf %57, %67 : vector<64x16xf32>
    %c1_i32 = arith.constant 1 : i32
    %69 = arith.addi %1, %c1_i32 : i32
    %c0_49 = arith.constant 0 : index
    %70 = arith.index_cast %69 : i32 to index
    %c0_50 = arith.constant 0 : index
    %c0_51 = arith.constant 0 : index
    %71 = vector.load %arg2[%c0_49, %70, %c0_50, %c0_51] : memref<4x9x9x8xbf16, #tpu.memory_space<vmem>>, vector<1x8x8x8xbf16>
    %72 = vector.shape_cast %71 : vector<1x8x8x8xbf16> to vector<8x8x8xbf16>
    %73 = arith.extf %72 : vector<8x8x8xbf16> to vector<8x8x8xf32>
    %74 = vector.shape_cast %73 : vector<8x8x8xf32> to vector<64x8xf32>
    %75 = arith.truncf %74 : vector<64x8xf32> to vector<64x8xbf16>
    %c2_52 = arith.constant 2 : index
    %c0_53 = arith.constant 0 : index
    %c0_54 = arith.constant 0 : index
    %c0_55 = arith.constant 0 : index
    %76 = vector.load %arg3[%c2_52, %c0_53, %c0_54, %c0_55] : memref<3x3x8x16xbf16, #tpu.memory_space<vmem>>, vector<1x1x8x16xbf16>
    %77 = vector.shape_cast %76 : vector<1x1x8x16xbf16> to vector<8x16xbf16>
    %cst_56 = arith.constant dense<0.000000e+00> : vector<64x16xf32>
    %78 = tpu.matmul %75, %77, %cst_56 {dimension_numbers = #tpu.dot_dimension_numbers<[1], [0], [0], [1], [0, 0, 1, 1], [], []>} : vector<64x8xbf16>, vector<8x16xbf16>, vector<64x16xf32> -> vector<64x16xf32>
    %79 = arith.addf %68, %78 : vector<64x16xf32>
    %c1_i32_57 = arith.constant 1 : i32
    %80 = arith.addi %1, %c1_i32_57 : i32
    %c1_58 = arith.constant 1 : index
    %81 = arith.index_cast %80 : i32 to index
    %c0_59 = arith.constant 0 : index
    %c0_60 = arith.constant 0 : index
    %82 = vector.load %arg2[%c1_58, %81, %c0_59, %c0_60] : memref<4x9x9x8xbf16, #tpu.memory_space<vmem>>, vector<1x8x8x8xbf16>
    %83 = vector.shape_cast %82 : vector<1x8x8x8xbf16> to vector<8x8x8xbf16>
    %84 = arith.extf %83 : vector<8x8x8xbf16> to vector<8x8x8xf32>
    %85 = vector.shape_cast %84 : vector<8x8x8xf32> to vector<64x8xf32>
    %86 = arith.truncf %85 : vector<64x8xf32> to vector<64x8xbf16>
    %c2_61 = arith.constant 2 : index
    %c1_62 = arith.constant 1 : index
    %c0_63 = arith.constant 0 : index
    %c0_64 = arith.constant 0 : index
    %87 = vector.load %arg3[%c2_61, %c1_62, %c0_63, %c0_64] : memref<3x3x8x16xbf16, #tpu.memory_space<vmem>>, vector<1x1x8x16xbf16>
    %88 = vector.shape_cast %87 : vector<1x1x8x16xbf16> to vector<8x16xbf16>
    %cst_65 = arith.constant dense<0.000000e+00> : vector<64x16xf32>
    %89 = tpu.matmul %86, %88, %cst_65 {dimension_numbers = #tpu.dot_dimension_numbers<[1], [0], [0], [1], [0, 0, 1, 1], [], []>} : vector<64x8xbf16>, vector<8x16xbf16>, vector<64x16xf32> -> vector<64x16xf32>
    %90 = arith.addf %79, %89 : vector<64x16xf32>
    %c1_i32_66 = arith.constant 1 : i32
    %91 = arith.addi %1, %c1_i32_66 : i32
    %c0_67 = arith.constant 0 : index
    %92 = arith.index_cast %91 : i32 to index
    %c1_68 = arith.constant 1 : index
    %c0_69 = arith.constant 0 : index
    %93 = vector.load %arg2[%c0_67, %92, %c1_68, %c0_69] : memref<4x9x9x8xbf16, #tpu.memory_space<vmem>>, vector<1x8x8x8xbf16>
    %94 = vector.shape_cast %93 : vector<1x8x8x8xbf16> to vector<8x8x8xbf16>
    %95 = arith.extf %94 : vector<8x8x8xbf16> to vector<8x8x8xf32>
    %96 = vector.shape_cast %95 : vector<8x8x8xf32> to vector<64x8xf32>
    %97 = arith.truncf %96 : vector<64x8xf32> to vector<64x8xbf16>
    %c2_70 = arith.constant 2 : index
    %c2_71 = arith.constant 2 : index
    %c0_72 = arith.constant 0 : index
    %c0_73 = arith.constant 0 : index
    %98 = vector.load %arg3[%c2_70, %c2_71, %c0_72, %c0_73] : memref<3x3x8x16xbf16, #tpu.memory_space<vmem>>, vector<1x1x8x16xbf16>
    %99 = vector.shape_cast %98 : vector<1x1x8x16xbf16> to vector<8x16xbf16>
    %cst_74 = arith.constant dense<0.000000e+00> : vector<64x16xf32>
    %100 = tpu.matmul %97, %99, %cst_74 {dimension_numbers = #tpu.dot_dimension_numbers<[1], [0], [0], [1], [0, 0, 1, 1], [], []>} : vector<64x8xbf16>, vector<8x16xbf16>, vector<64x16xf32> -> vector<64x16xf32>
    %101 = arith.addf %90, %100 : vector<64x16xf32>
    %c0_75 = arith.constant 0 : index
    %c0_76 = arith.constant 0 : index
    %102 = vector.load %arg4[%c0_75, %c0_76] : memref<1x16xf32, #tpu.memory_space<vmem>>, vector<1x16xf32>
    %103 = vector.broadcast %102 : vector<1x16xf32> to vector<64x16xf32>
    %104 = arith.mulf %101, %103 : vector<64x16xf32>
    %c0_77 = arith.constant 0 : index
    %c0_78 = arith.constant 0 : index
    %105 = vector.load %arg5[%c0_77, %c0_78] : memref<1x16xf32, #tpu.memory_space<vmem>>, vector<1x16xf32>
    %106 = vector.broadcast %105 : vector<1x16xf32> to vector<64x16xf32>
    %107 = arith.addf %104, %106 : vector<64x16xf32>
    %cst_79 = arith.constant 0.000000e+00 : f32
    %108 = vector.broadcast %cst_79 : f32 to vector<64x16xf32>
    %109 = arith.maximumf %107, %108 : vector<64x16xf32>
    %110 = arith.truncf %109 : vector<64x16xf32> to vector<64x16xbf16>
    %c0_80 = arith.constant 0 : index
    %c0_81 = arith.constant 0 : index
    %111 = vector.load %arg6[%c0_80, %c0_81] : memref<64x16xbf16, #tpu.memory_space<vmem>>, vector<64x16xbf16>
    tpu.vector_store %arg6[%c0_80, %c0_81], %110 {strides = array<i32>} : memref<64x16xbf16, #tpu.memory_space<vmem>>, vector<64x16xbf16>,
    return
  }
  func.func @transform_0(%arg0: i32, %arg1: i32) -> (i32, i32, i32, i32) {
    %c0_i32 = arith.constant 0 : i32
    %c0_i32_0 = arith.constant 0 : i32
    %c0_i32_1 = arith.constant 0 : i32
    %c0_i32_2 = arith.constant 0 : i32
    return %arg0, %c0_i32, %c0_i32_0, %c0_i32_1 : i32, i32, i32, i32
  }
  func.func @transform_1(%arg0: i32, %arg1: i32) -> (i32, i32, i32, i32) {
    %c0_i32 = arith.constant 0 : i32
    %c0_i32_0 = arith.constant 0 : i32
    %c0_i32_1 = arith.constant 0 : i32
    %c0_i32_2 = arith.constant 0 : i32
    %c0_i32_3 = arith.constant 0 : i32
    return %c0_i32, %c0_i32_0, %c0_i32_1, %c0_i32_2 : i32, i32, i32, i32
  }
  func.func @transform_2(%arg0: i32, %arg1: i32) -> (i32, i32) {
    %c0_i32 = arith.constant 0 : i32
    %c0_i32_0 = arith.constant 0 : i32
    %c0_i32_1 = arith.constant 0 : i32
    return %c0_i32, %c0_i32_0 : i32, i32
  }
  func.func @transform_3(%arg0: i32, %arg1: i32) -> (i32, i32) {
    %c0_i32 = arith.constant 0 : i32
    %c0_i32_0 = arith.constant 0 : i32
    %c0_i32_1 = arith.constant 0 : i32
    return %c0_i32, %c0_i32_0 : i32, i32
  }
  func.func @transform_4(%arg0: i32, %arg1: i32) -> (i32, i32) {
    %c1_i32 = arith.constant 1 : i32
    %0 = arith.muli %arg0, %c1_i32 : i32
    %1 = arith.addi %0, %arg1 : i32
    %c0_i32 = arith.constant 0 : i32
    %c0_i32_0 = arith.constant 0 : i32
    return %1, %c0_i32 : i32, i32
  }
}

module attributes {stable_mosaic.version = 11 : i64} {
  func.func @_conv3x3_bn_relu_kernel(%arg0: i32, %arg1: i32, %arg2: memref<1x10x10x16xbf16, #tpu.memory_space<vmem>>, %arg3: memref<3x3x16x16xbf16, #tpu.memory_space<vmem>>, %arg4: memref<1x16xf32, #tpu.memory_space<vmem>>, %arg5: memref<1x16xf32, #tpu.memory_space<vmem>>, %arg6: memref<64x16xbf16, #tpu.memory_space<vmem>>) attributes {dimension_semantics = [#tpu.dimension_semantics<parallel>, #tpu.dimension_semantics<parallel>], iteration_bounds = array<i64: 2, 1>, scalar_prefetch = 0 : i64, scratch_operands = 0 : i64, tpu.core_type = #tpu.core_type<tc>, window_params = [{transform_indices = @transform_0, window_bounds = array<i64: 1, 10, 10, 16>}, {pipeline_mode = #tpu.pipeline_mode<synchronous>, transform_indices = @transform_1, window_bounds = array<i64: 3, 3, 16, 16>}, {pipeline_mode = #tpu.pipeline_mode<synchronous>, transform_indices = @transform_2, window_bounds = array<i64: 1, 16>}, {pipeline_mode = #tpu.pipeline_mode<synchronous>, transform_indices = @transform_3, window_bounds = array<i64: 1, 16>}, {transform_indices = @transform_4, window_bounds = array<i64: 64, 16>}]} {
    %c8_i32 = arith.constant 8 : i32
    %0 = arith.muli %arg1, %c8_i32 : i32
    %1 = tpu.assume_multiple %0, 8 : i32
    %cst = arith.constant 0.000000e+00 : f32
    %2 = vector.broadcast %cst : f32 to vector<64x16xf32>
    %c0_i32 = arith.constant 0 : i32
    %3 = arith.addi %1, %c0_i32 : i32
    %c0 = arith.constant 0 : index
    %4 = arith.index_cast %3 : i32 to index
    %c0_0 = arith.constant 0 : index
    %c0_1 = arith.constant 0 : index
    %5 = vector.load %arg2[%c0, %4, %c0_0, %c0_1] : memref<1x10x10x16xbf16, #tpu.memory_space<vmem>>, vector<1x8x8x16xbf16>
    %6 = vector.shape_cast %5 : vector<1x8x8x16xbf16> to vector<8x8x16xbf16>
    %7 = arith.extf %6 : vector<8x8x16xbf16> to vector<8x8x16xf32>
    %8 = vector.shape_cast %7 : vector<8x8x16xf32> to vector<64x16xf32>
    %9 = arith.truncf %8 : vector<64x16xf32> to vector<64x16xbf16>
    %c0_2 = arith.constant 0 : index
    %c0_3 = arith.constant 0 : index
    %c0_4 = arith.constant 0 : index
    %c0_5 = arith.constant 0 : index
    %10 = vector.load %arg3[%c0_2, %c0_3, %c0_4, %c0_5] : memref<3x3x16x16xbf16, #tpu.memory_space<vmem>>, vector<1x1x16x16xbf16>
    %11 = vector.shape_cast %10 : vector<1x1x16x16xbf16> to vector<16x16xbf16>
    %cst_6 = arith.constant dense<0.000000e+00> : vector<64x16xf32>
    %12 = tpu.matmul %9, %11, %cst_6 {dimension_numbers = #tpu.dot_dimension_numbers<[1], [0], [0], [1], [0, 0, 1, 1], [], []>} : vector<64x16xbf16>, vector<16x16xbf16>, vector<64x16xf32> -> vector<64x16xf32>
    %13 = arith.addf %2, %12 : vector<64x16xf32>
    %c0_i32_7 = arith.constant 0 : i32
    %14 = arith.addi %1, %c0_i32_7 : i32
    %c0_8 = arith.constant 0 : index
    %15 = arith.index_cast %14 : i32 to index
    %c1 = arith.constant 1 : index
    %c0_9 = arith.constant 0 : index
    %16 = vector.load %arg2[%c0_8, %15, %c1, %c0_9] : memref<1x10x10x16xbf16, #tpu.memory_space<vmem>>, vector<1x8x8x16xbf16>
    %17 = vector.shape_cast %16 : vector<1x8x8x16xbf16> to vector<8x8x16xbf16>
    %18 = arith.extf %17 : vector<8x8x16xbf16> to vector<8x8x16xf32>
    %19 = vector.shape_cast %18 : vector<8x8x16xf32> to vector<64x16xf32>
    %20 = arith.truncf %19 : vector<64x16xf32> to vector<64x16xbf16>
    %c0_10 = arith.constant 0 : index
    %c1_11 = arith.constant 1 : index
    %c0_12 = arith.constant 0 : index
    %c0_13 = arith.constant 0 : index
    %21 = vector.load %arg3[%c0_10, %c1_11, %c0_12, %c0_13] : memref<3x3x16x16xbf16, #tpu.memory_space<vmem>>, vector<1x1x16x16xbf16>
    %22 = vector.shape_cast %21 : vector<1x1x16x16xbf16> to vector<16x16xbf16>
    %cst_14 = arith.constant dense<0.000000e+00> : vector<64x16xf32>
    %23 = tpu.matmul %20, %22, %cst_14 {dimension_numbers = #tpu.dot_dimension_numbers<[1], [0], [0], [1], [0, 0, 1, 1], [], []>} : vector<64x16xbf16>, vector<16x16xbf16>, vector<64x16xf32> -> vector<64x16xf32>
    %24 = arith.addf %13, %23 : vector<64x16xf32>
    %c0_i32_15 = arith.constant 0 : i32
    %25 = arith.addi %1, %c0_i32_15 : i32
    %c0_16 = arith.constant 0 : index
    %26 = arith.index_cast %25 : i32 to index
    %c2 = arith.constant 2 : index
    %c0_17 = arith.constant 0 : index
    %27 = vector.load %arg2[%c0_16, %26, %c2, %c0_17] : memref<1x10x10x16xbf16, #tpu.memory_space<vmem>>, vector<1x8x8x16xbf16>
    %28 = vector.shape_cast %27 : vector<1x8x8x16xbf16> to vector<8x8x16xbf16>
    %29 = arith.extf %28 : vector<8x8x16xbf16> to vector<8x8x16xf32>
    %30 = vector.shape_cast %29 : vector<8x8x16xf32> to vector<64x16xf32>
    %31 = arith.truncf %30 : vector<64x16xf32> to vector<64x16xbf16>
    %c0_18 = arith.constant 0 : index
    %c2_19 = arith.constant 2 : index
    %c0_20 = arith.constant 0 : index
    %c0_21 = arith.constant 0 : index
    %32 = vector.load %arg3[%c0_18, %c2_19, %c0_20, %c0_21] : memref<3x3x16x16xbf16, #tpu.memory_space<vmem>>, vector<1x1x16x16xbf16>
    %33 = vector.shape_cast %32 : vector<1x1x16x16xbf16> to vector<16x16xbf16>
    %cst_22 = arith.constant dense<0.000000e+00> : vector<64x16xf32>
    %34 = tpu.matmul %31, %33, %cst_22 {dimension_numbers = #tpu.dot_dimension_numbers<[1], [0], [0], [1], [0, 0, 1, 1], [], []>} : vector<64x16xbf16>, vector<16x16xbf16>, vector<64x16xf32> -> vector<64x16xf32>
    %35 = arith.addf %24, %34 : vector<64x16xf32>
    %c1_i32 = arith.constant 1 : i32
    %36 = arith.addi %1, %c1_i32 : i32
    %c0_23 = arith.constant 0 : index
    %37 = arith.index_cast %36 : i32 to index
    %c0_24 = arith.constant 0 : index
    %c0_25 = arith.constant 0 : index
    %38 = vector.load %arg2[%c0_23, %37, %c0_24, %c0_25] : memref<1x10x10x16xbf16, #tpu.memory_space<vmem>>, vector<1x8x8x16xbf16>
    %39 = vector.shape_cast %38 : vector<1x8x8x16xbf16> to vector<8x8x16xbf16>
    %40 = arith.extf %39 : vector<8x8x16xbf16> to vector<8x8x16xf32>
    %41 = vector.shape_cast %40 : vector<8x8x16xf32> to vector<64x16xf32>
    %42 = arith.truncf %41 : vector<64x16xf32> to vector<64x16xbf16>
    %c1_26 = arith.constant 1 : index
    %c0_27 = arith.constant 0 : index
    %c0_28 = arith.constant 0 : index
    %c0_29 = arith.constant 0 : index
    %43 = vector.load %arg3[%c1_26, %c0_27, %c0_28, %c0_29] : memref<3x3x16x16xbf16, #tpu.memory_space<vmem>>, vector<1x1x16x16xbf16>
    %44 = vector.shape_cast %43 : vector<1x1x16x16xbf16> to vector<16x16xbf16>
    %cst_30 = arith.constant dense<0.000000e+00> : vector<64x16xf32>
    %45 = tpu.matmul %42, %44, %cst_30 {dimension_numbers = #tpu.dot_dimension_numbers<[1], [0], [0], [1], [0, 0, 1, 1], [], []>} : vector<64x16xbf16>, vector<16x16xbf16>, vector<64x16xf32> -> vector<64x16xf32>
    %46 = arith.addf %35, %45 : vector<64x16xf32>
    %c1_i32_31 = arith.constant 1 : i32
    %47 = arith.addi %1, %c1_i32_31 : i32
    %c0_32 = arith.constant 0 : index
    %48 = arith.index_cast %47 : i32 to index
    %c1_33 = arith.constant 1 : index
    %c0_34 = arith.constant 0 : index
    %49 = vector.load %arg2[%c0_32, %48, %c1_33, %c0_34] : memref<1x10x10x16xbf16, #tpu.memory_space<vmem>>, vector<1x8x8x16xbf16>
    %50 = vector.shape_cast %49 : vector<1x8x8x16xbf16> to vector<8x8x16xbf16>
    %51 = arith.extf %50 : vector<8x8x16xbf16> to vector<8x8x16xf32>
    %52 = vector.shape_cast %51 : vector<8x8x16xf32> to vector<64x16xf32>
    %53 = arith.truncf %52 : vector<64x16xf32> to vector<64x16xbf16>
    %c1_35 = arith.constant 1 : index
    %c1_36 = arith.constant 1 : index
    %c0_37 = arith.constant 0 : index
    %c0_38 = arith.constant 0 : index
    %54 = vector.load %arg3[%c1_35, %c1_36, %c0_37, %c0_38] : memref<3x3x16x16xbf16, #tpu.memory_space<vmem>>, vector<1x1x16x16xbf16>
    %55 = vector.shape_cast %54 : vector<1x1x16x16xbf16> to vector<16x16xbf16>
    %cst_39 = arith.constant dense<0.000000e+00> : vector<64x16xf32>
    %56 = tpu.matmul %53, %55, %cst_39 {dimension_numbers = #tpu.dot_dimension_numbers<[1], [0], [0], [1], [0, 0, 1, 1], [], []>} : vector<64x16xbf16>, vector<16x16xbf16>, vector<64x16xf32> -> vector<64x16xf32>
    %57 = arith.addf %46, %56 : vector<64x16xf32>
    %c1_i32_40 = arith.constant 1 : i32
    %58 = arith.addi %1, %c1_i32_40 : i32
    %c0_41 = arith.constant 0 : index
    %59 = arith.index_cast %58 : i32 to index
    %c2_42 = arith.constant 2 : index
    %c0_43 = arith.constant 0 : index
    %60 = vector.load %arg2[%c0_41, %59, %c2_42, %c0_43] : memref<1x10x10x16xbf16, #tpu.memory_space<vmem>>, vector<1x8x8x16xbf16>
    %61 = vector.shape_cast %60 : vector<1x8x8x16xbf16> to vector<8x8x16xbf16>
    %62 = arith.extf %61 : vector<8x8x16xbf16> to vector<8x8x16xf32>
    %63 = vector.shape_cast %62 : vector<8x8x16xf32> to vector<64x16xf32>
    %64 = arith.truncf %63 : vector<64x16xf32> to vector<64x16xbf16>
    %c1_44 = arith.constant 1 : index
    %c2_45 = arith.constant 2 : index
    %c0_46 = arith.constant 0 : index
    %c0_47 = arith.constant 0 : index
    %65 = vector.load %arg3[%c1_44, %c2_45, %c0_46, %c0_47] : memref<3x3x16x16xbf16, #tpu.memory_space<vmem>>, vector<1x1x16x16xbf16>
    %66 = vector.shape_cast %65 : vector<1x1x16x16xbf16> to vector<16x16xbf16>
    %cst_48 = arith.constant dense<0.000000e+00> : vector<64x16xf32>
    %67 = tpu.matmul %64, %66, %cst_48 {dimension_numbers = #tpu.dot_dimension_numbers<[1], [0], [0], [1], [0, 0, 1, 1], [], []>} : vector<64x16xbf16>, vector<16x16xbf16>, vector<64x16xf32> -> vector<64x16xf32>
    %68 = arith.addf %57, %67 : vector<64x16xf32>
    %c2_i32 = arith.constant 2 : i32
    %69 = arith.addi %1, %c2_i32 : i32
    %c0_49 = arith.constant 0 : index
    %70 = arith.index_cast %69 : i32 to index
    %c0_50 = arith.constant 0 : index
    %c0_51 = arith.constant 0 : index
    %71 = vector.load %arg2[%c0_49, %70, %c0_50, %c0_51] : memref<1x10x10x16xbf16, #tpu.memory_space<vmem>>, vector<1x8x8x16xbf16>
    %72 = vector.shape_cast %71 : vector<1x8x8x16xbf16> to vector<8x8x16xbf16>
    %73 = arith.extf %72 : vector<8x8x16xbf16> to vector<8x8x16xf32>
    %74 = vector.shape_cast %73 : vector<8x8x16xf32> to vector<64x16xf32>
    %75 = arith.truncf %74 : vector<64x16xf32> to vector<64x16xbf16>
    %c2_52 = arith.constant 2 : index
    %c0_53 = arith.constant 0 : index
    %c0_54 = arith.constant 0 : index
    %c0_55 = arith.constant 0 : index
    %76 = vector.load %arg3[%c2_52, %c0_53, %c0_54, %c0_55] : memref<3x3x16x16xbf16, #tpu.memory_space<vmem>>, vector<1x1x16x16xbf16>
    %77 = vector.shape_cast %76 : vector<1x1x16x16xbf16> to vector<16x16xbf16>
    %cst_56 = arith.constant dense<0.000000e+00> : vector<64x16xf32>
    %78 = tpu.matmul %75, %77, %cst_56 {dimension_numbers = #tpu.dot_dimension_numbers<[1], [0], [0], [1], [0, 0, 1, 1], [], []>} : vector<64x16xbf16>, vector<16x16xbf16>, vector<64x16xf32> -> vector<64x16xf32>
    %79 = arith.addf %68, %78 : vector<64x16xf32>
    %c2_i32_57 = arith.constant 2 : i32
    %80 = arith.addi %1, %c2_i32_57 : i32
    %c0_58 = arith.constant 0 : index
    %81 = arith.index_cast %80 : i32 to index
    %c1_59 = arith.constant 1 : index
    %c0_60 = arith.constant 0 : index
    %82 = vector.load %arg2[%c0_58, %81, %c1_59, %c0_60] : memref<1x10x10x16xbf16, #tpu.memory_space<vmem>>, vector<1x8x8x16xbf16>
    %83 = vector.shape_cast %82 : vector<1x8x8x16xbf16> to vector<8x8x16xbf16>
    %84 = arith.extf %83 : vector<8x8x16xbf16> to vector<8x8x16xf32>
    %85 = vector.shape_cast %84 : vector<8x8x16xf32> to vector<64x16xf32>
    %86 = arith.truncf %85 : vector<64x16xf32> to vector<64x16xbf16>
    %c2_61 = arith.constant 2 : index
    %c1_62 = arith.constant 1 : index
    %c0_63 = arith.constant 0 : index
    %c0_64 = arith.constant 0 : index
    %87 = vector.load %arg3[%c2_61, %c1_62, %c0_63, %c0_64] : memref<3x3x16x16xbf16, #tpu.memory_space<vmem>>, vector<1x1x16x16xbf16>
    %88 = vector.shape_cast %87 : vector<1x1x16x16xbf16> to vector<16x16xbf16>
    %cst_65 = arith.constant dense<0.000000e+00> : vector<64x16xf32>
    %89 = tpu.matmul %86, %88, %cst_65 {dimension_numbers = #tpu.dot_dimension_numbers<[1], [0], [0], [1], [0, 0, 1, 1], [], []>} : vector<64x16xbf16>, vector<16x16xbf16>, vector<64x16xf32> -> vector<64x16xf32>
    %90 = arith.addf %79, %89 : vector<64x16xf32>
    %c2_i32_66 = arith.constant 2 : i32
    %91 = arith.addi %1, %c2_i32_66 : i32
    %c0_67 = arith.constant 0 : index
    %92 = arith.index_cast %91 : i32 to index
    %c2_68 = arith.constant 2 : index
    %c0_69 = arith.constant 0 : index
    %93 = vector.load %arg2[%c0_67, %92, %c2_68, %c0_69] : memref<1x10x10x16xbf16, #tpu.memory_space<vmem>>, vector<1x8x8x16xbf16>
    %94 = vector.shape_cast %93 : vector<1x8x8x16xbf16> to vector<8x8x16xbf16>
    %95 = arith.extf %94 : vector<8x8x16xbf16> to vector<8x8x16xf32>
    %96 = vector.shape_cast %95 : vector<8x8x16xf32> to vector<64x16xf32>
    %97 = arith.truncf %96 : vector<64x16xf32> to vector<64x16xbf16>
    %c2_70 = arith.constant 2 : index
    %c2_71 = arith.constant 2 : index
    %c0_72 = arith.constant 0 : index
    %c0_73 = arith.constant 0 : index
    %98 = vector.load %arg3[%c2_70, %c2_71, %c0_72, %c0_73] : memref<3x3x16x16xbf16, #tpu.memory_space<vmem>>, vector<1x1x16x16xbf16>
    %99 = vector.shape_cast %98 : vector<1x1x16x16xbf16> to vector<16x16xbf16>
    %cst_74 = arith.constant dense<0.000000e+00> : vector<64x16xf32>
    %100 = tpu.matmul %97, %99, %cst_74 {dimension_numbers = #tpu.dot_dimension_numbers<[1], [0], [0], [1], [0, 0, 1, 1], [], []>} : vector<64x16xbf16>, vector<16x16xbf16>, vector<64x16xf32> -> vector<64x16xf32>
    %101 = arith.addf %90, %100 : vector<64x16xf32>
    %c0_75 = arith.constant 0 : index
    %c0_76 = arith.constant 0 : index
    %102 = vector.load %arg4[%c0_75, %c0_76] : memref<1x16xf32, #tpu.memory_space<vmem>>, vector<1x16xf32>
    %103 = vector.broadcast %102 : vector<1x16xf32> to vector<64x16xf32>
    %104 = arith.mulf %101, %103 : vector<64x16xf32>
    %c0_77 = arith.constant 0 : index
    %c0_78 = arith.constant 0 : index
    %105 = vector.load %arg5[%c0_77, %c0_78] : memref<1x16xf32, #tpu.memory_space<vmem>>, vector<1x16xf32>
    %106 = vector.broadcast %105 : vector<1x16xf32> to vector<64x16xf32>
    %107 = arith.addf %104, %106 : vector<64x16xf32>
    %cst_79 = arith.constant 0.000000e+00 : f32
    %108 = vector.broadcast %cst_79 : f32 to vector<64x16xf32>
    %109 = arith.maximumf %107, %108 : vector<64x16xf32>
    %110 = arith.truncf %109 : vector<64x16xf32> to vector<64x16xbf16>
    %c0_80 = arith.constant 0 : index
    %c0_81 = arith.constant 0 : index
    %111 = vector.load %arg6[%c0_80, %c0_81] : memref<64x16xbf16, #tpu.memory_space<vmem>>, vector<64x16xbf16>
    tpu.vector_store %arg6[%c0_80, %c0_81], %110 {strides = array<i32>} : memref<64x16xbf16, #tpu.memory_space<vmem>>, vector<64x16xbf16>,
    return
  }
  func.func @transform_0(%arg0: i32, %arg1: i32) -> (i32, i32, i32, i32) {
    %c0_i32 = arith.constant 0 : i32
    %c0_i32_0 = arith.constant 0 : i32
    %c0_i32_1 = arith.constant 0 : i32
    %c0_i32_2 = arith.constant 0 : i32
    return %arg0, %c0_i32, %c0_i32_0, %c0_i32_1 : i32, i32, i32, i32
  }
  func.func @transform_1(%arg0: i32, %arg1: i32) -> (i32, i32, i32, i32) {
    %c0_i32 = arith.constant 0 : i32
    %c0_i32_0 = arith.constant 0 : i32
    %c0_i32_1 = arith.constant 0 : i32
    %c0_i32_2 = arith.constant 0 : i32
    %c0_i32_3 = arith.constant 0 : i32
    return %c0_i32, %c0_i32_0, %c0_i32_1, %c0_i32_2 : i32, i32, i32, i32
  }
  func.func @transform_2(%arg0: i32, %arg1: i32) -> (i32, i32) {
    %c0_i32 = arith.constant 0 : i32
    %c0_i32_0 = arith.constant 0 : i32
    %c0_i32_1 = arith.constant 0 : i32
    return %c0_i32, %c0_i32_0 : i32, i32
  }
  func.func @transform_3(%arg0: i32, %arg1: i32) -> (i32, i32) {
    %c0_i32 = arith.constant 0 : i32
    %c0_i32_0 = arith.constant 0 : i32
    %c0_i32_1 = arith.constant 0 : i32
    return %c0_i32, %c0_i32_0 : i32, i32
  }
  func.func @transform_4(%arg0: i32, %arg1: i32) -> (i32, i32) {
    %c1_i32 = arith.constant 1 : i32
    %0 = arith.muli %arg0, %c1_i32 : i32
    %1 = arith.addi %0, %arg1 : i32
    %c0_i32 = arith.constant 0 : i32
    %c0_i32_0 = arith.constant 0 : i32
    return %1, %c0_i32 : i32, i32
  }
}

module attributes {stable_mosaic.version = 11 : i64} {
  func.func @_matmul_bn_relu_kernel(%arg0: i32, %arg1: memref<128x16xbf16, #tpu.memory_space<vmem>>, %arg2: memref<16x32xbf16, #tpu.memory_space<vmem>>, %arg3: memref<1x32xf32, #tpu.memory_space<vmem>>, %arg4: memref<1x32xf32, #tpu.memory_space<vmem>>, %arg5: memref<128x32xbf16, #tpu.memory_space<vmem>>) attributes {dimension_semantics = [#tpu.dimension_semantics<parallel>], iteration_bounds = array<i64: 1>, scalar_prefetch = 0 : i64, scratch_operands = 0 : i64, tpu.core_type = #tpu.core_type<tc>, window_params = [{transform_indices = @transform_0, window_bounds = array<i64: 128, 16>}, {pipeline_mode = #tpu.pipeline_mode<synchronous>, transform_indices = @transform_1, window_bounds = array<i64: 16, 32>}, {pipeline_mode = #tpu.pipeline_mode<synchronous>, transform_indices = @transform_2, window_bounds = array<i64: 1, 32>}, {pipeline_mode = #tpu.pipeline_mode<synchronous>, transform_indices = @transform_3, window_bounds = array<i64: 1, 32>}, {transform_indices = @transform_4, window_bounds = array<i64: 128, 32>}]} {
    %c0 = arith.constant 0 : index
    %c0_0 = arith.constant 0 : index
    %0 = vector.load %arg1[%c0, %c0_0] : memref<128x16xbf16, #tpu.memory_space<vmem>>, vector<128x16xbf16>
    %c0_1 = arith.constant 0 : index
    %c0_2 = arith.constant 0 : index
    %1 = vector.load %arg2[%c0_1, %c0_2] : memref<16x32xbf16, #tpu.memory_space<vmem>>, vector<16x32xbf16>
    %cst = arith.constant dense<0.000000e+00> : vector<128x32xf32>
    %2 = tpu.matmul %0, %1, %cst {dimension_numbers = #tpu.dot_dimension_numbers<[1], [0], [0], [1], [0, 0, 1, 1], [], []>} : vector<128x16xbf16>, vector<16x32xbf16>, vector<128x32xf32> -> vector<128x32xf32>
    %c0_3 = arith.constant 0 : index
    %c0_4 = arith.constant 0 : index
    %3 = vector.load %arg3[%c0_3, %c0_4] : memref<1x32xf32, #tpu.memory_space<vmem>>, vector<1x32xf32>
    %4 = vector.broadcast %3 : vector<1x32xf32> to vector<128x32xf32>
    %5 = arith.mulf %2, %4 : vector<128x32xf32>
    %c0_5 = arith.constant 0 : index
    %c0_6 = arith.constant 0 : index
    %6 = vector.load %arg4[%c0_5, %c0_6] : memref<1x32xf32, #tpu.memory_space<vmem>>, vector<1x32xf32>
    %7 = vector.broadcast %6 : vector<1x32xf32> to vector<128x32xf32>
    %8 = arith.addf %5, %7 : vector<128x32xf32>
    %cst_7 = arith.constant 0.000000e+00 : f32
    %9 = vector.broadcast %cst_7 : f32 to vector<128x32xf32>
    %10 = arith.maximumf %8, %9 : vector<128x32xf32>
    %11 = arith.truncf %10 : vector<128x32xf32> to vector<128x32xbf16>
    %c0_8 = arith.constant 0 : index
    %c0_9 = arith.constant 0 : index
    %12 = vector.load %arg5[%c0_8, %c0_9] : memref<128x32xbf16, #tpu.memory_space<vmem>>, vector<128x32xbf16>
    tpu.vector_store %arg5[%c0_8, %c0_9], %11 {strides = array<i32>} : memref<128x32xbf16, #tpu.memory_space<vmem>>, vector<128x32xbf16>,
    return
  }
  func.func @transform_0(%arg0: i32) -> (i32, i32) {
    %c0_i32 = arith.constant 0 : i32
    %c0_i32_0 = arith.constant 0 : i32
    return %arg0, %c0_i32 : i32, i32
  }
  func.func @transform_1(%arg0: i32) -> (i32, i32) {
    %c0_i32 = arith.constant 0 : i32
    %c0_i32_0 = arith.constant 0 : i32
    %c0_i32_1 = arith.constant 0 : i32
    return %c0_i32, %c0_i32_0 : i32, i32
  }
  func.func @transform_2(%arg0: i32) -> (i32, i32) {
    %c0_i32 = arith.constant 0 : i32
    %c0_i32_0 = arith.constant 0 : i32
    %c0_i32_1 = arith.constant 0 : i32
    return %c0_i32, %c0_i32_0 : i32, i32
  }
  func.func @transform_3(%arg0: i32) -> (i32, i32) {
    %c0_i32 = arith.constant 0 : i32
    %c0_i32_0 = arith.constant 0 : i32
    %c0_i32_1 = arith.constant 0 : i32
    return %c0_i32, %c0_i32_0 : i32, i32
  }
  func.func @transform_4(%arg0: i32) -> (i32, i32) {
    %c0_i32 = arith.constant 0 : i32
    %c0_i32_0 = arith.constant 0 : i32
    return %arg0, %c0_i32 : i32, i32
  }
}

</mosaic_0001>

<bundles_post_ra>
// kernel: _forward.8
= control target key start
LH: loop header
LB: loop body
LE: loop exit
PB: predicated region body
PF: predicated region fallthrough
CT: control target
= control target key end

     0   :  { %vm340_vm0 = vcmask 1043456   ;;  %vm243_vm1 = vcmask 64512   ;;  %vm1095_vm2 = vcmask 60416   ;;  %s2043_s1 = inlined_call_operand.vmem [shape: bf16[8,8], index: 1, kind: input, shape index: {}]   ;;  %s2044_s0 = inlined_call_operand.vmem [shape: bf16[512,8], index: 0, kind: input, shape index: {}]   ;;  %s2045_s2 = inlined_call_operand.vmem [shape: f32[1,8], index: 2, kind: input, shape index: {}]   ;;  %s2046_s3 = inlined_call_operand.vmem [shape: f32[1,8], index: 3, kind: input, shape index: {}]   ;;  %s2047_s4 = inlined_call_operand.vmem [shape: bf16[512,8], index: 4, kind: output, shape index: {}]  }
   0x1   :  { %v82_v0 = vld [vmem:[%s2043_s1] sm:$0xf]  ;;  %v1463_v4 = vld [vmem:[%s2044_s0 + $0x8] sm:$0xff]   ;;  %v1465_v6 = vld [vmem:[%s2044_s0 + $0x10] sm:$0xff]  }
   0x2   :  { %1459 = vmatprep.subr.msk.bf16.mxu0 %vm340_vm0, %v82_v0  ;;  %1460 = vmatprep.subr.msk.bf16.mxu1 %vm340_vm0, %v82_v0  ;;  %v342_v1 = vsel %vm340_vm0, %v82_v0, 0  ;;  %v1461_v2 = vld [vmem:[%s2044_s0] sm:$0xff]   ;;  %v1464_v5 = vld [vmem:[%s2044_s0 + $0x88] sm:$0xff]   ;;  %v1466_v7 = vld [vmem:[%s2044_s0 + $0x90] sm:$0xff]  }
   0x3   :  { %1392 = vmatpush3.bf16.msra.mxu0 %v342_v1  ;;  %1458 = vmatpush3.bf16.msra.mxu1 %v342_v1  ;;  %v1462_v3 = vld [vmem:[%s2044_s0 + $0x80] sm:$0xff]   ;;  %v1467_v8 = vld [vmem:[%s2044_s0 + $0x18] sm:$0xff]   ;;  %v1471_v12 = vld [vmem:[%s2044_s0 + $0x28] sm:$0xff]  }
   0x4   :  { %1393 = vmatprep.mubr.msk.bf16.mxu0 %vm243_vm1, %v1461_v2  ;;  %1425 = vmatprep.mubr.msk.bf16.mxu1 %vm243_vm1, %v1462_v3  ;;  %v1468_v9 = vld [vmem:[%s2044_s0 + $0x98] sm:$0xff]   ;;  %v1469_v10 = vld [vmem:[%s2044_s0 + $0x20] sm:$0xff]   ;;  %v1472_v13 = vld [vmem:[%s2044_s0 + $0xa8] sm:$0xff]  }
   0x5   :  { %v1470_v11 = vld [vmem:[%s2044_s0 + $0xa0] sm:$0xff]   ;;  %v1473_v14 = vld [vmem:[%s2044_s0 + $0x30] sm:$0xff]   ;;  %v1475_v16 = vld [vmem:[%s2044_s0 + $0x38] sm:$0xff]  }
   0x6   :  { %1394 = vmatmul.mubr.msk.bf16.vlgmr.msra.gmra.mxu0 %vm243_vm1, %v1463_v4  ;;  %1426 = vmatmul.mubr.msk.bf16.vlgmr.msra.gmra.mxu1 %vm243_vm1, %v1464_v5  ;;  %v1474_v15 = vld [vmem:[%s2044_s0 + $0xb0] sm:$0xff]   ;;  %v1476_v17 = vld [vmem:[%s2044_s0 + $0xb8] sm:$0xff]   ;;  %v1477_v18 = vld [vmem:[%s2044_s0 + $0x40] sm:$0xff]  }
   0x7   :  { %1397 = vmatprep.mubr.msk.bf16.mxu0 %vm243_vm1, %v1465_v6  ;;  %1429 = vmatprep.mubr.msk.bf16.mxu1 %vm243_vm1, %v1466_v7  ;;  %v1478_v19 = vld [vmem:[%s2044_s0 + $0xc0] sm:$0xff]   ;;  %v1479_v20 = vld [vmem:[%s2044_s0 + $0x48] sm:$0xff]   ;;  %v1481_v22 = vld [vmem:[%s2044_s0 + $0x50] sm:$0xff]  }
   0x8   :  { %v1480_v21 = vld [vmem:[%s2044_s0 + $0xc8] sm:$0xff]   ;;  %v1482_v23 = vld [vmem:[%s2044_s0 + $0xd0] sm:$0xff]   ;;  %v1483_v24 = vld [vmem:[%s2044_s0 + $0x58] sm:$0xff]  }
   0x9   :  { %v1484_v25 = vld [vmem:[%s2044_s0 + $0xd8] sm:$0xff]   ;;  %v1485_v26 = vld [vmem:[%s2044_s0 + $0x60] sm:$0xff]   ;;  %v1487_v28 = vld [vmem:[%s2044_s0 + $0x68] sm:$0xff]  }
   0xa   :  { %v1486_v27 = vld [vmem:[%s2044_s0 + $0xe0] sm:$0xff]   ;;  %v1488_v29 = vld [vmem:[%s2044_s0 + $0xe8] sm:$0xff]   ;;  %v1489_v30 = vld [vmem:[%s2044_s0 + $0x70] sm:$0xff]  }
   0xb   :  { %v1490_v31 = vld [vmem:[%s2044_s0 + $0xf0] sm:$0xff]   ;;  %v1491_v32 = vld [vmem:[%s2044_s0 + $0x78] sm:$0xff]   ;;  %v1652_v34 = vld [vmem:[%s2045_s2] ss:$0 sm:$0xff] }
   0xc   :  { %v1492_v33 = vld [vmem:[%s2044_s0 + $0xf8] sm:$0xff]   ;;  %v1657_v36 = vld [vmem:[%s2046_s3] ss:$0 sm:$0xff] }
   0xe   :  { %1398 = vmatmul.mubr.msk.bf16.gmra.mxu0 %vm243_vm1, %v1467_v8  ;;  %1430 = vmatmul.mubr.msk.bf16.gmra.mxu1 %vm243_vm1, %v1468_v9 }
   0xf   :  { %1401 = vmatprep.mubr.msk.bf16.mxu0 %vm243_vm1, %v1469_v10  ;;  %1433 = vmatprep.mubr.msk.bf16.mxu1 %vm243_vm1, %v1470_v11 }
  0x16   :  { %1402 = vmatmul.mubr.msk.bf16.gmra.mxu0 %vm243_vm1, %v1471_v12  ;;  %1434 = vmatmul.mubr.msk.bf16.gmra.mxu1 %vm243_vm1, %v1472_v13 }
  0x17   :  { %1405 = vmatprep.mubr.msk.bf16.mxu0 %vm243_vm1, %v1473_v14  ;;  %1437 = vmatprep.mubr.msk.bf16.mxu1 %vm243_vm1, %v1474_v15 }
  0x1e   :  { %1406 = vmatmul.mubr.msk.bf16.gmra.mxu0 %vm243_vm1, %v1475_v16  ;;  %1438 = vmatmul.mubr.msk.bf16.gmra.mxu1 %vm243_vm1, %v1476_v17 }
  0x1f   :  { %1409 = vmatprep.mubr.msk.bf16.mxu0 %vm243_vm1, %v1477_v18  ;;  %1441 = vmatprep.mubr.msk.bf16.mxu1 %vm243_vm1, %v1478_v19 }
  0x26   :  { %1410 = vmatmul.mubr.msk.bf16.gmra.mxu0 %vm243_vm1, %v1479_v20  ;;  %1442 = vmatmul.mubr.msk.bf16.gmra.mxu1 %vm243_vm1, %v1480_v21 }
  0x27   :  { %1413 = vmatprep.mubr.msk.bf16.mxu0 %vm243_vm1, %v1481_v22  ;;  %1445 = vmatprep.mubr.msk.bf16.mxu1 %vm243_vm1, %v1482_v23 }
  0x2e   :  { %1414 = vmatmul.mubr.msk.bf16.gmra.mxu0 %vm243_vm1, %v1483_v24  ;;  %1446 = vmatmul.mubr.msk.bf16.gmra.mxu1 %vm243_vm1, %v1484_v25 }
  0x2f   :  { %1417 = vmatprep.mubr.msk.bf16.mxu0 %vm243_vm1, %v1485_v26  ;;  %1449 = vmatprep.mubr.msk.bf16.mxu1 %vm243_vm1, %v1486_v27 }
  0x36   :  { %1418 = vmatmul.mubr.msk.bf16.gmra.mxu0 %vm243_vm1, %v1487_v28  ;;  %1450 = vmatmul.mubr.msk.bf16.gmra.mxu1 %vm243_vm1, %v1488_v29 }
  0x37   :  { %1421 = vmatprep.mubr.msk.bf16.mxu0 %vm243_vm1, %v1489_v30  ;;  %1453 = vmatprep.mubr.msk.bf16.mxu1 %vm243_vm1, %v1490_v31 }
  0x3e   :  { %1422 = vmatmul.mubr.msk.bf16.gmra.mxu0 %vm243_vm1, %v1491_v32  ;;  %1454 = vmatmul.mubr.msk.bf16.gmra.mxu1 %vm243_vm1, %v1492_v33 }
  0xc6   :  { %v1395_v35 = vpop.f32.mrf.mxu0  ;;  %v1427_v38 = vpop.f32.mrf.mxu1 }
  0xc7   :  { %v642_v37 = vmul.f32 %v1395_v35, %v1652_v34  ;;  %v674_v39 = vmul.f32 %v1427_v38, %v1652_v34 }
  0xc8   :  { %v378_v40 = vpop.f32.mrf.mxu0  ;;  %v506_v43 = vpop.f32.mrf.mxu1 }
  0xc9   :  { %v713_v41 = vadd.f32 %v1657_v36, %v642_v37  ;;  %v640_v42 = vmul.f32 %v1652_v34, %v378_v40  ;;  %v745_v44 = vadd.f32 %v1657_v36, %v674_v39  ;;  %v672_v45 = vmul.f32 %v1652_v34, %v506_v43 }
  0xca   :  { %v1396_v46 = vpop.f32.mrf.mxu0  ;;  %v1428_v50 = vpop.f32.mrf.mxu1 }
  0xcb   :  { %v777_v47 = vmax.f32 %v713_v41, 0.0  ;;  %v711_v48 = vadd.f32 %v1657_v36, %v640_v42  ;;  %v643_v49 = vmul.f32 %v1396_v46, %v1652_v34  ;;  %v809_v51 = vmax.f32 %v745_v44, 0.0 }
  0xcc   :  { %v743_v52 = vadd.f32 %v1657_v36, %v672_v45  ;;  %v675_v53 = vmul.f32 %v1428_v50, %v1652_v34  ;;  %v381_v54 = vpop.f32.mrf.mxu0  ;;  %v509_v59 = vpop.f32.mrf.mxu1 }
  0xcd   :  { %v1296_v55 = vpack.c.bf16 %v777_v47, %v777_v47  ;;  %v775_v56 = vmax.f32 %v711_v48, 0.0  ;;  %v714_v57 = vadd.f32 %v1657_v36, %v643_v49  ;;  %v641_v58 = vmul.f32 %v1652_v34, %v381_v54 }
  0xce   :  { %v1328_v60 = vpack.c.bf16 %v809_v51, %v809_v51  ;;  %v807_v61 = vmax.f32 %v743_v52, 0.0  ;;  %v746_v62 = vadd.f32 %v1657_v36, %v675_v53  ;;  %v673_v63 = vmul.f32 %v1652_v34, %v509_v59  ;;  %v1399_v0 = vpop.f32.mrf.mxu0  ;;  %v1431_v5 = vpop.f32.mrf.mxu1 }
  0xcf   :  { %1098 = vst.msk [vmem:[%s2047_s4 + $0x8] sm:$0xf] %vm1095_vm2, %v1296_v55  ;;  %v1294_v1 = vpack.c.bf16 %v775_v56, %v775_v56  ;;  %v778_v2 = vmax.f32 %v714_v57, 0.0  ;;  %v712_v3 = vadd.f32 %v1657_v36, %v641_v58  ;;  %v646_v4 = vmul.f32 %v1399_v0, %v1652_v34 }
  0xd0   :  { %1130 = vst.msk [vmem:[%s2047_s4 + $0x88] sm:$0xf] %vm1095_vm2, %v1328_v60  ;;  %v1326_v6 = vpack.c.bf16 %v807_v61, %v807_v61  ;;  %v810_v7 = vmax.f32 %v746_v62, 0.0  ;;  %v744_v8 = vadd.f32 %v1657_v36, %v673_v63  ;;  %v678_v9 = vmul.f32 %v1431_v5, %v1652_v34  ;;  %v394_v10 = vpop.f32.mrf.mxu0  ;;  %v522_v15 = vpop.f32.mrf.mxu1 }
  0xd1   :  { %1096 = vst.msk [vmem:[%s2047_s4] sm:$0xf] %vm1095_vm2, %v1294_v1  ;;  %v1297_v11 = vpack.c.bf16 %v778_v2, %v778_v2  ;;  %v776_v12 = vmax.f32 %v712_v3, 0.0  ;;  %v717_v13 = vadd.f32 %v1657_v36, %v646_v4  ;;  %v644_v14 = vmul.f32 %v1652_v34, %v394_v10 }
  0xd2   :  { %1128 = vst.msk [vmem:[%s2047_s4 + $0x80] sm:$0xf] %vm1095_vm2, %v1326_v6  ;;  %v1329_v16 = vpack.c.bf16 %v810_v7, %v810_v7  ;;  %v808_v17 = vmax.f32 %v744_v8, 0.0  ;;  %v749_v18 = vadd.f32 %v1657_v36, %v678_v9  ;;  %v676_v19 = vmul.f32 %v1652_v34, %v522_v15  ;;  %v1400_v20 = vpop.f32.mrf.mxu0  ;;  %v1432_v25 = vpop.f32.mrf.mxu1 }
  0xd3   :  { %1099 = vst.msk [vmem:[%s2047_s4 + $0xc] sm:$0xf] %vm1095_vm2, %v1297_v11  ;;  %v1295_v21 = vpack.c.bf16 %v776_v12, %v776_v12  ;;  %v781_v22 = vmax.f32 %v717_v13, 0.0  ;;  %v715_v23 = vadd.f32 %v1657_v36, %v644_v14  ;;  %v647_v24 = vmul.f32 %v1400_v20, %v1652_v34 }
  0xd4   :  { %1131 = vst.msk [vmem:[%s2047_s4 + $0x8c] sm:$0xf] %vm1095_vm2, %v1329_v16  ;;  %v1327_v26 = vpack.c.bf16 %v808_v17, %v808_v17  ;;  %v813_v27 = vmax.f32 %v749_v18, 0.0  ;;  %v747_v28 = vadd.f32 %v1657_v36, %v676_v19  ;;  %v679_v29 = vmul.f32 %v1432_v25, %v1652_v34  ;;  %v397_v30 = vpop.f32.mrf.mxu0  ;;  %v525_v37 = vpop.f32.mrf.mxu1 }
  0xd5   :  { %1097 = vst.msk [vmem:[%s2047_s4 + $0x4] sm:$0xf] %vm1095_vm2, %v1295_v21  ;;  %v1300_v31 = vpack.c.bf16 %v781_v22, %v781_v22  ;;  %v779_v32 = vmax.f32 %v715_v23, 0.0  ;;  %v718_v33 = vadd.f32 %v1657_v36, %v647_v24  ;;  %v645_v35 = vmul.f32 %v1652_v34, %v397_v30 }
  0xd6   :  { %1129 = vst.msk [vmem:[%s2047_s4 + $0x84] sm:$0xf] %vm1095_vm2, %v1327_v26  ;;  %v1332_v38 = vpack.c.bf16 %v813_v27, %v813_v27  ;;  %v811_v39 = vmax.f32 %v747_v28, 0.0  ;;  %v750_v40 = vadd.f32 %v1657_v36, %v679_v29  ;;  %v677_v41 = vmul.f32 %v1652_v34, %v525_v37  ;;  %v1403_v42 = vpop.f32.mrf.mxu0  ;;  %v1435_v47 = vpop.f32.mrf.mxu1 }
  0xd7   :  { %1102 = vst.msk [vmem:[%s2047_s4 + $0x18] sm:$0xf] %vm1095_vm2, %v1300_v31  ;;  %v1298_v43 = vpack.c.bf16 %v779_v32, %v779_v32  ;;  %v782_v44 = vmax.f32 %v718_v33, 0.0  ;;  %v716_v45 = vadd.f32 %v1657_v36, %v645_v35  ;;  %v650_v46 = vmul.f32 %v1403_v42, %v1652_v34 }
  0xd8   :  { %1134 = vst.msk [vmem:[%s2047_s4 + $0x98] sm:$0xf] %vm1095_vm2, %v1332_v38  ;;  %v1330_v48 = vpack.c.bf16 %v811_v39, %v811_v39  ;;  %v814_v49 = vmax.f32 %v750_v40, 0.0  ;;  %v748_v50 = vadd.f32 %v1657_v36, %v677_v41  ;;  %v682_v51 = vmul.f32 %v1435_v47, %v1652_v34  ;;  %v410_v52 = vpop.f32.mrf.mxu0  ;;  %v538_v57 = vpop.f32.mrf.mxu1 }
  0xd9   :  { %1100 = vst.msk [vmem:[%s2047_s4 + $0x10] sm:$0xf] %vm1095_vm2, %v1298_v43  ;;  %v1301_v53 = vpack.c.bf16 %v782_v44, %v782_v44  ;;  %v780_v54 = vmax.f32 %v716_v45, 0.0  ;;  %v721_v55 = vadd.f32 %v1657_v36, %v650_v46  ;;  %v648_v56 = vmul.f32 %v1652_v34, %v410_v52 }
  0xda   :  { %1132 = vst.msk [vmem:[%s2047_s4 + $0x90] sm:$0xf] %vm1095_vm2, %v1330_v48  ;;  %v1333_v58 = vpack.c.bf16 %v814_v49, %v814_v49  ;;  %v812_v59 = vmax.f32 %v748_v50, 0.0  ;;  %v753_v60 = vadd.f32 %v1657_v36, %v682_v51  ;;  %v680_v61 = vmul.f32 %v1652_v34, %v538_v57  ;;  %v1404_v62 = vpop.f32.mrf.mxu0  ;;  %v1436_v3 = vpop.f32.mrf.mxu1 }
  0xdb   :  { %1103 = vst.msk [vmem:[%s2047_s4 + $0x1c] sm:$0xf] %vm1095_vm2, %v1301_v53  ;;  %v1299_v63 = vpack.c.bf16 %v780_v54, %v780_v54  ;;  %v785_v0 = vmax.f32 %v721_v55, 0.0  ;;  %v719_v1 = vadd.f32 %v1657_v36, %v648_v56  ;;  %v651_v2 = vmul.f32 %v1404_v62, %v1652_v34 }
  0xdc   :  { %1135 = vst.msk [vmem:[%s2047_s4 + $0x9c] sm:$0xf] %vm1095_vm2, %v1333_v58  ;;  %v1331_v4 = vpack.c.bf16 %v812_v59, %v812_v59  ;;  %v817_v5 = vmax.f32 %v753_v60, 0.0  ;;  %v751_v6 = vadd.f32 %v1657_v36, %v680_v61  ;;  %v683_v7 = vmul.f32 %v1436_v3, %v1652_v34  ;;  %v413_v8 = vpop.f32.mrf.mxu0  ;;  %v541_v13 = vpop.f32.mrf.mxu1 }
  0xdd   :  { %1101 = vst.msk [vmem:[%s2047_s4 + $0x14] sm:$0xf] %vm1095_vm2, %v1299_v63  ;;  %v1304_v9 = vpack.c.bf16 %v785_v0, %v785_v0  ;;  %v783_v10 = vmax.f32 %v719_v1, 0.0  ;;  %v722_v11 = vadd.f32 %v1657_v36, %v651_v2  ;;  %v649_v12 = vmul.f32 %v1652_v34, %v413_v8 }
  0xde   :  { %1133 = vst.msk [vmem:[%s2047_s4 + $0x94] sm:$0xf] %vm1095_vm2, %v1331_v4  ;;  %v1336_v14 = vpack.c.bf16 %v817_v5, %v817_v5  ;;  %v815_v15 = vmax.f32 %v751_v6, 0.0  ;;  %v754_v16 = vadd.f32 %v1657_v36, %v683_v7  ;;  %v681_v17 = vmul.f32 %v1652_v34, %v541_v13  ;;  %v1407_v18 = vpop.f32.mrf.mxu0  ;;  %v1439_v23 = vpop.f32.mrf.mxu1 }
  0xdf   :  { %1106 = vst.msk [vmem:[%s2047_s4 + $0x28] sm:$0xf] %vm1095_vm2, %v1304_v9  ;;  %v1302_v19 = vpack.c.bf16 %v783_v10, %v783_v10  ;;  %v786_v20 = vmax.f32 %v722_v11, 0.0  ;;  %v720_v21 = vadd.f32 %v1657_v36, %v649_v12  ;;  %v654_v22 = vmul.f32 %v1407_v18, %v1652_v34 }
  0xe0   :  { %1138 = vst.msk [vmem:[%s2047_s4 + $0xa8] sm:$0xf] %vm1095_vm2, %v1336_v14  ;;  %v1334_v24 = vpack.c.bf16 %v815_v15, %v815_v15  ;;  %v818_v25 = vmax.f32 %v754_v16, 0.0  ;;  %v752_v26 = vadd.f32 %v1657_v36, %v681_v17  ;;  %v686_v27 = vmul.f32 %v1439_v23, %v1652_v34  ;;  %v426_v28 = vpop.f32.mrf.mxu0  ;;  %v554_v33 = vpop.f32.mrf.mxu1 }
  0xe1   :  { %1104 = vst.msk [vmem:[%s2047_s4 + $0x20] sm:$0xf] %vm1095_vm2, %v1302_v19  ;;  %v1305_v29 = vpack.c.bf16 %v786_v20, %v786_v20  ;;  %v784_v30 = vmax.f32 %v720_v21, 0.0  ;;  %v725_v31 = vadd.f32 %v1657_v36, %v654_v22  ;;  %v652_v32 = vmul.f32 %v1652_v34, %v426_v28 }
  0xe2   :  { %1136 = vst.msk [vmem:[%s2047_s4 + $0xa0] sm:$0xf] %vm1095_vm2, %v1334_v24  ;;  %v1337_v35 = vpack.c.bf16 %v818_v25, %v818_v25  ;;  %v816_v37 = vmax.f32 %v752_v26, 0.0  ;;  %v757_v38 = vadd.f32 %v1657_v36, %v686_v27  ;;  %v684_v39 = vmul.f32 %v1652_v34, %v554_v33  ;;  %v1408_v40 = vpop.f32.mrf.mxu0  ;;  %v1440_v45 = vpop.f32.mrf.mxu1 }
  0xe3   :  { %1107 = vst.msk [vmem:[%s2047_s4 + $0x2c] sm:$0xf] %vm1095_vm2, %v1305_v29  ;;  %v1303_v41 = vpack.c.bf16 %v784_v30, %v784_v30  ;;  %v789_v42 = vmax.f32 %v725_v31, 0.0  ;;  %v723_v43 = vadd.f32 %v1657_v36, %v652_v32  ;;  %v655_v44 = vmul.f32 %v1408_v40, %v1652_v34 }
  0xe4   :  { %1139 = vst.msk [vmem:[%s2047_s4 + $0xac] sm:$0xf] %vm1095_vm2, %v1337_v35  ;;  %v1335_v46 = vpack.c.bf16 %v816_v37, %v816_v37  ;;  %v821_v47 = vmax.f32 %v757_v38, 0.0  ;;  %v755_v48 = vadd.f32 %v1657_v36, %v684_v39  ;;  %v687_v49 = vmul.f32 %v1440_v45, %v1652_v34  ;;  %v429_v50 = vpop.f32.mrf.mxu0  ;;  %v557_v55 = vpop.f32.mrf.mxu1 }
  0xe5   :  { %1105 = vst.msk [vmem:[%s2047_s4 + $0x24] sm:$0xf] %vm1095_vm2, %v1303_v41  ;;  %v1308_v51 = vpack.c.bf16 %v789_v42, %v789_v42  ;;  %v787_v52 = vmax.f32 %v723_v43, 0.0  ;;  %v726_v53 = vadd.f32 %v1657_v36, %v655_v44  ;;  %v653_v54 = vmul.f32 %v1652_v34, %v429_v50 }
  0xe6   :  { %1137 = vst.msk [vmem:[%s2047_s4 + $0xa4] sm:$0xf] %vm1095_vm2, %v1335_v46  ;;  %v1340_v56 = vpack.c.bf16 %v821_v47, %v821_v47  ;;  %v819_v57 = vmax.f32 %v755_v48, 0.0  ;;  %v758_v58 = vadd.f32 %v1657_v36, %v687_v49  ;;  %v685_v59 = vmul.f32 %v1652_v34, %v557_v55  ;;  %v1411_v60 = vpop.f32.mrf.mxu0  ;;  %v1443_v1 = vpop.f32.mrf.mxu1 }
  0xe7   :  { %1110 = vst.msk [vmem:[%s2047_s4 + $0x38] sm:$0xf] %vm1095_vm2, %v1308_v51  ;;  %v1306_v61 = vpack.c.bf16 %v787_v52, %v787_v52  ;;  %v790_v62 = vmax.f32 %v726_v53, 0.0  ;;  %v724_v63 = vadd.f32 %v1657_v36, %v653_v54  ;;  %v658_v0 = vmul.f32 %v1411_v60, %v1652_v34 }
  0xe8   :  { %1142 = vst.msk [vmem:[%s2047_s4 + $0xb8] sm:$0xf] %vm1095_vm2, %v1340_v56  ;;  %v1338_v2 = vpack.c.bf16 %v819_v57, %v819_v57  ;;  %v822_v3 = vmax.f32 %v758_v58, 0.0  ;;  %v756_v4 = vadd.f32 %v1657_v36, %v685_v59  ;;  %v690_v5 = vmul.f32 %v1443_v1, %v1652_v34  ;;  %v442_v6 = vpop.f32.mrf.mxu0  ;;  %v570_v11 = vpop.f32.mrf.mxu1 }
  0xe9   :  { %1108 = vst.msk [vmem:[%s2047_s4 + $0x30] sm:$0xf] %vm1095_vm2, %v1306_v61  ;;  %v1309_v7 = vpack.c.bf16 %v790_v62, %v790_v62  ;;  %v788_v8 = vmax.f32 %v724_v63, 0.0  ;;  %v729_v9 = vadd.f32 %v1657_v36, %v658_v0  ;;  %v656_v10 = vmul.f32 %v1652_v34, %v442_v6 }
  0xea   :  { %1140 = vst.msk [vmem:[%s2047_s4 + $0xb0] sm:$0xf] %vm1095_vm2, %v1338_v2  ;;  %v1341_v12 = vpack.c.bf16 %v822_v3, %v822_v3  ;;  %v820_v13 = vmax.f32 %v756_v4, 0.0  ;;  %v761_v14 = vadd.f32 %v1657_v36, %v690_v5  ;;  %v688_v15 = vmul.f32 %v1652_v34, %v570_v11  ;;  %v1412_v16 = vpop.f32.mrf.mxu0  ;;  %v1444_v21 = vpop.f32.mrf.mxu1 }
  0xeb   :  { %1111 = vst.msk [vmem:[%s2047_s4 + $0x3c] sm:$0xf] %vm1095_vm2, %v1309_v7  ;;  %v1307_v17 = vpack.c.bf16 %v788_v8, %v788_v8  ;;  %v793_v18 = vmax.f32 %v729_v9, 0.0  ;;  %v727_v19 = vadd.f32 %v1657_v36, %v656_v10  ;;  %v659_v20 = vmul.f32 %v1412_v16, %v1652_v34 }
  0xec   :  { %1143 = vst.msk [vmem:[%s2047_s4 + $0xbc] sm:$0xf] %vm1095_vm2, %v1341_v12  ;;  %v1339_v22 = vpack.c.bf16 %v820_v13, %v820_v13  ;;  %v825_v23 = vmax.f32 %v761_v14, 0.0  ;;  %v759_v24 = vadd.f32 %v1657_v36, %v688_v15  ;;  %v691_v25 = vmul.f32 %v1444_v21, %v1652_v34  ;;  %v445_v26 = vpop.f32.mrf.mxu0  ;;  %v573_v31 = vpop.f32.mrf.mxu1 }
  0xed   :  { %1109 = vst.msk [vmem:[%s2047_s4 + $0x34] sm:$0xf] %vm1095_vm2, %v1307_v17  ;;  %v1312_v27 = vpack.c.bf16 %v793_v18, %v793_v18  ;;  %v791_v28 = vmax.f32 %v727_v19, 0.0  ;;  %v730_v29 = vadd.f32 %v1657_v36, %v659_v20  ;;  %v657_v30 = vmul.f32 %v1652_v34, %v445_v26 }
  0xee   :  { %1141 = vst.msk [vmem:[%s2047_s4 + $0xb4] sm:$0xf] %vm1095_vm2, %v1339_v22  ;;  %v1344_v32 = vpack.c.bf16 %v825_v23, %v825_v23  ;;  %v823_v33 = vmax.f32 %v759_v24, 0.0  ;;  %v762_v35 = vadd.f32 %v1657_v36, %v691_v25  ;;  %v689_v37 = vmul.f32 %v1652_v34, %v573_v31  ;;  %v1415_v38 = vpop.f32.mrf.mxu0  ;;  %v1447_v43 = vpop.f32.mrf.mxu1 }
  0xef   :  { %1114 = vst.msk [vmem:[%s2047_s4 + $0x48] sm:$0xf] %vm1095_vm2, %v1312_v27  ;;  %v1310_v39 = vpack.c.bf16 %v791_v28, %v791_v28  ;;  %v794_v40 = vmax.f32 %v730_v29, 0.0  ;;  %v728_v41 = vadd.f32 %v1657_v36, %v657_v30  ;;  %v662_v42 = vmul.f32 %v1415_v38, %v1652_v34 }
  0xf0   :  { %1146 = vst.msk [vmem:[%s2047_s4 + $0xc8] sm:$0xf] %vm1095_vm2, %v1344_v32  ;;  %v1342_v44 = vpack.c.bf16 %v823_v33, %v823_v33  ;;  %v826_v45 = vmax.f32 %v762_v35, 0.0  ;;  %v760_v46 = vadd.f32 %v1657_v36, %v689_v37  ;;  %v694_v47 = vmul.f32 %v1447_v43, %v1652_v34  ;;  %v458_v48 = vpop.f32.mrf.mxu0  ;;  %v586_v53 = vpop.f32.mrf.mxu1 }
  0xf1   :  { %1112 = vst.msk [vmem:[%s2047_s4 + $0x40] sm:$0xf] %vm1095_vm2, %v1310_v39  ;;  %v1313_v49 = vpack.c.bf16 %v794_v40, %v794_v40  ;;  %v792_v50 = vmax.f32 %v728_v41, 0.0  ;;  %v733_v51 = vadd.f32 %v1657_v36, %v662_v42  ;;  %v660_v52 = vmul.f32 %v1652_v34, %v458_v48 }
  0xf2   :  { %1144 = vst.msk [vmem:[%s2047_s4 + $0xc0] sm:$0xf] %vm1095_vm2, %v1342_v44  ;;  %v1345_v54 = vpack.c.bf16 %v826_v45, %v826_v45  ;;  %v824_v55 = vmax.f32 %v760_v46, 0.0  ;;  %v765_v56 = vadd.f32 %v1657_v36, %v694_v47  ;;  %v692_v57 = vmul.f32 %v1652_v34, %v586_v53  ;;  %v1416_v58 = vpop.f32.mrf.mxu0  ;;  %v1448_v63 = vpop.f32.mrf.mxu1 }
  0xf3   :  { %1115 = vst.msk [vmem:[%s2047_s4 + $0x4c] sm:$0xf] %vm1095_vm2, %v1313_v49  ;;  %v1311_v59 = vpack.c.bf16 %v792_v50, %v792_v50  ;;  %v797_v60 = vmax.f32 %v733_v51, 0.0  ;;  %v731_v61 = vadd.f32 %v1657_v36, %v660_v52  ;;  %v663_v62 = vmul.f32 %v1416_v58, %v1652_v34 }
  0xf4   :  { %1147 = vst.msk [vmem:[%s2047_s4 + $0xcc] sm:$0xf] %vm1095_vm2, %v1345_v54  ;;  %v1343_v0 = vpack.c.bf16 %v824_v55, %v824_v55  ;;  %v829_v1 = vmax.f32 %v765_v56, 0.0  ;;  %v763_v2 = vadd.f32 %v1657_v36, %v692_v57  ;;  %v695_v3 = vmul.f32 %v1448_v63, %v1652_v34  ;;  %v461_v4 = vpop.f32.mrf.mxu0  ;;  %v589_v9 = vpop.f32.mrf.mxu1 }
  0xf5   :  { %1113 = vst.msk [vmem:[%s2047_s4 + $0x44] sm:$0xf] %vm1095_vm2, %v1311_v59  ;;  %v1316_v5 = vpack.c.bf16 %v797_v60, %v797_v60  ;;  %v795_v6 = vmax.f32 %v731_v61, 0.0  ;;  %v734_v7 = vadd.f32 %v1657_v36, %v663_v62  ;;  %v661_v8 = vmul.f32 %v1652_v34, %v461_v4 }
  0xf6   :  { %1145 = vst.msk [vmem:[%s2047_s4 + $0xc4] sm:$0xf] %vm1095_vm2, %v1343_v0  ;;  %v1348_v10 = vpack.c.bf16 %v829_v1, %v829_v1  ;;  %v827_v11 = vmax.f32 %v763_v2, 0.0  ;;  %v766_v12 = vadd.f32 %v1657_v36, %v695_v3  ;;  %v693_v13 = vmul.f32 %v1652_v34, %v589_v9  ;;  %v1419_v14 = vpop.f32.mrf.mxu0  ;;  %v1451_v19 = vpop.f32.mrf.mxu1 }
  0xf7   :  { %1118 = vst.msk [vmem:[%s2047_s4 + $0x58] sm:$0xf] %vm1095_vm2, %v1316_v5  ;;  %v1314_v15 = vpack.c.bf16 %v795_v6, %v795_v6  ;;  %v798_v16 = vmax.f32 %v734_v7, 0.0  ;;  %v732_v17 = vadd.f32 %v1657_v36, %v661_v8  ;;  %v666_v18 = vmul.f32 %v1419_v14, %v1652_v34 }
  0xf8   :  { %1150 = vst.msk [vmem:[%s2047_s4 + $0xd8] sm:$0xf] %vm1095_vm2, %v1348_v10  ;;  %v1346_v20 = vpack.c.bf16 %v827_v11, %v827_v11  ;;  %v830_v21 = vmax.f32 %v766_v12, 0.0  ;;  %v764_v22 = vadd.f32 %v1657_v36, %v693_v13  ;;  %v698_v23 = vmul.f32 %v1451_v19, %v1652_v34  ;;  %v474_v24 = vpop.f32.mrf.mxu0  ;;  %v602_v29 = vpop.f32.mrf.mxu1 }
  0xf9   :  { %1116 = vst.msk [vmem:[%s2047_s4 + $0x50] sm:$0xf] %vm1095_vm2, %v1314_v15  ;;  %v1317_v25 = vpack.c.bf16 %v798_v16, %v798_v16  ;;  %v796_v26 = vmax.f32 %v732_v17, 0.0  ;;  %v737_v27 = vadd.f32 %v1657_v36, %v666_v18  ;;  %v664_v28 = vmul.f32 %v1652_v34, %v474_v24 }
  0xfa   :  { %1148 = vst.msk [vmem:[%s2047_s4 + $0xd0] sm:$0xf] %vm1095_vm2, %v1346_v20  ;;  %v1349_v30 = vpack.c.bf16 %v830_v21, %v830_v21  ;;  %v828_v31 = vmax.f32 %v764_v22, 0.0  ;;  %v769_v32 = vadd.f32 %v1657_v36, %v698_v23  ;;  %v696_v33 = vmul.f32 %v1652_v34, %v602_v29  ;;  %v1420_v35 = vpop.f32.mrf.mxu0  ;;  %v1452_v41 = vpop.f32.mrf.mxu1 }
  0xfb   :  { %1119 = vst.msk [vmem:[%s2047_s4 + $0x5c] sm:$0xf] %vm1095_vm2, %v1317_v25  ;;  %v1315_v37 = vpack.c.bf16 %v796_v26, %v796_v26  ;;  %v801_v38 = vmax.f32 %v737_v27, 0.0  ;;  %v735_v39 = vadd.f32 %v1657_v36, %v664_v28  ;;  %v667_v40 = vmul.f32 %v1420_v35, %v1652_v34 }
  0xfc   :  { %1151 = vst.msk [vmem:[%s2047_s4 + $0xdc] sm:$0xf] %vm1095_vm2, %v1349_v30  ;;  %v1347_v42 = vpack.c.bf16 %v828_v31, %v828_v31  ;;  %v833_v43 = vmax.f32 %v769_v32, 0.0  ;;  %v767_v44 = vadd.f32 %v1657_v36, %v696_v33  ;;  %v699_v45 = vmul.f32 %v1452_v41, %v1652_v34  ;;  %v477_v46 = vpop.f32.mrf.mxu0  ;;  %v605_v51 = vpop.f32.mrf.mxu1 }
  0xfd   :  { %1117 = vst.msk [vmem:[%s2047_s4 + $0x54] sm:$0xf] %vm1095_vm2, %v1315_v37  ;;  %v1320_v47 = vpack.c.bf16 %v801_v38, %v801_v38  ;;  %v799_v48 = vmax.f32 %v735_v39, 0.0  ;;  %v738_v49 = vadd.f32 %v1657_v36, %v667_v40  ;;  %v665_v50 = vmul.f32 %v1652_v34, %v477_v46 }
  0xfe   :  { %1149 = vst.msk [vmem:[%s2047_s4 + $0xd4] sm:$0xf] %vm1095_vm2, %v1347_v42  ;;  %v1352_v52 = vpack.c.bf16 %v833_v43, %v833_v43  ;;  %v831_v53 = vmax.f32 %v767_v44, 0.0  ;;  %v770_v54 = vadd.f32 %v1657_v36, %v699_v45  ;;  %v697_v55 = vmul.f32 %v1652_v34, %v605_v51  ;;  %v1423_v56 = vpop.f32.mrf.mxu0  ;;  %v1455_v61 = vpop.f32.mrf.mxu1 }
  0xff   :  { %1122 = vst.msk [vmem:[%s2047_s4 + $0x68] sm:$0xf] %vm1095_vm2, %v1320_v47  ;;  %v1318_v57 = vpack.c.bf16 %v799_v48, %v799_v48  ;;  %v802_v58 = vmax.f32 %v738_v49, 0.0  ;;  %v736_v59 = vadd.f32 %v1657_v36, %v665_v50  ;;  %v670_v60 = vmul.f32 %v1423_v56, %v1652_v34 }
 0x100   :  { %1154 = vst.msk [vmem:[%s2047_s4 + $0xe8] sm:$0xf] %vm1095_vm2, %v1352_v52  ;;  %v1350_v62 = vpack.c.bf16 %v831_v53, %v831_v53  ;;  %v834_v63 = vmax.f32 %v770_v54, 0.0  ;;  %v768_v0 = vadd.f32 %v1657_v36, %v697_v55  ;;  %v702_v1 = vmul.f32 %v1455_v61, %v1652_v34  ;;  %v490_v2 = vpop.f32.mrf.mxu0  ;;  %v618_v7 = vpop.f32.mrf.mxu1 }
 0x101   :  { %1120 = vst.msk [vmem:[%s2047_s4 + $0x60] sm:$0xf] %vm1095_vm2, %v1318_v57  ;;  %v1321_v3 = vpack.c.bf16 %v802_v58, %v802_v58  ;;  %v800_v4 = vmax.f32 %v736_v59, 0.0  ;;  %v741_v5 = vadd.f32 %v1657_v36, %v670_v60  ;;  %v668_v6 = vmul.f32 %v1652_v34, %v490_v2 }
 0x102   :  { %1152 = vst.msk [vmem:[%s2047_s4 + $0xe0] sm:$0xf] %vm1095_vm2, %v1350_v62  ;;  %v1353_v8 = vpack.c.bf16 %v834_v63, %v834_v63  ;;  %v832_v9 = vmax.f32 %v768_v0, 0.0  ;;  %v773_v10 = vadd.f32 %v1657_v36, %v702_v1  ;;  %v700_v11 = vmul.f32 %v1652_v34, %v618_v7  ;;  %v1424_v12 = vpop.f32.mrf.mxu0  ;;  %v1456_v17 = vpop.f32.mrf.mxu1 }
 0x103   :  { %1123 = vst.msk [vmem:[%s2047_s4 + $0x6c] sm:$0xf] %vm1095_vm2, %v1321_v3  ;;  %v1319_v13 = vpack.c.bf16 %v800_v4, %v800_v4  ;;  %v805_v14 = vmax.f32 %v741_v5, 0.0  ;;  %v739_v15 = vadd.f32 %v1657_v36, %v668_v6  ;;  %v671_v16 = vmul.f32 %v1424_v12, %v1652_v34 }
 0x104   :  { %1155 = vst.msk [vmem:[%s2047_s4 + $0xec] sm:$0xf] %vm1095_vm2, %v1353_v8  ;;  %v1351_v18 = vpack.c.bf16 %v832_v9, %v832_v9  ;;  %v837_v19 = vmax.f32 %v773_v10, 0.0  ;;  %v771_v20 = vadd.f32 %v1657_v36, %v700_v11  ;;  %v703_v21 = vmul.f32 %v1456_v17, %v1652_v34  ;;  %v493_v22 = vpop.f32.mrf.mxu0  ;;  %v621_v27 = vpop.f32.mrf.mxu1 }
 0x105   :  { %1121 = vst.msk [vmem:[%s2047_s4 + $0x64] sm:$0xf] %vm1095_vm2, %v1319_v13  ;;  %v1324_v23 = vpack.c.bf16 %v805_v14, %v805_v14  ;;  %v803_v24 = vmax.f32 %v739_v15, 0.0  ;;  %v742_v25 = vadd.f32 %v1657_v36, %v671_v16  ;;  %v669_v26 = vmul.f32 %v1652_v34, %v493_v22 }
 0x106   :  { %1153 = vst.msk [vmem:[%s2047_s4 + $0xe4] sm:$0xf] %vm1095_vm2, %v1351_v18  ;;  %v1356_v28 = vpack.c.bf16 %v837_v19, %v837_v19  ;;  %v835_v29 = vmax.f32 %v771_v20, 0.0  ;;  %v774_v30 = vadd.f32 %v1657_v36, %v703_v21  ;;  %v701_v31 = vmul.f32 %v1652_v34, %v621_v27 }
 0x107   :  { %1126 = vst.msk [vmem:[%s2047_s4 + $0x78] sm:$0xf] %vm1095_vm2, %v1324_v23  ;;  %v1322_v32 = vpack.c.bf16 %v803_v24, %v803_v24  ;;  %v806_v33 = vmax.f32 %v742_v25, 0.0  ;;  %v740_v35 = vadd.f32 %v1657_v36, %v669_v26 }
 0x108   :  { %1158 = vst.msk [vmem:[%s2047_s4 + $0xf8] sm:$0xf] %vm1095_vm2, %v1356_v28  ;;  %v1354_v37 = vpack.c.bf16 %v835_v29, %v835_v29  ;;  %v838_v38 = vmax.f32 %v774_v30, 0.0  ;;  %v772_v39 = vadd.f32 %v1657_v36, %v701_v31 }
 0x109   :  { %1124 = vst.msk [vmem:[%s2047_s4 + $0x70] sm:$0xf] %vm1095_vm2, %v1322_v32  ;;  %v1325_v34 = vpack.c.bf16 %v806_v33, %v806_v33  ;;  %v804_v40 = vmax.f32 %v740_v35, 0.0 }
 0x10a   :  { %1156 = vst.msk [vmem:[%s2047_s4 + $0xf0] sm:$0xf] %vm1095_vm2, %v1354_v37  ;;  %v1357_v41 = vpack.c.bf16 %v838_v38, %v838_v38  ;;  %v836_v42 = vmax.f32 %v772_v39, 0.0 }
 0x10b   :  { %1127 = vst.msk [vmem:[%s2047_s4 + $0x7c] sm:$0xf] %vm1095_vm2, %v1325_v34  ;;  %v1323_v36 = vpack.c.bf16 %v804_v40, %v804_v40 }
 0x10c   :  { %1159 = vst.msk [vmem:[%s2047_s4 + $0xfc] sm:$0xf] %vm1095_vm2, %v1357_v41  ;;  %v1355_v43 = vpack.c.bf16 %v836_v42, %v836_v42 }
 0x10d   :  { %1125 = vst.msk [vmem:[%s2047_s4 + $0x74] sm:$0xf] %vm1095_vm2, %v1323_v36 }
 0x10e   :  { %1157 = vst.msk [vmem:[%s2047_s4 + $0xf4] sm:$0xf] %vm1095_vm2, %v1355_v43 }

// kernel: _forward.9
= control target key start
LH: loop header
LB: loop body
LE: loop exit
PB: predicated region body
PF: predicated region fallthrough
CT: control target
= control target key end

     0   :  { %s1994_s15 = smov 0   ;;  %s1996_s16 = smov 0   ;;  %s2277_s0 = inlined_call_operand.vmem [shape: bf16[8,9,9,8], index: 0, kind: input, shape index: {}]   ;;  %s2278_s1 = inlined_call_operand.vmem [shape: bf16[3,3,8,16], index: 1, kind: input, shape index: {}]   ;;  %s2279_s2 = inlined_call_operand.vmem [shape: f32[1,16], index: 2, kind: input, shape index: {}]   ;;  %s2280_s3 = inlined_call_operand.vmem [shape: f32[1,16], index: 3, kind: input, shape index: {}]   ;;  %s2281_s4 = inlined_call_operand.vmem [shape: bf16[128,16], index: 4, kind: output, shape index: {}]  }
   0x1   :  { %s1998_s17 = smov 0  }
   0x2 LB: > { %s26_s18 = sadd.s32 1, %s1963_s16  ;;  %p1584_p0 = scmp.ge.s32.totalorder %s1967_s17, 1  ;;  %s1967_s17 = sphi %s1998_s17, %s14_s17   ;;  %s1963_s16 = sphi %s1996_s16, %s2284_s16   ;;  %s1959_s15 = sphi %s1994_s15, %s2283_s15  }
   0x3   : > { %p28_p1 = scmp.ge.s32.totalorder %s26_s18, 2  ;;  %p178_p2 = scmp.lt.s32.totalorder %s1967_s17, 3 }
   0x5   : > { %s2286_s18 = smov (%p28_p1, %s26_s18), 0  ;;  %p179_p3 = pnand %p1584_p0, %p178_p2 }
   0x6   : > { %s1585_s21 = sshll.u32 (!%p179_p3), %s1959_s15, 2  ;;  %s1587_s20 = sshll.u32 (!%p179_p3), %s1959_s15, 3 }
   0x7   : > { %182 = sbr.rel (%p179_p3) target bundleno = 295 (0x127), region = 36  ;;  %p207_p4 = scmp.lt.s32.totalorder (!%p179_p3), %s1585_s21, 7 }
   0x8   : > { %p2209_p5 = scmp.lt.s32.totalorder (!%p179_p3), %s1587_s20, 15 }
   0xc   : > { %v1605_v0 = vld [vmem:[%s2278_s1 + $0x4] sm:$0xf]  ;;  %vm285_vm0 = vcmask 1043456   ;;  %v246_v2 = vld [vmem:[%s2278_s1] sm:$0xf]  ;;  %s2288_s21 = smov (!%p207_p4, %s1585_s21), 7 }
   0xd   : > { %1887 = vmatprep.subr.msk.bf16.mxu1 %vm285_vm0, %v1605_v0  ;;  %1886 = vmatprep.subr.msk.bf16.mxu0 %vm285_vm0, %v1605_v0  ;;  %v287_v1 = vsel %vm285_vm0, %v1605_v0, 0  ;;  %v1614_v3 = vld [vmem:[%s2278_s1 + $0x8] sm:$0xf]  ;;  %v1631_v4 = vld [vmem:[%s2278_s1 + $0xc] sm:$0xf]  ;;  %s1896_s30 = smul.u32 72, %s2288_s21 }
   0xe   : > { %1885 = vmatpush3.bf16.msra.mxu1 %v287_v1  ;;  %1795 = vmatpush3.bf16.msra.mxu0 %v287_v1  ;;  %v1648_v5 = vld [vmem:[%s2278_s1 + $0x10] sm:$0xf]  ;;  %vm272_vm1 = vcmask 64512   ;;  %v367_v6 = vsel %vm285_vm0, %v246_v2, 0  ;;  %v534_v7 = vsel %vm285_vm0, %v1614_v3, 0  ;;  %vm482_vm2 = vcmask 1046528  }
   0xf   : > { %1888 = vmatprep.subr.msk.bf16.mxu1 %vm285_vm0, %v246_v2  ;;  %1889 = vmatprep.subr.msk.bf16.mxu0 %vm285_vm0, %v1614_v3  ;;  %s2038_s7 = scalar_lea.vmem %s2277_s0, %s1896_s30  ;;  %v2043_v8 = vsel %vm285_vm0, %v1631_v4, 0  ;;  %v2046_v9 = vsel %vm285_vm0, %v1648_v5, 0  ;;  %v1669_v51 = vld [vmem:[%s2278_s1 + $0x14] sm:$0xf]  ;;  %v1686_v2 = vld [vmem:[%s2278_s1 + $0x18] sm:$0xf] }
  0x10   : > { %v1921_v10 = vld [vmem:[%s2038_s7 + $0x48] ss:$8 sps:$4 sm:$0xff]   ;;  %v1923_v12 = vld [vmem:[%s2038_s7 + $0x58] ss:$8 sps:$4 sm:$0xff]   ;;  %v435_v16 = vld [vmem:[%s2038_s7 + $0x4] sm:$0x1] }
  0x11   : > { %v1922_v11 = vld [vmem:[%s2038_s7 + $0x68] ss:$8 sps:$4 sm:$0xff]   ;;  %1796 = vmatprep.mubr.msk.bf16.mxu0 %vm272_vm1, %v1921_v10  ;;  %v1924_v13 = vld [vmem:[%s2038_s7 + $0x78] ss:$8 sps:$4 sm:$0xff]   ;;  %v437_v17 = vld [vmem:[%s2038_s7 + $0xc] sm:$0x1]  ;;  %v451_v19 = vunpack.c.l.bf16 %v435_v16 }
  0x12   : > { %1800 = vmatprep.mubr.msk.bf16.mxu1 %vm272_vm1, %v1922_v11  ;;  %1797 = vmatmul.mubr.msk.bf16.vlgmr.msra.gmra.mxu0 %vm272_vm1, %v1923_v12  ;;  %v1925_v14 = vld [vmem:[%s2038_s7] ss:$8 sps:$4 sm:$0xff]   ;;  %v453_v21 = vunpack.c.l.bf16 %v437_v17  ;;  %v1926_v22 = vld [vmem:[%s2038_s7 + $0x10] ss:$8 sps:$4 sm:$0xff]   ;;  %v439_v24 = vld [vmem:[%s2038_s7 + $0x14] sm:$0x1] }
  0x13   : > { %1801 = vmatmul.mubr.msk.bf16.vlgmr.msra.gmra.mxu1 %vm272_vm1, %v1924_v13  ;;  %1815 = vmatpush3.bf16.msra.mxu0 %v534_v7  ;;  %v434_v15 = vld [vmem:[%s2038_s7] ss:$8 sps:$4 sm:$0xff]   ;;  %v438_v23 = vld [vmem:[%s2038_s7 + $0x10] ss:$8 sps:$4 sm:$0xff]   ;;  %v441_v25 = vld [vmem:[%s2038_s7 + $0x1c] sm:$0x1]  ;;  %v455_v31 = vunpack.c.l.bf16 %v439_v24 }
  0x14   : > { %1805 = vmatpush3.bf16.msra.mxu1 %v367_v6  ;;  %1806 = vmatprep.mubr.msk.bf16.mxu1 %vm272_vm1, %v1925_v14  ;;  %v450_v18 = vunpack.c.l.bf16 %v434_v15  ;;  %v452_v20 = vunpack.c.h.bf16 %v434_v15  ;;  %v484_v27 = vrot.slane %v451_v19, 1  ;;  %v487_v29 = vrot.slane %v453_v21, 1  ;;  %v1927_v34 = vld [vmem:[%s2038_s7 + $0x20] ss:$8 sps:$4 sm:$0xff]   ;;  %v443_v38 = vld [vmem:[%s2038_s7 + $0x24] sm:$0x1] }
  0x15   : > { %1890 = vmatprep.subr.msk.bf16.mxu1 %vm285_vm0, %v1631_v4  ;;  %1891 = vmatprep.subr.msk.bf16.mxu0 %vm285_vm0, %v1648_v5  ;;  %v454_v30 = vunpack.c.l.bf16 %v438_v23  ;;  %v456_v32 = vunpack.c.h.bf16 %v438_v23  ;;  %v457_v33 = vunpack.c.l.bf16 %v441_v25  ;;  %v442_v35 = vld [vmem:[%s2038_s7 + $0x20] ss:$8 sps:$4 sm:$0xff]   ;;  %v445_v39 = vld [vmem:[%s2038_s7 + $0x2c] sm:$0x1]  ;;  %v490_v44 = vrot.slane %v455_v31, 1  ;;  %s2290_s20 = smov (!%p2209_p5, %s1587_s20), 15 }
  0x16   : > { %v483_v26 = vrot.slane %v450_v18, 1  ;;  %v486_v28 = vrot.slane %v452_v20, 1  ;;  %v458_v40 = vunpack.c.l.bf16 %v442_v35  ;;  %v460_v41 = vunpack.c.h.bf16 %v442_v35  ;;  %v446_v50 = vld [vmem:[%s2038_s7 + $0x30] ss:$8 sps:$4 sm:$0xff]   ;;  %v447_v54 = vld [vmem:[%s2038_s7 + $0x34] sm:$0x1] }
  0x17   : > { %v489_v43 = vrot.slane %v454_v30, 1  ;;  %v492_v45 = vrot.slane %v456_v32, 1  ;;  %v493_v46 = vrot.slane %v457_v33, 1  ;;  %v459_v47 = vunpack.c.l.bf16 %v443_v38  ;;  %v449_v55 = vld [vmem:[%s2038_s7 + $0x3c] sm:$0x1]  ;;  %s1588_s25 = sshll.u32 %s2290_s20, 2 }
  0x18   : > { %v485_v36 = vsel %vm482_vm2, %v483_v26, %v484_v27  ;;  %v488_v37 = vsel %vm482_vm2, %v486_v28, %v487_v29  ;;  %v461_v48 = vunpack.c.l.bf16 %v445_v39  ;;  %v495_v49 = vrot.slane %v458_v40, 1  ;;  %v1928_v5 = vld [vmem:[%s2038_s7 + $0x30] ss:$8 sps:$4 sm:$0xff]   ;;  %v1931_v15 = vld [vmem:[%s2038_s7 + $0xa0] ss:$8 sps:$4 sm:$0xff]   ;;  %s2239_s28 = scalar_lea.vmem %s2281_s4, %s1588_s25 }
  0x19   : > { %v515_v42 = vpack.c.bf16 %v488_v37, %v485_v36  ;;  %v491_v52 = vsel %vm482_vm2, %v489_v43, %v490_v44  ;;  %v498_v53 = vrot.slane %v460_v41, 1  ;;  %v462_v56 = vunpack.c.l.bf16 %v446_v50  ;;  %v1929_v11 = vld [vmem:[%s2038_s7 + $0x90] ss:$8 sps:$4 sm:$0xff]   ;;  %v1654_v17 = vld [vmem:[%s2038_s7 + $0x94] sm:$0x1] }
  0x1a   : > { %v464_v57 = vunpack.c.h.bf16 %v446_v50  ;;  %v494_v58 = vsel %vm482_vm2, %v492_v45, %v493_v46  ;;  %v496_v59 = vrot.slane %v459_v47, 1  ;;  %v499_v60 = vrot.slane %v461_v48, 1  ;;  %v1653_v16 = vld [vmem:[%s2038_s7 + $0x90] ss:$8 sps:$4 sm:$0xff]   ;;  %v1656_v18 = vld [vmem:[%s2038_s7 + $0x9c] sm:$0x1] }
  0x1b   : > { %1816 = vmatprep.mubr.msk.bf16.mxu0 %vm272_vm1, %v515_v42  ;;  %1807 = vmatmul.mubr.msk.bf16.vlgmr.msra.gmra.mxu1 %vm272_vm1, %v1926_v22  ;;  %v463_v61 = vunpack.c.l.bf16 %v447_v54  ;;  %v516_v62 = vpack.c.bf16 %v494_v58, %v491_v52  ;;  %v465_v63 = vunpack.c.l.bf16 %v449_v55  ;;  %v501_v0 = vrot.slane %v462_v56, 1  ;;  %v1933_v22 = vld [vmem:[%s2038_s7 + $0xb0] ss:$8 sps:$4 sm:$0xff]   ;;  %v1657_v24 = vld [vmem:[%s2038_s7 + $0xa0] ss:$8 sps:$4 sm:$0xff]  }
  0x1c   : > { %1825 = vmatpush3.bf16.msra.mxu1 %v2043_v8  ;;  %1810 = vmatprep.mubr.msk.bf16.mxu1 %vm272_vm1, %v1927_v34  ;;  %v504_v1 = vrot.slane %v464_v57, 1  ;;  %v497_v3 = vsel %vm482_vm2, %v495_v49, %v496_v59  ;;  %v500_v4 = vsel %vm482_vm2, %v498_v53, %v499_v60  ;;  %v934_v14 = vsel %vm285_vm0, %v1669_v51, 0  ;;  %v1658_v25 = vld [vmem:[%s2038_s7 + $0xa4] sm:$0x1]  ;;  %v1660_v29 = vld [vmem:[%s2038_s7 + $0xac] sm:$0x1] }
  0x1d   : > { %1892 = vmatprep.subr.msk.bf16.mxu1 %vm285_vm0, %v1669_v51  ;;  %v502_v6 = vrot.slane %v463_v61, 1  ;;  %1817 = vmatmul.mubr.msk.bf16.vlgmr.msra.gmra.mxu0 %vm272_vm1, %v516_v62  ;;  %v517_v7 = vpack.c.bf16 %v500_v4, %v497_v3  ;;  %v505_v8 = vrot.slane %v465_v63, 1  ;;  %v851_v19 = vunpack.c.l.bf16 %v1653_v16  ;;  %v1932_v35 = vld [vmem:[%s2038_s7 + $0xe8] ss:$8 sps:$4 sm:$0xff]   ;;  %v1703_v36 = vld [vmem:[%s2278_s1 + $0x1c] sm:$0xf] }
  0x1e   : > { %1835 = vmatpush3.bf16.msra.mxu0 %v2046_v9  ;;  %v1930_v9 = vld [vmem:[%s2038_s7 + $0xd8] ss:$8 sps:$4 sm:$0xff]   ;;  %v852_v20 = vunpack.c.l.bf16 %v1654_v17  ;;  %v853_v21 = vunpack.c.h.bf16 %v1653_v16  ;;  %v854_v23 = vunpack.c.l.bf16 %v1656_v18  ;;  %v855_v30 = vunpack.c.l.bf16 %v1657_v24  ;;  %v1662_v42 = vld [vmem:[%s2038_s7 + $0xb4] sm:$0x1]  ;;  %v1664_v45 = vld [vmem:[%s2038_s7 + $0xbc] sm:$0x1] }
  0x1f   : > { %v503_v10 = vsel %vm482_vm2, %v501_v0, %v502_v6  ;;  %1820 = vmatprep.mubr.msk.bf16.mxu0 %vm272_vm1, %v517_v7  ;;  %v506_v12 = vsel %vm482_vm2, %v504_v1, %v505_v8  ;;  %1893 = vmatprep.subr.msk.bf16.mxu0 %vm285_vm0, %v1686_v2  ;;  %v883_v26 = vrot.slane %v851_v19, 1  ;;  %v856_v32 = vunpack.c.l.bf16 %v1658_v25  ;;  %v1661_v37 = vld [vmem:[%s2038_s7 + $0xb0] ss:$8 sps:$4 sm:$0xff]   ;;  %v2128_v44 = vld [vmem:[%s2278_s1 + $0x20] sm:$0xf] }
  0x20   : > { %v518_v13 = vpack.c.bf16 %v506_v12, %v503_v10  ;;  %v884_v27 = vrot.slane %v852_v20, 1  ;;  %v886_v28 = vrot.slane %v853_v21, 1  ;;  %v887_v31 = vrot.slane %v854_v23, 1  ;;  %v1934_v39 = vld [vmem:[%s2038_s7 + $0xf8] ss:$8 sps:$4 sm:$0xff]  }
  0x21   : > { %v857_v33 = vunpack.c.h.bf16 %v1657_v24  ;;  %v858_v34 = vunpack.c.l.bf16 %v1660_v29  ;;  %v1048_v38 = vsel %vm285_vm0, %v1686_v2, 0  ;;  %v889_v41 = vrot.slane %v855_v30, 1  ;;  %v1935_v49 = vld [vmem:[%s2038_s7 + $0xc0] ss:$8 sps:$4 sm:$0xff]   ;;  %v1666_v57 = vld [vmem:[%s2038_s7 + $0xc4] sm:$0x1] }
  0x22   : > { %v885_v40 = vsel %vm482_vm2, %v883_v26, %v884_v27  ;;  %v888_v43 = vsel %vm482_vm2, %v886_v28, %v887_v31  ;;  %v859_v46 = vunpack.c.l.bf16 %v1661_v37  ;;  %v860_v47 = vunpack.c.l.bf16 %v1662_v42  ;;  %v1665_v56 = vld [vmem:[%s2038_s7 + $0xc0] ss:$8 sps:$4 sm:$0xff]   ;;  %v1668_v58 = vld [vmem:[%s2038_s7 + $0xcc] sm:$0x1]  ;;  %v1713_v31 = vld [vmem:[%s2038_s7 + $0x1c] sm:$0x1] }
  0x23   : > { %1811 = vmatmul.mubr.msk.bf16.gmra.mxu1 %vm272_vm1, %v1928_v5  ;;  %v861_v48 = vunpack.c.h.bf16 %v1661_v37  ;;  %v890_v50 = vrot.slane %v856_v32, 1  ;;  %v892_v51 = vrot.slane %v857_v33, 1  ;;  %v893_v52 = vrot.slane %v858_v34, 1  ;;  %v1936_v0 = vld [vmem:[%s2038_s7 + $0x108] ss:$8 sps:$4 sm:$0xff]  }
  0x24   : > { %1826 = vmatprep.mubr.msk.bf16.mxu1 %vm272_vm1, %v1929_v11  ;;  %v862_v53 = vunpack.c.l.bf16 %v1664_v45  ;;  %v895_v54 = vrot.slane %v859_v46, 1  ;;  %v896_v55 = vrot.slane %v860_v47, 1  ;;  %v915_v59 = vpack.c.bf16 %v888_v43, %v885_v40  ;;  %v1937_v5 = vld [vmem:[%s2038_s7 + $0x8] ss:$8 sps:$4 sm:$0xff]   ;;  %v1709_v10 = vld [vmem:[%s2038_s7 + $0xc] sm:$0x1] }
  0x25   : > { %1821 = vmatmul.mubr.msk.bf16.gmra.mxu0 %vm272_vm1, %v518_v13  ;;  %v898_v60 = vrot.slane %v861_v48, 1  ;;  %v891_v62 = vsel %vm482_vm2, %v889_v41, %v890_v50  ;;  %v863_v63 = vunpack.c.l.bf16 %v1665_v56  ;;  %v894_v1 = vsel %vm482_vm2, %v892_v51, %v893_v52  ;;  %v1708_v8 = vld [vmem:[%s2038_s7 + $0x8] ss:$8 sps:$4 sm:$0xff]   ;;  %v1711_v11 = vld [vmem:[%s2038_s7 + $0x14] sm:$0x1] }
  0x26   : > { %1836 = vmatprep.mubr.msk.bf16.mxu0 %vm272_vm1, %v1930_v9  ;;  %v899_v61 = vrot.slane %v862_v53, 1  ;;  %v864_v2 = vunpack.c.l.bf16 %v1666_v57  ;;  %v865_v3 = vunpack.c.h.bf16 %v1665_v56  ;;  %v866_v4 = vunpack.c.l.bf16 %v1668_v58  ;;  %v1939_v23 = vld [vmem:[%s2038_s7 + $0x28] ss:$8 sps:$4 sm:$0xff]   ;;  %v1712_v26 = vld [vmem:[%s2038_s7 + $0x18] ss:$8 sps:$4 sm:$0xff]  }
  0x27   : > { %v897_v6 = vsel %vm482_vm2, %v895_v54, %v896_v55  ;;  %v916_v12 = vpack.c.bf16 %v894_v1, %v891_v62  ;;  %v901_v13 = vrot.slane %v863_v63, 1  ;;  %v1252_v17 = vunpack.c.l.bf16 %v1708_v8  ;;  %v1715_v33 = vld [vmem:[%s2038_s7 + $0x24] sm:$0x1]  ;;  %v1716_v34 = vld [vmem:[%s2038_s7 + $0x28] ss:$8 sps:$4 sm:$0xff]  }
  0x28   : > { %v900_v7 = vsel %vm482_vm2, %v898_v60, %v899_v61  ;;  %v902_v9 = vrot.slane %v864_v2, 1  ;;  %v905_v16 = vrot.slane %v866_v4, 1  ;;  %v1253_v18 = vunpack.c.l.bf16 %v1709_v10  ;;  %v1941_v40 = vld [vmem:[%s2038_s7 + $0x50] ss:$8 sps:$4 sm:$0xff]   ;;  %v1721_v56 = vld [vmem:[%s2038_s7 + $0x3c] sm:$0x1] }
  0x29   : > { %v1254_v19 = vunpack.c.h.bf16 %v1708_v8  ;;  %v1255_v20 = vunpack.c.l.bf16 %v1711_v11  ;;  %v1161_v21 = vsel %vm285_vm0, %v1703_v36, 0  ;;  %v1284_v27 = vrot.slane %v1252_v17, 1  ;;  %v1720_v55 = vld [vmem:[%s2038_s7 + $0x38] ss:$8 sps:$4 sm:$0xff]   ;;  %v1723_v61 = vld [vmem:[%s2038_s7 + $0x44] sm:$0x1] }
  0x2a   : > { %v903_v24 = vsel %vm482_vm2, %v901_v13, %v902_v9  ;;  %v1285_v28 = vrot.slane %v1253_v18, 1  ;;  %v1335_v32 = vsel %vm285_vm0, %v2128_v44, 0  ;;  %v1258_v43 = vunpack.c.h.bf16 %v1712_v26  ;;  %v1942_v62 = vld [vmem:[%s2038_s7 + $0x60] ss:$8 sps:$4 sm:$0xff]   ;;  %v1943_v2 = vld [vmem:[%s2038_s7 + $0x70] ss:$8 sps:$4 sm:$0xff]  }
  0x2b   : > { %1827 = vmatmul.mubr.msk.bf16.vlgmr.msra.gmra.mxu1 %vm272_vm1, %v1931_v15  ;;  %v904_v15 = vrot.slane %v865_v3, 1  ;;  %v1287_v29 = vrot.slane %v1254_v19, 1  ;;  %v1288_v30 = vrot.slane %v1255_v20, 1  ;;  %v1260_v45 = vunpack.c.l.bf16 %v1716_v34  ;;  %v1944_v9 = vld [vmem:[%s2038_s7 + $0x80] ss:$8 sps:$4 sm:$0xff]  }
  0x2c   : > { %1845 = vmatpush3.bf16.msra.mxu1 %v934_v14  ;;  %1830 = vmatprep.mubr.msk.bf16.mxu1 %vm272_vm1, %v1933_v22  ;;  %v917_v14 = vpack.c.bf16 %v900_v7, %v897_v6  ;;  %v1938_v22 = vld [vmem:[%s2038_s7 + $0x18] ss:$8 sps:$4 sm:$0xff]   ;;  %v1286_v41 = vsel %vm482_vm2, %v1284_v27, %v1285_v28  ;;  %v1262_v47 = vunpack.c.h.bf16 %v1716_v34  ;;  %v1293_v53 = vrot.slane %v1258_v43, 1 }
  0x2d   : > { %1894 = vmatprep.subr.msk.bf16.mxu1 %vm285_vm0, %v1703_v36  ;;  %1837 = vmatmul.mubr.msk.bf16.vlgmr.msra.gmra.mxu0 %vm272_vm1, %v1932_v35  ;;  %v906_v25 = vsel %vm482_vm2, %v904_v15, %v905_v16  ;;  %v1717_v35 = vld [vmem:[%s2038_s7 + $0x2c] sm:$0x1]  ;;  %v1719_v36 = vld [vmem:[%s2038_s7 + $0x34] sm:$0x1]  ;;  %v1289_v42 = vsel %vm482_vm2, %v1287_v29, %v1288_v30  ;;  %v1296_v57 = vrot.slane %v1260_v45, 1  ;;  %v1265_v3 = vunpack.c.l.bf16 %v1721_v56 }
  0x2e   : > { %1855 = vmatpush3.bf16.msra.mxu0 %v1048_v38  ;;  %1840 = vmatprep.mubr.msk.bf16.mxu0 %vm272_vm1, %v1934_v39  ;;  %v918_v37 = vpack.c.bf16 %v906_v25, %v903_v24  ;;  %v1256_v38 = vunpack.c.l.bf16 %v1712_v26  ;;  %v1257_v39 = vunpack.c.l.bf16 %v1713_v31  ;;  %v1261_v46 = vunpack.c.l.bf16 %v1717_v35 }
  0x2f   : > { %1895 = vmatprep.subr.msk.bf16.mxu0 %vm285_vm0, %v2128_v44  ;;  %v1259_v44 = vunpack.c.l.bf16 %v1715_v33  ;;  %v1263_v48 = vunpack.c.l.bf16 %v1719_v36  ;;  %v1316_v52 = vpack.c.bf16 %v1289_v42, %v1286_v41  ;;  %v1266_v4 = vunpack.c.h.bf16 %v1720_v55 }
  0x30   : > { %v1290_v50 = vrot.slane %v1256_v38, 1  ;;  %v1291_v51 = vrot.slane %v1257_v39, 1  ;;  %v1297_v58 = vrot.slane %v1261_v46, 1  ;;  %vm1480_vm3 = vcmask 125952  }
  0x31   : > { %v1294_v54 = vrot.slane %v1259_v44, 1  ;;  %v1300_v60 = vrot.slane %v1263_v48, 1  ;;  %v1305_v13 = vrot.slane %v1266_v4, 1 }
  0x32   : > { %v1292_v63 = vsel %vm482_vm2, %v1290_v50, %v1291_v51  ;;  %v1298_v6 = vsel %vm482_vm2, %v1296_v57, %v1297_v58 }
  0x33   : > { %1831 = vmatmul.mubr.msk.bf16.gmra.mxu1 %vm272_vm1, %v1935_v49  ;;  %v1940_v49 = vld [vmem:[%s2038_s7 + $0x38] ss:$8 sps:$4 sm:$0xff]   ;;  %v1295_v1 = vsel %vm482_vm2, %v1293_v53, %v1294_v54 }
  0x34   : > { %1846 = vmatprep.mubr.msk.bf16.mxu1 %vm272_vm1, %v915_v59  ;;  %v1299_v59 = vrot.slane %v1262_v47, 1  ;;  %v1317_v8 = vpack.c.bf16 %v1295_v1, %v1292_v63 }
  0x35   : > { %1841 = vmatmul.mubr.msk.bf16.gmra.mxu0 %vm272_vm1, %v1936_v0  ;;  %v1264_v0 = vunpack.c.l.bf16 %v1720_v55 }
  0x36   : > { %1856 = vmatprep.mubr.msk.bf16.mxu0 %vm272_vm1, %v1937_v5  ;;  %v1267_v5 = vunpack.c.l.bf16 %v1723_v61  ;;  %v1301_v7 = vsel %vm482_vm2, %v1299_v59, %v1300_v60 }
  0x37   : > { %v1302_v10 = vrot.slane %v1264_v0, 1  ;;  %v1318_v11 = vpack.c.bf16 %v1301_v7, %v1298_v6 }
  0x3b   : > { %1847 = vmatmul.mubr.msk.bf16.vlgmr.msra.gmra.mxu1 %vm272_vm1, %v916_v12  ;;  %v1303_v12 = vrot.slane %v1265_v3, 1 }
  0x3c   : > { %1865 = vmatpush3.bf16.msra.mxu1 %v1161_v21  ;;  %1850 = vmatprep.mubr.msk.bf16.mxu1 %vm272_vm1, %v917_v14  ;;  %v1306_v14 = vrot.slane %v1267_v5, 1 }
  0x3d   : > { %1857 = vmatmul.mubr.msk.bf16.vlgmr.msra.gmra.mxu0 %vm272_vm1, %v1938_v22  ;;  %v1304_v15 = vsel %vm482_vm2, %v1302_v10, %v1303_v12 }
  0x3e   : > { %1875 = vmatpush3.bf16.msra.mxu0 %v1335_v32  ;;  %1860 = vmatprep.mubr.msk.bf16.mxu0 %vm272_vm1, %v1939_v23  ;;  %v1307_v16 = vsel %vm482_vm2, %v1305_v13, %v1306_v14 }
  0x3f   : > { %v1319_v17 = vpack.c.bf16 %v1307_v16, %v1304_v15 }
  0x43   : > { %1851 = vmatmul.mubr.msk.bf16.gmra.mxu1 %vm272_vm1, %v918_v37 }
  0x44   : > { %1866 = vmatprep.mubr.msk.bf16.mxu1 %vm272_vm1, %v1941_v40 }
  0x45   : > { %1861 = vmatmul.mubr.msk.bf16.gmra.mxu0 %vm272_vm1, %v1940_v49 }
  0x46   : > { %1876 = vmatprep.mubr.msk.bf16.mxu0 %vm272_vm1, %v1316_v52 }
  0x4b   : > { %1867 = vmatmul.mubr.msk.bf16.vlgmr.msra.gmra.mxu1 %vm272_vm1, %v1942_v62 }
  0x4c   : > { %1870 = vmatprep.mubr.msk.bf16.mxu1 %vm272_vm1, %v1943_v2 }
  0x4d   : > { %1877 = vmatmul.mubr.msk.bf16.vlgmr.msra.gmra.mxu0 %vm272_vm1, %v1317_v8 }
  0x4e   : > { %1880 = vmatprep.mubr.msk.bf16.mxu0 %vm272_vm1, %v1318_v11 }
  0x53   : > { %1871 = vmatmul.mubr.msk.bf16.gmra.mxu1 %vm272_vm1, %v1944_v9 }
  0x55   : > { %1881 = vmatmul.mubr.msk.bf16.gmra.mxu0 %vm272_vm1, %v1319_v17 }
  0xd2   : > { %v1798_v18 = vpop.f32.mrf.mxu0 }
  0xd3   : > { %v1802_v19 = vpop.f32.mrf.mxu1 }
  0xd4   : > { %v323_v20 = vpop.f32.mrf.mxu0 }
  0xd5   : > { %v339_v21 = vpop.f32.mrf.mxu1 }
  0xd6   : > { %v1799_v22 = vpop.f32.mrf.mxu0 }
  0xd7   : > { %v2196_v23 = vpop.f32.mrf.mxu1 }
  0xd8   : > { %v326_v25 = vpop.f32.mrf.mxu0 }
  0xd9   : > { %v2198_v24 = vpop.f32.mrf.mxu1 }
  0xdb   : > { %v1808_v26 = vpop.f32.mrf.mxu1 }
  0xdc   : > { %v412_v56 = vadd.f32 %v1808_v26, %v1798_v18 }
  0xdd   : > { %v403_v27 = vpop.f32.mrf.mxu1  ;;  %v1818_v28 = vpop.f32.mrf.mxu0 }
  0xde   : > { %v404_v59 = vadd.f32 %v403_v27, %v323_v20  ;;  %v603_v62 = vadd.f32 %v1818_v28, %v412_v56 }
  0xdf   : > { %v1809_v29 = vpop.f32.mrf.mxu1  ;;  %v570_v30 = vpop.f32.mrf.mxu0 }
  0xe0   : > { %v415_v63 = vadd.f32 %v1809_v29, %v1799_v22  ;;  %v601_v2 = vadd.f32 %v570_v30, %v404_v59  ;;  %v2217_v59 = vld [vmem:[%s2279_s2] ss:$0 sm:$0xff] }
  0xe1   : > { %v406_v31 = vpop.f32.mrf.mxu1  ;;  %v1819_v32 = vpop.f32.mrf.mxu0 }
  0xe2   : > { %v407_v3 = vadd.f32 %v406_v31, %v326_v25  ;;  %v604_v7 = vadd.f32 %v1819_v32, %v415_v63 }
  0xe3   : > { %v1812_v33 = vpop.f32.mrf.mxu1  ;;  %v573_v34 = vpop.f32.mrf.mxu0 }
  0xe4   : > { %v428_v10 = vadd.f32 %v1812_v33, %v1802_v19  ;;  %v602_v13 = vadd.f32 %v573_v34, %v407_v3 }
  0xe5   : > { %v419_v35 = vpop.f32.mrf.mxu1  ;;  %v1822_v36 = vpop.f32.mrf.mxu0 }
  0xe6   : > { %v420_v15 = vadd.f32 %v419_v35, %v339_v21  ;;  %v607_v26 = vadd.f32 %v1822_v36, %v428_v10 }
  0xe7   : > { %v1813_v37 = vpop.f32.mrf.mxu1  ;;  %v586_v38 = vpop.f32.mrf.mxu0 }
  0xe8   : > { %v431_v25 = vadd.f32 %v1813_v37, %v2196_v23  ;;  %v605_v19 = vadd.f32 %v586_v38, %v420_v15 }
  0xe9   : > { %v422_v39 = vpop.f32.mrf.mxu1  ;;  %v1823_v40 = vpop.f32.mrf.mxu0 }
  0xea   : > { %v423_v31 = vadd.f32 %v422_v39, %v2198_v24 }
  0xeb   : > { %v1828_v41 = vpop.f32.mrf.mxu1  ;;  %v2200_v42 = vpop.f32.mrf.mxu0 }
  0xec   : > { %v716_v4 = vadd.f32 %v1828_v41, %v603_v62  ;;  %v606_v24 = vadd.f32 %v2200_v42, %v423_v31 }
  0xed   : > { %v683_v43 = vpop.f32.mrf.mxu1  ;;  %v1838_v44 = vpop.f32.mrf.mxu0 }
  0xee   : > { %v714_v8 = vadd.f32 %v683_v43, %v601_v2  ;;  %v829_v14 = vadd.f32 %v1838_v44, %v716_v4  ;;  %v608_v43 = vadd.f32 %v1823_v40, %v431_v25 }
  0xef   : > { %v1829_v45 = vpop.f32.mrf.mxu1  ;;  %v796_v46 = vpop.f32.mrf.mxu0 }
  0xf0   : > { %v717_v9 = vadd.f32 %v1829_v45, %v604_v7  ;;  %v827_v18 = vadd.f32 %v796_v46, %v714_v8 }
  0xf1   : > { %v686_v47 = vpop.f32.mrf.mxu1  ;;  %v1839_v48 = vpop.f32.mrf.mxu0 }
  0xf2   : > { %v715_v20 = vadd.f32 %v686_v47, %v602_v13  ;;  %v830_v29 = vadd.f32 %v1839_v48, %v717_v9 }
  0xf3   : > { %v1832_v49 = vpop.f32.mrf.mxu1  ;;  %v799_v50 = vpop.f32.mrf.mxu0 }
  0xf4   : > { %v720_v32 = vadd.f32 %v1832_v49, %v607_v26  ;;  %v828_v21 = vadd.f32 %v799_v50, %v715_v20 }
  0xf5   : > { %v699_v51 = vpop.f32.mrf.mxu1  ;;  %v1842_v52 = vpop.f32.mrf.mxu0 }
  0xf6   : > { %v718_v44 = vadd.f32 %v699_v51, %v605_v19  ;;  %v833_v38 = vadd.f32 %v1842_v52, %v720_v32 }
  0xf7   : > { %v1833_v53 = vpop.f32.mrf.mxu1  ;;  %v812_v54 = vpop.f32.mrf.mxu0 }
  0xf8   : > { %v721_v39 = vadd.f32 %v1833_v53, %v608_v43  ;;  %v831_v40 = vadd.f32 %v812_v54, %v718_v44  ;;  %v2227_v54 = vld [vmem:[%s2280_s3] ss:$0 sm:$0xff] }
  0xf9   : > { %v702_v55 = vpop.f32.mrf.mxu1  ;;  %v2202_v57 = vpop.f32.mrf.mxu0 }
  0xfa   : > { %v719_v51 = vadd.f32 %v702_v55, %v606_v24  ;;  %v834_v53 = vadd.f32 %v2202_v57, %v721_v39 }
  0xfb   : > { %v1848_v58 = vpop.f32.mrf.mxu1  ;;  %v2204_v60 = vpop.f32.mrf.mxu0 }
  0xfc   : > { %v1003_v22 = vadd.f32 %v1848_v58, %v829_v14  ;;  %v832_v4 = vadd.f32 %v2204_v60, %v719_v51 }
  0xfd   : > { %v970_v61 = vpop.f32.mrf.mxu1  ;;  %v1858_v0 = vpop.f32.mrf.mxu0 }
  0xfe   : > { %v1001_v30 = vadd.f32 %v970_v61, %v827_v18  ;;  %v1117_v35 = vadd.f32 %v1858_v0, %v1003_v22 }
  0xff   : > { %v1849_v1 = vpop.f32.mrf.mxu1  ;;  %v1084_v5 = vpop.f32.mrf.mxu0 }
 0x100   : > { %v1004_v41 = vadd.f32 %v1849_v1, %v830_v29  ;;  %v1115_v46 = vadd.f32 %v1084_v5, %v1001_v30 }
 0x101   : > { %v973_v6 = vpop.f32.mrf.mxu1  ;;  %v1859_v11 = vpop.f32.mrf.mxu0 }
 0x102   : > { %v1002_v23 = vadd.f32 %v973_v6, %v828_v21  ;;  %v1118_v49 = vadd.f32 %v1859_v11, %v1004_v41 }
 0x103   : > { %v1852_v12 = vpop.f32.mrf.mxu1  ;;  %v1087_v16 = vpop.f32.mrf.mxu0 }
 0x104   : > { %v1007_v56 = vadd.f32 %v1852_v12, %v833_v38  ;;  %v1116_v62 = vadd.f32 %v1087_v16, %v1002_v23 }
 0x105   : > { %v986_v17 = vpop.f32.mrf.mxu1  ;;  %v1862_v27 = vpop.f32.mrf.mxu0 }
 0x106   : > { %v1005_v63 = vadd.f32 %v986_v17, %v831_v40  ;;  %v1121_v5 = vadd.f32 %v1862_v27, %v1007_v56 }
 0x107   : > { %v1853_v28 = vpop.f32.mrf.mxu1  ;;  %v1100_v33 = vpop.f32.mrf.mxu0 }
 0x108   : > { %v1008_v6 = vadd.f32 %v1853_v28, %v834_v53  ;;  %v1119_v12 = vadd.f32 %v1100_v33, %v1005_v63 }
 0x109   : > { %v989_v34 = vpop.f32.mrf.mxu1  ;;  %v1863_v45 = vpop.f32.mrf.mxu0 }
 0x10a   : > { %v1006_v13 = vadd.f32 %v989_v34, %v832_v4  ;;  %v1122_v20 = vadd.f32 %v1863_v45, %v1008_v6 }
 0x10b   : > { %v1868_v36 = vpop.f32.mrf.mxu1  ;;  %v1103_v47 = vpop.f32.mrf.mxu0 }
 0x10c   : > { %v1230_v37 = vadd.f32 %v1868_v36, %v1117_v35  ;;  %v1120_v19 = vadd.f32 %v1103_v47, %v1006_v13 }
 0x10d   : > { %v1197_v48 = vpop.f32.mrf.mxu1  ;;  %v1878_v58 = vpop.f32.mrf.mxu0 }
 0x10e   : > { %v1228_v50 = vadd.f32 %v1197_v48, %v1115_v46  ;;  %v1404_v42 = vadd.f32 %v1878_v58, %v1230_v37 }
 0x10f   : > { %v1869_v61 = vpop.f32.mrf.mxu1  ;;  %v1371_v55 = vpop.f32.mrf.mxu0 }
 0x110   : > { %v1231_v52 = vadd.f32 %v1869_v61, %v1118_v49  ;;  %v1419_v1 = vmul.f32 %v2217_v59, %v1404_v42  ;;  %v1402_v2 = vadd.f32 %v1371_v55, %v1228_v50 }
 0x111   : > { %v1200_v0 = vpop.f32.mrf.mxu1  ;;  %v1879_v7 = vpop.f32.mrf.mxu0 }
 0x112   : > { %v1229_v3 = vadd.f32 %v1200_v0, %v1116_v62  ;;  %v1434_v57 = vadd.f32 %v2227_v54, %v1419_v1  ;;  %v1417_v10 = vmul.f32 %v2217_v59, %v1402_v2  ;;  %v1405_v11 = vadd.f32 %v1879_v7, %v1231_v52 }
 0x113   : > { %v1872_v8 = vpop.f32.mrf.mxu1  ;;  %v1374_v14 = vpop.f32.mrf.mxu0 }
 0x114   : > { %v1234_v9 = vadd.f32 %v1872_v8, %v1121_v5  ;;  %v1442_v16 = vmax.f32 %v1434_v57, 0.0  ;;  %v1432_v17 = vadd.f32 %v2227_v54, %v1417_v10  ;;  %v1420_v60 = vmul.f32 %v2217_v59, %v1405_v11 }
 0x115   : > { %v1213_v15 = vpop.f32.mrf.mxu1  ;;  %v1403_v18 = vadd.f32 %v1374_v14, %v1229_v3  ;;  %v1882_v22 = vpop.f32.mrf.mxu0 }
 0x116   : > { %v1232_v26 = vadd.f32 %v1213_v15, %v1119_v12  ;;  %v1743_v27 = vpack.c.bf16 %v1442_v16, %v1442_v16  ;;  %v1440_v28 = vmax.f32 %v1432_v17, 0.0  ;;  %v1435_v29 = vadd.f32 %v2227_v54, %v1420_v60 }
 0x117   : > { %v1873_v25 = vpop.f32.mrf.mxu1  ;;  %v1418_v30 = vmul.f32 %v2217_v59, %v1403_v18  ;;  %v1408_v31 = vadd.f32 %v1882_v22, %v1234_v9  ;;  %v1387_v32 = vpop.f32.mrf.mxu0 }
 0x118   : > { %v1235_v33 = vadd.f32 %v1873_v25, %v1122_v20  ;;  %1483 = vst.msk [vmem:[%s2239_s28 + $0x8] sm:$0xf] %vm1480_vm3, %v1743_v27  ;;  %v1741_v21 = vpack.c.bf16 %v1440_v28, %v1440_v28  ;;  %v1443_v35 = vmax.f32 %v1435_v29, 0.0  ;;  %v1406_v43 = vadd.f32 %v1387_v32, %v1232_v26 }
 0x119   : > { %v1216_v34 = vpop.f32.mrf.mxu1  ;;  %v1433_v41 = vadd.f32 %v2227_v54, %v1418_v30  ;;  %v1423_v44 = vmul.f32 %v2217_v59, %v1408_v31  ;;  %v1883_v45 = vpop.f32.mrf.mxu0 }
 0x11a   : > { %v1233_v36 = vadd.f32 %v1216_v34, %v1120_v19  ;;  %1481 = vst.msk [vmem:[%s2239_s28] sm:$0xf] %vm1480_vm3, %v1741_v21  ;;  %v1744_v46 = vpack.c.bf16 %v1443_v35, %v1443_v35  ;;  %v1421_v37 = vmul.f32 %v2217_v59, %v1406_v43  ;;  %v1409_v24 = vadd.f32 %v1883_v45, %v1235_v33 }
 0x11b   : > { %v1441_v23 = vmax.f32 %v1433_v41, 0.0  ;;  %v1438_v38 = vadd.f32 %v2227_v54, %v1423_v44  ;;  %v1390_v39 = vpop.f32.mrf.mxu0 }
 0x11c   : > { %1484 = vst.msk [vmem:[%s2239_s28 + $0xc] sm:$0xf] %vm1480_vm3, %v1744_v46  ;;  %v1436_v48 = vadd.f32 %v2227_v54, %v1421_v37  ;;  %v1424_v49 = vmul.f32 %v2217_v59, %v1409_v24  ;;  %v1407_v50 = vadd.f32 %v1390_v39, %v1233_v36 }
 0x11d   : > { %v1742_v47 = vpack.c.bf16 %v1441_v23, %v1441_v23  ;;  %v1446_v40 = vmax.f32 %v1438_v38, 0.0 }
 0x11e   : > { %v1444_v51 = vmax.f32 %v1436_v48, 0.0  ;;  %v1439_v56 = vadd.f32 %v2227_v54, %v1424_v49  ;;  %v1422_v58 = vmul.f32 %v2217_v59, %v1407_v50 }
 0x11f   : > { %1482 = vst.msk [vmem:[%s2239_s28 + $0x4] sm:$0xf] %vm1480_vm3, %v1742_v47  ;;  %v1747_v61 = vpack.c.bf16 %v1446_v40, %v1446_v40 }
 0x120   : > { %v1745_v62 = vpack.c.bf16 %v1444_v51, %v1444_v51  ;;  %v1447_v42 = vmax.f32 %v1439_v56, 0.0  ;;  %v1437_v52 = vadd.f32 %v2227_v54, %v1422_v58 }
 0x121   : > { %1487 = vst.msk [vmem:[%s2239_s28 + $0x18] sm:$0xf] %vm1480_vm3, %v1747_v61 }
 0x122   : > { %1485 = vst.msk [vmem:[%s2239_s28 + $0x10] sm:$0xf] %vm1480_vm3, %v1745_v62  ;;  %v1748_v53 = vpack.c.bf16 %v1447_v42, %v1447_v42  ;;  %v1445_v63 = vmax.f32 %v1437_v52, 0.0 }
 0x124   : > { %1488 = vst.msk [vmem:[%s2239_s28 + $0x1c] sm:$0xf] %vm1480_vm3, %v1748_v53  ;;  %v1746_v55 = vpack.c.bf16 %v1445_v63, %v1445_v63 }
 0x126   : > { %1486 = vst.msk [vmem:[%s2239_s28 + $0x14] sm:$0xf] %vm1480_vm3, %v1746_v55 }
 0x127 PF: > { %s14_s17 = sadd.s32 1, %s1967_s17   ;;  %s2283_s15 = smov %s1963_s16 }
 0x128   : > { %p11_p6 = scmp.ge.s32.totalorder %s14_s17, 4   ;;  %s2284_s16 = smov %s2286_s18 }
 0x12a   :  { %13 = sbr.rel (!%p11_p6) target bundleno = 2 (0x2), region = 80 }

// kernel: _forward.6
= control target key start
LH: loop header
LB: loop body
LE: loop exit
PB: predicated region body
PF: predicated region fallthrough
CT: control target
= control target key end

     0   :  { %s6342_s15 = smov 0   ;;  %s6344_s16 = smov 0   ;;  %s9079_s0 = inlined_call_operand.vmem [shape: bf16[2,18,18,4], index: 0, kind: input, shape index: {}]   ;;  %s9080_s1 = inlined_call_operand.vmem [shape: bf16[3,3,4,8], index: 1, kind: input, shape index: {}]   ;;  %s9081_s2 = inlined_call_operand.vmem [shape: f32[1,8], index: 2, kind: input, shape index: {}]   ;;  %s9082_s3 = inlined_call_operand.vmem [shape: f32[1,8], index: 3, kind: input, shape index: {}]   ;;  %s9083_s4 = inlined_call_operand.vmem [shape: bf16[512,8], index: 4, kind: output, shape index: {}]  }
   0x1   :  { %s6346_s17 = smov 0  }
   0x2 LB: > { %s26_s18 = sadd.s32 1, %s6311_s16  ;;  %p5139_p0 = scmp.ge.s32.totalorder %s6315_s17, 1  ;;  %s6315_s17 = sphi %s6346_s17, %s14_s17   ;;  %s6311_s16 = sphi %s6344_s16, %s9359_s16   ;;  %s6307_s15 = sphi %s6342_s15, %s9358_s15  }
   0x3   : > { %p28_p1 = scmp.ge.s32.totalorder %s26_s18, 2  ;;  %p176_p2 = scmp.lt.s32.totalorder %s6315_s17, 3 }
   0x5   : > { %s9361_s18 = smov (%p28_p1, %s26_s18), 0  ;;  %p177_p3 = pnand %p5139_p0, %p176_p2 }
   0x7   : > { %180 = sbr.rel (%p177_p3) target bundleno = 562 (0x232), region = 36 }
   0xc   : > { %v5143_v0 = vld [vmem:[%s9080_s1 + $0x2] sm:$0x3]  ;;  %vm756_vm0 = vcmask 1041408   ;;  %p203_p4 = scmp.lt.s32.totalorder %s6307_s15, 1  ;;  %v253_v2 = vld [vmem:[%s9080_s1] sm:$0x3] }
   0xd   : > { %6209 = vmatprep.subr.msk.bf16.mxu1 %vm756_vm0, %v5143_v0  ;;  %6208 = vmatprep.subr.msk.bf16.mxu0 %vm756_vm0, %v5143_v0  ;;  %v758_v1 = vsel %vm756_vm0, %v5143_v0, 0  ;;  %v5224_v3 = vld [vmem:[%s9080_s1 + $0x4] sm:$0x3]  ;;  %vm270_vm1 = vsmask.f32 3328  ;;  %v6384_v4 = vsel %vm756_vm0, %v253_v2, 0 }
   0xe   : > { %6207 = vmatpush3.bf16.msra.mxu1 %v758_v1  ;;  %5901 = vmatpush3.bf16.msra.mxu0 %v758_v1  ;;  %s204_s23 = scalar_select %p203_p4, %s6307_s15, 1  ;;  %vm271_vm2 = vsmask.f32 7440  ;;  %vm707_vm3 = vcmask 31744   ;;  %v6410_v16 = vsel %vm756_vm0, %v5224_v3, 0  ;;  %vm1261_vm5 = vcmask 1042432  }
   0xf   : > { %6210 = vmatprep.subr.msk.bf16.mxu1 %vm756_vm0, %v253_v2  ;;  %6211 = vmatprep.subr.msk.bf16.mxu0 %vm756_vm0, %v5224_v3  ;;  %vm6425_vm4 = vmor %vm270_vm1, %vm271_vm2  ;;  %vm1262_vm6 = vcmask 1046532   ;;  %s5141_s20 = sshll.u32 %s6307_s15, 5  ;;  %vm5024_vm8 = vcmask 60416  }
  0x10   : > { %s6218_s26 = smul.u32 216, %s204_s23  ;;  %vm6711_vm7 = vmor %vm1261_vm5, %vm1262_vm6  ;;  %p210_p5 = scmp.lt.s32.totalorder %s5141_s20, 63 }
  0x12   : > { %s6381_s29 = scalar_lea.vmem %s9079_s0, %s6218_s26  ;;  %s9363_s20 = smov (!%p210_p5, %s5141_s20), 63 }
  0x13   : > { %v6387_v5 = vld [vmem:[%s6381_s29] sm:$0xf]  ;;  %v6390_v6 = vld [vmem:[%s6381_s29 + $0x4] sm:$0xf]  ;;  %v6393_v7 = vld [vmem:[%s6381_s29 + $0x8] sm:$0x1] }
  0x14   : > { %v274_v8 = vshrl.u32 %v6387_v5, 16  ;;  %v277_v9 = vshll.u32 %v6387_v5, 16  ;;  %v283_v10 = vshll.u32 %v6390_v6, 16  ;;  %v287_v11 = vshrl.u32 %v6390_v6, 16  ;;  %v6400_v12 = vld [vmem:[%s6381_s29 + $0x60] sm:$0xf] }
  0x15   : > { %v293_v13 = vshll.u32 %v6393_v7, 16  ;;  %v6404_v14 = vld [vmem:[%s6381_s29 + $0x64] sm:$0xf]  ;;  %v6407_v15 = vld [vmem:[%s6381_s29 + $0x68] sm:$0x1]  ;;  %v466_v22 = vshrl.u32 %v6400_v12, 16 }
  0x16   : > { %v276_v17 = vrot.slane %v274_v8, 4  ;;  %v279_v18 = vrot.slane %v277_v9, 5  ;;  %v285_v19 = vrot.slane %v283_v10, 5  ;;  %v289_v20 = vrot.slane %v287_v11, 4  ;;  %v6418_v29 = vld [vmem:[%s6381_s29 + $0xc] sm:$0xf] }
  0x17   : > { %v295_v21 = vrot.slane %v293_v13, 5  ;;  %v469_v23 = vshll.u32 %v6400_v12, 16  ;;  %v475_v24 = vshll.u32 %v6404_v14, 16  ;;  %v479_v27 = vshrl.u32 %v6404_v14, 16  ;;  %v6421_v30 = vld [vmem:[%s6381_s29 + $0x10] sm:$0xf] }
  0x18   : > { %v280_v25 = vor.u32 %v279_v18, %v276_v17  ;;  %v290_v26 = vor.u32 %v289_v20, %v285_v19  ;;  %v485_v28 = vshll.u32 %v6407_v15, 16  ;;  %v468_v33 = vrot.slane %v466_v22, 4  ;;  %v6431_v41 = vld [vmem:[%s6381_s29 + $0x14] sm:$0x1]  ;;  %v6442_v53 = vld [vmem:[%s6381_s29 + $0x6c] sm:$0xf] }
  0x19   : > { %v471_v34 = vrot.slane %v469_v23, 5  ;;  %v477_v35 = vrot.slane %v475_v24, 5  ;;  %v481_v38 = vrot.slane %v479_v27, 4  ;;  %v298_v42 = vshrl.u32 %v6418_v29, 16  ;;  %v6446_v58 = vld [vmem:[%s6381_s29 + $0x70] sm:$0xf] }
  0x1a   : > { %v281_v36 = vrot.slane %v280_v25, 4  ;;  %v291_v37 = vrot.slane %v290_v26, 4  ;;  %v487_v39 = vrot.slane %v485_v28, 5  ;;  %v301_v43 = vshll.u32 %v6418_v29, 16  ;;  %v6454_v63 = vld [vmem:[%s6381_s29 + $0x74] sm:$0x1] }
  0x1b   : > { %v472_v40 = vor.u32 %v471_v34, %v468_v33  ;;  %v307_v44 = vshll.u32 %v6421_v30, 16  ;;  %v482_v47 = vor.u32 %v481_v38, %v477_v35  ;;  %v311_v48 = vshrl.u32 %v6421_v30, 16  ;;  %v6460_v8 = vld [vmem:[%s6381_s29 + $0x18] sm:$0xf]  ;;  %v6473_v25 = vld [vmem:[%s6381_s29 + $0x20] sm:$0x1] }
  0x1c   : > { %v286_v45 = vsel %vm6425_vm4, %v281_v36, %v285_v19  ;;  %v296_v46 = vsel %vm6425_vm4, %v291_v37, %v295_v21  ;;  %v300_v51 = vrot.slane %v298_v42, 4  ;;  %v303_v52 = vrot.slane %v301_v43, 5  ;;  %v6467_v21 = vld [vmem:[%s6381_s29 + $0x1c] sm:$0xf]  ;;  %s5142_s24 = sshll.u32 %s9363_s20, 2 }
  0x1d   : > { %v5144_v49 = vcombine.low %v286_v45, %v296_v46  ;;  %v473_v50 = vrot.slane %v472_v40, 4  ;;  %v483_v54 = vrot.slane %v482_v47, 4  ;;  %v309_v55 = vrot.slane %v307_v44, 5  ;;  %v6486_v40 = vld [vmem:[%s9080_s1 + $0x8] sm:$0x3]  ;;  %s8874_s27 = scalar_lea.vmem %s9083_s4, %s5142_s24 }
  0x1e   : > { %v313_v56 = vrot.slane %v311_v48, 4  ;;  %v317_v57 = vshll.u32 %v6431_v41, 16  ;;  %v304_v60 = vor.u32 %v303_v52, %v300_v51  ;;  %v490_v3 = vshrl.u32 %v6442_v53, 16  ;;  %v6491_v46 = vld [vmem:[%s6381_s29 + $0x7c] sm:$0xf] }
  0x1f   : > { %5902 = vmatprep.mubr.msk.bf16.mxu0 %vm707_vm3, %v5144_v49  ;;  %v478_v59 = vsel %vm6425_vm4, %v473_v50, %v477_v35  ;;  %v488_v0 = vsel %vm6425_vm4, %v483_v54, %v487_v39  ;;  %v493_v11 = vshll.u32 %v6442_v53, 16  ;;  %v499_v13 = vshll.u32 %v6446_v58, 16  ;;  %v6480_v35 = vld [vmem:[%s6381_s29 + $0x78] sm:$0xf] }
  0x20   : > { %v314_v1 = vor.u32 %v313_v56, %v309_v55  ;;  %v319_v2 = vrot.slane %v317_v57, 5  ;;  %v5152_v9 = vcombine.low %v478_v59, %v488_v0  ;;  %v305_v10 = vrot.slane %v304_v60, 4  ;;  %v6498_v56 = vld [vmem:[%s6381_s29 + $0x80] sm:$0x1] }
  0x21   : > { %v492_v18 = vrot.slane %v490_v3, 4  ;;  %v503_v19 = vshrl.u32 %v6446_v58, 16  ;;  %v509_v20 = vshll.u32 %v6454_v63, 16  ;;  %v495_v23 = vrot.slane %v493_v11, 5  ;;  %9119 = vst [vmem:[#allocation2_spill] sm:$0xff] %v6498_v56 }
  0x22   : > { %v315_v17 = vrot.slane %v314_v1, 4  ;;  %5918 = vmatprep.mubr.msk.bf16.mxu1 %vm707_vm3, %v5152_v9  ;;  %v310_v22 = vsel %vm6425_vm4, %v305_v10, %v309_v55  ;;  %v501_v24 = vrot.slane %v499_v13, 5  ;;  %v322_v26 = vshrl.u32 %v6460_v8, 16  ;;  %v6504_v1 = vld [vmem:[%s6381_s29 + $0x24] sm:$0xf] }
  0x23   : > { %v505_v28 = vrot.slane %v503_v19, 4  ;;  %v511_v33 = vrot.slane %v509_v20, 5  ;;  %v325_v34 = vshll.u32 %v6460_v8, 16  ;;  %v496_v37 = vor.u32 %v495_v23, %v492_v18  ;;  %v6512_v10 = vld [vmem:[%s6381_s29 + $0x28] sm:$0xf] }
  0x24   : > { %v320_v27 = vsel %vm6425_vm4, %v315_v17, %v319_v2  ;;  %v324_v38 = vrot.slane %v322_v26, 4  ;;  %v331_v39 = vshll.u32 %v6467_v21, 16  ;;  %v335_v44 = vshrl.u32 %v6467_v21, 16  ;;  %v6518_v19 = vld [vmem:[%s9080_s1 + $0x6] sm:$0x3] }
  0x25   : > { %v5145_v36 = vcombine.low %v310_v22, %v320_v27  ;;  %v506_v42 = vor.u32 %v505_v28, %v501_v24  ;;  %v327_v43 = vrot.slane %v325_v34, 5  ;;  %v341_v45 = vshll.u32 %v6473_v25, 16 }
  0x26   : > { %v497_v47 = vrot.slane %v496_v37, 4  ;;  %v333_v48 = vrot.slane %v331_v39, 5  ;;  %v514_v49 = vshrl.u32 %v6480_v35, 16  ;;  %v517_v50 = vshll.u32 %v6480_v35, 16 }
  0x27   : > { %5903 = vmatmul.mubr.msk.bf16.vlgmr.msra.gmra.mxu0 %vm707_vm3, %v5145_v36  ;;  %v507_v51 = vrot.slane %v506_v42, 4  ;;  %v328_v52 = vor.u32 %v327_v43, %v324_v38  ;;  %v337_v54 = vrot.slane %v335_v44, 4  ;;  %v343_v55 = vrot.slane %v341_v45, 5  ;;  %v6530_v36 = vld [vmem:[%s6381_s29 + $0x84] sm:$0xf] }
  0x28   : > { %5969 = vmatpush3.bf16.msra.mxu0 %v6410_v16  ;;  %v502_v57 = vsel %vm6425_vm4, %v497_v47, %v501_v24  ;;  %v516_v59 = vrot.slane %v514_v49, 4  ;;  %v519_v60 = vrot.slane %v517_v50, 5  ;;  %v523_v0 = vshll.u32 %v6491_v46, 16  ;;  %v6523_v24 = vld [vmem:[%s6381_s29 + $0x2c] sm:$0x1] }
  0x29   : > { %6213 = vmatprep.subr.msk.bf16.mxu0 %vm756_vm0, %v6486_v40  ;;  %v512_v16 = vsel %vm6425_vm4, %v507_v51, %v511_v33  ;;  %v329_v2 = vrot.slane %v328_v52, 4  ;;  %v338_v3 = vor.u32 %v337_v54, %v333_v48  ;;  %v527_v9 = vshrl.u32 %v6491_v46, 16  ;;  %v6537_v43 = vld [vmem:[%s6381_s29 + $0x88] sm:$0xf]  ;;  %v6545_v51 = vld [vmem:[%s6381_s29 + $0x8c] sm:$0x1] }
  0x2a   : > { %v5153_v11 = vcombine.low %v502_v57, %v512_v16  ;;  %v520_v13 = vor.u32 %v519_v60, %v516_v59  ;;  %v525_v17 = vrot.slane %v523_v0, 5  ;;  %v533_v18 = vshll.u32 %v6498_v56, 16  ;;  %9120 = vst [vmem:[#allocation3_spill] sm:$0xff] %v6545_v51  ;;  %v6553_v60 = vld [vmem:[%s6381_s29 + $0x30] sm:$0xf] }
  0x2b   : > { %v334_v20 = vsel %vm6425_vm4, %v329_v2, %v333_v48  ;;  %v339_v22 = vrot.slane %v338_v3, 4  ;;  %v529_v23 = vrot.slane %v527_v9, 4  ;;  %v346_v26 = vshrl.u32 %v6504_v1, 16  ;;  %v6558_v9 = vld [vmem:[%s6381_s29 + $0x34] sm:$0xf] }
  0x2c   : > { %5919 = vmatmul.mubr.msk.bf16.vlgmr.msra.gmra.mxu1 %vm707_vm3, %v5153_v11  ;;  %v521_v27 = vrot.slane %v520_v13, 4  ;;  %v535_v28 = vrot.slane %v533_v18, 5  ;;  %v349_v33 = vshll.u32 %v6504_v1, 16  ;;  %v355_v34 = vshll.u32 %v6512_v10, 16 }
  0x2d   : > { %5935 = vmatpush3.bf16.msra.mxu1 %v6384_v4  ;;  %v344_v37 = vsel %vm6425_vm4, %v339_v22, %v343_v55  ;;  %v530_v38 = vor.u32 %v529_v23, %v525_v17  ;;  %v348_v39 = vrot.slane %v346_v26, 4  ;;  %v359_v42 = vshrl.u32 %v6512_v10, 16 }
  0x2e   : > { %v5146_v44 = vcombine.low %v334_v20, %v344_v37  ;;  %v526_v45 = vsel %vm6425_vm4, %v521_v27, %v525_v17  ;;  %v351_v47 = vrot.slane %v349_v33, 5  ;;  %v357_v48 = vrot.slane %v355_v34, 5  ;;  %6212 = vmatprep.subr.msk.bf16.mxu1 %vm756_vm0, %v6518_v19  ;;  %v6566_v33 = vld [vmem:[%s6381_s29 + $0x38] sm:$0x1] }
  0x2f   : > { %v531_v4 = vrot.slane %v530_v38, 4  ;;  %v361_v49 = vrot.slane %v359_v42, 4  ;;  %v365_v50 = vshll.u32 %v6523_v24, 16  ;;  %v538_v52 = vshrl.u32 %v6530_v36, 16  ;;  %v6571_v38 = vld [vmem:[%s6381_s29 + $0x90] sm:$0xf] }
  0x30   : > { %5906 = vmatprep.mubr.msk.bf16.mxu0 %vm707_vm3, %v5146_v44  ;;  %v352_v54 = vor.u32 %v351_v47, %v348_v39  ;;  %v541_v55 = vshll.u32 %v6530_v36, 16  ;;  %v547_v57 = vshll.u32 %v6537_v43, 16  ;;  %v551_v59 = vshrl.u32 %v6537_v43, 16  ;;  %9121 = vst [vmem:[#allocation4_spill] sm:$0xff] %v6571_v38  ;;  %v6576_v47 = vld [vmem:[%s6381_s29 + $0x94] sm:$0xf] }
  0x31   : > { %v536_v0 = vsel %vm6425_vm4, %v531_v4, %v535_v28  ;;  %v362_v16 = vor.u32 %v361_v49, %v357_v48  ;;  %v367_v2 = vrot.slane %v365_v50, 5  ;;  %v540_v3 = vrot.slane %v538_v52, 4  ;;  %9122 = vst [vmem:[#allocation5_spill] sm:$0xff] %v6576_v47 }
  0x32   : > { %v5154_v11 = vcombine.low %v526_v45, %v536_v0  ;;  %v353_v13 = vrot.slane %v352_v54, 4  ;;  %v543_v17 = vrot.slane %v541_v55, 5  ;;  %v549_v18 = vrot.slane %v547_v57, 5 }
  0x33   : > { %v363_v20 = vrot.slane %v362_v16, 4  ;;  %v553_v22 = vrot.slane %v551_v59, 4  ;;  %v557_v23 = vshll.u32 %v6545_v51, 16  ;;  %v370_v26 = vshrl.u32 %v6553_v60, 16  ;;  %v6585_v16 = vld [vmem:[%s6381_s29 + $0x98] sm:$0x1] }
  0x34   : > { %5922 = vmatprep.mubr.msk.bf16.mxu1 %vm707_vm3, %v5154_v11  ;;  %v358_v27 = vsel %vm6425_vm4, %v353_v13, %v357_v48  ;;  %v544_v28 = vor.u32 %v543_v17, %v540_v3  ;;  %v373_v34 = vshll.u32 %v6553_v60, 16  ;;  %v379_v37 = vshll.u32 %v6558_v9, 16  ;;  %9123 = vst [vmem:[#allocation6_spill] sm:$0xff] %v6585_v16  ;;  %v6590_v11 = vld [vmem:[%s6381_s29 + $0x3c] sm:$0xf] }
  0x35   : > { %v368_v39 = vsel %vm6425_vm4, %v363_v20, %v367_v2  ;;  %v554_v42 = vor.u32 %v553_v22, %v549_v18  ;;  %v559_v44 = vrot.slane %v557_v23, 5  ;;  %v372_v45 = vrot.slane %v370_v26, 4  ;;  %v6595_v23 = vld [vmem:[%s6381_s29 + $0x40] sm:$0xf]  ;;  %v1214_v51 = vld [vmem:[%s6381_s29 + $0xc] sm:$0xe] }
  0x36   : > { %v5147_v48 = vcombine.low %v358_v27, %v368_v39  ;;  %v545_v4 = vrot.slane %v544_v28, 4  ;;  %v375_v49 = vrot.slane %v373_v34, 5  ;;  %v381_v50 = vrot.slane %v379_v37, 5 }
  0x37   : > { %v555_v52 = vrot.slane %v554_v42, 4  ;;  %v383_v54 = vshrl.u32 %v6558_v9, 16  ;;  %v389_v55 = vshll.u32 %v6566_v33, 16  ;;  %v562_v57 = vshrl.u32 %v6571_v38, 16 }
  0x38   : > { %5907 = vmatmul.mubr.msk.bf16.gmra.mxu0 %vm707_vm3, %v5147_v48  ;;  %v550_v59 = vsel %vm6425_vm4, %v545_v4, %v549_v18  ;;  %v376_v0 = vor.u32 %v375_v49, %v372_v45  ;;  %v565_v2 = vshll.u32 %v6571_v38, 16  ;;  %v571_v3 = vshll.u32 %v6576_v47, 16  ;;  %v6604_v48 = vld [vmem:[%s6381_s29 + $0x44] sm:$0x1] }
  0x39   : > { %v560_v13 = vsel %vm6425_vm4, %v555_v52, %v559_v44  ;;  %v385_v17 = vrot.slane %v383_v54, 4  ;;  %v391_v20 = vrot.slane %v389_v55, 5  ;;  %v564_v22 = vrot.slane %v562_v57, 4  ;;  %v6609_v52 = vld [vmem:[%s6381_s29 + $0x9c] sm:$0xf] }
  0x3a   : > { %v5155_v18 = vcombine.low %v550_v59, %v560_v13  ;;  %v377_v26 = vrot.slane %v376_v0, 4  ;;  %v567_v27 = vrot.slane %v565_v2, 5  ;;  %v573_v28 = vrot.slane %v571_v3, 5  ;;  %9124 = vst [vmem:[#allocation7_spill] sm:$0xff] %v6609_v52  ;;  %v6613_v13 = vld [vmem:[%s6381_s29 + $0xa0] sm:$0xf] }
  0x3b   : > { %v386_v34 = vor.u32 %v385_v17, %v381_v50  ;;  %v575_v37 = vshrl.u32 %v6576_v47, 16  ;;  %v581_v39 = vshll.u32 %v6585_v16, 16  ;;  %v394_v42 = vshrl.u32 %v6590_v11, 16  ;;  %9125 = vst [vmem:[#allocation8_spill] sm:$0xff] %v6613_v13 }
  0x3c   : > { %5923 = vmatmul.mubr.msk.bf16.gmra.mxu1 %vm707_vm3, %v5155_v18  ;;  %v382_v44 = vsel %vm6425_vm4, %v377_v26, %v381_v50  ;;  %v568_v45 = vor.u32 %v567_v27, %v564_v22  ;;  %v397_v4 = vshll.u32 %v6590_v11, 16  ;;  %v403_v49 = vshll.u32 %v6595_v23, 16  ;;  %v6619_v26 = vld [vmem:[%s6381_s29 + $0xa4] sm:$0x1] }
  0x3d   : > { %v387_v54 = vrot.slane %v386_v34, 4  ;;  %v577_v55 = vrot.slane %v575_v37, 4  ;;  %v583_v57 = vrot.slane %v581_v39, 5  ;;  %v396_v59 = vrot.slane %v394_v42, 4  ;;  %9126 = vst [vmem:[#allocation9_spill] sm:$0xff] %v6619_v26 }
  0x3e   : > { %v569_v0 = vrot.slane %v568_v45, 4  ;;  %v399_v2 = vrot.slane %v397_v4, 5  ;;  %v405_v3 = vrot.slane %v403_v49, 5  ;;  %v407_v50 = vshrl.u32 %v6595_v23, 16  ;;  %v6623_v34 = vld [vmem:[%s6381_s29 + $0x48] sm:$0xf] }
  0x3f   : > { %v392_v17 = vsel %vm6425_vm4, %v387_v54, %v391_v20  ;;  %v578_v22 = vor.u32 %v577_v55, %v573_v28  ;;  %v413_v18 = vshll.u32 %v6604_v48, 16  ;;  %v586_v27 = vshrl.u32 %v6609_v52, 16 }
  0x40   : > { %v5148_v37 = vcombine.low %v382_v44, %v392_v17  ;;  %v574_v39 = vsel %vm6425_vm4, %v569_v0, %v573_v28  ;;  %v400_v42 = vor.u32 %v399_v2, %v396_v59  ;;  %v409_v45 = vrot.slane %v407_v50, 4  ;;  %v6632_v17 = vld [vmem:[%s6381_s29 + $0x4c] sm:$0xf]  ;;  %v6638_v2 = vld [vmem:[%s6381_s29 + $0x50] sm:$0x1] }
  0x41   : > { %v579_v4 = vrot.slane %v578_v22, 4  ;;  %v415_v49 = vrot.slane %v413_v18, 5  ;;  %v588_v20 = vrot.slane %v586_v27, 4  ;;  %v589_v54 = vshll.u32 %v6609_v52, 16 }
  0x42   : > { %5910 = vmatprep.mubr.msk.bf16.mxu0 %vm707_vm3, %v5148_v37  ;;  %v401_v55 = vrot.slane %v400_v42, 4  ;;  %v410_v62 = vor.u32 %v409_v45, %v405_v3  ;;  %v595_v32 = vshll.u32 %v6613_v13, 16  ;;  %v599_v44 = vshrl.u32 %v6613_v13, 16  ;;  %v6644_v42 = vld [vmem:[%s6381_s29 + $0xa8] sm:$0xf] }
  0x43   : > { %v584_v28 = vsel %vm6425_vm4, %v579_v4, %v583_v57  ;;  %v591_v59 = vrot.slane %v589_v54, 5  ;;  %v605_v0 = vshll.u32 %v6619_v26, 16  ;;  %v418_v50 = vshrl.u32 %v6623_v34, 16  ;;  %9127 = vst [vmem:[#allocation10_spill] sm:$0xff] %v6644_v42 }
  0x44   : > { %v5156_v22 = vcombine.low %v574_v39, %v584_v28  ;;  %v406_v18 = vsel %vm6425_vm4, %v401_v55, %v405_v3  ;;  %v411_v27 = vrot.slane %v410_v62, 4  ;;  %v597_v37 = vrot.slane %v595_v32, 5 }
  0x45   : > { %v592_v45 = vor.u32 %v591_v59, %v588_v20  ;;  %v601_v61 = vrot.slane %v599_v44, 4  ;;  %v607_v57 = vrot.slane %v605_v0, 5  ;;  %v420_v4 = vrot.slane %v418_v50, 4  ;;  %v6654_v44 = vld [vmem:[%s6381_s29 + $0xac] sm:$0xf] }
  0x46   : > { %5926 = vmatprep.mubr.msk.bf16.mxu1 %vm707_vm3, %v5156_v22  ;;  %v416_v54 = vsel %vm6425_vm4, %v411_v27, %v415_v49  ;;  %v421_v39 = vshll.u32 %v6623_v34, 16  ;;  %v427_v28 = vshll.u32 %v6632_v17, 16  ;;  %v431_v62 = vshrl.u32 %v6632_v17, 16  ;;  %9128 = vst [vmem:[#allocation11_spill] sm:$0xff] %v6654_v44  ;;  %v6657_v22 = vld [vmem:[%s6381_s29 + $0xb0] sm:$0x1] }
  0x47   : > { %v5149_v3 = vcombine.low %v406_v18, %v416_v54  ;;  %v593_v32 = vrot.slane %v592_v45, 4  ;;  %v602_v55 = vor.u32 %v601_v61, %v597_v37  ;;  %v437_v20 = vshll.u32 %v6638_v2, 16  ;;  %9129 = vst [vmem:[#allocation12_spill] sm:$0xff] %v6657_v22 }
  0x48   : > { %v423_v59 = vrot.slane %v421_v39, 5  ;;  %v429_v0 = vrot.slane %v427_v28, 5  ;;  %v433_v50 = vrot.slane %v431_v62, 4  ;;  %v610_v49 = vshrl.u32 %v6644_v42, 16  ;;  %v6666_v62 = vld [vmem:[%s6381_s29 + $0x54] sm:$0xf] }
  0x49   : > { %5911 = vmatmul.mubr.msk.bf16.gmra.mxu0 %vm707_vm3, %v5149_v3  ;;  %v598_v18 = vsel %vm6425_vm4, %v593_v32, %v597_v37  ;;  %v603_v27 = vrot.slane %v602_v55, 4  ;;  %v439_v61 = vrot.slane %v437_v20, 5  ;;  %v613_v45 = vshll.u32 %v6644_v42, 16  ;;  %v6673_v55 = vld [vmem:[%s6381_s29 + $0x58] sm:$0xf] }
  0x4a   : > { %v424_v54 = vor.u32 %v423_v59, %v420_v4  ;;  %v434_v56 = vor.u32 %v433_v50, %v429_v0  ;;  %v612_v39 = vrot.slane %v610_v49, 4  ;;  %v619_v28 = vshll.u32 %v6654_v44, 16  ;;  %v6676_v49 = vld [vmem:[%s6381_s29 + $0x5c] sm:$0x1] }
  0x4b   : > { %v608_v3 = vsel %vm6425_vm4, %v603_v27, %v607_v57  ;;  %v615_v26 = vrot.slane %v613_v45, 5  ;;  %v623_v37 = vshrl.u32 %v6654_v44, 16  ;;  %v629_v32 = vshll.u32 %v6657_v22, 16  ;;  %v1213_v22 = vld [vmem:[%s6381_s29] sm:$0xe] }
  0x4c   : > { %v5157_v4 = vcombine.low %v598_v18, %v608_v3  ;;  %v425_v20 = vrot.slane %v424_v54, 4  ;;  %v435_v59 = vrot.slane %v434_v56, 4  ;;  %v621_v50 = vrot.slane %v619_v28, 5  ;;  %v6687_v54 = vld [vmem:[%s6381_s29 + $0xb4] sm:$0xf] }
  0x4d   : > { %v616_v42 = vor.u32 %v615_v26, %v612_v39  ;;  %v625_v52 = vrot.slane %v623_v37, 4  ;;  %v631_v13 = vrot.slane %v629_v32, 5  ;;  %v442_v57 = vshrl.u32 %v6666_v62, 16  ;;  %9130 = vst [vmem:[#allocation13_spill] sm:$0xff] %v6687_v54  ;;  %v6690_v37 = vld [vmem:[%s6381_s29 + $0xb8] sm:$0xf] }
  0x4e   : > { %5927 = vmatmul.mubr.msk.bf16.gmra.mxu1 %vm707_vm3, %v5157_v4  ;;  %v430_v27 = vsel %vm6425_vm4, %v425_v20, %v429_v0  ;;  %v440_v18 = vsel %vm6425_vm4, %v435_v59, %v439_v61  ;;  %v445_v56 = vshll.u32 %v6666_v62, 16  ;;  %v451_v45 = vshll.u32 %v6673_v55, 16  ;;  %v6695_v61 = vld [vmem:[%s6381_s29 + $0xbc] sm:$0x1] }
  0x4f   : > { %v5150_v26 = vcombine.low %v430_v27, %v440_v18  ;;  %v617_v39 = vrot.slane %v616_v42, 4  ;;  %v626_v28 = vor.u32 %v625_v52, %v621_v50  ;;  %v444_v3 = vrot.slane %v442_v57, 4 }
  0x50   : > { %v447_v32 = vrot.slane %v445_v56, 5  ;;  %v453_v4 = vrot.slane %v451_v45, 5  ;;  %v455_v0 = vshrl.u32 %v6673_v55, 16  ;;  %v461_v20 = vshll.u32 %v6676_v49, 16 }
  0x51   : > { %5914 = vmatprep.mubr.msk.bf16.mxu0 %vm707_vm3, %v5150_v26  ;;  %v622_v59 = vsel %vm6425_vm4, %v617_v39, %v621_v50  ;;  %v627_v27 = vrot.slane %v626_v28, 4  ;;  %v634_v52 = vshrl.u32 %v6687_v54, 16  ;;  %v637_v42 = vshll.u32 %v6687_v54, 16 }
  0x52   : > { %v448_v57 = vor.u32 %v447_v32, %v444_v3  ;;  %v457_v18 = vrot.slane %v455_v0, 4  ;;  %v463_v56 = vrot.slane %v461_v20, 5  ;;  %v643_v45 = vshll.u32 %v6690_v37, 16 }
  0x53   : > { %v632_v44 = vsel %vm6425_vm4, %v627_v27, %v631_v13  ;;  %v636_v16 = vrot.slane %v634_v52, 4  ;;  %v639_v26 = vrot.slane %v637_v42, 5  ;;  %v647_v38 = vshrl.u32 %v6690_v37, 16 }
  0x54   : > { %v5158_v50 = vcombine.low %v622_v59, %v632_v44  ;;  %v449_v39 = vrot.slane %v448_v57, 4  ;;  %v458_v28 = vor.u32 %v457_v18, %v453_v4  ;;  %v645_v47 = vrot.slane %v643_v45, 5  ;;  %v1215_v57 = vld [vmem:[%s6381_s29 + $0x18] sm:$0xe] }
  0x55   : > { %v640_v54 = vor.u32 %v639_v26, %v636_v16  ;;  %v649_v3 = vrot.slane %v647_v38, 4  ;;  %v653_v32 = vshll.u32 %v6695_v61, 16  ;;  %v5208_v13 = vrot.slane %v1213_v22, 9 }
  0x56   : > { %5930 = vmatprep.mubr.msk.bf16.mxu1 %vm707_vm3, %v5158_v50  ;;  %v454_v44 = vsel %vm6425_vm4, %v449_v39, %v453_v4  ;;  %v459_v20 = vrot.slane %v458_v28, 4  ;;  %v1266_v59 = vrot.slane %v6390_v6, 5  ;;  %v5177_v38 = vcombine.low %v6418_v29, %v6421_v30 }
  0x57   : > { %v641_v16 = vrot.slane %v640_v54, 4  ;;  %v650_v27 = vor.u32 %v649_v3, %v645_v47  ;;  %v655_v52 = vrot.slane %v653_v32, 5  ;;  %v5209_v42 = vrot.slane %v1214_v51, 9 }
  0x58   : > { %v464_v18 = vsel %vm6425_vm4, %v459_v20, %v463_v56  ;;  %v1267_v22 = vsel %vm6711_vm7, %v5208_v13, %v1266_v59  ;;  %v1268_v45 = vrot.slane %v1266_v59, 4  ;;  %v9133_v4 = vrot.slane %v6421_v30, 5 }
  0x59   : > { %v5151_v50 = vcombine.low %v454_v44, %v464_v18  ;;  %v646_v54 = vsel %vm6425_vm4, %v641_v16, %v645_v47  ;;  %v651_v39 = vrot.slane %v650_v27, 4  ;;  %v5176_v51 = vcombine.low %v6387_v5, %v6390_v6  ;;  %v1216_v27 = vld [vmem:[%s6381_s29 + $0x24] sm:$0xe] }
  0x5a   : > { %v1275_v26 = vrot.slane %v9133_v4, 4  ;;  %v9134_v28 = vrot.slane %v6393_v7, 5  ;;  %v9135_v3 = vmov %v9133_v4  ;;  %v5178_v13 = vcombine.low %v6460_v8, %v6467_v21  ;;  %v1218_v4 = vld [vmem:[%s6381_s29 + $0x3c] sm:$0xe] }
  0x5b   : > { %v1274_v32 = vsel %vm6711_vm7, %v5209_v42, %v9135_v3  ;;  %v5210_v44 = vrot.slane %v1215_v57, 9  ;;  %5915 = vmatmul.mubr.msk.bf16.gmra.mxu0 %vm707_vm3, %v5151_v50  ;;  %v656_v47 = vsel %vm6425_vm4, %v651_v39, %v655_v52  ;;  %v9136_v6 = vrot.slane %v6431_v41, 5  ;;  %v1217_v42 = vld [vmem:[%s6381_s29 + $0x30] sm:$0xe]  ;;  %v1219_v39 = vld [vmem:[%s6381_s29 + $0x48] sm:$0xe] }
  0x5c   : > { %v1270_v56 = vsel %vm6711_vm7, %v1268_v45, %v9134_v28  ;;  %v1280_v20 = vrot.slane %v6467_v21, 5  ;;  %v5159_v59 = vcombine.low %v646_v54, %v656_v47  ;;  %v1283_v16 = vrot.slane %v6473_v25, 5  ;;  %v1220_v47 = vld [vmem:[%s6381_s29 + $0x54] sm:$0xe]  ;;  %v7006_v21 = vld [vmem:[%s6381_s29 + $0x2c] sm:$0x1] }
  0x5d   : > { %v5225_v5 = vcombine.low %v1267_v22, %v1270_v56  ;;  %v1277_v7 = vsel %vm6711_vm7, %v1275_v26, %v9136_v6  ;;  %v1837_v52 = vsel %vm756_vm0, %v6518_v19, 0  ;;  %v1287_v18 = vrot.slane %v6512_v10, 5 }
  0x5e   : > { %v1281_v41 = vsel %vm6711_vm7, %v5210_v44, %v1280_v20  ;;  %v1282_v57 = vrot.slane %v1280_v20, 4  ;;  %5931 = vmatmul.mubr.msk.bf16.gmra.mxu1 %vm707_vm3, %v5159_v59  ;;  %v5226_v22 = vcombine.low %v1274_v32, %v1277_v7  ;;  %v2563_v25 = vsel %vm756_vm0, %v6486_v40, 0 }
  0x5f   : > { %5970 = vmatprep.mubr.msk.bf16.mxu0 %vm707_vm3, %v5225_v5  ;;  %v1294_v45 = vrot.slane %v6558_v9, 5  ;;  %5936 = vmatprep.mubr.msk.bf16.mxu1 %vm707_vm3, %v5176_v51  ;;  %v5211_v26 = vrot.slane %v1216_v27, 9  ;;  %v1290_v50 = vrot.slane %v6523_v24, 5  ;;  %v5212_v54 = vrot.slane %v1217_v42, 9  ;;  %v6778_v24 = vld [vmem:[%s9080_s1 + $0xc] sm:$0x3] }
  0x60   : > { %v1284_v19 = vsel %vm6711_vm7, %v1282_v57, %v1283_v16  ;;  %v1289_v56 = vrot.slane %v1287_v18, 4  ;;  %v1297_v32 = vrot.slane %v6566_v33, 5  ;;  %v5213_v44 = vrot.slane %v1218_v4, 9 }
  0x61   : > { %v5227_v28 = vcombine.low %v1281_v41, %v1284_v19  ;;  %v1296_v3 = vrot.slane %v1294_v45, 4  ;;  %v1301_v40 = vrot.slane %v6595_v23, 5  ;;  %v1325_v5 = vrot.slane %v6407_v15, 5 }
  0x62   : > { %v1304_v51 = vrot.slane %v6604_v48, 5  ;;  %v5214_v6 = vrot.slane %v1219_v39, 9  ;;  %v1308_v7 = vrot.slane %v6632_v17, 5  ;;  %v5179_v33 = vcombine.low %v6504_v1, %v6512_v10  ;;  %v1221_v1 = vld [vmem:[%s6381_s29 + $0x60] sm:$0xe] }
  0x63   : > { %5971 = vmatmul.mubr.msk.bf16.vlgmr.msra.gmra.mxu0 %vm707_vm3, %v5226_v22  ;;  %v1288_v20 = vsel %vm6711_vm7, %v5211_v26, %v1287_v18  ;;  %v1303_v59 = vrot.slane %v1301_v40, 4  ;;  %v1311_v16 = vrot.slane %v6638_v2, 5  ;;  %v1291_v48 = vsel %vm6711_vm7, %v1289_v56, %v1290_v50  ;;  %v6806_v22 = vld [vmem:[%s9080_s1 + $0xa] sm:$0x3]  ;;  %v6831_v50 = vld [vmem:[%s6381_s29 + $0x6c] sm:$0xe] }
  0x64   : > { %6037 = vmatpush3.bf16.msra.mxu0 %v2563_v25  ;;  %5974 = vmatprep.mubr.msk.bf16.mxu0 %vm707_vm3, %v5227_v28  ;;  %v1295_v27 = vsel %vm6711_vm7, %v5212_v54, %v1294_v45  ;;  %v1298_v42 = vsel %vm6711_vm7, %v1296_v3, %v1297_v32  ;;  %v1310_v41 = vrot.slane %v1308_v7, 4  ;;  %v6796_v10 = vsel %vm6711_vm7, %v5213_v44, %v1301_v40  ;;  %v1224_v39 = vld [vmem:[%s6381_s29 + $0x84] sm:$0xe]  ;;  %v6860_v44 = vld [vmem:[%s6381_s29 + $0x78] sm:$0xe] }
  0x65   : > { %v6800_v2 = vsel %vm6711_vm7, %v5214_v6, %v1308_v7  ;;  %v5215_v57 = vrot.slane %v1220_v47, 9  ;;  %v1315_v18 = vrot.slane %v6673_v55, 5  ;;  %6215 = vmatprep.subr.msk.bf16.mxu0 %vm756_vm0, %v6778_v24  ;;  %v6816_v25 = vsel %vm6711_vm7, %v1303_v59, %v1304_v51  ;;  %v1225_v40 = vld [vmem:[%s6381_s29 + $0x90] sm:$0xe] }
  0x66   : > { %5937 = vmatmul.mubr.msk.bf16.vlgmr.msra.gmra.mxu1 %vm707_vm3, %v5177_v38  ;;  %v6820_v45 = vsel %vm6711_vm7, %v1310_v41, %v1311_v16  ;;  %v1318_v4 = vrot.slane %v6676_v49, 5  ;;  %v1322_v19 = vrot.slane %v6404_v14, 5  ;;  %v5228_v29 = vcombine.low %v1288_v20, %v1291_v48  ;;  %v9137_v48 = vld [vmem:[#allocation3_spill] sm:$0xff] }
  0x67   : > { %6003 = vmatpush3.bf16.msra.mxu1 %v1837_v52  ;;  %5940 = vmatprep.mubr.msk.bf16.mxu1 %vm707_vm3, %v5178_v13  ;;  %v5180_v30 = vcombine.low %v6553_v60, %v6558_v9  ;;  %v1317_v38 = vrot.slane %v1315_v18, 4  ;;  %v5216_v26 = vrot.slane %v1221_v1, 9  ;;  %v5229_v49 = vcombine.low %v1295_v27, %v1298_v42  ;;  %v1226_v42 = vld [vmem:[%s6381_s29 + $0x9c] sm:$0xe] }
  0x68   : > { %v5181_v52 = vcombine.low %v6590_v11, %v6595_v23  ;;  %v5182_v8 = vcombine.low %v6623_v34, %v6632_v17  ;;  %6214 = vmatprep.subr.msk.bf16.mxu1 %vm756_vm0, %v6806_v22  ;;  %v5230_v60 = vcombine.low %v6796_v10, %v6816_v25  ;;  %v5231_v9 = vcombine.low %v6800_v2, %v6820_v45  ;;  %v9138_v10 = vld [vmem:[#allocation5_spill] sm:$0xff]  ;;  %v9139_v2 = vld [vmem:[#allocation4_spill] sm:$0xff] }
  0x69   : > { %v1324_v54 = vrot.slane %v1322_v19, 4  ;;  %v6850_v28 = vsel %vm6711_vm7, %v5215_v57, %v1315_v18  ;;  %v6854_v56 = vsel %vm6711_vm7, %v1317_v38, %v1318_v4  ;;  %v5217_v32 = vrot.slane %v6831_v50, 9  ;;  %v1227_v18 = vld [vmem:[%s6381_s29 + $0xa8] sm:$0xe]  ;;  %v9141_v38 = vld [vmem:[#allocation8_spill] sm:$0xff] }
  0x6a   : > { %v6866_v47 = vsel %vm6711_vm7, %v5216_v26, %v1322_v19  ;;  %v1329_v51 = vrot.slane %v6446_v58, 5  ;;  %v1332_v6 = vrot.slane %v6454_v63, 5  ;;  %v5219_v59 = vrot.slane %v1224_v39, 9  ;;  %v9140_v19 = vld [vmem:[#allocation6_spill] sm:$0xff]  ;;  %v9142_v26 = vld [vmem:[#allocation7_spill] sm:$0xff] }
  0x6b   : > { %5975 = vmatmul.mubr.msk.bf16.gmra.mxu0 %vm707_vm3, %v5228_v29  ;;  %v1343_v16 = vrot.slane %v6537_v43, 5  ;;  %v1346_v27 = vrot.slane %v9137_v48, 5  ;;  %v5232_v41 = vcombine.low %v6850_v28, %v6854_v56  ;;  %v6884_v63 = vsel %vm6711_vm7, %v1324_v54, %v1325_v5  ;;  %v9144_v48 = vld [vmem:[#allocation11_spill] sm:$0xff] }
  0x6c   : > { %5978 = vmatprep.mubr.msk.bf16.mxu0 %vm707_vm3, %v5229_v49  ;;  %v5218_v1 = vrot.slane %v6860_v44, 9  ;;  %v5220_v4 = vrot.slane %v1225_v40, 9  ;;  %v1350_v15 = vrot.slane %v9138_v10, 5  ;;  %v1331_v5 = vrot.slane %v1329_v51, 4  ;;  %v5322_v57 = vld [vmem:[%s6381_s29 + $0xc] sm:$0xf] }
  0x6d   : > { %v6893_v25 = vsel %vm6711_vm7, %v5219_v59, %v1343_v16  ;;  %v1345_v45 = vrot.slane %v1343_v16, 4  ;;  %v1353_v29 = vrot.slane %v9140_v19, 5  ;;  %v5221_v49 = vrot.slane %v1226_v42, 9  ;;  %v9143_v59 = vld [vmem:[#allocation9_spill] sm:$0xff]  ;;  %v9145_v42 = vld [vmem:[#allocation10_spill] sm:$0xff] }
  0x6e   : > { %5941 = vmatmul.mubr.msk.bf16.gmra.mxu1 %vm707_vm3, %v5179_v33  ;;  %v1336_v33 = vrot.slane %v6491_v46, 5  ;;  %v6907_v39 = vsel %vm6711_vm7, %v5220_v4, %v1350_v15  ;;  %v1352_v44 = vrot.slane %v1350_v15, 4  ;;  %v1357_v40 = vrot.slane %v9141_v38, 5  ;;  %v9146_v15 = vld [vmem:[#allocation12_spill] sm:$0xff] }
  0x6f   : > { %5944 = vmatprep.mubr.msk.bf16.mxu1 %vm707_vm3, %v5180_v30  ;;  %v6903_v54 = vsel %vm6711_vm7, %v1345_v45, %v1346_v27  ;;  %v1360_v16 = vrot.slane %v9143_v59, 5  ;;  %v5222_v45 = vrot.slane %v1227_v18, 9  ;;  %v1364_v4 = vrot.slane %v9144_v48, 5 }
  0x70   : > { %v6917_v27 = vsel %vm6711_vm7, %v1352_v44, %v1353_v29  ;;  %v1367_v50 = vrot.slane %v9146_v15, 5  ;;  %v6927_v19 = vsel %vm6711_vm7, %v5221_v49, %v1357_v40  ;;  %v1359_v7 = vrot.slane %v1357_v40, 4  ;;  %v9147_v29 = vld [vmem:[#allocation13_spill] sm:$0xff]  ;;  %v9148_v15 = vld [vmem:[#allocation2_spill] sm:$0xff]  ;;  %v6942_v49 = vld [vmem:[%s6381_s29 + $0x10] sm:$0xf] }
  0x71   : > { %v6934_v18 = vsel %vm6711_vm7, %v5217_v32, %v1329_v51  ;;  %v6939_v59 = vsel %vm6711_vm7, %v5222_v45, %v1364_v4  ;;  %v1366_v30 = vrot.slane %v1364_v4, 4  ;;  %v5325_v40 = vld [vmem:[%s6381_s29 + $0x18] sm:$0xf]  ;;  %v1338_v20 = vrot.slane %v1336_v33, 4 }
  0x72   : > { %v2081_v44 = vshrl.u32 %v5322_v57, 16  ;;  %v2084_v32 = vshll.u32 %v5322_v57, 16  ;;  %v5233_v51 = vcombine.low %v6866_v47, %v6884_v63  ;;  %v6957_v45 = vsel %vm6711_vm7, %v1331_v5, %v1332_v6  ;;  %v1228_v57 = vld [vmem:[%s6381_s29 + $0xb4] sm:$0xe]  ;;  %v6978_v47 = vld [vmem:[%s6381_s29 + $0x14] sm:$0x1] }
  0x73   : > { %5979 = vmatmul.mubr.msk.bf16.gmra.mxu0 %vm707_vm3, %v5230_v60  ;;  %v1339_v60 = vrot.slane %v9148_v15, 5  ;;  %v6972_v11 = vsel %vm6711_vm7, %v5218_v1, %v1336_v33  ;;  %v2090_v6 = vshll.u32 %v6942_v49, 16  ;;  %v5326_v63 = vld [vmem:[%s6381_s29 + $0x1c] sm:$0xf]  ;;  %v2094_v17 = vshrl.u32 %v6942_v49, 16 }
  0x74   : > { %5982 = vmatprep.mubr.msk.bf16.mxu0 %vm707_vm3, %v5231_v9  ;;  %v6947_v9 = vsel %vm6711_vm7, %v1359_v7, %v1360_v16  ;;  %v6963_v7 = vsel %vm6711_vm7, %v1366_v30, %v1367_v50  ;;  %v2083_v5 = vrot.slane %v2081_v44, 4  ;;  %v2086_v34 = vrot.slane %v2084_v32, 5  ;;  %v5328_v15 = vld [vmem:[%s6381_s29 + $0x24] sm:$0xf]  ;;  %v6991_v44 = vld [vmem:[%s6381_s29 + $0x28] sm:$0xf] }
  0x75   : > { %v2105_v50 = vshrl.u32 %v5325_v40, 16  ;;  %v1340_v1 = vsel %vm6711_vm7, %v1338_v20, %v1339_v60  ;;  %v5223_v33 = vrot.slane %v1228_v57, 9  ;;  %v6986_v30 = vrot.slane %v2090_v6, 5 }
  0x76   : > { %5945 = vmatmul.mubr.msk.bf16.gmra.mxu1 %vm707_vm3, %v5181_v52  ;;  %v1371_v52 = vrot.slane %v6690_v37, 5  ;;  %v2108_v16 = vshll.u32 %v5325_v40, 16  ;;  %v1374_v23 = vrot.slane %v6695_v61, 5  ;;  %v2096_v4 = vrot.slane %v2094_v17, 4 }
  0x77   : > { %5948 = vmatprep.mubr.msk.bf16.mxu1 %vm707_vm3, %v5182_v8  ;;  %v5327_v8 = vld [vmem:[%s6381_s29 + $0x20] sm:$0x1]  ;;  %v2107_v3 = vrot.slane %v2105_v50, 4  ;;  %v2114_v13 = vshll.u32 %v5326_v63, 16  ;;  %v2100_v20 = vshll.u32 %v6978_v47, 16  ;;  %v2118_v57 = vshrl.u32 %v5326_v63, 16 }
  0x78   : > { %v1373_v32 = vrot.slane %v1371_v52, 4  ;;  %v2110_v60 = vrot.slane %v2108_v16, 5  ;;  %v5234_v61 = vcombine.low %v6934_v18, %v6957_v45  ;;  %v5235_v40 = vcombine.low %v6972_v11, %v1340_v1 }
  0x79   : > { %v2087_v6 = vor.u32 %v2086_v34, %v2083_v5  ;;  %v7002_v17 = vrot.slane %v2114_v13, 5  ;;  %v2097_v28 = vor.u32 %v2096_v4, %v6986_v30  ;;  %v2124_v50 = vshll.u32 %v5327_v8, 16  ;;  %v7029_v5 = vld [vmem:[%s6381_s29 + $0x34] sm:$0xf] }
  0x7a   : > { %v2111_v56 = vor.u32 %v2110_v60, %v2107_v3  ;;  %v7014_v18 = vsel %vm6711_vm7, %v5223_v33, %v1371_v52  ;;  %v2129_v13 = vshrl.u32 %v5328_v15, 16  ;;  %v2132_v45 = vshll.u32 %v5328_v15, 16  ;;  %v5331_v52 = vld [vmem:[%s6381_s29 + $0x30] sm:$0xf] }
  0x7b   : > { %5983 = vmatmul.mubr.msk.bf16.gmra.mxu0 %vm707_vm3, %v5232_v41  ;;  %v2120_v41 = vrot.slane %v2118_v57, 4  ;;  %v2138_v11 = vshll.u32 %v6991_v44, 16  ;;  %v9150_v3 = vcombine.low %v6400_v12, %v6404_v14  ;;  %v7023_v4 = vsel %vm6711_vm7, %v1373_v32, %v1374_v23 }
  0x7c   : > { %5986 = vmatprep.mubr.msk.bf16.mxu0 %vm707_vm3, %v5233_v51  ;;  %v9149_v51 = vcombine.low %v6666_v62, %v6673_v55  ;;  %v2102_v62 = vrot.slane %v2100_v20, 5  ;;  %v2142_v63 = vshrl.u32 %v6991_v44, 16  ;;  %v2088_v34 = vrot.slane %v2087_v6, 4 }
  0x7d   : > { %v2121_v55 = vor.u32 %v2120_v41, %v7002_v17  ;;  %v2131_v8 = vrot.slane %v2129_v13, 4  ;;  %v2134_v1 = vrot.slane %v2132_v45, 5  ;;  %v7031_v33 = vrot.slane %v2138_v11, 5  ;;  %v7037_v41 = vld [vmem:[%s6381_s29 + $0x38] sm:$0x1] }
  0x7e   : > { %5949 = vmatmul.mubr.msk.bf16.gmra.mxu1 %vm707_vm3, %v9149_v51  ;;  %v2098_v12 = vrot.slane %v2097_v28, 4  ;;  %v2112_v14 = vrot.slane %v2111_v56, 4  ;;  %v2126_v16 = vrot.slane %v2124_v50, 5  ;;  %v2144_v23 = vrot.slane %v2142_v63, 4  ;;  %v5334_v13 = vld [vmem:[%s6381_s29 + $0x3c] sm:$0xf] }
  0x7f   : > { %5952 = vmatprep.mubr.msk.bf16.mxu1 %vm707_vm3, %v9150_v3  ;;  %v2122_v15 = vrot.slane %v2121_v55, 4  ;;  %v2148_v32 = vshll.u32 %v7006_v21, 16  ;;  %v2153_v20 = vshrl.u32 %v5331_v52, 16  ;;  %v2156_v60 = vshll.u32 %v5331_v52, 16 }
  0x80   : > { %v2135_v57 = vor.u32 %v2134_v1, %v2131_v8  ;;  %v2145_v6 = vor.u32 %v2144_v23, %v7031_v33  ;;  %v2162_v28 = vshll.u32 %v7029_v5, 16  ;;  %v2166_v56 = vshrl.u32 %v7029_v5, 16  ;;  %v5337_v8 = vld [vmem:[%s6381_s29 + $0x48] sm:$0xf]  ;;  %v7064_v1 = vld [vmem:[%s6381_s29 + $0x4c] sm:$0xf] }
  0x81   : > { %v2155_v50 = vrot.slane %v2153_v20, 4  ;;  %v2158_v51 = vrot.slane %v2156_v60, 5  ;;  %v9151_v3 = vcombine.low %v6442_v53, %v6446_v58  ;;  %v5240_v55 = vcombine.low %v7014_v18, %v7023_v4 }
  0x82   : > { %v7043_v45 = vrot.slane %v2162_v28, 5  ;;  %v2168_v11 = vrot.slane %v2166_v56, 4  ;;  %v2103_v63 = vsel %vm6425_vm4, %v2098_v12, %v2102_v62  ;;  %v2117_v52 = vsel %vm6425_vm4, %v2112_v14, %v7002_v17 }
  0x83   : > { %5987 = vmatmul.mubr.msk.bf16.gmra.mxu0 %vm707_vm3, %v5234_v61  ;;  %v7046_v61 = vld [vmem:[%s6381_s29 + $0x40] sm:$0xf]  ;;  %v9152_v53 = vcombine.low %v6480_v35, %v6491_v46  ;;  %v2127_v58 = vsel %vm6425_vm4, %v2122_v15, %v2126_v16  ;;  %v2136_v23 = vrot.slane %v2135_v57, 4  ;;  %v2159_v20 = vor.u32 %v2158_v51, %v2155_v50  ;;  %v7098_v50 = vld [vmem:[%s6381_s29 + $0x44] sm:$0x1] }
  0x84   : > { %5990 = vmatprep.mubr.msk.bf16.mxu0 %vm707_vm3, %v5235_v40  ;;  %v2093_v40 = vsel %vm6425_vm4, %v2088_v34, %v6986_v30  ;;  %v2146_v30 = vrot.slane %v2145_v6, 4  ;;  %v2150_v34 = vrot.slane %v2148_v32, 5  ;;  %v2172_v62 = vshll.u32 %v7037_v41, 16  ;;  %v5340_v51 = vld [vmem:[%s6381_s29 + $0x54] sm:$0xf] }
  0x85   : > { %v2177_v12 = vshrl.u32 %v5334_v13, 16  ;;  %v2180_v17 = vshll.u32 %v5334_v13, 16  ;;  %v7075_v14 = vsel %vm756_vm0, %v6806_v22, 0  ;;  %v2169_v35 = vor.u32 %v2168_v11, %v7043_v45 }
  0x86   : > { %5953 = vmatmul.mubr.msk.bf16.gmra.mxu1 %vm707_vm3, %v9151_v3  ;;  %v2186_v46 = vshll.u32 %v7046_v61, 16  ;;  %v2190_v16 = vshrl.u32 %v7046_v61, 16  ;;  %v7080_v15 = vcombine.low %v2093_v40, %v2103_v63  ;;  %v7084_v32 = vsel %vm756_vm0, %v6778_v24, 0  ;;  %v7107_v40 = vld [vmem:[%s6381_s29 + $0x58] sm:$0xf] }
  0x87   : > { %5956 = vmatprep.mubr.msk.bf16.mxu1 %vm707_vm3, %v9152_v53  ;;  %v2201_v60 = vshrl.u32 %v5337_v8, 16  ;;  %v2204_v57 = vshll.u32 %v5337_v8, 16  ;;  %v9153_v6 = vcombine.low %v6893_v25, %v6903_v54  ;;  %v7090_v22 = vcombine.low %v2117_v52, %v2127_v58  ;;  %v7112_v8 = vld [vmem:[%s6381_s29 + $0x50] sm:$0x1] }
  0x88   : > { %v2141_v28 = vsel %vm6425_vm4, %v2136_v23, %v7031_v33  ;;  %v2151_v56 = vsel %vm6425_vm4, %v2146_v30, %v2150_v34  ;;  %v2210_v24 = vshll.u32 %v7064_v1, 16  ;;  %v9154_v25 = vcombine.low %v6907_v39, %v6917_v27  ;;  %v5343_v34 = vld [vmem:[%s6381_s29 + $0x60] sm:$0xf] }
  0x89   : > { %v2160_v54 = vrot.slane %v2159_v20, 4  ;;  %v2174_v13 = vrot.slane %v2172_v62, 5  ;;  %v2179_v11 = vrot.slane %v2177_v12, 4  ;;  %v2182_v3 = vrot.slane %v2180_v17, 5 }
  0x8a   : > { %v2170_v33 = vrot.slane %v2169_v35, 4  ;;  %v7109_v63 = vrot.slane %v2186_v46, 5  ;;  %v2192_v52 = vrot.slane %v2190_v16, 4  ;;  %v2214_v53 = vshrl.u32 %v7064_v1, 16  ;;  %v7129_v35 = vld [vmem:[%s6381_s29 + $0x5c] sm:$0x1] }
  0x8b   : > { %5991 = vmatmul.mubr.msk.bf16.gmra.mxu0 %vm707_vm3, %v9153_v6  ;;  %v9155_v39 = vcombine.low %v6530_v36, %v6537_v43  ;;  %v2203_v27 = vrot.slane %v2201_v60, 4  ;;  %v2206_v58 = vrot.slane %v2204_v57, 5  ;;  %v2225_v23 = vshrl.u32 %v5340_v51, 16 }
  0x8c   : > { %5994 = vmatprep.mubr.msk.bf16.mxu0 %vm707_vm3, %v9154_v25  ;;  %v2228_v30 = vshll.u32 %v5340_v51, 16  ;;  %v9156_v20 = vcombine.low %v9139_v2, %v9138_v10  ;;  %v7124_v62 = vcombine.low %v2141_v28, %v2151_v56  ;;  %v7126_v12 = vrot.slane %v2210_v24, 5  ;;  %v7142_v28 = vld [vmem:[%s6381_s29 + $0x64] sm:$0xf] }
  0x8d   : > { %v2216_v17 = vrot.slane %v2214_v53, 4  ;;  %v2234_v36 = vshll.u32 %v7107_v40, 16  ;;  %v2196_v43 = vshll.u32 %v7098_v50, 16  ;;  %v2227_v46 = vrot.slane %v2225_v23, 4 }
  0x8e   : > { %5957 = vmatmul.mubr.msk.bf16.gmra.mxu1 %vm707_vm3, %v9155_v39  ;;  %v2230_v16 = vrot.slane %v2228_v30, 5  ;;  %v2238_v60 = vshrl.u32 %v7107_v40, 16  ;;  %v2165_v10 = vsel %vm6425_vm4, %v2160_v54, %v7043_v45  ;;  %v2175_v2 = vsel %vm6425_vm4, %v2170_v33, %v2174_v13  ;;  %v7164_v30 = vld [vmem:[%s6381_s29 + $0x68] sm:$0x1] }
  0x8f   : > { %5960 = vmatprep.mubr.msk.bf16.mxu1 %vm707_vm3, %v9156_v20  ;;  %v2183_v57 = vor.u32 %v2182_v3, %v2179_v11  ;;  %v7139_v6 = vrot.slane %v2234_v36, 5  ;;  %v2193_v56 = vor.u32 %v2192_v52, %v7109_v63  ;;  %v2207_v24 = vor.u32 %v2206_v58, %v2203_v27  ;;  %v5346_v3 = vld [vmem:[%s6381_s29 + $0x6c] sm:$0xf]  ;;  %v7161_v27 = vld [vmem:[%s6381_s29 + $0x70] sm:$0xf] }
  0x90   : > { %v2220_v51 = vshll.u32 %v7112_v8, 16  ;;  %v2240_v25 = vrot.slane %v2238_v60, 4  ;;  %v9157_v53 = vcombine.low %v6927_v19, %v6947_v9  ;;  %v2217_v45 = vor.u32 %v2216_v17, %v7126_v12 }
  0x91   : > { %v2231_v54 = vor.u32 %v2230_v16, %v2227_v46  ;;  %v2249_v13 = vshrl.u32 %v5343_v34, 16  ;;  %v2252_v11 = vshll.u32 %v5343_v34, 16  ;;  %v9158_v33 = vcombine.low %v6939_v59, %v6963_v7  ;;  %v5349_v16 = vld [vmem:[%s6381_s29 + $0x78] sm:$0xf] }
  0x92   : > { %v2241_v52 = vor.u32 %v2240_v25, %v7139_v6  ;;  %v2244_v39 = vshll.u32 %v7129_v35, 16  ;;  %v2258_v19 = vshll.u32 %v7142_v28, 16  ;;  %v2262_v9 = vshrl.u32 %v7142_v28, 16 }
  0x93   : > { %5995 = vmatmul.mubr.msk.bf16.gmra.mxu0 %vm707_vm3, %v9157_v53  ;;  %v2184_v58 = vrot.slane %v2183_v57, 4  ;;  %v2198_v23 = vrot.slane %v2196_v43, 5  ;;  %v2251_v34 = vrot.slane %v2249_v13, 4  ;;  %v2254_v20 = vrot.slane %v2252_v11, 5 }
  0x94   : > { %5998 = vmatprep.mubr.msk.bf16.mxu0 %vm707_vm3, %v9158_v33  ;;  %v9159_v59 = vcombine.low %v9142_v26, %v9141_v38  ;;  %v7170_v7 = vcombine.low %v2165_v10, %v2175_v2  ;;  %v2194_v17 = vrot.slane %v2193_v56, 4  ;;  %v2208_v36 = vrot.slane %v2207_v24, 4  ;;  %v7180_v2 = vld [vmem:[%s6381_s29 + $0x7c] sm:$0xf] }
  0x95   : > { %v7172_v46 = vrot.slane %v2258_v19, 5  ;;  %v9160_v43 = vcombine.low %v9145_v42, %v9144_v48  ;;  %v2218_v60 = vrot.slane %v2217_v45, 4  ;;  %v2222_v57 = vrot.slane %v2220_v51, 5  ;;  %9161 = vst [vmem:[#allocation3_spill] sm:$0xff] %v7180_v2  ;;  %v5352_v19 = vld [vmem:[%s6381_s29 + $0x84] sm:$0xf] }
  0x96   : > { %5961 = vmatmul.mubr.msk.bf16.gmra.mxu1 %vm707_vm3, %v9159_v59  ;;  %v2232_v25 = vrot.slane %v2231_v54, 4  ;;  %v2264_v38 = vrot.slane %v2262_v9, 4  ;;  %v2242_v26 = vrot.slane %v2241_v52, 4  ;;  %v2246_v53 = vrot.slane %v2244_v39, 5 }
  0x97   : > { %5964 = vmatprep.mubr.msk.bf16.mxu1 %vm707_vm3, %v9160_v43  ;;  %v2255_v13 = vor.u32 %v2254_v20, %v2251_v34  ;;  %v2273_v10 = vshrl.u32 %v5346_v3, 16  ;;  %v2189_v56 = vsel %vm6425_vm4, %v2184_v58, %v7109_v63  ;;  %v2276_v24 = vshll.u32 %v5346_v3, 16  ;;  %v6259_v63 = vld [vmem:[%s6381_s29 + $0xc] sm:$0xff]   ;;  %v7214_v34 = vld [vmem:[%s6381_s29 + $0x88] sm:$0xf] }
  0x98   : > { %v2282_v48 = vshll.u32 %v7161_v27, 16  ;;  %v2286_v42 = vshrl.u32 %v7161_v27, 16  ;;  %v2199_v51 = vsel %vm6425_vm4, %v2194_v17, %v2198_v23  ;;  %v2213_v45 = vsel %vm6425_vm4, %v2208_v36, %v7126_v12  ;;  %9162 = vst [vmem:[#allocation5_spill] sm:$0xff] %v7214_v34  ;;  %v7223_v36 = vld [vmem:[%s6381_s29 + $0x74] sm:$0x1] }
  0x99   : > { %v2265_v54 = vor.u32 %v2264_v38, %v7172_v46  ;;  %v2268_v11 = vshll.u32 %v7164_v30, 16  ;;  %v2223_v3 = vsel %vm6425_vm4, %v2218_v60, %v2222_v57  ;;  %v2237_v33 = vsel %vm6425_vm4, %v2232_v25, %v7139_v6  ;;  %9164 = vst [vmem:[#allocation4_spill] sm:$0xff] %v7223_v36  ;;  %v7233_v38 = vld [vmem:[%s6381_s29 + $0x80] sm:$0x1] }
  0x9a   : > { %v2297_v52 = vshrl.u32 %v5349_v16, 16  ;;  %v2300_v12 = vshll.u32 %v5349_v16, 16  ;;  %v2247_v18 = vsel %vm6425_vm4, %v2242_v26, %v2246_v53  ;;  %v2256_v4 = vrot.slane %v2255_v13, 4  ;;  %9165 = vst [vmem:[#allocation6_spill] sm:$0xff] %v7233_v38  ;;  %v7236_v26 = vld [vmem:[%s6381_s29 + $0x8c] sm:$0x1] }
  0x9b   : > { %5999 = vmatmul.mubr.msk.bf16.gmra.mxu0 %vm707_vm3, %v5240_v55  ;;  %v2275_v55 = vrot.slane %v2273_v10, 4  ;;  %v2306_v39 = vshll.u32 %v7180_v2, 16  ;;  %v2278_v9 = vrot.slane %v2276_v24, 5  ;;  %v7210_v58 = vrot.slane %v2282_v48, 5  ;;  %9166 = vst [vmem:[#allocation8_spill] sm:$0xff] %v7236_v26  ;;  %v6260_v10 = vld [vmem:[%s6381_s29 + $0x18] sm:$0xff]  }
  0x9c   : > { %6038 = vmatprep.mubr.msk.bf16.mxu0 %vm707_vm3, %v7080_v15  ;;  %v2288_v23 = vrot.slane %v2286_v42, 4  ;;  %v2310_v6 = vshrl.u32 %v7180_v2, 16  ;;  %v9163_v15 = vcombine.low %v9147_v29, %v6690_v37  ;;  %v7220_v20 = vcombine.low %v2189_v56, %v2199_v51  ;;  %v5355_v51 = vld [vmem:[%s6381_s29 + $0x90] sm:$0xf] }
  0x9d   : > { %v2266_v59 = vrot.slane %v2265_v54, 4  ;;  %v2270_v17 = vrot.slane %v2268_v11, 5  ;;  %v2299_v16 = vrot.slane %v2297_v52, 4  ;;  %v2302_v43 = vrot.slane %v2300_v12, 5 }
  0x9e   : > { %5965 = vmatmul.mubr.msk.bf16.gmra.mxu1 %vm707_vm3, %v9163_v15  ;;  %v7226_v60 = vrot.slane %v2306_v39, 5  ;;  %v2312_v57 = vrot.slane %v2310_v6, 4  ;;  %v2321_v25 = vshrl.u32 %v5352_v19, 16  ;;  %v7228_v37 = vcombine.low %v2213_v45, %v2223_v3  ;;  %v7247_v45 = vld [vmem:[%s6381_s29 + $0x94] sm:$0xf] }
  0x9f   : > { %6004 = vmatprep.mubr.msk.bf16.mxu1 %vm707_vm3, %v6259_v63  ;;  %v7230_v29 = vcombine.low %v2237_v33, %v2247_v18  ;;  %v2324_v53 = vshll.u32 %v5352_v19, 16  ;;  %v2330_v13 = vshll.u32 %v7214_v34, 16  ;;  %v2261_v56 = vsel %vm6425_vm4, %v2256_v4, %v7172_v46  ;;  %9167 = vst [vmem:[#allocation7_spill] sm:$0xff] %v7247_v45  ;;  %v7255_v33 = vld [vmem:[%s9080_s1 + $0x10] sm:$0x3]  ;;  %v6261_v46 = vld [vmem:[%s6381_s29 + $0x24] sm:$0xff]  }
  0xa0   : > { %v2279_v24 = vor.u32 %v2278_v9, %v2275_v55  ;;  %v2289_v48 = vor.u32 %v2288_v23, %v7210_v58  ;;  %v2292_v42 = vshll.u32 %v7223_v36, 16  ;;  %v2323_v54 = vrot.slane %v2321_v25, 4  ;;  %9168 = vst [vmem:[#allocation9_spill] sm:$0xff] %v7255_v33 }
  0xa1   : > { %v2326_v11 = vrot.slane %v2324_v53, 5  ;;  %v7249_v63 = vrot.slane %v2330_v13, 5  ;;  %v2334_v3 = vshrl.u32 %v7214_v34, 16  ;;  %v2271_v52 = vsel %vm6425_vm4, %v2266_v59, %v2270_v17 }
  0xa2   : > { %v2303_v12 = vor.u32 %v2302_v43, %v2299_v16  ;;  %v2313_v18 = vor.u32 %v2312_v57, %v7226_v60  ;;  %v2316_v4 = vshll.u32 %v7233_v38, 16  ;;  %v2345_v19 = vshrl.u32 %v5355_v51, 16  ;;  %v7289_v57 = vld [vmem:[%s6381_s29 + $0xa0] sm:$0xf] }
  0xa3   : > { %6039 = vmatmul.mubr.msk.bf16.vlgmr.msra.gmra.mxu0 %vm707_vm3, %v7090_v22  ;;  %v2327_v55 = vor.u32 %v2326_v11, %v2323_v54  ;;  %v2336_v39 = vrot.slane %v2334_v3, 4  ;;  %v2348_v9 = vshll.u32 %v5355_v51, 16  ;;  %v5358_v22 = vld [vmem:[%s6381_s29 + $0x9c] sm:$0xf]  ;;  %v7268_v23 = vrot.slane %v2279_v24, 4  ;;  %9170 = vst [vmem:[#allocation10_spill] sm:$0xff] %v7289_v57 }
  0xa4   : > { %6105 = vmatpush3.bf16.msra.mxu0 %v7084_v32  ;;  %6042 = vmatprep.mubr.msk.bf16.mxu0 %vm707_vm3, %v7124_v62  ;;  %v7270_v6 = vrot.slane %v2292_v42, 5  ;;  %v2340_v15 = vshll.u32 %v7236_v26, 16  ;;  %v2354_v59 = vshll.u32 %v7247_v45, 16  ;;  %v7277_v32 = vld [vmem:[%s9080_s1 + $0xe] sm:$0x3]  ;;  %v7282_v62 = vcombine.low %v2261_v56, %v2271_v52 }
  0xa5   : > { %9169 = vst [vmem:[#allocation11_spill] sm:$0xff] %v7277_v32  ;;  %6217 = vmatprep.subr.msk.bf16.mxu0 %vm756_vm0, %v7255_v33  ;;  %v7284_v17 = vrot.slane %v2289_v48, 4  ;;  %v2337_v16 = vor.u32 %v2336_v39, %v7249_v63  ;;  %v2358_v43 = vshrl.u32 %v7247_v45, 16  ;;  %v7293_v25 = vrot.slane %v2303_v12, 4  ;;  %v7302_v56 = vld [vmem:[%s6381_s29 + $0x98] sm:$0x1] }
  0xa6   : > { %6005 = vmatmul.mubr.msk.bf16.vlgmr.msra.gmra.mxu1 %vm707_vm3, %v6260_v10  ;;  %v7295_v53 = vrot.slane %v2313_v18, 4  ;;  %v7297_v13 = vrot.slane %v2316_v4, 5  ;;  %v7299_v10 = vrot.slane %v2327_v55, 4  ;;  %9171 = vst [vmem:[#allocation12_spill] sm:$0xff] %v7302_v56  ;;  %v2347_v24 = vrot.slane %v2345_v19, 4  ;;  %v6263_v19 = vld [vmem:[%s6381_s29 + $0x3c] sm:$0xff]  }
  0xa7   : > { %6071 = vmatpush3.bf16.msra.mxu1 %v7075_v14  ;;  %6008 = vmatprep.mubr.msk.bf16.mxu1 %vm707_vm3, %v6261_v46  ;;  %v2350_v48 = vrot.slane %v2348_v9, 5  ;;  %v2369_v42 = vshrl.u32 %v5358_v22, 16  ;;  %v2372_v51 = vshll.u32 %v5358_v22, 16  ;;  %v6262_v14 = vld [vmem:[%s6381_s29 + $0x30] sm:$0xff]   ;;  %v7311_v11 = vrot.slane %v2340_v15, 5 }
  0xa8   : > { %6216 = vmatprep.subr.msk.bf16.mxu1 %vm756_vm0, %v7277_v32  ;;  %v7313_v3 = vrot.slane %v2354_v59, 5  ;;  %v2378_v46 = vshll.u32 %v7289_v57, 16  ;;  %v5361_v52 = vld [vmem:[%s6381_s29 + $0xa8] sm:$0xf]  ;;  %v7317_v12 = vrot.slane %v2337_v16, 4  ;;  %v2360_v18 = vrot.slane %v2358_v43, 4 }
  0xa9   : > { %v2364_v4 = vshll.u32 %v7302_v56, 16  ;;  %v2382_v55 = vshrl.u32 %v7289_v57, 16  ;;  %v7322_v39 = vld [vmem:[%s6381_s29 + $0xac] sm:$0xf]  ;;  %v2351_v59 = vor.u32 %v2350_v48, %v2347_v24  ;;  %v7346_v16 = vld [vmem:[%s6381_s29 + $0xa4] sm:$0x1] }
  0xaa   : > { %9172 = vst [vmem:[#allocation13_spill] sm:$0xff] %v7322_v39  ;;  %9173 = vst [vmem:[#allocation2_spill] sm:$0xff] %v7346_v16  ;;  %v2371_v43 = vrot.slane %v2369_v42, 4  ;;  %v2374_v22 = vrot.slane %v2372_v51, 5  ;;  %v2393_v54 = vshrl.u32 %v5361_v52, 16  ;;  %v7348_v9 = vrot.slane %v2378_v46, 5 }
  0xab   : > { %6043 = vmatmul.mubr.msk.bf16.gmra.mxu0 %vm707_vm3, %v7170_v7  ;;  %v2384_v32 = vrot.slane %v2382_v55, 4  ;;  %v2396_v15 = vshll.u32 %v5361_v52, 16  ;;  %v2402_v33 = vshll.u32 %v7322_v39, 16  ;;  %v5364_v57 = vld [vmem:[%s6381_s29 + $0xb4] sm:$0xf]  ;;  %v2361_v24 = vor.u32 %v2360_v18, %v7313_v3 }
  0xac   : > { %6046 = vmatprep.mubr.msk.bf16.mxu0 %vm707_vm3, %v7220_v20  ;;  %v2343_v20 = vsel %vm6425_vm4, %v7317_v12, %v7311_v11  ;;  %v7358_v48 = vrot.slane %v2364_v4, 5  ;;  %v7361_v42 = vld [vmem:[%s6381_s29 + $0xb0] sm:$0x1]  ;;  %v2395_v51 = vrot.slane %v2393_v54, 4  ;;  %v7364_v46 = vld [vmem:[%s6381_s29 + $0xb8] sm:$0xf]  ;;  %v2375_v18 = vor.u32 %v2374_v22, %v2371_v43 }
  0xad   : > { %9174 = vst [vmem:[#allocation14_spill] sm:$0xff] %v7361_v42  ;;  %9175 = vst [vmem:[#allocation15_spill] sm:$0xff] %v7364_v46  ;;  %v2398_v52 = vrot.slane %v2396_v15, 5  ;;  %v7368_v55 = vrot.slane %v2402_v33, 5  ;;  %v2406_v11 = vshrl.u32 %v7322_v39, 16  ;;  %v7371_v12 = vrot.slane %v2351_v59, 4 }
  0xae   : > { %6009 = vmatmul.mubr.msk.bf16.gmra.mxu1 %vm707_vm3, %v6262_v14  ;;  %v2388_v14 = vshll.u32 %v7346_v16, 16  ;;  %v7374_v4 = vld [vmem:[%s6381_s29 + $0xbc] sm:$0x1]  ;;  %v2417_v54 = vshrl.u32 %v5364_v57, 16  ;;  %v2420_v7 = vshll.u32 %v5364_v57, 16  ;;  %v2385_v56 = vor.u32 %v2384_v32, %v7348_v9  ;;  %v6264_v16 = vld [vmem:[%s6381_s29 + $0x48] sm:$0xff]  }
  0xaf   : > { %6012 = vmatprep.mubr.msk.bf16.mxu1 %vm707_vm3, %v6263_v19  ;;  %v2408_v45 = vrot.slane %v2406_v11, 4  ;;  %v2412_v19 = vshll.u32 %v7361_v42, 16  ;;  %v2426_v15 = vshll.u32 %v7364_v46, 16  ;;  %v5367_v33 = vld [vmem:[%s6381_s29 + $0xc0] sm:$0xf]  ;;  %v2399_v26 = vor.u32 %v2398_v52, %v2395_v51  ;;  %v6265_v57 = vld [vmem:[%s6381_s29 + $0x54] sm:$0xff]  }
  0xb0   : > { %v2419_v39 = vrot.slane %v2417_v54, 4  ;;  %v2422_v34 = vrot.slane %v2420_v7, 5  ;;  %v2430_v59 = vshrl.u32 %v7364_v46, 16  ;;  %v7383_v22 = vld [vmem:[%s6381_s29 + $0xc4] sm:$0xf]  ;;  %v2362_v43 = vrot.slane %v2361_v24, 4 }
  0xb1   : > { %v2390_v32 = vrot.slane %v2388_v14, 5  ;;  %v2409_v11 = vor.u32 %v2408_v45, %v7368_v55  ;;  %v2428_v42 = vrot.slane %v2426_v15, 5  ;;  %v2436_v7 = vshll.u32 %v7374_v4, 16  ;;  %v7395_v45 = vld [vmem:[%s6381_s29 + $0xc8] sm:$0x1] }
  0xb2   : > { %v2423_v51 = vor.u32 %v2422_v34, %v2419_v39  ;;  %v2432_v52 = vrot.slane %v2430_v59, 4  ;;  %v2441_v54 = vshrl.u32 %v5367_v33, 16  ;;  %v2376_v46 = vrot.slane %v2375_v18, 4 }
  0xb3   : > { %6047 = vmatmul.mubr.msk.bf16.gmra.mxu0 %vm707_vm3, %v7228_v37  ;;  %v2386_v38 = vrot.slane %v2385_v56, 4  ;;  %v2444_v2 = vshll.u32 %v5367_v33, 16  ;;  %v2450_v37 = vshll.u32 %v7383_v22, 16  ;;  %v2400_v24 = vrot.slane %v2399_v26, 4 }
  0xb4   : > { %6050 = vmatprep.mubr.msk.bf16.mxu0 %vm707_vm3, %v7230_v29  ;;  %v2414_v14 = vrot.slane %v2412_v19, 5  ;;  %v2433_v36 = vor.u32 %v2432_v52, %v2428_v42  ;;  %v2443_v15 = vrot.slane %v2441_v54, 4  ;;  %v2410_v34 = vrot.slane %v2409_v11, 4 }
  0xb5   : > { %v2446_v29 = vrot.slane %v2444_v2, 5  ;;  %v7398_v39 = vrot.slane %v2450_v37, 5  ;;  %v2454_v56 = vshrl.u32 %v7383_v22, 16  ;;  %v9176_v26 = vsel %vm6425_vm4, %v7284_v17, %v7270_v6 }
  0xb6   : > { %6013 = vmatmul.mubr.msk.bf16.gmra.mxu1 %vm707_vm3, %v6264_v16  ;;  %v9177_v16 = vsel %vm6425_vm4, %v7268_v23, %v7210_v58  ;;  %v2424_v19 = vrot.slane %v2423_v51, 4  ;;  %v2434_v33 = vrot.slane %v2433_v36, 4  ;;  %v2438_v2 = vrot.slane %v2436_v7, 5  ;;  %v6266_v23 = vld [vmem:[%s6381_s29 + $0x60] sm:$0xff]  }
  0xb7   : > { %6016 = vmatprep.mubr.msk.bf16.mxu1 %vm707_vm3, %v6265_v57  ;;  %v5379_v18 = vcombine.low %v9177_v16, %v9176_v26  ;;  %v9178_v59 = vsel %vm6425_vm4, %v7295_v53, %v7297_v13  ;;  %v9179_v6 = vsel %vm6425_vm4, %v7293_v25, %v7226_v60  ;;  %v2447_v57 = vor.u32 %v2446_v29, %v2443_v15  ;;  %v5405_v13 = vld [vmem:[%s6381_s29 + $0x24] sm:$0xe]  ;;  %v5408_v26 = vld [vmem:[%s6381_s29 + $0x48] sm:$0xe] }
  0xb8   : > { %v5380_v17 = vcombine.low %v9179_v6, %v9178_v59  ;;  %v2456_v11 = vrot.slane %v2454_v56, 4  ;;  %v2460_v58 = vshll.u32 %v7395_v45, 16  ;;  %v9180_v36 = vsel %vm6425_vm4, %v7299_v10, %v7249_v63  ;;  %v6267_v63 = vld [vmem:[%s6381_s29 + $0x6c] sm:$0xff]   ;;  %v5409_v6 = vld [vmem:[%s6381_s29 + $0x54] sm:$0xe] }
  0xb9   : > { %v5381_v51 = vcombine.low %v9180_v36, %v2343_v20  ;;  %v2357_v53 = vsel %vm6425_vm4, %v7371_v12, %v7313_v3  ;;  %v2367_v60 = vsel %vm6425_vm4, %v2362_v43, %v7358_v48  ;;  %v2381_v25 = vsel %vm6425_vm4, %v2376_v46, %v7348_v9  ;;  %v7451_v12 = vld [vmem:[%s6381_s29 + $0xc] sm:$0xe] }
  0xba   : > { %v2391_v10 = vsel %vm6425_vm4, %v2386_v38, %v2390_v32  ;;  %v2405_v3 = vsel %vm6425_vm4, %v2400_v24, %v7368_v55  ;;  %v2415_v20 = vsel %vm6425_vm4, %v2410_v34, %v2414_v14  ;;  %v2457_v48 = vor.u32 %v2456_v11, %v7398_v39  ;;  %v5406_v55 = vld [vmem:[%s6381_s29 + $0x30] sm:$0xe]  ;;  %v5407_v14 = vld [vmem:[%s6381_s29 + $0x3c] sm:$0xe] }
  0xbb   : > { %6051 = vmatmul.mubr.msk.bf16.gmra.mxu0 %vm707_vm3, %v7282_v62  ;;  %v2429_v62 = vsel %vm6425_vm4, %v2424_v19, %v2428_v42  ;;  %v2439_v38 = vsel %vm6425_vm4, %v2434_v33, %v2438_v2  ;;  %v7458_v9 = vrot.slane %v2447_v57, 4  ;;  %v2824_v46 = vrot.slane %v6942_v49, 5  ;;  %v6268_v57 = vld [vmem:[%s6381_s29 + $0x78] sm:$0xff]  }
  0xbc   : > { %6054 = vmatprep.mubr.msk.bf16.mxu0 %vm707_vm3, %v5379_v18  ;;  %v7462_v43 = vcombine.low %v2357_v53, %v2367_v60  ;;  %v7464_v32 = vrot.slane %v2457_v48, 4  ;;  %v7466_v52 = vrot.slane %v2460_v58, 5  ;;  %v5421_v7 = vrot.slane %v5405_v13, 9  ;;  %v6269_v53 = vld [vmem:[%s6381_s29 + $0x84] sm:$0xff]   ;;  %v5410_v13 = vld [vmem:[%s6381_s29 + $0x60] sm:$0xe] }
  0xbd   : > { %v7469_v54 = vcombine.low %v2381_v25, %v2391_v10  ;;  %v7471_v42 = vcombine.low %v2405_v3, %v2415_v20  ;;  %v5419_v37 = vrot.slane %v7451_v12, 9  ;;  %v2838_v24 = vrot.slane %v6991_v44, 5  ;;  %v6275_v49 = vld [vmem:[%s6381_s29 + $0x18] sm:$0xff]  }
  0xbe   : > { %6017 = vmatmul.mubr.msk.bf16.gmra.mxu1 %vm707_vm3, %v6266_v23  ;;  %v7477_v15 = vcombine.low %v2429_v62, %v2439_v38  ;;  %v2827_v34 = vrot.slane %v6978_v47, 5  ;;  %v2841_v29 = vrot.slane %v7006_v21, 5  ;;  %v5422_v56 = vrot.slane %v5406_v55, 9  ;;  %v5412_v55 = vld [vmem:[%s6381_s29 + $0x78] sm:$0xe] }
  0xbf   : > { %6020 = vmatprep.mubr.msk.bf16.mxu1 %vm707_vm3, %v6267_v63  ;;  %v2453_v16 = vsel %vm6425_vm4, %v7458_v9, %v7398_v39  ;;  %v7488_v44 = vrot.slane %v2824_v46, 4  ;;  %v7492_v18 = vsel %vm6711_vm7, %v5421_v7, %v2838_v24  ;;  %v2840_v19 = vrot.slane %v2838_v24, 4 }
  0xc0   : > { %v2463_v21 = vsel %vm6425_vm4, %v7464_v32, %v7466_v52  ;;  %v2845_v33 = vrot.slane %v7029_v5, 5  ;;  %v2848_v2 = vrot.slane %v7037_v41, 5  ;;  %v5423_v59 = vrot.slane %v5407_v14, 9  ;;  %v6274_v52 = vld [vmem:[%s6381_s29 + $0xc0] sm:$0xff]  }
  0xc1   : > { %v7504_v11 = vsel %vm6711_vm7, %v2840_v19, %v2841_v29  ;;  %v2852_v58 = vrot.slane %v7046_v61, 5  ;;  %v2855_v23 = vrot.slane %v7098_v50, 5  ;;  %v5424_v36 = vrot.slane %v5408_v26, 9  ;;  %v5413_v19 = vld [vmem:[%s6381_s29 + $0x84] sm:$0xe] }
  0xc2   : > { %v5438_v5 = vcombine.low %v7492_v18, %v7504_v11  ;;  %v7514_v41 = vsel %vm6711_vm7, %v5422_v56, %v2845_v33  ;;  %v2847_v60 = vrot.slane %v2845_v33, 4  ;;  %v2859_v25 = vrot.slane %v7064_v1, 5 }
  0xc3   : > { %6055 = vmatmul.mubr.msk.bf16.gmra.mxu0 %vm707_vm3, %v5380_v17  ;;  %v7521_v61 = vsel %vm6711_vm7, %v5423_v59, %v2852_v58  ;;  %v2854_v50 = vrot.slane %v2852_v58, 4  ;;  %v2862_v17 = vrot.slane %v7112_v8, 5  ;;  %v5425_v63 = vrot.slane %v5409_v6, 9  ;;  %v9181_v59 = vld [vmem:[#allocation4_spill] sm:$0xff] }
  0xc4   : > { %6058 = vmatprep.mubr.msk.bf16.mxu0 %vm707_vm3, %v5381_v51  ;;  %v7526_v10 = vsel %vm6711_vm7, %v2847_v60, %v2848_v2  ;;  %v7530_v3 = vsel %vm6711_vm7, %v5424_v36, %v2859_v25  ;;  %v2861_v1 = vrot.slane %v2859_v25, 4  ;;  %v2866_v20 = vrot.slane %v7107_v40, 5  ;;  %v5411_v51 = vld [vmem:[%s6381_s29 + $0x6c] sm:$0xe]  ;;  %v6270_v58 = vld [vmem:[%s6381_s29 + $0x90] sm:$0xff]  }
  0xc5   : > { %v5439_v48 = vcombine.low %v7514_v41, %v7526_v10  ;;  %v7539_v8 = vsel %vm6711_vm7, %v2854_v50, %v2855_v23  ;;  %v2869_v62 = vrot.slane %v7129_v35, 5  ;;  %v5426_v38 = vrot.slane %v5410_v13, 9  ;;  %v9182_v36 = vld [vmem:[#allocation3_spill] sm:$0xff]  ;;  %v5414_v60 = vld [vmem:[%s6381_s29 + $0x90] sm:$0xe]  ;;  %v9183_v50 = vld [vmem:[#allocation6_spill] sm:$0xff] }
  0xc6   : > { %6021 = vmatmul.mubr.msk.bf16.gmra.mxu1 %vm707_vm3, %v6268_v57  ;;  %v5440_v40 = vcombine.low %v7521_v61, %v7539_v8  ;;  %v7548_v7 = vsel %vm6711_vm7, %v2861_v1, %v2862_v17  ;;  %v7552_v24 = vsel %vm6711_vm7, %v5425_v63, %v2866_v20  ;;  %v2868_v14 = vrot.slane %v2866_v20, 4 }
  0xc7   : > { %6024 = vmatprep.mubr.msk.bf16.mxu1 %vm707_vm3, %v6269_v53  ;;  %v5441_v35 = vcombine.low %v7530_v3, %v7548_v7  ;;  %v2873_v29 = vrot.slane %v7142_v28, 5  ;;  %v2876_v56 = vrot.slane %v7164_v30, 5  ;;  %v5427_v26 = vrot.slane %v5411_v51, 9  ;;  %v9184_v51 = vld [vmem:[#allocation5_spill] sm:$0xff]  ;;  %v5545_v3 = vld [vmem:[%s6381_s29 + $0x48] sm:$0xf] }
  0xc8   : > { %v7561_v33 = vsel %vm6711_vm7, %v2868_v14, %v2869_v62  ;;  %v2880_v2 = vrot.slane %v7161_v27, 5  ;;  %v2883_v6 = vrot.slane %v9181_v59, 5  ;;  %v5428_v57 = vrot.slane %v5412_v55, 9  ;;  %v6271_v27 = vld [vmem:[%s6381_s29 + $0x9c] sm:$0xff]   ;;  %v9192_v55 = vld [vmem:[#allocation15_spill] sm:$0xff] }
  0xc9   : > { %v5442_v23 = vcombine.low %v7552_v24, %v7561_v33  ;;  %v7570_v28 = vsel %vm6711_vm7, %v5426_v38, %v2873_v29  ;;  %v2875_v30 = vrot.slane %v2873_v29, 4  ;;  %v2887_v53 = vrot.slane %v9182_v36, 5  ;;  %v5415_v38 = vld [vmem:[%s6381_s29 + $0x9c] sm:$0xe]  ;;  %v9187_v36 = vld [vmem:[#allocation12_spill] sm:$0xff] }
  0xca   : > { %v7579_v25 = vsel %vm6711_vm7, %v5427_v26, %v2880_v2  ;;  %v2882_v13 = vrot.slane %v2880_v2, 4  ;;  %v2890_v17 = vrot.slane %v9183_v50, 5  ;;  %v5429_v63 = vrot.slane %v5413_v19, 9  ;;  %v5416_v26 = vld [vmem:[%s6381_s29 + $0xa8] sm:$0xe] }
  0xcb   : > { %6059 = vmatmul.mubr.msk.bf16.gmra.mxu0 %vm707_vm3, %v7462_v43  ;;  %v7586_v1 = vsel %vm6711_vm7, %v2875_v30, %v2876_v56  ;;  %v7590_v43 = vsel %vm6711_vm7, %v5428_v57, %v2887_v53  ;;  %v2889_v20 = vrot.slane %v2887_v53, 4  ;;  %v2894_v62 = vrot.slane %v9184_v51, 5  ;;  %v5418_v57 = vld [vmem:[%s6381_s29 + $0xc0] sm:$0xe]  ;;  %v6272_v19 = vld [vmem:[%s6381_s29 + $0xa8] sm:$0xff]  }
  0xcc   : > { %6062 = vmatprep.mubr.msk.bf16.mxu0 %vm707_vm3, %v7469_v54  ;;  %v7598_v14 = vsel %vm6711_vm7, %v2882_v13, %v2883_v6  ;;  %v9185_v54 = vld [vmem:[#allocation8_spill] sm:$0xff]  ;;  %v5430_v56 = vrot.slane %v5414_v60, 9  ;;  %v2904_v53 = vrot.slane %v9187_v36, 5  ;;  %v5431_v60 = vrot.slane %v5415_v38, 9  ;;  %v9190_v38 = vld [vmem:[#allocation13_spill] sm:$0xff] }
  0xcd   : > { %v2897_v29 = vrot.slane %v9185_v54, 5  ;;  %v7607_v2 = vsel %vm6711_vm7, %v2889_v20, %v2890_v17  ;;  %v7611_v59 = vsel %vm6711_vm7, %v5429_v63, %v2894_v62  ;;  %v2896_v6 = vrot.slane %v2894_v62, 4  ;;  %v5417_v13 = vld [vmem:[%s6381_s29 + $0xb4] sm:$0xe]  ;;  %v9188_v17 = vld [vmem:[#allocation10_spill] sm:$0xff] }
  0xce   : > { %6025 = vmatmul.mubr.msk.bf16.gmra.mxu1 %vm707_vm3, %v6270_v58  ;;  %v9186_v58 = vld [vmem:[#allocation7_spill] sm:$0xff]  ;;  %v2908_v63 = vrot.slane %v9188_v17, 5  ;;  %v9189_v20 = vld [vmem:[#allocation2_spill] sm:$0xff]  ;;  %v5432_v62 = vrot.slane %v5416_v26, 9  ;;  %v2915_v36 = vrot.slane %v9190_v38, 5  ;;  %v5433_v26 = vrot.slane %v5417_v13, 9 }
  0xcf   : > { %6028 = vmatprep.mubr.msk.bf16.mxu1 %vm707_vm3, %v6271_v27  ;;  %v2901_v30 = vrot.slane %v9186_v58, 5  ;;  %v7621_v50 = vsel %vm6711_vm7, %v2896_v6, %v2897_v29  ;;  %v2911_v51 = vrot.slane %v9189_v20, 5  ;;  %v9191_v17 = vld [vmem:[#allocation14_spill] sm:$0xff]  ;;  %v6273_v27 = vld [vmem:[%s6381_s29 + $0xb4] sm:$0xff]   ;;  %v2828_v39 = vsel %vm6711_vm7, %v7488_v44, %v2827_v34  ;;  %v7838_v7 = vld [vmem:[%s6381_s29 + $0x4c] sm:$0xf] }
  0xd0   : > { %v7636_v29 = vsel %vm6711_vm7, %v5431_v60, %v2908_v63  ;;  %v2910_v6 = vrot.slane %v2908_v63, 4  ;;  %v2918_v20 = vrot.slane %v9191_v17, 5  ;;  %v2917_v38 = vrot.slane %v2915_v36, 4  ;;  %v6292_v44 = vld [vmem:[%s6381_s29 + $0x20] sm:$0x1] }
  0xd1   : > { %v7629_v54 = vsel %vm6711_vm7, %v5430_v56, %v2901_v30  ;;  %v2903_v58 = vrot.slane %v2901_v30, 4  ;;  %v7648_v30 = vsel %vm6711_vm7, %v5432_v62, %v2915_v36  ;;  %v2922_v60 = vrot.slane %v9192_v55, 5 }
  0xd2   : > { %v5434_v63 = vrot.slane %v5418_v57, 9  ;;  %v7664_v55 = vsel %vm6711_vm7, %v2917_v38, %v2918_v20  ;;  %v2929_v57 = vrot.slane %v7383_v22, 5  ;;  %v2825_v22 = vsel %vm6711_vm7, %v5419_v37, %v2824_v46  ;;  %v6277_v38 = vld [vmem:[%s6381_s29 + $0x30] sm:$0xff]  }
  0xd3   : > { %6063 = vmatmul.mubr.msk.bf16.gmra.mxu0 %vm707_vm3, %v7471_v42  ;;  %v7644_v56 = vsel %vm6711_vm7, %v2903_v58, %v2904_v53  ;;  %v7657_v42 = vsel %vm6711_vm7, %v2910_v6, %v2911_v51  ;;  %v2925_v53 = vrot.slane %v7374_v4, 5  ;;  %v2924_v58 = vrot.slane %v2922_v60, 4 }
  0xd4   : > { %6066 = vmatprep.mubr.msk.bf16.mxu0 %vm707_vm3, %v7477_v15  ;;  %v7668_v15 = vsel %vm6711_vm7, %v5433_v26, %v2922_v60  ;;  %v2932_v51 = vrot.slane %v7395_v45, 5  ;;  %v5404_v45 = vld [vmem:[%s6381_s29 + $0x18] sm:$0xe]  ;;  %v7708_v9 = vsel %vm6711_vm7, %v5434_v63, %v2929_v57  ;;  %v2931_v46 = vrot.slane %v2929_v57, 4  ;;  %v6276_v26 = vld [vmem:[%s6381_s29 + $0x24] sm:$0xff]  }
  0xd5   : > { %v7696_v32 = vsel %vm6711_vm7, %v2924_v58, %v2925_v53  ;;  %v5420_v37 = vrot.slane %v5404_v45, 9  ;;  %v5436_v34 = vcombine.low %v2825_v22, %v2828_v39  ;;  %v9193_v60 = vld [vmem:[#allocation9_spill] sm:$0xff] }
  0xd6   : > { %6029 = vmatmul.mubr.msk.bf16.gmra.mxu1 %vm707_vm3, %v6272_v19  ;;  %v5386_v19 = vcombine.low %v2453_v16, %v2463_v21  ;;  %v7713_v47 = vsel %vm6711_vm7, %v2931_v46, %v2932_v51  ;;  %v2834_v21 = vrot.slane %v6292_v44, 5  ;;  %v4591_v53 = vsel %vm756_vm0, %v9193_v60, 0  ;;  %v5533_v63 = vld [vmem:[%s6381_s29 + $0x18] sm:$0xf]  ;;  %v5534_v57 = vld [vmem:[%s6381_s29 + $0x1c] sm:$0xf] }
  0xd7   : > { %6032 = vmatprep.mubr.msk.bf16.mxu1 %vm707_vm3, %v6273_v27  ;;  %v6291_v27 = vld [vmem:[%s6381_s29 + $0x1c] sm:$0xf]  ;;  %v5536_v51 = vld [vmem:[%s6381_s29 + $0x24] sm:$0xf]  ;;  %v3639_v45 = vshrl.u32 %v5533_v63, 16  ;;  %v3648_v39 = vshll.u32 %v5534_v57, 16 }
  0xd8   : > { %v2831_v36 = vrot.slane %v6291_v27, 5  ;;  %v3642_v27 = vshll.u32 %v5533_v63, 16  ;;  %v3663_v46 = vshrl.u32 %v5536_v51, 16  ;;  %v6279_v44 = vld [vmem:[%s6381_s29 + $0x48] sm:$0xff]   ;;  %v5614_v60 = vld [vmem:[%s6381_s29 + $0x18] sm:$0xe] }
  0xd9   : > { %v7754_v63 = vld [vmem:[%s6381_s29 + $0x2c] sm:$0x1] }
  0xda   : > { %v2833_v16 = vrot.slane %v2831_v36, 4  ;;  %v2832_v17 = vsel %vm6711_vm7, %v5420_v37, %v2831_v36  ;;  %v7738_v36 = vld [vmem:[%s6381_s29 + $0x28] sm:$0xf]  ;;  %v6278_v37 = vld [vmem:[%s6381_s29 + $0x3c] sm:$0xff]   ;;  %v3665_v18 = vrot.slane %v3663_v46, 4 }
  0xdb   : > { %6067 = vmatmul.mubr.msk.bf16.gmra.mxu0 %vm707_vm3, %v5386_v19  ;;  %v9194_v19 = vld [vmem:[#allocation11_spill] sm:$0xff] }
  0xdc   : > { %6106 = vmatprep.mubr.msk.bf16.mxu0 %vm707_vm3, %v6275_v49  ;;  %v2835_v20 = vsel %vm6711_vm7, %v2833_v16, %v2834_v21  ;;  %v4121_v22 = vsel %vm756_vm0, %v9194_v19, 0  ;;  %v3652_v49 = vshrl.u32 %v5534_v57, 16  ;;  %v3676_v16 = vshrl.u32 %v7738_v36, 16  ;;  %v5535_v21 = vld [vmem:[%s6381_s29 + $0x20] sm:$0x1] }
  0xdd   : > { %v5437_v58 = vcombine.low %v2832_v17, %v2835_v20  ;;  %v3641_v17 = vrot.slane %v3639_v45, 4  ;;  %v3644_v20 = vrot.slane %v3642_v27, 5  ;;  %v5539_v19 = vld [vmem:[%s6381_s29 + $0x30] sm:$0xf]  ;;  %v3658_v45 = vshll.u32 %v5535_v21, 16 }
  0xde   : > { %6033 = vmatmul.mubr.msk.bf16.gmra.mxu1 %vm707_vm3, %v6274_v52  ;;  %v3666_v52 = vshll.u32 %v5536_v51, 16  ;;  %v3678_v51 = vrot.slane %v3676_v16, 4  ;;  %v5630_v27 = vrot.slane %v5614_v60, 9  ;;  %v4385_v46 = vrot.slane %v5535_v21, 5  ;;  %v5615_v16 = vld [vmem:[%s6381_s29 + $0x24] sm:$0xe] }
  0xdf   : > { %6072 = vmatprep.mubr.msk.bf16.mxu1 %vm707_vm3, %v5436_v34  ;;  %v3672_v34 = vshll.u32 %v7738_v36, 16  ;;  %v6280_v21 = vld [vmem:[%s6381_s29 + $0x54] sm:$0xff]   ;;  %v3690_v10 = vshll.u32 %v5539_v19, 16  ;;  %v6281_v60 = vld [vmem:[%s6381_s29 + $0x60] sm:$0xff]  }
  0xe0   : > { %v3668_v11 = vrot.slane %v3666_v52, 5  ;;  %v3682_v52 = vshll.u32 %v7754_v63, 16 }
  0xe3   : > { %6107 = vmatmul.mubr.msk.bf16.vlgmr.msra.gmra.mxu0 %vm707_vm3, %v6276_v26  ;;  %v7750_v26 = vrot.slane %v3648_v39, 5 }
  0xe4   : > { %6173 = vmatpush3.bf16.msra.mxu0 %v4591_v53  ;;  %6110 = vmatprep.mubr.msk.bf16.mxu0 %vm707_vm3, %v6277_v38  ;;  %v3654_v38 = vrot.slane %v3652_v49, 4  ;;  %v4382_v53 = vrot.slane %v5534_v57, 5  ;;  %v7764_v57 = vld [vmem:[%s6381_s29 + $0x34] sm:$0xf] }
  0xe6   : > { %6073 = vmatmul.mubr.msk.bf16.vlgmr.msra.gmra.mxu1 %vm707_vm3, %v5437_v58  ;;  %v7759_v58 = vrot.slane %v3672_v34, 5  ;;  %v3655_v39 = vor.u32 %v3654_v38, %v7750_v26  ;;  %v4384_v49 = vrot.slane %v4382_v53, 4  ;;  %v3669_v34 = vor.u32 %v3668_v11, %v3665_v18 }
  0xe7   : > { %6139 = vmatpush3.bf16.msra.mxu1 %v4121_v22  ;;  %6076 = vmatprep.mubr.msk.bf16.mxu1 %vm707_vm3, %v5438_v5  ;;  %v7757_v5 = vpop.f32.mrf.mxu0  ;;  %v3645_v22 = vor.u32 %v3644_v20, %v3641_v17  ;;  %v3687_v17 = vshrl.u32 %v5539_v19, 16  ;;  %v3700_v38 = vshrl.u32 %v7764_v57, 16  ;;  %v7789_v61 = vsel %vm6711_vm7, %v5630_v27, %v4382_v53  ;;  %v5542_v19 = vld [vmem:[%s6381_s29 + $0x3c] sm:$0xf] }
  0xe8   : > { %v3679_v41 = vor.u32 %v3678_v51, %v7759_v58  ;;  %v3656_v8 = vrot.slane %v3655_v39, 4  ;;  %v3684_v11 = vrot.slane %v3682_v52, 5  ;;  %v5631_v51 = vrot.slane %v5615_v16, 9  ;;  %v7803_v39 = vld [vmem:[%s6381_s29 + $0x38] sm:$0x1] }
  0xe9   : > { %v7781_v20 = vpop.f32.mrf.mxu0  ;;  %v3646_v18 = vrot.slane %v3645_v22, 4  ;;  %v3670_v12 = vrot.slane %v3669_v34, 4  ;;  %v4392_v22 = vrot.slane %v7754_v63, 5  ;;  %v3702_v52 = vrot.slane %v3700_v38, 4 }
  0xea   : > { %v3680_v27 = vrot.slane %v3679_v41, 4  ;;  %v3711_v34 = vshrl.u32 %v5542_v19, 16  ;;  %v3714_v16 = vshll.u32 %v5542_v19, 16  ;;  %v7816_v41 = vld [vmem:[%s6381_s29 + $0x40] sm:$0xf] }
  0xeb   : > { %6111 = vmatmul.mubr.msk.bf16.gmra.mxu0 %vm707_vm3, %v6278_v37  ;;  %v7800_v53 = vpop.f32.mrf.mxu0  ;;  %v3651_v63 = vsel %vm6425_vm4, %v3646_v18, %v7750_v26  ;;  %v3675_v26 = vsel %vm6425_vm4, %v3670_v12, %v7759_v58  ;;  %v5616_v18 = vld [vmem:[%s6381_s29 + $0x30] sm:$0xe]  ;;  %v3720_v24 = vshll.u32 %v7816_v41, 16  ;;  %v3724_v33 = vshrl.u32 %v7816_v41, 16 }
  0xec   : > { %6114 = vmatprep.mubr.msk.bf16.mxu0 %vm707_vm3, %v6279_v44  ;;  %v7772_v37 = vpop.f32.mrf.mxu1  ;;  %v4389_v44 = vrot.slane %v7738_v36, 5  ;;  %v3660_v36 = vrot.slane %v3658_v45, 5  ;;  %v3689_v45 = vrot.slane %v3687_v17, 4  ;;  %v3685_v58 = vsel %vm6425_vm4, %v3680_v27, %v3684_v11 }
  0xed   : > { %9195 = vst [vmem:[#allocation4_spill] sm:$0xff] %v7772_v37  ;;  %v7845_v12 = vpop.f32.mrf.mxu0  ;;  %v3716_v19 = vrot.slane %v3714_v16, 5  ;;  %v3748_v11 = vshrl.u32 %v7838_v7, 16 }
  0xee   : > { %6077 = vmatmul.mubr.msk.bf16.gmra.mxu1 %vm707_vm3, %v5439_v48  ;;  %v3696_v48 = vshll.u32 %v7764_v57, 16  ;;  %v7796_v6 = vpop.f32.mrf.mxu1  ;;  %v4391_v4 = vrot.slane %v4389_v44, 4  ;;  %v3661_v17 = vsel %vm6425_vm4, %v3656_v8, %v3660_v36  ;;  %v4396_v36 = vrot.slane %v7764_v57, 5  ;;  %v6283_v8 = vld [vmem:[%s6381_s29 + $0x78] sm:$0xff]  }
  0xef   : > { %6080 = vmatprep.mubr.msk.bf16.mxu1 %vm707_vm3, %v5440_v40  ;;  %v7793_v40 = vsel %vm6711_vm7, %v4384_v49, %v4385_v46  ;;  %9196 = vst [vmem:[#allocation3_spill] sm:$0xff] %v7796_v6  ;;  %v3692_v49 = vrot.slane %v3690_v10, 5  ;;  %v7859_v27 = vcombine.low %v3651_v63, %v3661_v17  ;;  %v7861_v57 = vcombine.low %v3675_v26, %v3685_v58  ;;  %v7875_v17 = vld [vmem:[%s6381_s29 + $0x58] sm:$0xf]  ;;  %v7881_v58 = vld [vmem:[%s6381_s29 + $0x44] sm:$0x1] }
  0xf0   : > { %v7805_v46 = vrot.slane %v3696_v48, 5  ;;  %v7822_v10 = vpop.f32.mrf.mxu1  ;;  %v7829_v48 = vsel %vm6711_vm7, %v5631_v51, %v4389_v44  ;;  %v7833_v38 = vsel %vm6711_vm7, %v4391_v4, %v4392_v22  ;;  %v3713_v51 = vrot.slane %v3711_v34, 4  ;;  %v5548_v34 = vld [vmem:[%s6381_s29 + $0x54] sm:$0xf] }
  0xf1   : > { %9197 = vst [vmem:[#allocation6_spill] sm:$0xff] %v7822_v10  ;;  %v3693_v44 = vor.u32 %v3692_v49, %v3689_v45  ;;  %v3738_v22 = vshll.u32 %v5545_v3, 16  ;;  %v4398_v13 = vrot.slane %v4396_v36, 4  ;;  %v4399_v63 = vrot.slane %v7803_v39, 5  ;;  %v5617_v49 = vld [vmem:[%s6381_s29 + $0x3c] sm:$0xe] }
  0xf2   : > { %v3703_v4 = vor.u32 %v3702_v52, %v7805_v46  ;;  %v7857_v45 = vpop.f32.mrf.mxu1  ;;  %v5632_v52 = vrot.slane %v5616_v18, 9  ;;  %v3717_v18 = vor.u32 %v3716_v19, %v3713_v51  ;;  %v9200_v6 = vcombine.low %v7570_v28, %v7586_v1 }
  0xf3   : > { %6115 = vmatmul.mubr.msk.bf16.gmra.mxu0 %vm707_vm3, %v6280_v21  ;;  %v3744_v21 = vshll.u32 %v7838_v7, 16  ;;  %9198 = vst [vmem:[#allocation5_spill] sm:$0xff] %v7857_v45  ;;  %v3740_v45 = vrot.slane %v3738_v22, 5  ;;  %v3759_v51 = vshrl.u32 %v5548_v34, 16  ;;  %v3762_v19 = vshll.u32 %v5548_v34, 16 }
  0xf4   : > { %6118 = vmatprep.mubr.msk.bf16.mxu0 %vm707_vm3, %v6281_v60  ;;  %v3706_v60 = vshll.u32 %v7803_v39, 16  ;;  %v7878_v26 = vrot.slane %v3703_v4, 4  ;;  %v3750_v39 = vrot.slane %v3748_v11, 4  ;;  %v7916_v22 = vsel %vm6711_vm7, %v4398_v13, %v4399_v63 }
  0xf5   : > { %v7886_v10 = vrot.slane %v3744_v21, 5  ;;  %v9202_v21 = vcombine.low %v7579_v25, %v7598_v14  ;;  %v4403_v25 = vrot.slane %v7816_v41, 5  ;;  %v6285_v14 = vld [vmem:[%s6381_s29 + $0x90] sm:$0xff]   ;;  %v5633_v1 = vrot.slane %v5617_v49, 9  ;;  %v5551_v41 = vld [vmem:[%s6381_s29 + $0x60] sm:$0xf] }
  0xf6   : > { %6081 = vmatmul.mubr.msk.bf16.gmra.mxu1 %vm707_vm3, %v5441_v35  ;;  %v6282_v35 = vld [vmem:[%s6381_s29 + $0x6c] sm:$0xff]   ;;  %v7871_v62 = vrot.slane %v3706_v60, 5  ;;  %v3761_v37 = vrot.slane %v3759_v51, 4 }
  0xf7   : > { %6084 = vmatprep.mubr.msk.bf16.mxu1 %vm707_vm3, %v5442_v23  ;;  %v3735_v23 = vshrl.u32 %v5545_v3, 16  ;;  %v7869_v3 = vrot.slane %v3693_v44, 4  ;;  %v3726_v44 = vrot.slane %v3724_v33, 4  ;;  %v3772_v33 = vshrl.u32 %v7875_v17, 16 }
  0xf8   : > { %v7867_v16 = vpop.f32.mrf.mxu0  ;;  %v3751_v13 = vor.u32 %v3750_v39, %v7886_v10  ;;  %v4410_v39 = vrot.slane %v7838_v7, 5  ;;  %v9206_v7 = vcombine.low %v7590_v43, %v7607_v2  ;;  %v9208_v43 = vcombine.low %v7611_v59, %v7621_v50  ;;  %v6286_v2 = vld [vmem:[%s6381_s29 + $0x9c] sm:$0xff]  }
  0xf9   : > { %9199 = vst [vmem:[#allocation8_spill] sm:$0xff] %v7867_v16  ;;  %v3737_v60 = vrot.slane %v3735_v23, 4  ;;  %v6284_v23 = vld [vmem:[%s6381_s29 + $0x84] sm:$0xff]   ;;  %v7943_v16 = vld [vmem:[%s6381_s29 + $0x5c] sm:$0x1]  ;;  %v4417_v59 = vrot.slane %v7875_v17, 5 }
  0xfa   : > { %v7904_v28 = vpop.f32.mrf.mxu0 }
  0xfb   : > { %6119 = vmatmul.mubr.msk.bf16.gmra.mxu0 %vm707_vm3, %v6282_v35  ;;  %v7883_v35 = vrot.slane %v3720_v24, 5  ;;  %v3768_v24 = vshll.u32 %v7875_v17, 16  ;;  %9203 = vst [vmem:[#allocation12_spill] sm:$0xff] %v7904_v28  ;;  %v3764_v28 = vrot.slane %v3762_v19, 5 }
  0xfc   : > { %6122 = vmatprep.mubr.msk.bf16.mxu0 %vm707_vm3, %v6283_v8  ;;  %v7892_v4 = vpop.f32.mrf.mxu1  ;;  %v7895_v8 = vld [vmem:[%s6381_s29 + $0x50] sm:$0x1]  ;;  %v7936_v49 = vpop.f32.mrf.mxu0 }
  0xfd   : > { %9201 = vst [vmem:[#allocation7_spill] sm:$0xff] %v7892_v4  ;;  %v3727_v34 = vor.u32 %v3726_v44, %v7883_v35  ;;  %v7926_v4 = vrot.slane %v3717_v18, 4  ;;  %v7933_v11 = vrot.slane %v3768_v24, 5  ;;  %v3774_v44 = vrot.slane %v3772_v33, 4  ;;  %9205 = vst [vmem:[#allocation2_spill] sm:$0xff] %v7936_v49 }
  0xfe   : > { %6085 = vmatmul.mubr.msk.bf16.gmra.mxu1 %vm707_vm3, %v9200_v6  ;;  %v7912_v6 = vsel %vm6711_vm7, %v5632_v52, %v4396_v36  ;;  %v3741_v36 = vor.u32 %v3740_v45, %v3737_v60  ;;  %v3754_v52 = vshll.u32 %v7895_v8, 16  ;;  %v7931_v63 = vpop.f32.mrf.mxu1  ;;  %v4405_v18 = vrot.slane %v4403_v25, 4  ;;  %v5618_v24 = vld [vmem:[%s6381_s29 + $0x48] sm:$0xe] }
  0xff   : > { %6088 = vmatprep.mubr.msk.bf16.mxu1 %vm707_vm3, %v9202_v21  ;;  %v3730_v21 = vshll.u32 %v7881_v58, 16  ;;  %9204 = vst [vmem:[#allocation10_spill] sm:$0xff] %v7931_v63  ;;  %v4406_v60 = vrot.slane %v7881_v58, 5  ;;  %v3728_v51 = vrot.slane %v3727_v34, 4  ;;  %v3783_v33 = vshrl.u32 %v5551_v41, 16 }
 0x100   : > { %v7949_v63 = vsel %vm6711_vm7, %v5633_v1, %v4403_v25  ;;  %v3742_v45 = vrot.slane %v3741_v36, 4  ;;  %v3752_v49 = vrot.slane %v3751_v13, 4  ;;  %v3756_v58 = vrot.slane %v3754_v52, 5  ;;  %v7964_v36 = vld [vmem:[%s6381_s29 + $0x64] sm:$0xf]  ;;  %v7971_v13 = vpop.f32.mrf.mxu0 }
 0x101   : > { %v3732_v19 = vrot.slane %v3730_v21, 5  ;;  %v3723_v34 = vsel %vm6425_vm4, %v7926_v4, %v7883_v35  ;;  %v3765_v21 = vor.u32 %v3764_v28, %v3761_v37  ;;  %v3775_v1 = vor.u32 %v3774_v44, %v7933_v11  ;;  %9209 = vst [vmem:[#allocation14_spill] sm:$0xff] %v7971_v13  ;;  %v5619_v28 = vld [vmem:[%s6381_s29 + $0x54] sm:$0xe]  ;;  %v6290_v13 = vld [vmem:[%s6381_s29 + $0xcc] sm:$0xff]  }
 0x102   : > { %v3778_v25 = vshll.u32 %v7943_v16, 16  ;;  %v7975_v52 = vsel %vm6711_vm7, %v4405_v18, %v4406_v60  ;;  %v5634_v35 = vrot.slane %v5618_v24, 9  ;;  %v4412_v37 = vrot.slane %v4410_v39, 4 }
 0x103   : > { %6123 = vmatmul.mubr.msk.bf16.gmra.mxu0 %vm707_vm3, %v6284_v23  ;;  %v3786_v23 = vshll.u32 %v5551_v41, 16  ;;  %v4413_v4 = vrot.slane %v7895_v8, 5  ;;  %v6287_v41 = vld [vmem:[%s6381_s29 + $0xa8] sm:$0xff]   ;;  %v3733_v44 = vsel %vm6425_vm4, %v3728_v51, %v3732_v19  ;;  %v3785_v50 = vrot.slane %v3783_v33, 4 }
 0x104   : > { %6126 = vmatprep.mubr.msk.bf16.mxu0 %vm707_vm3, %v6285_v14  ;;  %v7955_v14 = vpop.f32.mrf.mxu1  ;;  %v3757_v18 = vsel %vm6425_vm4, %v3752_v49, %v3756_v58  ;;  %v3792_v60 = vshll.u32 %v7964_v36, 16  ;;  %v3796_v8 = vshrl.u32 %v7964_v36, 16  ;;  %v3776_v51 = vrot.slane %v3775_v1, 4  ;;  %v7993_v33 = vld [vmem:[%s6381_s29 + $0x68] sm:$0x1] }
 0x105   : > { %9207 = vst [vmem:[#allocation13_spill] sm:$0xff] %v7955_v14  ;;  %v3766_v14 = vrot.slane %v3765_v21, 4  ;;  %v3780_v17 = vrot.slane %v3778_v25, 5  ;;  %v5635_v19 = vrot.slane %v5619_v28, 9  ;;  %v9212_v49 = vsel %vm6425_vm4, %v7878_v26, %v7871_v62  ;;  %v5554_v25 = vld [vmem:[%s6381_s29 + $0x6c] sm:$0xf] }
 0x106   : > { %6089 = vmatmul.mubr.msk.bf16.gmra.mxu1 %vm707_vm3, %v9206_v7  ;;  %v3788_v7 = vrot.slane %v3786_v23, 5  ;;  %v7990_v24 = vpop.f32.mrf.mxu1  ;;  %v8014_v21 = vsel %vm6711_vm7, %v5634_v35, %v4410_v39  ;;  %v8018_v1 = vsel %vm6711_vm7, %v4412_v37, %v4413_v4  ;;  %v8021_v62 = vcombine.low %v3723_v34, %v3733_v44  ;;  %v5620_v4 = vld [vmem:[%s6381_s29 + $0x60] sm:$0xe]  ;;  %v5560_v44 = vld [vmem:[%s6381_s29 + $0x84] sm:$0xf] }
 0x107   : > { %6092 = vmatprep.mubr.msk.bf16.mxu1 %vm707_vm3, %v9208_v43  ;;  %v3747_v43 = vsel %vm6425_vm4, %v3742_v45, %v7886_v10  ;;  %9210 = vst [vmem:[#allocation15_spill] sm:$0xff] %v7990_v24  ;;  %v9213_v45 = vsel %vm6425_vm4, %v7869_v3, %v7805_v46  ;;  %v4419_v46 = vrot.slane %v4417_v59, 4  ;;  %v4420_v3 = vrot.slane %v7943_v16, 5 }
 0x108   : > { %v8008_v23 = vcombine.low %v9213_v45, %v9212_v49  ;;  %9214 = vst [vmem:[#allocation11_spill] sm:$0xff] %v8021_v62  ;;  %v3789_v26 = vor.u32 %v3788_v7, %v3785_v50  ;;  %v8028_v28 = vcombine.low %v3747_v43, %v3757_v18  ;;  %v8030_v39 = vrot.slane %v3792_v60, 5 }
 0x109   : > { %v7996_v10 = vpop.f32.mrf.mxu0  ;;  %v8032_v35 = vrot.slane %v3796_v8, 4  ;;  %v3802_v37 = vshll.u32 %v7993_v33, 16  ;;  %v9216_v34 = vcombine.low %v7629_v54, %v7644_v56  ;;  %v3771_v50 = vsel %vm6425_vm4, %v3766_v14, %v7933_v11  ;;  %v5557_v54 = vld [vmem:[%s6381_s29 + $0x78] sm:$0xf] }
 0x10a   : > { %9211 = vst [vmem:[#allocation9_spill] sm:$0xff] %v7996_v10  ;;  %9215 = vst [vmem:[#allocation16_spill] sm:$0xff] %v8028_v28  ;;  %v3781_v7 = vsel %vm6425_vm4, %v3776_v51, %v3780_v17  ;;  %v8052_v43 = vsel %vm6711_vm7, %v5635_v19, %v4417_v59  ;;  %v9218_v56 = vcombine.low %v7636_v29, %v7657_v42  ;;  %v3807_v60 = vshrl.u32 %v5554_v25, 16  ;;  %v8064_v51 = vld [vmem:[%s6381_s29 + $0x7c] sm:$0xf]  ;;  %v6289_v59 = vld [vmem:[%s6381_s29 + $0xc0] sm:$0xff]  }
 0x10b   : > { %6127 = vmatmul.mubr.msk.bf16.gmra.mxu0 %vm707_vm3, %v6286_v2  ;;  %v8026_v2 = vld [vmem:[%s6381_s29 + $0x70] sm:$0xf]  ;;  %v8059_v18 = vpop.f32.mrf.mxu0  ;;  %v3810_v8 = vshll.u32 %v5554_v25, 16  ;;  %v8069_v17 = vsel %vm6711_vm7, %v4419_v46, %v4420_v3  ;;  %v8071_v29 = vrot.slane %v3789_v26, 4  ;;  %v5636_v42 = vrot.slane %v5620_v4, 9 }
 0x10c   : > { %6130 = vmatprep.mubr.msk.bf16.mxu0 %vm707_vm3, %v6287_v41  ;;  %v6288_v41 = vld [vmem:[%s6381_s29 + $0xb4] sm:$0xff]   ;;  %9219 = vst [vmem:[#allocation18_spill] sm:$0xff] %v8059_v18  ;;  %v3816_v11 = vshll.u32 %v8026_v2, 16  ;;  %v3820_v14 = vshrl.u32 %v8026_v2, 16  ;;  %v4424_v19 = vrot.slane %v7964_v36, 5  ;;  %v8074_v49 = vcombine.low %v3771_v50, %v3781_v7 }
 0x10d   : > { %v3799_v45 = vor.u32 %v8032_v35, %v8030_v39  ;;  %v8078_v25 = vrot.slane %v3802_v37, 5  ;;  %v3831_v46 = vshrl.u32 %v5557_v54, 16  ;;  %v3834_v3 = vshll.u32 %v5557_v54, 16  ;;  %v8090_v4 = vld [vmem:[%s6381_s29 + $0x88] sm:$0xf]  ;;  %v8093_v35 = vpop.f32.mrf.mxu0 }
 0x10e   : > { %6093 = vmatmul.mubr.msk.bf16.gmra.mxu1 %vm707_vm3, %v9216_v34  ;;  %v8040_v16 = vpop.f32.mrf.mxu1  ;;  %9220 = vst [vmem:[#allocation19_spill] sm:$0xff] %v8074_v49  ;;  %v4427_v34 = vrot.slane %v7993_v33, 5  ;;  %v3840_v36 = vshll.u32 %v8064_v51, 16  ;;  %v3844_v26 = vshrl.u32 %v8064_v51, 16  ;;  %9222 = vst [vmem:[#allocation21_spill] sm:$0xff] %v8093_v35  ;;  %v3809_v33 = vrot.slane %v3807_v60, 4 }
 0x10f   : > { %9217 = vst [vmem:[#allocation17_spill] sm:$0xff] %v8040_v16  ;;  %6096 = vmatprep.mubr.msk.bf16.mxu1 %vm707_vm3, %v9218_v56  ;;  %v8082_v56 = vld [vmem:[%s6381_s29 + $0x74] sm:$0x1]  ;;  %v3812_v37 = vrot.slane %v3810_v8, 5  ;;  %v8095_v50 = vrot.slane %v3816_v11, 5  ;;  %v3822_v7 = vrot.slane %v3820_v14, 4  ;;  %v9223_v54 = vcombine.low %v7648_v30, %v7664_v55  ;;  %v8123_v49 = vpop.f32.mrf.mxu0 }
 0x110   : > { %v8085_v58 = vpop.f32.mrf.mxu1  ;;  %v4426_v16 = vrot.slane %v4424_v19, 4  ;;  %v8108_v60 = vld [vmem:[%s6381_s29 + $0x80] sm:$0x1]  ;;  %v8111_v8 = vld [vmem:[%s6381_s29 + $0x6c] sm:$0xe]  ;;  %v3855_v11 = vshrl.u32 %v5560_v44, 16 }
 0x111   : > { %9221 = vst [vmem:[#allocation20_spill] sm:$0xff] %v8085_v58  ;;  %v8104_v58 = vsel %vm6711_vm7, %v5636_v42, %v4424_v19  ;;  %v3858_v14 = vshll.u32 %v5560_v44, 16  ;;  %v3868_v24 = vshrl.u32 %v8090_v4, 16  ;;  %v3833_v19 = vrot.slane %v3831_v46, 4  ;;  %9225 = vst [vmem:[#allocation23_spill] sm:$0xff] %v8123_v49 }
 0x112   : > { %v8119_v42 = vpop.f32.mrf.mxu1  ;;  %v3836_v35 = vrot.slane %v3834_v3, 5  ;;  %v8121_v18 = vrot.slane %v3840_v36, 5  ;;  %v3846_v10 = vrot.slane %v3844_v26, 4  ;;  %v9226_v44 = vcombine.low %v7668_v15, %v7696_v32  ;;  %v8142_v32 = vld [vmem:[%s6381_s29 + $0x8c] sm:$0x1] }
 0x113   : > { %6131 = vmatmul.mubr.msk.bf16.gmra.mxu0 %vm707_vm3, %v6288_v41  ;;  %v3826_v41 = vshll.u32 %v8082_v56, 16  ;;  %9224 = vst [vmem:[#allocation22_spill] sm:$0xff] %v8119_v42  ;;  %v3813_v30 = vor.u32 %v3812_v37, %v3809_v33  ;;  %v3823_v55 = vor.u32 %v3822_v7, %v8095_v50  ;;  %v3850_v46 = vshll.u32 %v8108_v60, 16  ;;  %v5622_v33 = vld [vmem:[%s6381_s29 + $0x78] sm:$0xe] }
 0x114   : > { %6134 = vmatprep.mubr.msk.bf16.mxu0 %vm707_vm3, %v6289_v59  ;;  %v3864_v59 = vshll.u32 %v8090_v4, 16  ;;  %v8133_v3 = vrot.slane %v3799_v45, 4  ;;  %v8137_v36 = vsel %vm6711_vm7, %v4426_v16, %v4427_v34  ;;  %v5637_v26 = vrot.slane %v8111_v8, 9  ;;  %v8147_v42 = vpop.f32.mrf.mxu1  ;;  %v5563_v8 = vld [vmem:[%s6381_s29 + $0x90] sm:$0xf] }
 0x115   : > { %v4438_v15 = vrot.slane %v8064_v51, 5  ;;  %v3857_v37 = vrot.slane %v3855_v11, 4  ;;  %v3860_v7 = vrot.slane %v3858_v14, 5  ;;  %9227 = vst [vmem:[#allocation24_spill] sm:$0xff] %v8147_v42  ;;  %v3828_v45 = vrot.slane %v3826_v41, 5 }
 0x116   : > { %6097 = vmatmul.mubr.msk.bf16.gmra.mxu1 %vm707_vm3, %v9223_v54  ;;  %v4431_v54 = vrot.slane %v8026_v2, 5  ;;  %v8145_v2 = vrot.slane %v3864_v59, 5  ;;  %v4434_v49 = vrot.slane %v8082_v56, 5  ;;  %v3837_v16 = vor.u32 %v3836_v35, %v3833_v19  ;;  %v8156_v59 = vld [vmem:[%s6381_s29 + $0x94] sm:$0xf] }
 0x117   : > { %6100 = vmatprep.mubr.msk.bf16.mxu1 %vm707_vm3, %v9226_v44  ;;  %v3870_v44 = vrot.slane %v3868_v24, 4  ;;  %v3847_v34 = vor.u32 %v3846_v10, %v8121_v18  ;;  %v3814_v51 = vrot.slane %v3813_v30, 4  ;;  %v3824_v11 = vrot.slane %v3823_v55, 4 }
 0x118   : > { %v4433_v62 = vrot.slane %v4431_v54, 4  ;;  %v3852_v14 = vrot.slane %v3850_v46, 5  ;;  %v9228_v24 = vcombine.low %v7789_v61, %v7793_v40  ;;  %v5638_v56 = vrot.slane %v5622_v33, 9 }
 0x119   : > { %v4440_v35 = vrot.slane %v4438_v15, 4  ;;  %v4441_v10 = vrot.slane %v8108_v60, 5  ;;  %v3874_v41 = vshll.u32 %v8142_v32, 16  ;;  %v3871_v30 = vor.u32 %v3870_v44, %v8145_v2 }
 0x11a   : > { %v3879_v55 = vshrl.u32 %v5563_v8, 16  ;;  %v3882_v46 = vshll.u32 %v5563_v8, 16  ;;  %v9230_v61 = vcombine.low %v7708_v9, %v7713_v47  ;;  %v3838_v40 = vrot.slane %v3837_v16, 4 }
 0x11b   : > { %v8152_v28 = vpop.f32.mrf.mxu0  ;;  %6135 = vmatmul.mubr.msk.bf16.gmra.mxu0 %vm707_vm3, %v6290_v13  ;;  %v3861_v13 = vor.u32 %v3860_v7, %v3857_v37  ;;  %v3848_v33 = vrot.slane %v3847_v34, 4  ;;  %v3888_v60 = vshll.u32 %v8156_v59, 16  ;;  %v3805_v37 = vsel %vm6425_vm4, %v8133_v3, %v8078_v25 }
 0x11c   : > { %6174 = vmatprep.mubr.msk.bf16.mxu0 %vm707_vm3, %v9228_v24  ;;  %v3892_v24 = vshrl.u32 %v8156_v59, 16  ;;  %v3819_v9 = vsel %vm6425_vm4, %v3814_v51, %v8095_v50  ;;  %v8188_v47 = vsel %vm6711_vm7, %v5637_v26, %v4431_v54  ;;  %v8192_v7 = vsel %vm6711_vm7, %v4433_v62, %v4434_v49  ;;  %v5623_v54 = vld [vmem:[%s6381_s29 + $0x84] sm:$0xe]  ;;  %v9269_v31 = vld [vmem:[#allocation24_spill] sm:$0xff] }
 0x11d   : > { %v8164_v19 = vpop.f32.mrf.mxu0  ;;  %v8200_v25 = vsel %vm6711_vm7, %v5638_v56, %v4438_v15  ;;  %v8204_v50 = vsel %vm6711_vm7, %v4440_v35, %v4441_v10  ;;  %v3876_v3 = vrot.slane %v3874_v41, 5  ;;  %v3862_v62 = vrot.slane %v3861_v13, 4  ;;  %v8228_v13 = vld [vmem:[%s6381_s29 + $0x98] sm:$0x1] }
 0x11e   : > { %9229 = vst [vmem:[#allocation25_spill] sm:$0xff] %v8164_v19  ;;  %v8167_v42 = vpop.f32.mrf.mxu1  ;;  %6101 = vmatmul.mubr.msk.bf16.gmra.mxu1 %vm707_vm3, %v9230_v61  ;;  %v3872_v49 = vrot.slane %v3871_v30, 4  ;;  %v3881_v16 = vrot.slane %v3879_v55, 4  ;;  %v3884_v34 = vrot.slane %v3882_v46, 5  ;;  %v3843_v15 = vsel %vm6425_vm4, %v3838_v40, %v8121_v18  ;;  %v5566_v30 = vld [vmem:[%s6381_s29 + $0x9c] sm:$0xf] }
 0x11f   : > { %v8175_v19 = vpop.f32.mrf.mxu0  ;;  %6140 = vmatprep.mubr.msk.bf16.mxu1 %vm707_vm3, %v7859_v27  ;;  %v3829_v27 = vsel %vm6425_vm4, %v3824_v11, %v3828_v45  ;;  %v3853_v45 = vsel %vm6425_vm4, %v3848_v33, %v3852_v14  ;;  %v8216_v51 = vrot.slane %v3888_v60, 5  ;;  %v3894_v11 = vrot.slane %v3892_v24, 4  ;;  %v8259_v24 = vld [vmem:[%s6381_s29 + $0xa0] sm:$0xf] }
 0x120   : > { %v8194_v44 = vpop.f32.mrf.mxu1  ;;  %v9231_v35 = vcombine.low %v7829_v48, %v7833_v38  ;;  %v5652_v10 = vcombine.low %v8052_v43, %v8069_v17  ;;  %v5653_v41 = vcombine.low %v8104_v58, %v8137_v36  ;;  %v5639_v18 = vrot.slane %v5623_v54, 9 }
 0x121   : > { %v8207_v26 = vpop.f32.mrf.mxu0  ;;  %v4445_v14 = vrot.slane %v8090_v4, 5  ;;  %v9232_v48 = vcombine.low %v7912_v6, %v7916_v22  ;;  %v9233_v38 = vsel %vm6425_vm4, %v8071_v29, %v8030_v39  ;;  %v8244_v61 = vcombine.low %v3819_v9, %v3829_v27  ;;  %v5624_v29 = vld [vmem:[%s6381_s29 + $0x90] sm:$0xe]  ;;  %v9240_v4 = vld [vmem:[#allocation2_spill] sm:$0xff] }
 0x122   : > { %v8209_v8 = vpop.f32.mrf.mxu1  ;;  %v8242_v46 = vcombine.low %v9233_v38, %v3805_v37  ;;  %v8250_v60 = vcombine.low %v3843_v15, %v3853_v45  ;;  %v3867_v6 = vsel %vm6425_vm4, %v3862_v62, %v8145_v2  ;;  %v3877_v22 = vsel %vm6425_vm4, %v3872_v49, %v3876_v3 }
 0x123   : > { %v5972_v56 = vpop.f32.mrf.mxu0  ;;  %6175 = vmatmul.mubr.msk.bf16.vlgmr.msra.gmra.mxu0 %vm707_vm3, %v9231_v35  ;;  %v3885_v39 = vor.u32 %v3884_v34, %v3881_v16  ;;  %v3895_v9 = vor.u32 %v3894_v11, %v8216_v51  ;;  %v3898_v27 = vshll.u32 %v8228_v13, 16  ;;  %v3903_v54 = vshrl.u32 %v5566_v30, 16 }
 0x124   : > { %v8231_v55 = vpop.f32.mrf.mxu1  ;;  %6178 = vmatprep.mubr.msk.bf16.mxu0 %vm707_vm3, %v9232_v48  ;;  %v3906_v15 = vshll.u32 %v5566_v30, 16  ;;  %v8270_v3 = vsel %vm6711_vm7, %v5639_v18, %v4445_v14  ;;  %v4447_v62 = vrot.slane %v4445_v14, 4  ;;  %v4448_v49 = vrot.slane %v8142_v32, 5 }
 0x125   : > { %v1511_v33 = vpop.f32.mrf.mxu0  ;;  %v5640_v16 = vrot.slane %v5624_v29, 9  ;;  %v4452_v34 = vrot.slane %v8156_v59, 5  ;;  %v3912_v11 = vshll.u32 %v8259_v24, 16  ;;  %v3916_v35 = vshrl.u32 %v8259_v24, 16 }
 0x126   : > { %v5938_v37 = vpop.f32.mrf.mxu1  ;;  %6141 = vmatmul.mubr.msk.bf16.vlgmr.msra.gmra.mxu1 %vm707_vm3, %v7861_v57  ;;  %v8279_v48 = vcombine.low %v3867_v6, %v3877_v22  ;;  %v8281_v18 = vrot.slane %v3885_v39, 4  ;;  %v3896_v32 = vrot.slane %v3895_v9, 4  ;;  %v3900_v38 = vrot.slane %v3898_v27, 5  ;;  %v5569_v22 = vld [vmem:[%s6381_s29 + $0xa8] sm:$0xf] }
 0x127   : > { %v1095_v45 = vadd.f32 %v5938_v37, %v7757_v5  ;;  %v5973_v2 = vpop.f32.mrf.mxu0  ;;  %6144 = vmatprep.mubr.msk.bf16.mxu1 %vm707_vm3, %v8008_v23  ;;  %v3905_v29 = vrot.slane %v3903_v54, 4  ;;  %v3908_v59 = vrot.slane %v3906_v15, 5  ;;  %v4455_v6 = vrot.slane %v8228_v13, 5  ;;  %v8307_v27 = vld [vmem:[%s6381_s29 + $0xac] sm:$0xf] }
 0x128   : > { %v1086_v57 = vpop.f32.mrf.mxu1  ;;  %v3918_v9 = vrot.slane %v3916_v35, 4  ;;  %v9237_v35 = vld [vmem:[#allocation8_spill] sm:$0xff] }
 0x129   : > { %v8276_v5 = vadd.f32 %v5972_v56, %v1095_v45  ;;  %v1087_v23 = vadd.f32 %v1086_v57, %v7781_v20  ;;  %v1514_v30 = vpop.f32.mrf.mxu0  ;;  %v9234_v45 = vcombine.low %v7949_v63, %v7975_v52  ;;  %v8292_v20 = vsel %vm6711_vm7, %v4447_v62, %v4448_v49  ;;  %v5625_v62 = vld [vmem:[%s6381_s29 + $0x9c] sm:$0xe] }
 0x12a   : > { %v5939_v14 = vpop.f32.mrf.mxu1  ;;  %v4454_v63 = vrot.slane %v4452_v34, 4  ;;  %v8304_v52 = vrot.slane %v3912_v11, 5  ;;  %v4459_v49 = vrot.slane %v8259_v24, 5  ;;  %v3936_v24 = vshll.u32 %v8307_v27, 16 }
 0x12b   : > { %v8283_v37 = vadd.f32 %v1511_v33, %v1087_v23  ;;  %v1098_v40 = vadd.f32 %v5939_v14, %v7800_v53  ;;  %v5976_v56 = vpop.f32.mrf.mxu0  ;;  %6179 = vmatmul.mubr.msk.bf16.gmra.mxu0 %vm707_vm3, %v9234_v45  ;;  %v9235_v33 = vcombine.low %v8014_v21, %v8018_v1  ;;  %v8302_v53 = vsel %vm6711_vm7, %v5640_v16, %v4452_v34  ;;  %v5568_v1 = vld [vmem:[%s6381_s29 + $0xa4] sm:$0x1]  ;;  %v9236_v16 = vld [vmem:[#allocation11_spill] sm:$0xff] }
 0x12c   : > { %v1089_v39 = vpop.f32.mrf.mxu1  ;;  %v3891_v21 = vsel %vm6425_vm4, %v8281_v18, %v8216_v51  ;;  %v3927_v34 = vshrl.u32 %v5569_v22, 16  ;;  %v9238_v51 = vld [vmem:[#allocation16_spill] sm:$0xff]  ;;  %v3940_v18 = vshrl.u32 %v8307_v27, 16 }
 0x12d   : > { %6182 = vmatprep.mubr.msk.bf16.mxu0 %vm707_vm3, %v9235_v33  ;;  %v8309_v54 = vadd.f32 %v5973_v2, %v1098_v40  ;;  %v1090_v13 = vadd.f32 %v1089_v39, %v7845_v12  ;;  %v1527_v15 = vpop.f32.mrf.mxu0  ;;  %v3901_v40 = vsel %vm6425_vm4, %v3896_v32, %v3900_v38  ;;  %v3909_v2 = vor.u32 %v3908_v59, %v3905_v29  ;;  %v9239_v59 = vld [vmem:[#allocation12_spill] sm:$0xff] }
 0x12e   : > { %v5942_v57 = vpop.f32.mrf.mxu1  ;;  %6145 = vmatmul.mubr.msk.bf16.gmra.mxu1 %vm707_vm3, %v9236_v16  ;;  %v3930_v12 = vshll.u32 %v5569_v22, 16  ;;  %v8332_v39 = vsel %vm6711_vm7, %v4454_v63, %v4455_v6  ;;  %v3919_v32 = vor.u32 %v3918_v9, %v8304_v52  ;;  %v3922_v38 = vshll.u32 %v5568_v1, 16 }
 0x12f   : > { %v8323_v11 = vadd.f32 %v1514_v30, %v1090_v13  ;;  %v1111_v23 = vadd.f32 %v5942_v57, %v9237_v35  ;;  %v5977_v14 = vpop.f32.mrf.mxu0  ;;  %6148 = vmatprep.mubr.msk.bf16.mxu1 %vm707_vm3, %v9238_v51  ;;  %v5641_v30 = vrot.slane %v5625_v62, 9  ;;  %v4461_v13 = vrot.slane %v4459_v49, 4 }
 0x130   : > { %v1102_v45 = vpop.f32.mrf.mxu1  ;;  %v4462_v57 = vrot.slane %v5568_v1, 5  ;;  %v8340_v51 = vrot.slane %v3909_v2, 4  ;;  %v3929_v6 = vrot.slane %v3927_v34, 4  ;;  %v3932_v63 = vrot.slane %v3930_v12, 5  ;;  %v8350_v1 = vld [vmem:[%s6381_s29 + $0xb0] sm:$0x1] }
 0x131   : > { %v8335_v29 = vadd.f32 %v5976_v56, %v1111_v23  ;;  %v1103_v22 = vadd.f32 %v1102_v45, %v9239_v59  ;;  %v1530_v33 = vpop.f32.mrf.mxu0  ;;  %v8352_v23 = vrot.slane %v3936_v24, 5  ;;  %v3942_v2 = vrot.slane %v3940_v18, 4  ;;  %v9241_v12 = vld [vmem:[#allocation14_spill] sm:$0xff] }
 0x132   : > { %v5943_v16 = vpop.f32.mrf.mxu1  ;;  %v8362_v43 = vrot.slane %v3919_v32, 4  ;;  %v8364_v17 = vrot.slane %v3922_v38, 5  ;;  %v8372_v58 = vsel %vm6711_vm7, %v5641_v30, %v4459_v49  ;;  %v8376_v36 = vsel %vm6711_vm7, %v4461_v13, %v4462_v57  ;;  %v8388_v30 = vld [vmem:[%s6381_s29 + $0xb8] sm:$0xf] }
 0x133   : > { %v8342_v9 = vadd.f32 %v1527_v15, %v1103_v22  ;;  %v1114_v62 = vadd.f32 %v5943_v16, %v9240_v4  ;;  %v5980_v56 = vpop.f32.mrf.mxu0  ;;  %6183 = vmatmul.mubr.msk.bf16.gmra.mxu0 %vm707_vm3, %v5652_v10  ;;  %v8358_v15 = vcombine.low %v3891_v21, %v3901_v40  ;;  %v5626_v10 = vld [vmem:[%s6381_s29 + $0xa8] sm:$0xe]  ;;  %v3933_v32 = vor.u32 %v3932_v63, %v3929_v6  ;;  %v9243_v22 = vld [vmem:[#allocation9_spill] sm:$0xff] }
 0x134   : > { %v1105_v45 = vpop.f32.mrf.mxu1  ;;  %6186 = vmatprep.mubr.msk.bf16.mxu0 %vm707_vm3, %v5653_v41  ;;  %v5572_v41 = vld [vmem:[%s6381_s29 + $0xb4] sm:$0xf]  ;;  %v9242_v40 = vld [vmem:[#allocation19_spill] sm:$0xff]  ;;  %v3946_v38 = vshll.u32 %v8350_v1, 16  ;;  %v4466_v49 = vrot.slane %v8307_v27, 5  ;;  %v3943_v16 = vor.u32 %v3942_v2, %v8352_v23  ;;  %v3925_v27 = vsel %vm6425_vm4, %v8362_v43, %v8364_v17 }
 0x135   : > { %v8367_v34 = vadd.f32 %v5977_v14, %v1114_v62  ;;  %v1106_v24 = vadd.f32 %v1105_v45, %v9241_v12  ;;  %v1543_v18 = vpop.f32.mrf.mxu0  ;;  %v5642_v62 = vrot.slane %v5626_v10, 9  ;;  %v3951_v6 = vshrl.u32 %v5572_v41, 16 }
 0x136   : > { %v5946_v21 = vpop.f32.mrf.mxu1  ;;  %6149 = vmatmul.mubr.msk.bf16.gmra.mxu1 %vm707_vm3, %v9242_v40  ;;  %v3954_v63 = vshll.u32 %v5572_v41, 16  ;;  %v3960_v2 = vshll.u32 %v8388_v30, 16  ;;  %v3964_v10 = vshrl.u32 %v8388_v30, 16  ;;  %v5575_v40 = vld [vmem:[%s6381_s29 + $0xc0] sm:$0xf]  ;;  %v3934_v4 = vrot.slane %v3933_v32, 4 }
 0x137   : > { %v8390_v59 = vadd.f32 %v1530_v33, %v1106_v24  ;;  %v1127_v13 = vadd.f32 %v5946_v21, %v9243_v22  ;;  %v5981_v57 = vpop.f32.mrf.mxu0  ;;  %6152 = vmatprep.mubr.msk.bf16.mxu1 %vm707_vm3, %v8242_v46  ;;  %v9245_v24 = vld [vmem:[#allocation18_spill] sm:$0xff]  ;;  %v3948_v43 = vrot.slane %v3946_v38, 5  ;;  %v4468_v17 = vrot.slane %v4466_v49, 4 }
 0x138   : > { %v1118_v45 = vpop.f32.mrf.mxu1  ;;  %v4469_v33 = vrot.slane %v8350_v1, 5  ;;  %v8418_v14 = vsel %vm6711_vm7, %v5642_v62, %v4466_v49  ;;  %v8421_v32 = vld [vmem:[%s6381_s29 + $0xc4] sm:$0xf]  ;;  %v9249_v1 = vcombine.low %v8200_v25, %v8204_v50  ;;  %v8433_v62 = vrot.slane %v3960_v2, 5 }
 0x139   : > { %v8402_v12 = vadd.f32 %v5980_v56, %v1127_v13  ;;  %v1119_v21 = vadd.f32 %v1118_v45, %v9245_v24  ;;  %v1546_v46 = vpop.f32.mrf.mxu0  ;;  %v9247_v56 = vld [vmem:[#allocation21_spill] sm:$0xff]  ;;  %v9248_v45 = vcombine.low %v8188_v47, %v8192_v7  ;;  %v3944_v24 = vrot.slane %v3943_v16, 4  ;;  %v9250_v16 = vld [vmem:[#allocation23_spill] sm:$0xff] }
 0x13a   : > { %v5947_v22 = vpop.f32.mrf.mxu1  ;;  %v3975_v47 = vshrl.u32 %v5575_v40, 16  ;;  %v3978_v7 = vshll.u32 %v5575_v40, 16  ;;  %v3939_v25 = vsel %vm6425_vm4, %v3934_v4, %v8352_v23  ;;  %v8442_v50 = vsel %vm6711_vm7, %v4468_v17, %v4469_v33  ;;  %v5627_v40 = vld [vmem:[%s6381_s29 + $0xb4] sm:$0xe] }
 0x13b   : > { %9244 = vst [vmem:[#allocation11_spill] sm:$0xff] %v8402_v12  ;;  %v8409_v35 = vadd.f32 %v1543_v18, %v1119_v21  ;;  %v1130_v41 = vadd.f32 %v5947_v22, %v9247_v56  ;;  %v5984_v13 = vpop.f32.mrf.mxu0  ;;  %6187 = vmatmul.mubr.msk.bf16.gmra.mxu0 %vm707_vm3, %v9248_v45  ;;  %v8428_v18 = vld [vmem:[%s6381_s29 + $0xbc] sm:$0x1]  ;;  %v3953_v21 = vrot.slane %v3951_v6, 4  ;;  %v3956_v22 = vrot.slane %v3954_v63, 5 }
 0x13c   : > { %v1121_v38 = vpop.f32.mrf.mxu1  ;;  %6190 = vmatprep.mubr.msk.bf16.mxu0 %vm707_vm3, %v9249_v1  ;;  %v3988_v6 = vshrl.u32 %v8421_v32, 16  ;;  %v3970_v23 = vshll.u32 %v8428_v18, 16  ;;  %v4473_v17 = vrot.slane %v8388_v30, 5  ;;  %v9251_v1 = vld [vmem:[#allocation25_spill] sm:$0xff] }
 0x13d   : > { %9246 = vst [vmem:[#allocation8_spill] sm:$0xff] %v8409_v35  ;;  %v8430_v56 = vadd.f32 %v5981_v57, %v1130_v41  ;;  %v1122_v45 = vadd.f32 %v1121_v38, %v9250_v16  ;;  %v1559_v49 = vpop.f32.mrf.mxu0  ;;  %v3966_v35 = vrot.slane %v3964_v10, 4  ;;  %v3984_v57 = vshll.u32 %v8421_v32, 16 }
 0x13e   : > { %v5950_v12 = vpop.f32.mrf.mxu1  ;;  %6153 = vmatmul.mubr.msk.bf16.gmra.mxu1 %vm707_vm3, %v8244_v61  ;;  %v3949_v61 = vsel %vm6425_vm4, %v3944_v24, %v3948_v43  ;;  %v3957_v33 = vor.u32 %v3956_v22, %v3953_v21  ;;  %v3977_v41 = vrot.slane %v3975_v47, 4  ;;  %v3980_v38 = vrot.slane %v3978_v7, 5 }
 0x13f   : > { %v8446_v63 = vadd.f32 %v1546_v46, %v1122_v45  ;;  %v1143_v2 = vadd.f32 %v5950_v12, %v8152_v28  ;;  %v5985_v10 = vpop.f32.mrf.mxu0  ;;  %6156 = vmatprep.mubr.msk.bf16.mxu1 %vm707_vm3, %v8250_v60  ;;  %v9252_v60 = vsel %vm6425_vm4, %v8340_v51, %v8304_v52  ;;  %v3967_v24 = vor.u32 %v3966_v35, %v8433_v62 }
 0x140   : > { %v1134_v4 = vpop.f32.mrf.mxu1  ;;  %v8464_v43 = vcombine.low %v9252_v60, %v3925_v27  ;;  %v8467_v30 = vcombine.low %v3939_v25, %v3949_v61  ;;  %v8471_v22 = vrot.slane %v3984_v57, 5  ;;  %v3990_v47 = vrot.slane %v3988_v6, 4  ;;  %v5577_v27 = vld [vmem:[%s6381_s29 + $0xc8] sm:$0x1] }
 0x141   : > { %v8456_v46 = vadd.f32 %v5984_v13, %v1143_v2  ;;  %v1135_v28 = vadd.f32 %v1134_v4, %v9251_v1  ;;  %v1562_v12 = vpop.f32.mrf.mxu0  ;;  %v5659_v13 = vcombine.low %v8418_v14, %v8442_v50  ;;  %v9253_v52 = vcombine.low %v8270_v3, %v8292_v20  ;;  %v5578_v14 = vld [vmem:[%s6381_s29 + $0xcc] sm:$0xf]  ;;  %v8492_v20 = vld [vmem:[%s6381_s29 + $0xd0] sm:$0xf]  ;;  %v5628_v4 = vld [vmem:[%s6381_s29 + $0xc0] sm:$0xe] }
 0x142   : > { %v5951_v21 = vpop.f32.mrf.mxu1  ;;  %v8480_v35 = vrot.slane %v3970_v23, 5  ;;  %v5643_v51 = vrot.slane %v5627_v40, 9  ;;  %v9254_v50 = vcombine.low %v8302_v53, %v8332_v39  ;;  %v4476_v57 = vrot.slane %v8428_v18, 5 }
 0x143   : > { %v8473_v7 = vadd.f32 %v1559_v49, %v1135_v28  ;;  %v1146_v16 = vadd.f32 %v5951_v21, %v8175_v19  ;;  %v5988_v45 = vpop.f32.mrf.mxu0  ;;  %6191 = vmatmul.mubr.msk.bf16.gmra.mxu0 %vm707_vm3, %v9253_v52  ;;  %v8488_v49 = vrot.slane %v3957_v33, 4  ;;  %v4475_v19 = vrot.slane %v4473_v17, 4 }
 0x144   : > { %v1137_v25 = vpop.f32.mrf.mxu1  ;;  %6194 = vmatprep.mubr.msk.bf16.mxu0 %vm707_vm3, %v9254_v50  ;;  %v3981_v3 = vor.u32 %v3980_v38, %v3977_v41  ;;  %v8497_v23 = vrot.slane %v3967_v24, 4  ;;  %v4480_v53 = vrot.slane %v8421_v32, 5  ;;  %v3991_v33 = vor.u32 %v3990_v47, %v8471_v22 }
 0x145   : > { %v8494_v6 = vadd.f32 %v5985_v10, %v1146_v16  ;;  %v1138_v2 = vadd.f32 %v1137_v25, %v8207_v26  ;;  %v1575_v61 = vpop.f32.mrf.mxu0  ;;  %v3994_v18 = vshll.u32 %v5577_v27, 16  ;;  %v3999_v40 = vshrl.u32 %v5578_v14, 16  ;;  %v9257_v10 = vld [vmem:[#allocation4_spill] sm:$0xff]  ;;  %v9258_v16 = vld [vmem:[#allocation3_spill] sm:$0xff] }
 0x146   : > { %v5954_v39 = vpop.f32.mrf.mxu1  ;;  %6157 = vmatmul.mubr.msk.bf16.gmra.mxu1 %vm707_vm3, %v8279_v48  ;;  %v4002_v41 = vshll.u32 %v5578_v14, 16  ;;  %v4008_v28 = vshll.u32 %v8492_v20, 16  ;;  %v4012_v32 = vshrl.u32 %v8492_v20, 16  ;;  %v4474_v48 = vsel %vm6711_vm7, %v5643_v51, %v4473_v17  ;;  %v9259_v17 = vld [vmem:[#allocation6_spill] sm:$0xff] }
 0x147   : > { %9255 = vst [vmem:[#allocation16_spill] sm:$0xff] %v8494_v6  ;;  %v8504_v38 = vadd.f32 %v1562_v12, %v1138_v2  ;;  %v1159_v1 = vadd.f32 %v5954_v39, %v9257_v10  ;;  %v5989_v26 = vpop.f32.mrf.mxu0  ;;  %6160 = vmatprep.mubr.msk.bf16.mxu1 %vm707_vm3, %v8358_v15  ;;  %v4477_v24 = vsel %vm6711_vm7, %v4475_v19, %v4476_v57  ;;  %v3982_v21 = vrot.slane %v3981_v3, 4 }
 0x148   : > { %v1150_v60 = vpop.f32.mrf.mxu1  ;;  %v5644_v12 = vrot.slane %v5628_v4, 9  ;;  %v4482_v25 = vrot.slane %v4480_v53, 4  ;;  %v4483_v15 = vrot.slane %v5577_v27, 5  ;;  %v3992_v2 = vrot.slane %v3991_v33, 4  ;;  %v5580_v33 = vld [vmem:[%s6381_s29 + $0xd4] sm:$0x1] }
 0x149   : > { %9256 = vst [vmem:[#allocation12_spill] sm:$0xff] %v8504_v38  ;;  %v8515_v47 = vadd.f32 %v5988_v45, %v1159_v1  ;;  %v1151_v52 = vadd.f32 %v1150_v60, %v9258_v16  ;;  %v1578_v14 = vpop.f32.mrf.mxu0  ;;  %v3996_v39 = vrot.slane %v3994_v18, 5  ;;  %v4001_v10 = vrot.slane %v3999_v40, 4  ;;  %v9261_v18 = vld [vmem:[#allocation5_spill] sm:$0xff] }
 0x14a   : > { %v5955_v50 = vpop.f32.mrf.mxu1  ;;  %v4004_v38 = vrot.slane %v4002_v41, 5  ;;  %v9260_v45 = vcombine.low %v8372_v58, %v8376_v36  ;;  %v8525_v57 = vrot.slane %v4008_v28, 5  ;;  %v4014_v27 = vrot.slane %v4012_v32, 4 }
 0x14b   : > { %v8518_v6 = vadd.f32 %v1575_v61, %v1151_v52  ;;  %v1162_v51 = vadd.f32 %v5955_v50, %v9259_v17  ;;  %v5992_v19 = vpop.f32.mrf.mxu0  ;;  %v3963_v61 = vsel %vm6425_vm4, %v8488_v49, %v8433_v62  ;;  %v3973_v4 = vsel %vm6425_vm4, %v8497_v23, %v8480_v35  ;;  %v5629_v62 = vld [vmem:[%s6381_s29 + $0xcc] sm:$0xe] }
 0x14c   : > { %6195 = vmatmul.mubr.msk.bf16.gmra.mxu0 %vm707_vm3, %v9260_v45  ;;  %v1153_v3 = vpop.f32.mrf.mxu1  ;;  %v4487_v58 = vrot.slane %v8492_v20, 5  ;;  %v4484_v1 = vsel %vm6711_vm7, %v4482_v25, %v4483_v15  ;;  %v5660_v35 = vcombine.low %v4474_v48, %v4477_v24  ;;  %v3987_v20 = vsel %vm6425_vm4, %v3982_v21, %v8471_v22  ;;  %v9263_v25 = vld [vmem:[#allocation10_spill] sm:$0xff] }
 0x14d   : > { %6198 = vmatprep.mubr.msk.bf16.mxu0 %vm707_vm3, %v5659_v13  ;;  %v8538_v36 = vadd.f32 %v5989_v26, %v1162_v51  ;;  %v1154_v40 = vadd.f32 %v1153_v3, %v9261_v18  ;;  %v1591_v41 = vpop.f32.mrf.mxu0  ;;  %v4481_v13 = vsel %vm6711_vm7, %v5644_v12, %v4480_v53  ;;  %v3997_v23 = vsel %vm6425_vm4, %v3992_v2, %v3996_v39  ;;  %v9262_v53 = vld [vmem:[#allocation7_spill] sm:$0xff] }
 0x14e   : > { %v5958_v49 = vpop.f32.mrf.mxu1  ;;  %6161 = vmatmul.mubr.msk.bf16.gmra.mxu1 %vm707_vm3, %v8464_v43  ;;  %v4005_v26 = vor.u32 %v4004_v38, %v4001_v10  ;;  %v4015_v12 = vor.u32 %v4014_v27, %v8525_v57  ;;  %v4018_v43 = vshll.u32 %v5580_v33, 16  ;;  %v5661_v24 = vcombine.low %v4481_v13, %v4484_v1 }
 0x14f   : > { %v8553_v28 = vadd.f32 %v1578_v14, %v1154_v40  ;;  %v1175_v32 = vadd.f32 %v5958_v49, %v9262_v53  ;;  %v5993_v60 = vpop.f32.mrf.mxu0  ;;  %6164 = vmatprep.mubr.msk.bf16.mxu1 %vm707_vm3, %v8467_v30  ;;  %v5645_v16 = vrot.slane %v5629_v62, 9  ;;  %v4489_v52 = vrot.slane %v4487_v58, 4  ;;  %v9264_v30 = vld [vmem:[#allocation13_spill] sm:$0xff] }
 0x150   : > { %v1166_v48 = vpop.f32.mrf.mxu1  ;;  %v4490_v22 = vrot.slane %v5580_v33, 5  ;;  %v5595_v50 = vcombine.low %v3963_v61, %v3973_v4  ;;  %v5596_v2 = vcombine.low %v3987_v20, %v3997_v23  ;;  %v4006_v39 = vrot.slane %v4005_v26, 4  ;;  %v9265_v33 = vld [vmem:[#allocation15_spill] sm:$0xff]  ;;  %v9266_v62 = vld [vmem:[#allocation17_spill] sm:$0xff]  ;;  %v9267_v26 = vld [vmem:[#allocation20_spill] sm:$0xff] }
 0x151   : > { %v8559_v21 = vadd.f32 %v5992_v19, %v1175_v32  ;;  %v1167_v38 = vadd.f32 %v1166_v48, %v9263_v25  ;;  %v1594_v14 = vpop.f32.mrf.mxu0  ;;  %v4016_v45 = vrot.slane %v4015_v12, 4  ;;  %v4020_v27 = vrot.slane %v4018_v43, 5  ;;  %v9268_v43 = vld [vmem:[#allocation22_spill] sm:$0xff] }
 0x152   : > { %v5959_v15 = vpop.f32.mrf.mxu1  ;;  %v4488_v19 = vsel %vm6711_vm7, %v5645_v16, %v4487_v58  ;;  %v4491_v61 = vsel %vm6711_vm7, %v4489_v52, %v4490_v22  ;;  %v4011_v13 = vsel %vm6425_vm4, %v4006_v39, %v8525_v57 }
 0x153   : > { %v8562_v10 = vadd.f32 %v1591_v41, %v1167_v38  ;;  %v1178_v17 = vadd.f32 %v5959_v15, %v9264_v30  ;;  %v5996_v51 = vpop.f32.mrf.mxu0  ;;  %v4021_v0 = vsel %vm6425_vm4, %v4016_v45, %v4020_v27 }
 0x154   : > { %6199 = vmatmul.mubr.msk.bf16.gmra.mxu0 %vm707_vm3, %v5660_v35  ;;  %v1169_v3 = vpop.f32.mrf.mxu1  ;;  %v5662_v35 = vcombine.low %v4488_v19, %v4491_v61  ;;  %v5597_v12 = vcombine.low %v4011_v13, %v4021_v0 }
 0x155   : > { %6202 = vmatprep.mubr.msk.bf16.mxu0 %vm707_vm3, %v5661_v24  ;;  %v8571_v4 = vadd.f32 %v5993_v60, %v1178_v17  ;;  %v1170_v18 = vadd.f32 %v1169_v3, %v9265_v33  ;;  %v1607_v40 = vpop.f32.mrf.mxu0 }
 0x156   : > { %v5962_v41 = vpop.f32.mrf.mxu1  ;;  %6165 = vmatmul.mubr.msk.bf16.gmra.mxu1 %vm707_vm3, %v5595_v50 }
 0x157   : > { %v8578_v1 = vadd.f32 %v1594_v14, %v1170_v18  ;;  %v1191_v49 = vadd.f32 %v5962_v41, %v9266_v62  ;;  %v5997_v58 = vpop.f32.mrf.mxu0  ;;  %6168 = vmatprep.mubr.msk.bf16.mxu1 %vm707_vm3, %v5596_v2 }
 0x158   : > { %v1182_v20 = vpop.f32.mrf.mxu1 }
 0x159   : > { %v8584_v23 = vadd.f32 %v5996_v51, %v1191_v49  ;;  %v1183_v53 = vadd.f32 %v1182_v20, %v9267_v26  ;;  %v1610_v32 = vpop.f32.mrf.mxu0 }
 0x15a   : > { %v5963_v60 = vpop.f32.mrf.mxu1 }
 0x15b   : > { %v8587_v57 = vadd.f32 %v1607_v40, %v1183_v53  ;;  %v1194_v48 = vadd.f32 %v5963_v60, %v9268_v43  ;;  %v6000_v24 = vpop.f32.mrf.mxu0 }
 0x15c   : > { %6203 = vmatmul.mubr.msk.bf16.gmra.mxu0 %vm707_vm3, %v5662_v35  ;;  %v1185_v16 = vpop.f32.mrf.mxu1 }
 0x15d   : > { %v8591_v52 = vadd.f32 %v5997_v58, %v1194_v48  ;;  %v1186_v22 = vadd.f32 %v1185_v16, %v9269_v31  ;;  %v1623_v25 = vpop.f32.mrf.mxu0 }
 0x15e   : > { %v5966_v38 = vpop.f32.mrf.mxu1  ;;  %6169 = vmatmul.mubr.msk.bf16.gmra.mxu1 %vm707_vm3, %v5597_v12 }
 0x15f   : > { %v8595_v14 = vadd.f32 %v1610_v32, %v1186_v22  ;;  %v1207_v15 = vadd.f32 %v5966_v38, %v8167_v42  ;;  %v6001_v50 = vpop.f32.mrf.mxu0 }
 0x160   : > { %v1198_v2 = vpop.f32.mrf.mxu1 }
 0x161   : > { %v8598_v39 = vadd.f32 %v6000_v24, %v1207_v15  ;;  %v1199_v30 = vadd.f32 %v1198_v2, %v8194_v44  ;;  %v1626_v17 = vpop.f32.mrf.mxu0 }
 0x162   : > { %v5967_v51 = vpop.f32.mrf.mxu1 }
 0x163   : > { %v8601_v45 = vadd.f32 %v1623_v25, %v1199_v30  ;;  %v1210_v27 = vadd.f32 %v5967_v51, %v8209_v8  ;;  %v6040_v3 = vpop.f32.mrf.mxu0  ;;  %v9270_v30 = vld [vmem:[#allocation11_spill] sm:$0xff] }
 0x164   : > { %v1201_v19 = vpop.f32.mrf.mxu1 }
 0x165   : > { %v8604_v61 = vadd.f32 %v6001_v50, %v1210_v27  ;;  %v1202_v33 = vadd.f32 %v1201_v19, %v8231_v55  ;;  %v2599_v18 = vpop.f32.mrf.mxu0 }
 0x166   : > { %v6006_v42 = vpop.f32.mrf.mxu1 }
 0x167   : > { %v8607_v40 = vadd.f32 %v1626_v17, %v1202_v33  ;;  %v2002_v41 = vadd.f32 %v6006_v42, %v8276_v5  ;;  %v6041_v13 = vpop.f32.mrf.mxu0 }
 0x168   : > { %v1873_v44 = vpop.f32.mrf.mxu1 }
 0x169   : > { %v8610_v62 = vadd.f32 %v6040_v3, %v2002_v41  ;;  %v2000_v49 = vadd.f32 %v1873_v44, %v8283_v37  ;;  %v2602_v58 = vpop.f32.mrf.mxu0  ;;  %v9271_v3 = vld [vmem:[#allocation8_spill] sm:$0xff] }
 0x16a   : > { %v6007_v8 = vpop.f32.mrf.mxu1 }
 0x16b   : > { %v8613_v0 = vadd.f32 %v2599_v18, %v2000_v49  ;;  %v2003_v35 = vadd.f32 %v6007_v8, %v8309_v54  ;;  %v6044_v20 = vpop.f32.mrf.mxu0 }
 0x16c   : > { %v1876_v55 = vpop.f32.mrf.mxu1 }
 0x16d   : > { %v8616_v26 = vadd.f32 %v6041_v13, %v2003_v35  ;;  %v2001_v53 = vadd.f32 %v1876_v55, %v8323_v11  ;;  %v2615_v32 = vpop.f32.mrf.mxu0 }
 0x16e   : > { %v6010_v5 = vpop.f32.mrf.mxu1 }
 0x16f   : > { %v8619_v60 = vadd.f32 %v2602_v58, %v2001_v53  ;;  %v2006_v12 = vadd.f32 %v6010_v5, %v8335_v29  ;;  %v6045_v43 = vpop.f32.mrf.mxu0 }
 0x170   : > { %v1889_v37 = vpop.f32.mrf.mxu1 }
 0x171   : > { %v8622_v48 = vadd.f32 %v6044_v20, %v2006_v12  ;;  %v2004_v24 = vadd.f32 %v1889_v37, %v8342_v9  ;;  %v2618_v16 = vpop.f32.mrf.mxu0 }
 0x172   : > { %v6011_v54 = vpop.f32.mrf.mxu1 }
 0x173   : > { %v8625_v31 = vadd.f32 %v2615_v32, %v2004_v24  ;;  %v2007_v22 = vadd.f32 %v6011_v54, %v8367_v34  ;;  %v6048_v25 = vpop.f32.mrf.mxu0  ;;  %v9273_v54 = vld [vmem:[#allocation12_spill] sm:$0xff] }
 0x174   : > { %v1892_v11 = vpop.f32.mrf.mxu1 }
 0x175   : > { %v8628_v38 = vadd.f32 %v6045_v43, %v2007_v22  ;;  %v2005_v15 = vadd.f32 %v1892_v11, %v8390_v59  ;;  %v2631_v50 = vpop.f32.mrf.mxu0  ;;  %v9272_v43 = vld [vmem:[#allocation16_spill] sm:$0xff] }
 0x176   : > { %v6014_v29 = vpop.f32.mrf.mxu1 }
 0x177   : > { %v8631_v2 = vadd.f32 %v2618_v16, %v2005_v15  ;;  %v2010_v17 = vadd.f32 %v6014_v29, %v9270_v30  ;;  %v6049_v51 = vpop.f32.mrf.mxu0 }
 0x178   : > { %v1905_v9 = vpop.f32.mrf.mxu1 }
 0x179   : > { %v8634_v27 = vadd.f32 %v6048_v25, %v2010_v17  ;;  %v2008_v19 = vadd.f32 %v1905_v9, %v9271_v3  ;;  %v2634_v33 = vpop.f32.mrf.mxu0 }
 0x17a   : > { %v6015_v34 = vpop.f32.mrf.mxu1 }
 0x17b   : > { %v8637_v18 = vadd.f32 %v2631_v50, %v2008_v19  ;;  %v2011_v42 = vadd.f32 %v6015_v34, %v8430_v56  ;;  %v6052_v41 = vpop.f32.mrf.mxu0 }
 0x17c   : > { %v1908_v59 = vpop.f32.mrf.mxu1 }
 0x17d   : > { %v8640_v13 = vadd.f32 %v6049_v51, %v2011_v42  ;;  %v2009_v44 = vadd.f32 %v1908_v59, %v8446_v63  ;;  %v2647_v49 = vpop.f32.mrf.mxu0 }
 0x17e   : > { %v6018_v58 = vpop.f32.mrf.mxu1 }
 0x17f   : > { %v8643_v8 = vadd.f32 %v2634_v33, %v2009_v44  ;;  %v2014_v35 = vadd.f32 %v6018_v58, %v8456_v46  ;;  %v6053_v20 = vpop.f32.mrf.mxu0 }
 0x180   : > { %v1921_v55 = vpop.f32.mrf.mxu1 }
 0x181   : > { %v8646_v53 = vadd.f32 %v6052_v41, %v2014_v35  ;;  %v2012_v32 = vadd.f32 %v1921_v55, %v8473_v7  ;;  %v2650_v5 = vpop.f32.mrf.mxu0 }
 0x182   : > { %v6019_v56 = vpop.f32.mrf.mxu1 }
 0x183   : > { %v8649_v12 = vadd.f32 %v2647_v49, %v2012_v32  ;;  %v2015_v37 = vadd.f32 %v6019_v56, %v9272_v43  ;;  %v6056_v24 = vpop.f32.mrf.mxu0 }
 0x184   : > { %v1924_v63 = vpop.f32.mrf.mxu1 }
 0x185   : > { %v8652_v16 = vadd.f32 %v6053_v20, %v2015_v37  ;;  %v2013_v22 = vadd.f32 %v1924_v63, %v9273_v54  ;;  %v2663_v25 = vpop.f32.mrf.mxu0 }
 0x186   : > { %v6022_v46 = vpop.f32.mrf.mxu1 }
 0x187   : > { %v8655_v11 = vadd.f32 %v2650_v5, %v2013_v22  ;;  %v2018_v15 = vadd.f32 %v6022_v46, %v8515_v47  ;;  %v6057_v50 = vpop.f32.mrf.mxu0 }
 0x188   : > { %v1937_v7 = vpop.f32.mrf.mxu1 }
 0x189   : > { %v8658_v29 = vadd.f32 %v6056_v24, %v2018_v15  ;;  %v2016_v30 = vadd.f32 %v1937_v7, %v8518_v6  ;;  %v2666_v17 = vpop.f32.mrf.mxu0 }
 0x18a   : > { %v6023_v51 = vpop.f32.mrf.mxu1 }
 0x18b   : > { %v8661_v9 = vadd.f32 %v2663_v25, %v2016_v30  ;;  %v2019_v3 = vadd.f32 %v6023_v51, %v8538_v36  ;;  %v6060_v19 = vpop.f32.mrf.mxu0 }
 0x18c   : > { %v1940_v33 = vpop.f32.mrf.mxu1 }
 0x18d   : > { %v8664_v34 = vadd.f32 %v6057_v50, %v2019_v3  ;;  %v2017_v42 = vadd.f32 %v1940_v33, %v8553_v28  ;;  %v2679_v41 = vpop.f32.mrf.mxu0 }
 0x18e   : > { %v6026_v47 = vpop.f32.mrf.mxu1 }
 0x18f   : > { %9274 = vst [vmem:[#allocation2_spill] sm:$0xff] %v8664_v34  ;;  %v8667_v59 = vadd.f32 %v2666_v17, %v2017_v42  ;;  %v2022_v44 = vadd.f32 %v6026_v47, %v8559_v21  ;;  %v6061_v49 = vpop.f32.mrf.mxu0 }
 0x190   : > { %v1953_v6 = vpop.f32.mrf.mxu1 }
 0x191   : > { %9275 = vst [vmem:[#allocation14_spill] sm:$0xff] %v8667_v59  ;;  %v8670_v58 = vadd.f32 %v6060_v19, %v2022_v44  ;;  %v2020_v35 = vadd.f32 %v1953_v6, %v8562_v10  ;;  %v2682_v20 = vpop.f32.mrf.mxu0 }
 0x192   : > { %v6027_v36 = vpop.f32.mrf.mxu1 }
 0x193   : > { %9276 = vst [vmem:[#allocation19_spill] sm:$0xff] %v8670_v58  ;;  %v8673_v55 = vadd.f32 %v2679_v41, %v2020_v35  ;;  %v2023_v32 = vadd.f32 %v6027_v36, %v8571_v4  ;;  %v6064_v5 = vpop.f32.mrf.mxu0 }
 0x194   : > { %v1956_v28 = vpop.f32.mrf.mxu1 }
 0x195   : > { %9277 = vst [vmem:[#allocation9_spill] sm:$0xff] %v8673_v55  ;;  %v8676_v56 = vadd.f32 %v6061_v49, %v2023_v32  ;;  %v2021_v43 = vadd.f32 %v1956_v28, %v8578_v1  ;;  %v2695_v37 = vpop.f32.mrf.mxu0 }
 0x196   : > { %v6030_v21 = vpop.f32.mrf.mxu1 }
 0x197   : > { %9278 = vst [vmem:[#allocation18_spill] sm:$0xff] %v8676_v56  ;;  %v8679_v24 = vadd.f32 %v2682_v20, %v2021_v43  ;;  %v2026_v63 = vadd.f32 %v6030_v21, %v8584_v23  ;;  %v6065_v54 = vpop.f32.mrf.mxu0 }
 0x198   : > { %v1969_v10 = vpop.f32.mrf.mxu1 }
 0x199   : > { %9279 = vst [vmem:[#allocation21_spill] sm:$0xff] %v8679_v24  ;;  %v8682_v22 = vadd.f32 %v6064_v5, %v2026_v63  ;;  %v2024_v25 = vadd.f32 %v1969_v10, %v8587_v57  ;;  %v2698_v46 = vpop.f32.mrf.mxu0 }
 0x19a   : > { %v6031_v4 = vpop.f32.mrf.mxu1 }
 0x19b   : > { %9280 = vst [vmem:[#allocation23_spill] sm:$0xff] %v8682_v22  ;;  %v8685_v15 = vadd.f32 %v2695_v37, %v2024_v25  ;;  %v2027_v50 = vadd.f32 %v6031_v4, %v8591_v52  ;;  %v6068_v7 = vpop.f32.mrf.mxu0 }
 0x19c   : > { %v1972_v1 = vpop.f32.mrf.mxu1 }
 0x19d   : > { %9281 = vst [vmem:[#allocation25_spill] sm:$0xff] %v8685_v15  ;;  %v8688_v30 = vadd.f32 %v6065_v54, %v2027_v50  ;;  %v2025_v17 = vadd.f32 %v1972_v1, %v8595_v14  ;;  %v2711_v51 = vpop.f32.mrf.mxu0 }
 0x19e   : > { %v6034_v23 = vpop.f32.mrf.mxu1 }
 0x19f   : > { %9282 = vst [vmem:[#allocation4_spill] sm:$0xff] %v8688_v30  ;;  %v8691_v3 = vadd.f32 %v2698_v46, %v2025_v17  ;;  %v2030_v19 = vadd.f32 %v6034_v23, %v8598_v39  ;;  %v6069_v33 = vpop.f32.mrf.mxu0 }
 0x1a0   : > { %v1985_v57 = vpop.f32.mrf.mxu1 }
 0x1a1   : > { %9283 = vst [vmem:[#allocation3_spill] sm:$0xff] %v8691_v3  ;;  %v8694_v42 = vadd.f32 %v6068_v7, %v2030_v19  ;;  %v2028_v41 = vadd.f32 %v1985_v57, %v8601_v45  ;;  %v2714_v47 = vpop.f32.mrf.mxu0 }
 0x1a2   : > { %v6035_v52 = vpop.f32.mrf.mxu1 }
 0x1a3   : > { %9284 = vst [vmem:[#allocation6_spill] sm:$0xff] %v8694_v42  ;;  %v8697_v44 = vadd.f32 %v2711_v51, %v2028_v41  ;;  %v2031_v49 = vadd.f32 %v6035_v52, %v8604_v61  ;;  %v8700_v6 = vpop.f32.mrf.mxu0 }
 0x1a4   : > { %v1988_v14 = vpop.f32.mrf.mxu1 }
 0x1a5   : > { %9285 = vst [vmem:[#allocation5_spill] sm:$0xff] %v8697_v44  ;;  %v8702_v35 = vadd.f32 %v6069_v33, %v2031_v49  ;;  %v2029_v20 = vadd.f32 %v1988_v14, %v8607_v40  ;;  %v8705_v39 = vpop.f32.mrf.mxu0 }
 0x1a6   : > { %v6074_v36 = vpop.f32.mrf.mxu1 }
 0x1a7   : > { %9286 = vst [vmem:[#allocation7_spill] sm:$0xff] %v8702_v35  ;;  %v8707_v32 = vadd.f32 %v2714_v47, %v2029_v20  ;;  %v8709_v5 = vpop.f32.mrf.mxu0 }
 0x1a8   : > { %v3069_v45 = vpop.f32.mrf.mxu1 }
 0x1a9   : > { %9287 = vst [vmem:[#allocation10_spill] sm:$0xff] %v8707_v32  ;;  %v8711_v28 = vpop.f32.mrf.mxu0 }
 0x1aa   : > { %v8713_v43 = vpop.f32.mrf.mxu1 }
 0x1ab   : > { %v8715_v61 = vpop.f32.mrf.mxu0 }
 0x1ac   : > { %v8717_v37 = vpop.f32.mrf.mxu1 }
 0x1ad   : > { %v8719_v21 = vpop.f32.mrf.mxu0 }
 0x1ae   : > { %v8721_v63 = vpop.f32.mrf.mxu1 }
 0x1af   : > { %v8723_v40 = vpop.f32.mrf.mxu0 }
 0x1b0   : > { %v8725_v54 = vpop.f32.mrf.mxu1 }
 0x1b1   : > { %v8727_v10 = vpop.f32.mrf.mxu0 }
 0x1b2   : > { %v8729_v25 = vpop.f32.mrf.mxu1 }
 0x1b3   : > { %v8731_v46 = vpop.f32.mrf.mxu0 }
 0x1b4   : > { %v8733_v4 = vpop.f32.mrf.mxu1 }
 0x1b5   : > { %v8735_v50 = vpop.f32.mrf.mxu0 }
 0x1b6   : > { %v8737_v7 = vpop.f32.mrf.mxu1 }
 0x1b7   : > { %v8739_v1 = vpop.f32.mrf.mxu0 }
 0x1b8   : > { %v8741_v17 = vpop.f32.mrf.mxu1 }
 0x1b9   : > { %v8743_v51 = vpop.f32.mrf.mxu0 }
 0x1ba   : > { %v8745_v23 = vpop.f32.mrf.mxu1 }
 0x1bb   : > { %v8747_v19 = vpop.f32.mrf.mxu0 }
 0x1bc   : > { %v8749_v33 = vpop.f32.mrf.mxu1 }
 0x1bd   : > { %v8751_v57 = vpop.f32.mrf.mxu0 }
 0x1be   : > { %v8753_v41 = vpop.f32.mrf.mxu1 }
 0x1bf   : > { %v8755_v47 = vpop.f32.mrf.mxu0 }
 0x1c0   : > { %v8757_v52 = vpop.f32.mrf.mxu1 }
 0x1c1   : > { %v8759_v49 = vpop.f32.mrf.mxu0 }
 0x1c2   : > { %v8761_v14 = vpop.f32.mrf.mxu1 }
 0x1c3   : > { %v8763_v20 = vpop.f32.mrf.mxu0 }
 0x1c4   : > { %v8765_v32 = vpop.f32.mrf.mxu1 }
 0x1c5   : > { %v8767_v35 = vpop.f32.mrf.mxu0 }
 0x1c6   : > { %9288 = vst [vmem:[#allocation13_spill] sm:$0xff] %v8767_v35  ;;  %v8769_v44 = vpop.f32.mrf.mxu1 }
 0x1c7   : > { %v8771_v42 = vpop.f32.mrf.mxu0 }
 0x1c8   : > { %9289 = vst [vmem:[#allocation15_spill] sm:$0xff] %v8771_v42  ;;  %v8773_v3 = vpop.f32.mrf.mxu1 }
 0x1c9   : > { %v8775_v30 = vpop.f32.mrf.mxu0 }
 0x1ca   : > { %9290 = vst [vmem:[#allocation17_spill] sm:$0xff] %v8775_v30  ;;  %v8777_v15 = vpop.f32.mrf.mxu1 }
 0x1cb   : > { %9291 = vst [vmem:[#allocation20_spill] sm:$0xff] %v8777_v15  ;;  %v8779_v22 = vpop.f32.mrf.mxu0 }
 0x1cc   : > { %9292 = vst [vmem:[#allocation22_spill] sm:$0xff] %v8779_v22  ;;  %v8781_v24 = vpop.f32.mrf.mxu1 }
 0x1cd   : > { %9293 = vst [vmem:[#allocation24_spill] sm:$0xff] %v8781_v24  ;;  %v8783_v56 = vpop.f32.mrf.mxu0 }
 0x1ce   : > { %9294 = vst [vmem:[#allocation11_spill] sm:$0xff] %v8783_v56  ;;  %v8785_v55 = vpop.f32.mrf.mxu1 }
 0x1cf   : > { %9295 = vst [vmem:[#allocation8_spill] sm:$0xff] %v8785_v55  ;;  %v8787_v58 = vpop.f32.mrf.mxu0 }
 0x1d0   : > { %9296 = vst [vmem:[#allocation16_spill] sm:$0xff] %v8787_v58  ;;  %v8789_v59 = vpop.f32.mrf.mxu1 }
 0x1d1   : > { %9297 = vst [vmem:[#allocation12_spill] sm:$0xff] %v8789_v59  ;;  %v8791_v35 = vpop.f32.mrf.mxu0 }
 0x1d2   : > { %9298 = vst [vmem:[#allocation26_spill] sm:$0xff] %v8791_v35  ;;  %v8793_v42 = vpop.f32.mrf.mxu1 }
 0x1d3   : > { %9299 = vst [vmem:[#allocation27_spill] sm:$0xff] %v8793_v42  ;;  %v8795_v34 = vpop.f32.mrf.mxu0 }
 0x1d4   : > { %9300 = vst [vmem:[#allocation28_spill] sm:$0xff] %v8795_v34  ;;  %v8797_v30 = vpop.f32.mrf.mxu1 }
 0x1d5   : > { %9301 = vst [vmem:[#allocation29_spill] sm:$0xff] %v8797_v30  ;;  %v8799_v22 = vpop.f32.mrf.mxu0 }
 0x1d6   : > { %9302 = vst [vmem:[#allocation30_spill] sm:$0xff] %v8799_v22  ;;  %v8801_v24 = vpop.f32.mrf.mxu1 }
 0x1d7   : > { %9303 = vst [vmem:[#allocation31_spill] sm:$0xff] %v8801_v24  ;;  %v8803_v56 = vpop.f32.mrf.mxu0 }
 0x1d8   : > { %9304 = vst [vmem:[#allocation32_spill] sm:$0xff] %v8803_v56  ;;  %v8805_v55 = vpop.f32.mrf.mxu1  ;;  %v3198_v56 = vadd.f32 %v6074_v36, %v8610_v62  ;;  %v3197_v36 = vadd.f32 %v8717_v37, %v8619_v60  ;;  %v8851_v60 = vld [vmem:[%s9082_s3] ss:$0 sm:$0xff] }
 0x1d9   : > { %9305 = vst [vmem:[#allocation33_spill] sm:$0xff] %v8805_v55  ;;  %v8807_v58 = vpop.f32.mrf.mxu0 }
 0x1da   : > { %9306 = vst [vmem:[#allocation34_spill] sm:$0xff] %v8807_v58  ;;  %v8809_v59 = vpop.f32.mrf.mxu1  ;;  %v3196_v58 = vadd.f32 %v3069_v45, %v8613_v0  ;;  %v8841_v0 = vld [vmem:[%s9081_s2] ss:$0 sm:$0xff] }
 0x1db   : > { %9307 = vst [vmem:[#allocation35_spill] sm:$0xff] %v8809_v59  ;;  %v8811_v35 = vpop.f32.mrf.mxu0 }
 0x1dc   : > { %9308 = vst [vmem:[#allocation36_spill] sm:$0xff] %v8811_v35  ;;  %v8813_v42 = vpop.f32.mrf.mxu1  ;;  %v3558_v62 = vadd.f32 %v8705_v39, %v3196_v58  ;;  %v3202_v58 = vadd.f32 %v8721_v63, %v8622_v48 }
 0x1dd   : > { %v8815_v34 = vpop.f32.mrf.mxu0 }
 0x1de   : > { %9309 = vst [vmem:[#allocation37_spill] sm:$0xff] %v8815_v34  ;;  %v8817_v30 = vpop.f32.mrf.mxu1  ;;  %v3560_v34 = vadd.f32 %v8700_v6, %v3198_v56 }
 0x1df   : > { %9310 = vst [vmem:[#allocation38_spill] sm:$0xff] %v8817_v30  ;;  %v8819_v15 = vpop.f32.mrf.mxu0  ;;  %v3199_v30 = vadd.f32 %v8713_v43, %v8616_v26 }
 0x1e0   : > { %9311 = vst [vmem:[#allocation39_spill] sm:$0xff] %v8819_v15  ;;  %v8821_v22 = vpop.f32.mrf.mxu1 }
 0x1e1   : > { %9312 = vst [vmem:[#allocation40_spill] sm:$0xff] %v8821_v22  ;;  %v8824_v24 = vpop.f32.mrf.mxu0  ;;  %v3561_v56 = vadd.f32 %v8709_v5, %v3199_v30 }
 0x1e2   : > { %9313 = vst [vmem:[#allocation41_spill] sm:$0xff] %v8824_v24  ;;  %v8826_v55 = vpop.f32.mrf.mxu1 }
 0x1e3   : > { %9314 = vst [vmem:[#allocation42_spill] sm:$0xff] %v8826_v55  ;;  %v6176_v35 = vpop.f32.mrf.mxu0 }
 0x1e4   : > { %v8830_v59 = vpop.f32.mrf.mxu1 }
 0x1e5   : > { %9315 = vst [vmem:[#allocation43_spill] sm:$0xff] %v8830_v59  ;;  %v4627_v15 = vpop.f32.mrf.mxu0 }
 0x1e6   : > { %v6142_v22 = vpop.f32.mrf.mxu1 }
 0x1e7   : > { %v4286_v24 = vadd.f32 %v6142_v22, %v3560_v34  ;;  %v6177_v55 = vpop.f32.mrf.mxu0  ;;  %v3559_v22 = vadd.f32 %v8711_v28, %v3197_v36  ;;  %v3564_v36 = vadd.f32 %v8715_v61, %v3202_v58 }
 0x1e8   : > { %v4157_v45 = vpop.f32.mrf.mxu1 }
 0x1e9   : > { %v4756_v26 = vadd.f32 %v6176_v35, %v4286_v24  ;;  %v4284_v6 = vadd.f32 %v4157_v45, %v3558_v62  ;;  %v4630_v43 = vpop.f32.mrf.mxu0  ;;  %v3200_v24 = vadd.f32 %v8725_v54, %v8625_v31  ;;  %v3203_v35 = vadd.f32 %v8729_v25, %v8628_v38 }
 0x1ea   : > { %v6143_v34 = vpop.f32.mrf.mxu1 }
 0x1eb   : > { %v4795_v39 = vmul.f32 %v8841_v0, %v4756_v26  ;;  %v4754_v30 = vadd.f32 %v4627_v15, %v4284_v6  ;;  %v4287_v5 = vadd.f32 %v6143_v34, %v3561_v56  ;;  %v6180_v37 = vpop.f32.mrf.mxu0  ;;  %v3201_v15 = vadd.f32 %v8733_v4, %v8631_v2 }
 0x1ec   : > { %v4160_v48 = vpop.f32.mrf.mxu1  ;;  %v3562_v6 = vadd.f32 %v8719_v21, %v3200_v24  ;;  %v3206_v34 = vadd.f32 %v8737_v7, %v8634_v27  ;;  %v3204_v27 = vadd.f32 %v8741_v17, %v8637_v18 }
 0x1ed   : > { %v4834_v63 = vadd.f32 %v8851_v60, %v4795_v39  ;;  %v4793_v62 = vmul.f32 %v8841_v0, %v4754_v30  ;;  %v4757_v45 = vadd.f32 %v6177_v55, %v4287_v5  ;;  %v4285_v59 = vadd.f32 %v4160_v48, %v3559_v22  ;;  %v4643_v28 = vpop.f32.mrf.mxu0 }
 0x1ee   : > { %v6146_v56 = vpop.f32.mrf.mxu1  ;;  %v3565_v55 = vadd.f32 %v8723_v40, %v3203_v35  ;;  %v3563_v40 = vadd.f32 %v8727_v10, %v3201_v15  ;;  %v3207_v10 = vadd.f32 %v8745_v23, %v8640_v13 }
 0x1ef   : > { %v4866_v31 = vmax.f32 %v4834_v63, 0.0  ;;  %v4832_v54 = vadd.f32 %v8851_v60, %v4793_v62  ;;  %v4796_v38 = vmul.f32 %v8841_v0, %v4757_v45  ;;  %v4755_v25 = vadd.f32 %v4630_v43, %v4285_v59  ;;  %v6181_v26 = vpop.f32.mrf.mxu0 }
 0x1f0   : > { %v4290_v2 = vadd.f32 %v6146_v56, %v3564_v36  ;;  %v4173_v61 = vpop.f32.mrf.mxu1  ;;  %v3568_v63 = vadd.f32 %v8731_v46, %v3206_v34  ;;  %v3205_v46 = vadd.f32 %v8749_v33, %v8643_v8 }
 0x1f1   : > { %v5717_v4 = vpack.c.bf16 %v4866_v31, %v4866_v31  ;;  %v4864_v58 = vmax.f32 %v4832_v54, 0.0  ;;  %v4835_v59 = vadd.f32 %v8851_v60, %v4796_v38  ;;  %v4794_v43 = vmul.f32 %v8841_v0, %v4755_v25  ;;  %v4646_v21 = vpop.f32.mrf.mxu0 }
 0x1f2   : > { %v4760_v7 = vadd.f32 %v6180_v37, %v4290_v2  ;;  %v4288_v22 = vadd.f32 %v4173_v61, %v3562_v6  ;;  %v6147_v39 = vpop.f32.mrf.mxu1  ;;  %v3566_v31 = vadd.f32 %v8735_v50, %v3204_v27  ;;  %v3210_v50 = vadd.f32 %v8753_v41, %v8646_v53 }
 0x1f3   : > { %5027 = vst.msk [vmem:[%s8874_s27 + $0x8] sm:$0xf] %vm5024_vm8, %v5717_v4  ;;  %v5715_v30 = vpack.c.bf16 %v4864_v58, %v4864_v58  ;;  %v4867_v5 = vmax.f32 %v4835_v59, 0.0  ;;  %v4833_v24 = vadd.f32 %v8851_v60, %v4794_v43  ;;  %v4291_v35 = vadd.f32 %v6147_v39, %v3565_v55  ;;  %v6184_v48 = vpop.f32.mrf.mxu0 }
 0x1f4   : > { %v4799_v62 = vmul.f32 %v8841_v0, %v4760_v7  ;;  %v4758_v18 = vadd.f32 %v4643_v28, %v4288_v22  ;;  %v4176_v17 = vpop.f32.mrf.mxu1  ;;  %v3569_v55 = vadd.f32 %v8739_v1, %v3207_v10  ;;  %v3567_v43 = vadd.f32 %v8743_v51, %v3205_v46 }
 0x1f5   : > { %5025 = vst.msk [vmem:[%s8874_s27] sm:$0xf] %vm5024_vm8, %v5715_v30  ;;  %v5718_v37 = vpack.c.bf16 %v4867_v5, %v4867_v5  ;;  %v4865_v45 = vmax.f32 %v4833_v24, 0.0  ;;  %v4761_v36 = vadd.f32 %v6181_v26, %v4291_v35  ;;  %v4289_v15 = vadd.f32 %v4176_v17, %v3563_v40  ;;  %v4659_v56 = vpop.f32.mrf.mxu0 }
 0x1f6   : > { %v4838_v54 = vadd.f32 %v8851_v60, %v4799_v62  ;;  %v4797_v13 = vmul.f32 %v8841_v0, %v4758_v18  ;;  %v6150_v23 = vpop.f32.mrf.mxu1  ;;  %v3208_v1 = vadd.f32 %v8757_v52, %v8649_v12  ;;  %v3572_v30 = vadd.f32 %v8747_v19, %v3210_v50 }
 0x1f7   : > { %5028 = vst.msk [vmem:[%s8874_s27 + $0xc] sm:$0xf] %vm5024_vm8, %v5718_v37  ;;  %v5716_v28 = vpack.c.bf16 %v4865_v45, %v4865_v45  ;;  %v4800_v38 = vmul.f32 %v8841_v0, %v4761_v36  ;;  %v4759_v25 = vadd.f32 %v4646_v21, %v4289_v15  ;;  %v4294_v26 = vadd.f32 %v6150_v23, %v3568_v63  ;;  %v6185_v6 = vpop.f32.mrf.mxu0 }
 0x1f8   : > { %v4870_v34 = vmax.f32 %v4838_v54, 0.0  ;;  %v4836_v8 = vadd.f32 %v8851_v60, %v4797_v13  ;;  %v4189_v33 = vpop.f32.mrf.mxu1  ;;  %v3211_v5 = vadd.f32 %v8761_v14, %v8652_v16  ;;  %v3570_v62 = vadd.f32 %v8751_v57, %v3208_v1 }
 0x1f9   : > { %5026 = vst.msk [vmem:[%s8874_s27 + $0x4] sm:$0xf] %vm5024_vm8, %v5716_v28  ;;  %v4839_v2 = vadd.f32 %v8851_v60, %v4800_v38  ;;  %v4798_v61 = vmul.f32 %v8841_v0, %v4759_v25  ;;  %v4764_v4 = vadd.f32 %v6184_v48, %v4294_v26  ;;  %v4292_v58 = vadd.f32 %v4189_v33, %v3566_v31  ;;  %v4662_v59 = vpop.f32.mrf.mxu0  ;;  %v9317_v33 = vld [vmem:[#allocation20_spill] sm:$0xff] }
 0x1fa   : > { %v5721_v53 = vpack.c.bf16 %v4870_v34, %v4870_v34  ;;  %v4868_v41 = vmax.f32 %v4836_v8, 0.0  ;;  %v6151_v21 = vpop.f32.mrf.mxu1  ;;  %v3209_v19 = vadd.f32 %v8765_v32, %v8655_v11  ;;  %v3214_v11 = vadd.f32 %v8769_v44, %v8658_v29 }
 0x1fb   : > { %v4871_v40 = vmax.f32 %v4839_v2, 0.0  ;;  %v4837_v27 = vadd.f32 %v8851_v60, %v4798_v61  ;;  %v4803_v7 = vmul.f32 %v8841_v0, %v4764_v4  ;;  %v4762_v22 = vadd.f32 %v4659_v56, %v4292_v58  ;;  %v6188_v39 = vpop.f32.mrf.mxu0 }
 0x1fc   : > { %5031 = vst.msk [vmem:[%s8874_s27 + $0x18] sm:$0xf] %vm5024_vm8, %v5721_v53  ;;  %v5719_v12 = vpack.c.bf16 %v4868_v41, %v4868_v41  ;;  %v4295_v51 = vadd.f32 %v6151_v21, %v3569_v55  ;;  %v4192_v52 = vpop.f32.mrf.mxu1  ;;  %v3573_v56 = vadd.f32 %v8755_v47, %v3211_v5  ;;  %v3571_v38 = vadd.f32 %v8759_v49, %v3209_v19  ;;  %v9316_v49 = vld [vmem:[#allocation2_spill] sm:$0xff]  ;;  %v9318_v53 = vld [vmem:[#allocation13_spill] sm:$0xff]  ;;  %v9320_v21 = vld [vmem:[#allocation24_spill] sm:$0xff] }
 0x1fd   : > { %v5722_v24 = vpack.c.bf16 %v4871_v40, %v4871_v40  ;;  %v4869_v35 = vmax.f32 %v4837_v27, 0.0  ;;  %v4842_v48 = vadd.f32 %v8851_v60, %v4803_v7  ;;  %v4801_v63 = vmul.f32 %v8841_v0, %v4762_v22  ;;  %v4675_v10 = vpop.f32.mrf.mxu0 }
 0x1fe   : > { %5029 = vst.msk [vmem:[%s8874_s27 + $0x10] sm:$0xf] %vm5024_vm8, %v5719_v12  ;;  %v4765_v16 = vadd.f32 %v6185_v6, %v4295_v51  ;;  %v4293_v14 = vadd.f32 %v4192_v52, %v3567_v43  ;;  %v6154_v18 = vpop.f32.mrf.mxu1  ;;  %v3212_v47 = vadd.f32 %v8773_v3, %v8661_v9  ;;  %v3576_v8 = vadd.f32 %v8763_v20, %v3214_v11  ;;  %v9319_v20 = vld [vmem:[#allocation14_spill] sm:$0xff]  ;;  %v9321_v52 = vld [vmem:[#allocation15_spill] sm:$0xff] }
 0x1ff   : > { %5032 = vst.msk [vmem:[%s8874_s27 + $0x1c] sm:$0xf] %vm5024_vm8, %v5722_v24  ;;  %v5720_v17 = vpack.c.bf16 %v4869_v35, %v4869_v35  ;;  %v4874_v37 = vmax.f32 %v4842_v48, 0.0  ;;  %v4840_v45 = vadd.f32 %v8851_v60, %v4801_v63  ;;  %v4298_v36 = vadd.f32 %v6154_v18, %v3572_v30  ;;  %v6189_v15 = vpop.f32.mrf.mxu0  ;;  %v9322_v35 = vld [vmem:[#allocation19_spill] sm:$0xff]  ;;  %v9323_v48 = vld [vmem:[#allocation8_spill] sm:$0xff] }
 0x200   : > { %v4804_v32 = vmul.f32 %v8841_v0, %v4765_v16  ;;  %v4763_v57 = vadd.f32 %v4662_v59, %v4293_v14  ;;  %v4205_v31 = vpop.f32.mrf.mxu1  ;;  %v3215_v2 = vadd.f32 %v9317_v33, %v9316_v49  ;;  %v3574_v41 = vadd.f32 %v9318_v53, %v3212_v47 }
 0x201   : > { %5030 = vst.msk [vmem:[%s8874_s27 + $0x14] sm:$0xf] %vm5024_vm8, %v5720_v17  ;;  %v5725_v46 = vpack.c.bf16 %v4874_v37, %v4874_v37  ;;  %v4872_v54 = vmax.f32 %v4840_v45, 0.0  ;;  %v4768_v13 = vadd.f32 %v6188_v39, %v4298_v36  ;;  %v4296_v23 = vadd.f32 %v4205_v31, %v3570_v62  ;;  %v4678_v28 = vpop.f32.mrf.mxu0  ;;  %v9324_v45 = vld [vmem:[#allocation17_spill] sm:$0xff] }
 0x202   : > { %v4843_v25 = vadd.f32 %v8851_v60, %v4804_v32  ;;  %v4802_v29 = vmul.f32 %v8841_v0, %v4763_v57  ;;  %v6155_v44 = vpop.f32.mrf.mxu1  ;;  %v3213_v40 = vadd.f32 %v9320_v21, %v9319_v20  ;;  %v3577_v24 = vadd.f32 %v9321_v52, %v3215_v2  ;;  %v9330_v2 = vld [vmem:[#allocation11_spill] sm:$0xff] }
 0x203   : > { %5035 = vst.msk [vmem:[%s8874_s27 + $0x28] sm:$0xf] %vm5024_vm8, %v5725_v46  ;;  %v5723_v26 = vpack.c.bf16 %v4872_v54, %v4872_v54  ;;  %v4807_v6 = vmul.f32 %v8841_v0, %v4768_v13  ;;  %v4766_v55 = vadd.f32 %v4675_v10, %v4296_v23  ;;  %v4299_v50 = vadd.f32 %v6155_v44, %v3573_v56  ;;  %v6192_v34 = vpop.f32.mrf.mxu0  ;;  %v9326_v56 = vld [vmem:[#allocation12_spill] sm:$0xff] }
 0x204   : > { %v4875_v61 = vmax.f32 %v4843_v25, 0.0  ;;  %v4841_v9 = vadd.f32 %v8851_v60, %v4802_v29  ;;  %v4208_v3 = vpop.f32.mrf.mxu1  ;;  %v3218_v63 = vadd.f32 %v9323_v48, %v9322_v35  ;;  %v3575_v36 = vadd.f32 %v9324_v45, %v3213_v40  ;;  %v9328_v25 = vld [vmem:[#allocation18_spill] sm:$0xff]  ;;  %v9329_v29 = vld [vmem:[#allocation27_spill] sm:$0xff]  ;;  %v9333_v40 = vld [vmem:[#allocation16_spill] sm:$0xff] }
 0x205   : > { %5033 = vst.msk [vmem:[%s8874_s27 + $0x20] sm:$0xf] %vm5024_vm8, %v5723_v26  ;;  %v4846_v4 = vadd.f32 %v8851_v60, %v4807_v6  ;;  %v4805_v58 = vmul.f32 %v8841_v0, %v4766_v55  ;;  %v4769_v59 = vadd.f32 %v6189_v15, %v4299_v50  ;;  %v4297_v43 = vadd.f32 %v4208_v3, %v3571_v38  ;;  %v4691_v1 = vpop.f32.mrf.mxu0  ;;  %v9325_v15 = vld [vmem:[#allocation9_spill] sm:$0xff]  ;;  %v9327_v38 = vld [vmem:[#allocation22_spill] sm:$0xff] }
 0x206   : > { %v5726_v27 = vpack.c.bf16 %v4875_v61, %v4875_v61  ;;  %v4873_v7 = vmax.f32 %v4841_v9, 0.0  ;;  %v6158_v22 = vpop.f32.mrf.mxu1  ;;  %v3216_v11 = vadd.f32 %v9326_v56, %v9325_v15  ;;  %v3580_v47 = vadd.f32 %v9327_v38, %v3218_v63  ;;  %v9331_v9 = vld [vmem:[#allocation21_spill] sm:$0xff]  ;;  %v9336_v63 = vld [vmem:[#allocation26_spill] sm:$0xff] }
 0x207   : > { %v4878_v39 = vmax.f32 %v4846_v4, 0.0  ;;  %v4844_v30 = vadd.f32 %v8851_v60, %v4805_v58  ;;  %v4808_v5 = vmul.f32 %v8841_v0, %v4769_v59  ;;  %v4767_v12 = vadd.f32 %v4678_v28, %v4297_v43  ;;  %v6193_v51 = vpop.f32.mrf.mxu0  ;;  %v9332_v3 = vld [vmem:[#allocation29_spill] sm:$0xff] }
 0x208   : > { %5036 = vst.msk [vmem:[%s8874_s27 + $0x2c] sm:$0xf] %vm5024_vm8, %v5726_v27  ;;  %v5724_v10 = vpack.c.bf16 %v4873_v7, %v4873_v7  ;;  %v4302_v62 = vadd.f32 %v6158_v22, %v3576_v8  ;;  %v4221_v19 = vpop.f32.mrf.mxu1  ;;  %v3219_v44 = vadd.f32 %v9329_v29, %v9328_v25  ;;  %v3578_v61 = vadd.f32 %v9330_v2, %v3216_v11  ;;  %v9334_v7 = vld [vmem:[#allocation23_spill] sm:$0xff]  ;;  %v9339_v11 = vld [vmem:[#allocation28_spill] sm:$0xff] }
 0x209   : > { %v5729_v16 = vpack.c.bf16 %v4878_v39, %v4878_v39  ;;  %v4876_v14 = vmax.f32 %v4844_v30, 0.0  ;;  %v4847_v18 = vadd.f32 %v8851_v60, %v4808_v5  ;;  %v4806_v17 = vmul.f32 %v8841_v0, %v4767_v12  ;;  %v4694_v37 = vpop.f32.mrf.mxu0  ;;  %v9335_v22 = vld [vmem:[#allocation31_spill] sm:$0xff] }
 0x20a   : > { %5034 = vst.msk [vmem:[%s8874_s27 + $0x24] sm:$0xf] %vm5024_vm8, %v5724_v10  ;;  %v4772_v32 = vadd.f32 %v6192_v34, %v4302_v62  ;;  %v4300_v57 = vadd.f32 %v4221_v19, %v3574_v41  ;;  %v6159_v31 = vpop.f32.mrf.mxu1  ;;  %v3217_v4 = vadd.f32 %v9332_v3, %v9331_v9  ;;  %v3581_v27 = vadd.f32 %v9333_v40, %v3219_v44  ;;  %v9337_v62 = vld [vmem:[#allocation25_spill] sm:$0xff]  ;;  %v9342_v44 = vld [vmem:[#allocation30_spill] sm:$0xff]  ;;  %v9344_v3 = vld [vmem:[#allocation32_spill] sm:$0xff] }
 0x20b   : > { %5039 = vst.msk [vmem:[%s8874_s27 + $0x38] sm:$0xf] %vm5024_vm8, %v5729_v16  ;;  %v5727_v46 = vpack.c.bf16 %v4876_v14, %v4876_v14  ;;  %v4879_v54 = vmax.f32 %v4847_v18, 0.0  ;;  %v4845_v13 = vadd.f32 %v8851_v60, %v4806_v17  ;;  %v4303_v23 = vadd.f32 %v6159_v31, %v3577_v24  ;;  %v9338_v19 = vld [vmem:[#allocation33_spill] sm:$0xff]  ;;  %v9341_v31 = vld [vmem:[#allocation35_spill] sm:$0xff] }
 0x20c   : > { %v6196_v28 = vpop.f32.mrf.mxu0  ;;  %v4811_v26 = vmul.f32 %v8841_v0, %v4772_v32  ;;  %v4770_v6 = vadd.f32 %v4691_v1, %v4300_v57  ;;  %v4224_v55 = vpop.f32.mrf.mxu1  ;;  %v3222_v39 = vadd.f32 %v9335_v22, %v9334_v7  ;;  %v3579_v10 = vadd.f32 %v9336_v63, %v3217_v4  ;;  %v9340_v57 = vld [vmem:[#allocation4_spill] sm:$0xff]  ;;  %v9347_v7 = vld [vmem:[#allocation38_spill] sm:$0xff] }
 0x20d   : > { %5037 = vst.msk [vmem:[%s8874_s27 + $0x30] sm:$0xf] %vm5024_vm8, %v5727_v46  ;;  %v5730_v50 = vpack.c.bf16 %v4879_v54, %v4879_v54  ;;  %v4877_v34 = vmax.f32 %v4845_v13, 0.0  ;;  %v4773_v8 = vadd.f32 %v6193_v51, %v4303_v23  ;;  %v4301_v49 = vadd.f32 %v4224_v55, %v3575_v36  ;;  %v9349_v63 = vld [vmem:[#allocation40_spill] sm:$0xff] }
 0x20e   : > { %v4707_v33 = vpop.f32.mrf.mxu0  ;;  %v4850_v58 = vadd.f32 %v8851_v60, %v4811_v26  ;;  %v4809_v59 = vmul.f32 %v8841_v0, %v4770_v6  ;;  %v6162_v43 = vpop.f32.mrf.mxu1  ;;  %v3220_v16 = vadd.f32 %v9338_v19, %v9337_v62  ;;  %v3584_v32 = vadd.f32 %v9339_v11, %v3222_v39  ;;  %v9343_v6 = vld [vmem:[#allocation3_spill] sm:$0xff]  ;;  %v9351_v19 = vld [vmem:[#allocation42_spill] sm:$0xff] }
 0x20f   : > { %5040 = vst.msk [vmem:[%s8874_s27 + $0x3c] sm:$0xf] %vm5024_vm8, %v5730_v50  ;;  %v5728_v1 = vpack.c.bf16 %v4877_v34, %v4877_v34  ;;  %v4812_v53 = vmul.f32 %v8841_v0, %v4773_v8  ;;  %v4771_v41 = vadd.f32 %v4694_v37, %v4301_v49  ;;  %v4306_v20 = vadd.f32 %v6162_v43, %v3580_v47  ;;  %v9350_v62 = vld [vmem:[#allocation7_spill] sm:$0xff] }
 0x210   : > { %v6197_v21 = vpop.f32.mrf.mxu0  ;;  %v4882_v30 = vmax.f32 %v4850_v58, 0.0  ;;  %v4848_v5 = vadd.f32 %v8851_v60, %v4809_v59  ;;  %v4237_v12 = vpop.f32.mrf.mxu1  ;;  %v3223_v46 = vadd.f32 %v9341_v31, %v9340_v57  ;;  %v3582_v26 = vadd.f32 %v9342_v44, %v3220_v16  ;;  %v9354_v57 = vld [vmem:[#allocation43_spill] sm:$0xff] }
 0x211   : > { %5038 = vst.msk [vmem:[%s8874_s27 + $0x34] sm:$0xf] %vm5024_vm8, %v5728_v1  ;;  %v4851_v51 = vadd.f32 %v8851_v60, %v4812_v53  ;;  %v4810_v52 = vmul.f32 %v8841_v0, %v4771_v41  ;;  %v4776_v24 = vadd.f32 %v6196_v28, %v4306_v20  ;;  %v4304_v35 = vadd.f32 %v4237_v12, %v3578_v61 }
 0x212   : > { %v4710_v48 = vpop.f32.mrf.mxu0  ;;  %v5733_v14 = vpack.c.bf16 %v4882_v30, %v4882_v30  ;;  %v4880_v18 = vmax.f32 %v4848_v5, 0.0  ;;  %v6163_v17 = vpop.f32.mrf.mxu1  ;;  %v3221_v55 = vadd.f32 %v8813_v42, %v9343_v6  ;;  %v3585_v4 = vadd.f32 %v9344_v3, %v3223_v46 }
 0x213   : > { %v4883_v37 = vmax.f32 %v4851_v51, 0.0  ;;  %v4849_v45 = vadd.f32 %v8851_v60, %v4810_v52  ;;  %v4815_v36 = vmul.f32 %v8841_v0, %v4776_v24  ;;  %v4774_v15 = vadd.f32 %v4707_v33, %v4304_v35 }
 0x214   : > { %v6200_v56 = vpop.f32.mrf.mxu0  ;;  %5043 = vst.msk [vmem:[%s8874_s27 + $0x48] sm:$0xf] %vm5024_vm8, %v5733_v14  ;;  %v5731_v54 = vpack.c.bf16 %v4880_v18, %v4880_v18  ;;  %v4307_v13 = vadd.f32 %v6163_v17, %v3581_v27  ;;  %v4240_v23 = vpop.f32.mrf.mxu1  ;;  %v9346_v27 = vld [vmem:[#allocation6_spill] sm:$0xff]  ;;  %v3227_v16 = vadd.f32 %v9351_v19, %v9350_v62 }
 0x215   : > { %v5734_v28 = vpack.c.bf16 %v4883_v37, %v4883_v37  ;;  %v4881_v38 = vmax.f32 %v4849_v45, 0.0  ;;  %v4854_v47 = vadd.f32 %v8851_v60, %v4815_v36  ;;  %v4813_v25 = vmul.f32 %v8841_v0, %v4774_v15 }
 0x216   : > { %v4723_v29 = vpop.f32.mrf.mxu0  ;;  %5041 = vst.msk [vmem:[%s8874_s27 + $0x40] sm:$0xf] %vm5024_vm8, %v5731_v54  ;;  %v4777_v50 = vadd.f32 %v6197_v21, %v4307_v13  ;;  %v4305_v34 = vadd.f32 %v4240_v23, %v3579_v10  ;;  %v6166_v8 = vpop.f32.mrf.mxu1  ;;  %v9345_v21 = vld [vmem:[#allocation34_spill] sm:$0xff]  ;;  %v3226_v22 = vadd.f32 %v9347_v7, %v9346_v27 }
 0x217   : > { %5044 = vst.msk [vmem:[%s8874_s27 + $0x4c] sm:$0xf] %vm5024_vm8, %v5734_v28  ;;  %v5732_v49 = vpack.c.bf16 %v4881_v38, %v4881_v38  ;;  %v4886_v33 = vmax.f32 %v4854_v47, 0.0  ;;  %v4852_v2 = vadd.f32 %v8851_v60, %v4813_v25  ;;  %v4310_v61 = vadd.f32 %v6166_v8, %v3584_v32  ;;  %v9353_v32 = vld [vmem:[#allocation10_spill] sm:$0xff] }
 0x218   : > { %v6201_v9 = vpop.f32.mrf.mxu0  ;;  %v4816_v58 = vmul.f32 %v8841_v0, %v4777_v50  ;;  %v4775_v59 = vadd.f32 %v4710_v48, %v4305_v34  ;;  %v4253_v42 = vpop.f32.mrf.mxu1  ;;  %v3583_v40 = vadd.f32 %v9345_v21, %v3221_v55  ;;  %v9348_v48 = vld [vmem:[#allocation5_spill] sm:$0xff]  ;;  %v3225_v31 = vadd.f32 %v9354_v57, %v9353_v32 }
 0x219   : > { %5042 = vst.msk [vmem:[%s8874_s27 + $0x44] sm:$0xf] %vm5024_vm8, %v5732_v49  ;;  %v5737_v43 = vpack.c.bf16 %v4886_v33, %v4886_v33  ;;  %v4884_v1 = vmax.f32 %v4852_v2, 0.0  ;;  %v4780_v53 = vadd.f32 %v6200_v56, %v4310_v61  ;;  %v4308_v41 = vadd.f32 %v4253_v42, %v3582_v26  ;;  %v9352_v56 = vld [vmem:[#allocation36_spill] sm:$0xff]  ;;  %v9356_v26 = vld [vmem:[#allocation39_spill] sm:$0xff]  ;;  %v9357_v61 = vld [vmem:[#allocation41_spill] sm:$0xff] }
 0x21a   : > { %v4726_v20 = vpop.f32.mrf.mxu0  ;;  %v4855_v39 = vadd.f32 %v8851_v60, %v4816_v58  ;;  %v4814_v30 = vmul.f32 %v8841_v0, %v4775_v59  ;;  %v6167_v5 = vpop.f32.mrf.mxu1  ;;  %v3224_v10 = vadd.f32 %v9349_v63, %v9348_v48  ;;  %v3588_v11 = vadd.f32 %v9352_v56, %v3226_v22 }
 0x21b   : > { %5047 = vst.msk [vmem:[%s8874_s27 + $0x58] sm:$0xf] %vm5024_vm8, %v5737_v43  ;;  %v5735_v12 = vpack.c.bf16 %v4884_v1, %v4884_v1  ;;  %v4819_v51 = vmul.f32 %v8841_v0, %v4780_v53  ;;  %v4778_v52 = vadd.f32 %v4723_v29, %v4308_v41  ;;  %v4311_v24 = vadd.f32 %v6167_v5, %v3585_v4  ;;  %v9355_v29 = vld [vmem:[#allocation37_spill] sm:$0xff] }
 0x21c   : > { %v6204_v35 = vpop.f32.mrf.mxu0  ;;  %v4887_v14 = vmax.f32 %v4855_v39, 0.0  ;;  %v4853_v18 = vadd.f32 %v8851_v60, %v4814_v30  ;;  %v4256_v17 = vpop.f32.mrf.mxu1  ;;  %v3586_v44 = vadd.f32 %v9355_v29, %v3224_v10  ;;  %v3589_v6 = vadd.f32 %v9356_v26, %v3227_v16 }
 0x21d   : > { %5045 = vst.msk [vmem:[%s8874_s27 + $0x50] sm:$0xf] %vm5024_vm8, %v5735_v12  ;;  %v4858_v37 = vadd.f32 %v8851_v60, %v4819_v51  ;;  %v4817_v45 = vmul.f32 %v8841_v0, %v4778_v52  ;;  %v4781_v36 = vadd.f32 %v6201_v9, %v4311_v24  ;;  %v4309_v15 = vadd.f32 %v4256_v17, %v3583_v40 }
 0x21e   : > { %v5738_v46 = vpack.c.bf16 %v4887_v14, %v4887_v14  ;;  %v4885_v54 = vmax.f32 %v4853_v18, 0.0  ;;  %v6170_v13 = vpop.f32.mrf.mxu1  ;;  %v4739_v23 = vpop.f32.mrf.mxu0  ;;  %v3587_v9 = vadd.f32 %v9357_v61, %v3225_v31 }
 0x21f   : > { %v4890_v28 = vmax.f32 %v4858_v37, 0.0  ;;  %v4856_v38 = vadd.f32 %v8851_v60, %v4817_v45  ;;  %v4820_v47 = vmul.f32 %v8841_v0, %v4781_v36  ;;  %v4779_v25 = vadd.f32 %v4726_v20, %v4309_v15 }
 0x220   : > { %5048 = vst.msk [vmem:[%s8874_s27 + $0x5c] sm:$0xf] %vm5024_vm8, %v5738_v46  ;;  %v5736_v55 = vpack.c.bf16 %v4885_v54, %v4885_v54  ;;  %v4314_v50 = vadd.f32 %v6170_v13, %v3588_v11  ;;  %v4269_v34 = vpop.f32.mrf.mxu1  ;;  %v6205_v59 = vpop.f32.mrf.mxu0 }
 0x221   : > { %v5741_v8 = vpack.c.bf16 %v4890_v28, %v4890_v28  ;;  %v4888_v49 = vmax.f32 %v4856_v38, 0.0  ;;  %v4859_v33 = vadd.f32 %v8851_v60, %v4820_v47  ;;  %v4818_v2 = vmul.f32 %v8841_v0, %v4779_v25 }
 0x222   : > { %5046 = vst.msk [vmem:[%s8874_s27 + $0x54] sm:$0xf] %vm5024_vm8, %v5736_v55  ;;  %v4784_v3 = vadd.f32 %v6204_v35, %v4314_v50  ;;  %v4312_v4 = vadd.f32 %v4269_v34, %v3586_v44  ;;  %v6171_v58 = vpop.f32.mrf.mxu1  ;;  %v4742_v5 = vpop.f32.mrf.mxu0 }
 0x223   : > { %5051 = vst.msk [vmem:[%s8874_s27 + $0x68] sm:$0xf] %vm5024_vm8, %v5741_v8  ;;  %v5739_v42 = vpack.c.bf16 %v4888_v49, %v4888_v49  ;;  %v4891_v43 = vmax.f32 %v4859_v33, 0.0  ;;  %v4857_v1 = vadd.f32 %v8851_v60, %v4818_v2  ;;  %v4315_v53 = vadd.f32 %v6171_v58, %v3589_v6 }
 0x224   : > { %v4823_v41 = vmul.f32 %v8841_v0, %v4784_v3  ;;  %v4782_v20 = vadd.f32 %v4739_v23, %v4312_v4  ;;  %v4272_v21 = vpop.f32.mrf.mxu1 }
 0x225   : > { %5049 = vst.msk [vmem:[%s8874_s27 + $0x60] sm:$0xf] %vm5024_vm8, %v5739_v42  ;;  %v5742_v40 = vpack.c.bf16 %v4891_v43, %v4891_v43  ;;  %v4889_v27 = vmax.f32 %v4857_v1, 0.0  ;;  %v4785_v7 = vadd.f32 %v6205_v59, %v4315_v53  ;;  %v4313_v22 = vadd.f32 %v4272_v21, %v3587_v9 }
 0x226   : > { %v4862_v39 = vadd.f32 %v8851_v60, %v4823_v41  ;;  %v4821_v30 = vmul.f32 %v8841_v0, %v4782_v20 }
 0x227   : > { %5052 = vst.msk [vmem:[%s8874_s27 + $0x6c] sm:$0xf] %vm5024_vm8, %v5742_v40  ;;  %v5740_v12 = vpack.c.bf16 %v4889_v27, %v4889_v27  ;;  %v4824_v51 = vmul.f32 %v8841_v0, %v4785_v7  ;;  %v4783_v52 = vadd.f32 %v4742_v5, %v4313_v22 }
 0x228   : > { %v4894_v24 = vmax.f32 %v4862_v39, 0.0  ;;  %v4860_v35 = vadd.f32 %v8851_v60, %v4821_v30 }
 0x229   : > { %5050 = vst.msk [vmem:[%s8874_s27 + $0x64] sm:$0xf] %vm5024_vm8, %v5740_v12  ;;  %v4863_v48 = vadd.f32 %v8851_v60, %v4824_v51  ;;  %v4822_v63 = vmul.f32 %v8841_v0, %v4783_v52 }
 0x22a   : > { %v5745_v10 = vpack.c.bf16 %v4894_v24, %v4894_v24  ;;  %v4892_v62 = vmax.f32 %v4860_v35, 0.0 }
 0x22b   : > { %v4895_v19 = vmax.f32 %v4863_v48, 0.0  ;;  %v4861_v16 = vadd.f32 %v8851_v60, %v4822_v63 }
 0x22c   : > { %5055 = vst.msk [vmem:[%s8874_s27 + $0x78] sm:$0xf] %vm5024_vm8, %v5745_v10  ;;  %v5743_v14 = vpack.c.bf16 %v4892_v62, %v4892_v62 }
 0x22d   : > { %v5746_v18 = vpack.c.bf16 %v4895_v19, %v4895_v19  ;;  %v4893_v17 = vmax.f32 %v4861_v16, 0.0 }
 0x22e   : > { %5053 = vst.msk [vmem:[%s8874_s27 + $0x70] sm:$0xf] %vm5024_vm8, %v5743_v14 }
 0x22f   : > { %5056 = vst.msk [vmem:[%s8874_s27 + $0x7c] sm:$0xf] %vm5024_vm8, %v5746_v18  ;;  %v5744_v37 = vpack.c.bf16 %v4893_v17, %v4893_v17 }
 0x231   : > { %5054 = vst.msk [vmem:[%s8874_s27 + $0x74] sm:$0xf] %vm5024_vm8, %v5744_v37 }
 0x232 PF: > { %s14_s17 = sadd.s32 1, %s6315_s17   ;;  %s9358_s15 = smov %s6311_s16 }
 0x233   : > { %p11_p6 = scmp.ge.s32.totalorder %s14_s17, 4   ;;  %s9359_s16 = smov %s9361_s18 }
 0x235   :  { %13 = sbr.rel (!%p11_p6) target bundleno = 2 (0x2), region = 77 }

// kernel: _forward.7
= control target key start
LH: loop header
LB: loop body
LE: loop exit
PB: predicated region body
PF: predicated region fallthrough
CT: control target
= control target key end

     0   :  { %s6342_s15 = smov 0   ;;  %s6344_s16 = smov 0   ;;  %s9079_s0 = inlined_call_operand.vmem [shape: bf16[2,18,18,8], index: 0, kind: input, shape index: {}]   ;;  %s9080_s1 = inlined_call_operand.vmem [shape: bf16[3,3,8,8], index: 1, kind: input, shape index: {}]   ;;  %s9081_s2 = inlined_call_operand.vmem [shape: f32[1,8], index: 2, kind: input, shape index: {}]   ;;  %s9082_s3 = inlined_call_operand.vmem [shape: f32[1,8], index: 3, kind: input, shape index: {}]   ;;  %s9083_s4 = inlined_call_operand.vmem [shape: bf16[512,8], index: 4, kind: output, shape index: {}]  }
   0x1   :  { %s6346_s17 = smov 0  }
   0x2 LB: > { %s26_s18 = sadd.s32 1, %s6311_s16  ;;  %p5139_p0 = scmp.ge.s32.totalorder %s6315_s17, 1  ;;  %s6315_s17 = sphi %s6346_s17, %s14_s17   ;;  %s6311_s16 = sphi %s6344_s16, %s9359_s16   ;;  %s6307_s15 = sphi %s6342_s15, %s9358_s15  }
   0x3   : > { %p28_p1 = scmp.ge.s32.totalorder %s26_s18, 2  ;;  %p176_p2 = scmp.lt.s32.totalorder %s6315_s17, 3 }
   0x5   : > { %s9361_s18 = smov (%p28_p1, %s26_s18), 0  ;;  %p177_p3 = pnand %p5139_p0, %p176_p2 }
   0x7   : > { %180 = sbr.rel (%p177_p3) target bundleno = 562 (0x232), region = 36 }
   0xc   : > { %v5143_v0 = vld [vmem:[%s9080_s1 + $0x4] sm:$0xf]  ;;  %vm756_vm0 = vcmask 1043456   ;;  %p203_p4 = scmp.lt.s32.totalorder %s6307_s15, 1  ;;  %v253_v2 = vld [vmem:[%s9080_s1] sm:$0xf] }
   0xd   : > { %6209 = vmatprep.subr.msk.bf16.mxu1 %vm756_vm0, %v5143_v0  ;;  %6208 = vmatprep.subr.msk.bf16.mxu0 %vm756_vm0, %v5143_v0  ;;  %v758_v1 = vsel %vm756_vm0, %v5143_v0, 0  ;;  %v5224_v3 = vld [vmem:[%s9080_s1 + $0x8] sm:$0xf]  ;;  %vm270_vm1 = vsmask.f32 3328  ;;  %v6384_v4 = vsel %vm756_vm0, %v253_v2, 0 }
   0xe   : > { %6207 = vmatpush3.bf16.msra.mxu1 %v758_v1  ;;  %5901 = vmatpush3.bf16.msra.mxu0 %v758_v1  ;;  %s204_s23 = scalar_select %p203_p4, %s6307_s15, 1  ;;  %vm271_vm2 = vsmask.f32 7440  ;;  %vm707_vm3 = vcmask 64512   ;;  %v6410_v16 = vsel %vm756_vm0, %v5224_v3, 0  ;;  %vm1261_vm5 = vcmask 1042432  }
   0xf   : > { %6210 = vmatprep.subr.msk.bf16.mxu1 %vm756_vm0, %v253_v2  ;;  %6211 = vmatprep.subr.msk.bf16.mxu0 %vm756_vm0, %v5224_v3  ;;  %vm6425_vm4 = vmor %vm270_vm1, %vm271_vm2  ;;  %vm1262_vm6 = vcmask 1046532   ;;  %s5141_s20 = sshll.u32 %s6307_s15, 5  ;;  %vm5024_vm8 = vcmask 60416  }
  0x10   : > { %s6218_s26 = smul.u32 216, %s204_s23  ;;  %vm6711_vm7 = vmor %vm1261_vm5, %vm1262_vm6  ;;  %p210_p5 = scmp.lt.s32.totalorder %s5141_s20, 63 }
  0x12   : > { %s6381_s29 = scalar_lea.vmem %s9079_s0, %s6218_s26  ;;  %s9363_s20 = smov (!%p210_p5, %s5141_s20), 63 }
  0x13   : > { %v6387_v5 = vld [vmem:[%s6381_s29] sm:$0xf]  ;;  %v6390_v6 = vld [vmem:[%s6381_s29 + $0x4] sm:$0xf]  ;;  %v6393_v7 = vld [vmem:[%s6381_s29 + $0x8] sm:$0x1] }
  0x14   : > { %v274_v8 = vshrl.u32 %v6387_v5, 16  ;;  %v277_v9 = vshll.u32 %v6387_v5, 16  ;;  %v283_v10 = vshll.u32 %v6390_v6, 16  ;;  %v287_v11 = vshrl.u32 %v6390_v6, 16  ;;  %v6400_v12 = vld [vmem:[%s6381_s29 + $0x60] sm:$0xf] }
  0x15   : > { %v293_v13 = vshll.u32 %v6393_v7, 16  ;;  %v6404_v14 = vld [vmem:[%s6381_s29 + $0x64] sm:$0xf]  ;;  %v6407_v15 = vld [vmem:[%s6381_s29 + $0x68] sm:$0x1]  ;;  %v466_v22 = vshrl.u32 %v6400_v12, 16 }
  0x16   : > { %v276_v17 = vrot.slane %v274_v8, 4  ;;  %v279_v18 = vrot.slane %v277_v9, 5  ;;  %v285_v19 = vrot.slane %v283_v10, 5  ;;  %v289_v20 = vrot.slane %v287_v11, 4  ;;  %v6418_v29 = vld [vmem:[%s6381_s29 + $0xc] sm:$0xf] }
  0x17   : > { %v295_v21 = vrot.slane %v293_v13, 5  ;;  %v469_v23 = vshll.u32 %v6400_v12, 16  ;;  %v475_v24 = vshll.u32 %v6404_v14, 16  ;;  %v479_v27 = vshrl.u32 %v6404_v14, 16  ;;  %v6421_v30 = vld [vmem:[%s6381_s29 + $0x10] sm:$0xf] }
  0x18   : > { %v280_v25 = vor.u32 %v279_v18, %v276_v17  ;;  %v290_v26 = vor.u32 %v289_v20, %v285_v19  ;;  %v485_v28 = vshll.u32 %v6407_v15, 16  ;;  %v468_v33 = vrot.slane %v466_v22, 4  ;;  %v6431_v41 = vld [vmem:[%s6381_s29 + $0x14] sm:$0x1]  ;;  %v6442_v53 = vld [vmem:[%s6381_s29 + $0x6c] sm:$0xf] }
  0x19   : > { %v471_v34 = vrot.slane %v469_v23, 5  ;;  %v477_v35 = vrot.slane %v475_v24, 5  ;;  %v481_v38 = vrot.slane %v479_v27, 4  ;;  %v298_v42 = vshrl.u32 %v6418_v29, 16  ;;  %v6446_v58 = vld [vmem:[%s6381_s29 + $0x70] sm:$0xf] }
  0x1a   : > { %v281_v36 = vrot.slane %v280_v25, 4  ;;  %v291_v37 = vrot.slane %v290_v26, 4  ;;  %v487_v39 = vrot.slane %v485_v28, 5  ;;  %v301_v43 = vshll.u32 %v6418_v29, 16  ;;  %v6454_v63 = vld [vmem:[%s6381_s29 + $0x74] sm:$0x1] }
  0x1b   : > { %v472_v40 = vor.u32 %v471_v34, %v468_v33  ;;  %v307_v44 = vshll.u32 %v6421_v30, 16  ;;  %v482_v47 = vor.u32 %v481_v38, %v477_v35  ;;  %v311_v48 = vshrl.u32 %v6421_v30, 16  ;;  %v6460_v8 = vld [vmem:[%s6381_s29 + $0x18] sm:$0xf]  ;;  %v6473_v25 = vld [vmem:[%s6381_s29 + $0x20] sm:$0x1] }
  0x1c   : > { %v286_v45 = vsel %vm6425_vm4, %v281_v36, %v285_v19  ;;  %v296_v46 = vsel %vm6425_vm4, %v291_v37, %v295_v21  ;;  %v300_v51 = vrot.slane %v298_v42, 4  ;;  %v303_v52 = vrot.slane %v301_v43, 5  ;;  %v6467_v21 = vld [vmem:[%s6381_s29 + $0x1c] sm:$0xf]  ;;  %s5142_s24 = sshll.u32 %s9363_s20, 2 }
  0x1d   : > { %v5144_v49 = vcombine.low %v286_v45, %v296_v46  ;;  %v473_v50 = vrot.slane %v472_v40, 4  ;;  %v483_v54 = vrot.slane %v482_v47, 4  ;;  %v309_v55 = vrot.slane %v307_v44, 5  ;;  %v6486_v40 = vld [vmem:[%s9080_s1 + $0x10] sm:$0xf]  ;;  %s8874_s27 = scalar_lea.vmem %s9083_s4, %s5142_s24 }
  0x1e   : > { %v313_v56 = vrot.slane %v311_v48, 4  ;;  %v317_v57 = vshll.u32 %v6431_v41, 16  ;;  %v304_v60 = vor.u32 %v303_v52, %v300_v51  ;;  %v490_v3 = vshrl.u32 %v6442_v53, 16  ;;  %v6491_v46 = vld [vmem:[%s6381_s29 + $0x7c] sm:$0xf] }
  0x1f   : > { %5902 = vmatprep.mubr.msk.bf16.mxu0 %vm707_vm3, %v5144_v49  ;;  %v478_v59 = vsel %vm6425_vm4, %v473_v50, %v477_v35  ;;  %v488_v0 = vsel %vm6425_vm4, %v483_v54, %v487_v39  ;;  %v493_v11 = vshll.u32 %v6442_v53, 16  ;;  %v499_v13 = vshll.u32 %v6446_v58, 16  ;;  %v6480_v35 = vld [vmem:[%s6381_s29 + $0x78] sm:$0xf] }
  0x20   : > { %v314_v1 = vor.u32 %v313_v56, %v309_v55  ;;  %v319_v2 = vrot.slane %v317_v57, 5  ;;  %v5152_v9 = vcombine.low %v478_v59, %v488_v0  ;;  %v305_v10 = vrot.slane %v304_v60, 4  ;;  %v6498_v56 = vld [vmem:[%s6381_s29 + $0x80] sm:$0x1] }
  0x21   : > { %v492_v18 = vrot.slane %v490_v3, 4  ;;  %v503_v19 = vshrl.u32 %v6446_v58, 16  ;;  %v509_v20 = vshll.u32 %v6454_v63, 16  ;;  %v495_v23 = vrot.slane %v493_v11, 5  ;;  %9119 = vst [vmem:[#allocation2_spill] sm:$0xff] %v6498_v56 }
  0x22   : > { %v315_v17 = vrot.slane %v314_v1, 4  ;;  %5918 = vmatprep.mubr.msk.bf16.mxu1 %vm707_vm3, %v5152_v9  ;;  %v310_v22 = vsel %vm6425_vm4, %v305_v10, %v309_v55  ;;  %v501_v24 = vrot.slane %v499_v13, 5  ;;  %v322_v26 = vshrl.u32 %v6460_v8, 16  ;;  %v6504_v1 = vld [vmem:[%s6381_s29 + $0x24] sm:$0xf] }
  0x23   : > { %v505_v28 = vrot.slane %v503_v19, 4  ;;  %v511_v33 = vrot.slane %v509_v20, 5  ;;  %v325_v34 = vshll.u32 %v6460_v8, 16  ;;  %v496_v37 = vor.u32 %v495_v23, %v492_v18  ;;  %v6512_v10 = vld [vmem:[%s6381_s29 + $0x28] sm:$0xf] }
  0x24   : > { %v320_v27 = vsel %vm6425_vm4, %v315_v17, %v319_v2  ;;  %v324_v38 = vrot.slane %v322_v26, 4  ;;  %v331_v39 = vshll.u32 %v6467_v21, 16  ;;  %v335_v44 = vshrl.u32 %v6467_v21, 16  ;;  %v6518_v19 = vld [vmem:[%s9080_s1 + $0xc] sm:$0xf] }
  0x25   : > { %v5145_v36 = vcombine.low %v310_v22, %v320_v27  ;;  %v506_v42 = vor.u32 %v505_v28, %v501_v24  ;;  %v327_v43 = vrot.slane %v325_v34, 5  ;;  %v341_v45 = vshll.u32 %v6473_v25, 16 }
  0x26   : > { %v497_v47 = vrot.slane %v496_v37, 4  ;;  %v333_v48 = vrot.slane %v331_v39, 5  ;;  %v514_v49 = vshrl.u32 %v6480_v35, 16  ;;  %v517_v50 = vshll.u32 %v6480_v35, 16 }
  0x27   : > { %5903 = vmatmul.mubr.msk.bf16.vlgmr.msra.gmra.mxu0 %vm707_vm3, %v5145_v36  ;;  %v507_v51 = vrot.slane %v506_v42, 4  ;;  %v328_v52 = vor.u32 %v327_v43, %v324_v38  ;;  %v337_v54 = vrot.slane %v335_v44, 4  ;;  %v343_v55 = vrot.slane %v341_v45, 5  ;;  %v6530_v36 = vld [vmem:[%s6381_s29 + $0x84] sm:$0xf] }
  0x28   : > { %5969 = vmatpush3.bf16.msra.mxu0 %v6410_v16  ;;  %v502_v57 = vsel %vm6425_vm4, %v497_v47, %v501_v24  ;;  %v516_v59 = vrot.slane %v514_v49, 4  ;;  %v519_v60 = vrot.slane %v517_v50, 5  ;;  %v523_v0 = vshll.u32 %v6491_v46, 16  ;;  %v6523_v24 = vld [vmem:[%s6381_s29 + $0x2c] sm:$0x1] }
  0x29   : > { %6213 = vmatprep.subr.msk.bf16.mxu0 %vm756_vm0, %v6486_v40  ;;  %v512_v16 = vsel %vm6425_vm4, %v507_v51, %v511_v33  ;;  %v329_v2 = vrot.slane %v328_v52, 4  ;;  %v338_v3 = vor.u32 %v337_v54, %v333_v48  ;;  %v527_v9 = vshrl.u32 %v6491_v46, 16  ;;  %v6537_v43 = vld [vmem:[%s6381_s29 + $0x88] sm:$0xf]  ;;  %v6545_v51 = vld [vmem:[%s6381_s29 + $0x8c] sm:$0x1] }
  0x2a   : > { %v5153_v11 = vcombine.low %v502_v57, %v512_v16  ;;  %v520_v13 = vor.u32 %v519_v60, %v516_v59  ;;  %v525_v17 = vrot.slane %v523_v0, 5  ;;  %v533_v18 = vshll.u32 %v6498_v56, 16  ;;  %9120 = vst [vmem:[#allocation3_spill] sm:$0xff] %v6545_v51  ;;  %v6553_v60 = vld [vmem:[%s6381_s29 + $0x30] sm:$0xf] }
  0x2b   : > { %v334_v20 = vsel %vm6425_vm4, %v329_v2, %v333_v48  ;;  %v339_v22 = vrot.slane %v338_v3, 4  ;;  %v529_v23 = vrot.slane %v527_v9, 4  ;;  %v346_v26 = vshrl.u32 %v6504_v1, 16  ;;  %v6558_v9 = vld [vmem:[%s6381_s29 + $0x34] sm:$0xf] }
  0x2c   : > { %5919 = vmatmul.mubr.msk.bf16.vlgmr.msra.gmra.mxu1 %vm707_vm3, %v5153_v11  ;;  %v521_v27 = vrot.slane %v520_v13, 4  ;;  %v535_v28 = vrot.slane %v533_v18, 5  ;;  %v349_v33 = vshll.u32 %v6504_v1, 16  ;;  %v355_v34 = vshll.u32 %v6512_v10, 16 }
  0x2d   : > { %5935 = vmatpush3.bf16.msra.mxu1 %v6384_v4  ;;  %v344_v37 = vsel %vm6425_vm4, %v339_v22, %v343_v55  ;;  %v530_v38 = vor.u32 %v529_v23, %v525_v17  ;;  %v348_v39 = vrot.slane %v346_v26, 4  ;;  %v359_v42 = vshrl.u32 %v6512_v10, 16 }
  0x2e   : > { %v5146_v44 = vcombine.low %v334_v20, %v344_v37  ;;  %v526_v45 = vsel %vm6425_vm4, %v521_v27, %v525_v17  ;;  %v351_v47 = vrot.slane %v349_v33, 5  ;;  %v357_v48 = vrot.slane %v355_v34, 5  ;;  %6212 = vmatprep.subr.msk.bf16.mxu1 %vm756_vm0, %v6518_v19  ;;  %v6566_v33 = vld [vmem:[%s6381_s29 + $0x38] sm:$0x1] }
  0x2f   : > { %v531_v4 = vrot.slane %v530_v38, 4  ;;  %v361_v49 = vrot.slane %v359_v42, 4  ;;  %v365_v50 = vshll.u32 %v6523_v24, 16  ;;  %v538_v52 = vshrl.u32 %v6530_v36, 16  ;;  %v6571_v38 = vld [vmem:[%s6381_s29 + $0x90] sm:$0xf] }
  0x30   : > { %5906 = vmatprep.mubr.msk.bf16.mxu0 %vm707_vm3, %v5146_v44  ;;  %v352_v54 = vor.u32 %v351_v47, %v348_v39  ;;  %v541_v55 = vshll.u32 %v6530_v36, 16  ;;  %v547_v57 = vshll.u32 %v6537_v43, 16  ;;  %v551_v59 = vshrl.u32 %v6537_v43, 16  ;;  %9121 = vst [vmem:[#allocation4_spill] sm:$0xff] %v6571_v38  ;;  %v6576_v47 = vld [vmem:[%s6381_s29 + $0x94] sm:$0xf] }
  0x31   : > { %v536_v0 = vsel %vm6425_vm4, %v531_v4, %v535_v28  ;;  %v362_v16 = vor.u32 %v361_v49, %v357_v48  ;;  %v367_v2 = vrot.slane %v365_v50, 5  ;;  %v540_v3 = vrot.slane %v538_v52, 4  ;;  %9122 = vst [vmem:[#allocation5_spill] sm:$0xff] %v6576_v47 }
  0x32   : > { %v5154_v11 = vcombine.low %v526_v45, %v536_v0  ;;  %v353_v13 = vrot.slane %v352_v54, 4  ;;  %v543_v17 = vrot.slane %v541_v55, 5  ;;  %v549_v18 = vrot.slane %v547_v57, 5 }
  0x33   : > { %v363_v20 = vrot.slane %v362_v16, 4  ;;  %v553_v22 = vrot.slane %v551_v59, 4  ;;  %v557_v23 = vshll.u32 %v6545_v51, 16  ;;  %v370_v26 = vshrl.u32 %v6553_v60, 16  ;;  %v6585_v16 = vld [vmem:[%s6381_s29 + $0x98] sm:$0x1] }
  0x34   : > { %5922 = vmatprep.mubr.msk.bf16.mxu1 %vm707_vm3, %v5154_v11  ;;  %v358_v27 = vsel %vm6425_vm4, %v353_v13, %v357_v48  ;;  %v544_v28 = vor.u32 %v543_v17, %v540_v3  ;;  %v373_v34 = vshll.u32 %v6553_v60, 16  ;;  %v379_v37 = vshll.u32 %v6558_v9, 16  ;;  %9123 = vst [vmem:[#allocation6_spill] sm:$0xff] %v6585_v16  ;;  %v6590_v11 = vld [vmem:[%s6381_s29 + $0x3c] sm:$0xf] }
  0x35   : > { %v368_v39 = vsel %vm6425_vm4, %v363_v20, %v367_v2  ;;  %v554_v42 = vor.u32 %v553_v22, %v549_v18  ;;  %v559_v44 = vrot.slane %v557_v23, 5  ;;  %v372_v45 = vrot.slane %v370_v26, 4  ;;  %v6595_v23 = vld [vmem:[%s6381_s29 + $0x40] sm:$0xf]  ;;  %v1214_v51 = vld [vmem:[%s6381_s29 + $0xc] sm:$0xe] }
  0x36   : > { %v5147_v48 = vcombine.low %v358_v27, %v368_v39  ;;  %v545_v4 = vrot.slane %v544_v28, 4  ;;  %v375_v49 = vrot.slane %v373_v34, 5  ;;  %v381_v50 = vrot.slane %v379_v37, 5 }
  0x37   : > { %v555_v52 = vrot.slane %v554_v42, 4  ;;  %v383_v54 = vshrl.u32 %v6558_v9, 16  ;;  %v389_v55 = vshll.u32 %v6566_v33, 16  ;;  %v562_v57 = vshrl.u32 %v6571_v38, 16 }
  0x38   : > { %5907 = vmatmul.mubr.msk.bf16.gmra.mxu0 %vm707_vm3, %v5147_v48  ;;  %v550_v59 = vsel %vm6425_vm4, %v545_v4, %v549_v18  ;;  %v376_v0 = vor.u32 %v375_v49, %v372_v45  ;;  %v565_v2 = vshll.u32 %v6571_v38, 16  ;;  %v571_v3 = vshll.u32 %v6576_v47, 16  ;;  %v6604_v48 = vld [vmem:[%s6381_s29 + $0x44] sm:$0x1] }
  0x39   : > { %v560_v13 = vsel %vm6425_vm4, %v555_v52, %v559_v44  ;;  %v385_v17 = vrot.slane %v383_v54, 4  ;;  %v391_v20 = vrot.slane %v389_v55, 5  ;;  %v564_v22 = vrot.slane %v562_v57, 4  ;;  %v6609_v52 = vld [vmem:[%s6381_s29 + $0x9c] sm:$0xf] }
  0x3a   : > { %v5155_v18 = vcombine.low %v550_v59, %v560_v13  ;;  %v377_v26 = vrot.slane %v376_v0, 4  ;;  %v567_v27 = vrot.slane %v565_v2, 5  ;;  %v573_v28 = vrot.slane %v571_v3, 5  ;;  %9124 = vst [vmem:[#allocation7_spill] sm:$0xff] %v6609_v52  ;;  %v6613_v13 = vld [vmem:[%s6381_s29 + $0xa0] sm:$0xf] }
  0x3b   : > { %v386_v34 = vor.u32 %v385_v17, %v381_v50  ;;  %v575_v37 = vshrl.u32 %v6576_v47, 16  ;;  %v581_v39 = vshll.u32 %v6585_v16, 16  ;;  %v394_v42 = vshrl.u32 %v6590_v11, 16  ;;  %9125 = vst [vmem:[#allocation8_spill] sm:$0xff] %v6613_v13 }
  0x3c   : > { %5923 = vmatmul.mubr.msk.bf16.gmra.mxu1 %vm707_vm3, %v5155_v18  ;;  %v382_v44 = vsel %vm6425_vm4, %v377_v26, %v381_v50  ;;  %v568_v45 = vor.u32 %v567_v27, %v564_v22  ;;  %v397_v4 = vshll.u32 %v6590_v11, 16  ;;  %v403_v49 = vshll.u32 %v6595_v23, 16  ;;  %v6619_v26 = vld [vmem:[%s6381_s29 + $0xa4] sm:$0x1] }
  0x3d   : > { %v387_v54 = vrot.slane %v386_v34, 4  ;;  %v577_v55 = vrot.slane %v575_v37, 4  ;;  %v583_v57 = vrot.slane %v581_v39, 5  ;;  %v396_v59 = vrot.slane %v394_v42, 4  ;;  %9126 = vst [vmem:[#allocation9_spill] sm:$0xff] %v6619_v26 }
  0x3e   : > { %v569_v0 = vrot.slane %v568_v45, 4  ;;  %v399_v2 = vrot.slane %v397_v4, 5  ;;  %v405_v3 = vrot.slane %v403_v49, 5  ;;  %v407_v50 = vshrl.u32 %v6595_v23, 16  ;;  %v6623_v34 = vld [vmem:[%s6381_s29 + $0x48] sm:$0xf] }
  0x3f   : > { %v392_v17 = vsel %vm6425_vm4, %v387_v54, %v391_v20  ;;  %v578_v22 = vor.u32 %v577_v55, %v573_v28  ;;  %v413_v18 = vshll.u32 %v6604_v48, 16  ;;  %v586_v27 = vshrl.u32 %v6609_v52, 16 }
  0x40   : > { %v5148_v37 = vcombine.low %v382_v44, %v392_v17  ;;  %v574_v39 = vsel %vm6425_vm4, %v569_v0, %v573_v28  ;;  %v400_v42 = vor.u32 %v399_v2, %v396_v59  ;;  %v409_v45 = vrot.slane %v407_v50, 4  ;;  %v6632_v17 = vld [vmem:[%s6381_s29 + $0x4c] sm:$0xf]  ;;  %v6638_v2 = vld [vmem:[%s6381_s29 + $0x50] sm:$0x1] }
  0x41   : > { %v579_v4 = vrot.slane %v578_v22, 4  ;;  %v415_v49 = vrot.slane %v413_v18, 5  ;;  %v588_v20 = vrot.slane %v586_v27, 4  ;;  %v589_v54 = vshll.u32 %v6609_v52, 16 }
  0x42   : > { %5910 = vmatprep.mubr.msk.bf16.mxu0 %vm707_vm3, %v5148_v37  ;;  %v401_v55 = vrot.slane %v400_v42, 4  ;;  %v410_v62 = vor.u32 %v409_v45, %v405_v3  ;;  %v595_v32 = vshll.u32 %v6613_v13, 16  ;;  %v599_v44 = vshrl.u32 %v6613_v13, 16  ;;  %v6644_v42 = vld [vmem:[%s6381_s29 + $0xa8] sm:$0xf] }
  0x43   : > { %v584_v28 = vsel %vm6425_vm4, %v579_v4, %v583_v57  ;;  %v591_v59 = vrot.slane %v589_v54, 5  ;;  %v605_v0 = vshll.u32 %v6619_v26, 16  ;;  %v418_v50 = vshrl.u32 %v6623_v34, 16  ;;  %9127 = vst [vmem:[#allocation10_spill] sm:$0xff] %v6644_v42 }
  0x44   : > { %v5156_v22 = vcombine.low %v574_v39, %v584_v28  ;;  %v406_v18 = vsel %vm6425_vm4, %v401_v55, %v405_v3  ;;  %v411_v27 = vrot.slane %v410_v62, 4  ;;  %v597_v37 = vrot.slane %v595_v32, 5 }
  0x45   : > { %v592_v45 = vor.u32 %v591_v59, %v588_v20  ;;  %v601_v61 = vrot.slane %v599_v44, 4  ;;  %v607_v57 = vrot.slane %v605_v0, 5  ;;  %v420_v4 = vrot.slane %v418_v50, 4  ;;  %v6654_v44 = vld [vmem:[%s6381_s29 + $0xac] sm:$0xf] }
  0x46   : > { %5926 = vmatprep.mubr.msk.bf16.mxu1 %vm707_vm3, %v5156_v22  ;;  %v416_v54 = vsel %vm6425_vm4, %v411_v27, %v415_v49  ;;  %v421_v39 = vshll.u32 %v6623_v34, 16  ;;  %v427_v28 = vshll.u32 %v6632_v17, 16  ;;  %v431_v62 = vshrl.u32 %v6632_v17, 16  ;;  %9128 = vst [vmem:[#allocation11_spill] sm:$0xff] %v6654_v44  ;;  %v6657_v22 = vld [vmem:[%s6381_s29 + $0xb0] sm:$0x1] }
  0x47   : > { %v5149_v3 = vcombine.low %v406_v18, %v416_v54  ;;  %v593_v32 = vrot.slane %v592_v45, 4  ;;  %v602_v55 = vor.u32 %v601_v61, %v597_v37  ;;  %v437_v20 = vshll.u32 %v6638_v2, 16  ;;  %9129 = vst [vmem:[#allocation12_spill] sm:$0xff] %v6657_v22 }
  0x48   : > { %v423_v59 = vrot.slane %v421_v39, 5  ;;  %v429_v0 = vrot.slane %v427_v28, 5  ;;  %v433_v50 = vrot.slane %v431_v62, 4  ;;  %v610_v49 = vshrl.u32 %v6644_v42, 16  ;;  %v6666_v62 = vld [vmem:[%s6381_s29 + $0x54] sm:$0xf] }
  0x49   : > { %5911 = vmatmul.mubr.msk.bf16.gmra.mxu0 %vm707_vm3, %v5149_v3  ;;  %v598_v18 = vsel %vm6425_vm4, %v593_v32, %v597_v37  ;;  %v603_v27 = vrot.slane %v602_v55, 4  ;;  %v439_v61 = vrot.slane %v437_v20, 5  ;;  %v613_v45 = vshll.u32 %v6644_v42, 16  ;;  %v6673_v55 = vld [vmem:[%s6381_s29 + $0x58] sm:$0xf] }
  0x4a   : > { %v424_v54 = vor.u32 %v423_v59, %v420_v4  ;;  %v434_v56 = vor.u32 %v433_v50, %v429_v0  ;;  %v612_v39 = vrot.slane %v610_v49, 4  ;;  %v619_v28 = vshll.u32 %v6654_v44, 16  ;;  %v6676_v49 = vld [vmem:[%s6381_s29 + $0x5c] sm:$0x1] }
  0x4b   : > { %v608_v3 = vsel %vm6425_vm4, %v603_v27, %v607_v57  ;;  %v615_v26 = vrot.slane %v613_v45, 5  ;;  %v623_v37 = vshrl.u32 %v6654_v44, 16  ;;  %v629_v32 = vshll.u32 %v6657_v22, 16  ;;  %v1213_v22 = vld [vmem:[%s6381_s29] sm:$0xe] }
  0x4c   : > { %v5157_v4 = vcombine.low %v598_v18, %v608_v3  ;;  %v425_v20 = vrot.slane %v424_v54, 4  ;;  %v435_v59 = vrot.slane %v434_v56, 4  ;;  %v621_v50 = vrot.slane %v619_v28, 5  ;;  %v6687_v54 = vld [vmem:[%s6381_s29 + $0xb4] sm:$0xf] }
  0x4d   : > { %v616_v42 = vor.u32 %v615_v26, %v612_v39  ;;  %v625_v52 = vrot.slane %v623_v37, 4  ;;  %v631_v13 = vrot.slane %v629_v32, 5  ;;  %v442_v57 = vshrl.u32 %v6666_v62, 16  ;;  %9130 = vst [vmem:[#allocation13_spill] sm:$0xff] %v6687_v54  ;;  %v6690_v37 = vld [vmem:[%s6381_s29 + $0xb8] sm:$0xf] }
  0x4e   : > { %5927 = vmatmul.mubr.msk.bf16.gmra.mxu1 %vm707_vm3, %v5157_v4  ;;  %v430_v27 = vsel %vm6425_vm4, %v425_v20, %v429_v0  ;;  %v440_v18 = vsel %vm6425_vm4, %v435_v59, %v439_v61  ;;  %v445_v56 = vshll.u32 %v6666_v62, 16  ;;  %v451_v45 = vshll.u32 %v6673_v55, 16  ;;  %v6695_v61 = vld [vmem:[%s6381_s29 + $0xbc] sm:$0x1] }
  0x4f   : > { %v5150_v26 = vcombine.low %v430_v27, %v440_v18  ;;  %v617_v39 = vrot.slane %v616_v42, 4  ;;  %v626_v28 = vor.u32 %v625_v52, %v621_v50  ;;  %v444_v3 = vrot.slane %v442_v57, 4 }
  0x50   : > { %v447_v32 = vrot.slane %v445_v56, 5  ;;  %v453_v4 = vrot.slane %v451_v45, 5  ;;  %v455_v0 = vshrl.u32 %v6673_v55, 16  ;;  %v461_v20 = vshll.u32 %v6676_v49, 16 }
  0x51   : > { %5914 = vmatprep.mubr.msk.bf16.mxu0 %vm707_vm3, %v5150_v26  ;;  %v622_v59 = vsel %vm6425_vm4, %v617_v39, %v621_v50  ;;  %v627_v27 = vrot.slane %v626_v28, 4  ;;  %v634_v52 = vshrl.u32 %v6687_v54, 16  ;;  %v637_v42 = vshll.u32 %v6687_v54, 16 }
  0x52   : > { %v448_v57 = vor.u32 %v447_v32, %v444_v3  ;;  %v457_v18 = vrot.slane %v455_v0, 4  ;;  %v463_v56 = vrot.slane %v461_v20, 5  ;;  %v643_v45 = vshll.u32 %v6690_v37, 16 }
  0x53   : > { %v632_v44 = vsel %vm6425_vm4, %v627_v27, %v631_v13  ;;  %v636_v16 = vrot.slane %v634_v52, 4  ;;  %v639_v26 = vrot.slane %v637_v42, 5  ;;  %v647_v38 = vshrl.u32 %v6690_v37, 16 }
  0x54   : > { %v5158_v50 = vcombine.low %v622_v59, %v632_v44  ;;  %v449_v39 = vrot.slane %v448_v57, 4  ;;  %v458_v28 = vor.u32 %v457_v18, %v453_v4  ;;  %v645_v47 = vrot.slane %v643_v45, 5  ;;  %v1215_v57 = vld [vmem:[%s6381_s29 + $0x18] sm:$0xe] }
  0x55   : > { %v640_v54 = vor.u32 %v639_v26, %v636_v16  ;;  %v649_v3 = vrot.slane %v647_v38, 4  ;;  %v653_v32 = vshll.u32 %v6695_v61, 16  ;;  %v5208_v13 = vrot.slane %v1213_v22, 9 }
  0x56   : > { %5930 = vmatprep.mubr.msk.bf16.mxu1 %vm707_vm3, %v5158_v50  ;;  %v454_v44 = vsel %vm6425_vm4, %v449_v39, %v453_v4  ;;  %v459_v20 = vrot.slane %v458_v28, 4  ;;  %v1266_v59 = vrot.slane %v6390_v6, 5  ;;  %v5177_v38 = vcombine.low %v6418_v29, %v6421_v30 }
  0x57   : > { %v641_v16 = vrot.slane %v640_v54, 4  ;;  %v650_v27 = vor.u32 %v649_v3, %v645_v47  ;;  %v655_v52 = vrot.slane %v653_v32, 5  ;;  %v5209_v42 = vrot.slane %v1214_v51, 9 }
  0x58   : > { %v464_v18 = vsel %vm6425_vm4, %v459_v20, %v463_v56  ;;  %v1267_v22 = vsel %vm6711_vm7, %v5208_v13, %v1266_v59  ;;  %v1268_v45 = vrot.slane %v1266_v59, 4  ;;  %v9133_v4 = vrot.slane %v6421_v30, 5 }
  0x59   : > { %v5151_v50 = vcombine.low %v454_v44, %v464_v18  ;;  %v646_v54 = vsel %vm6425_vm4, %v641_v16, %v645_v47  ;;  %v651_v39 = vrot.slane %v650_v27, 4  ;;  %v5176_v51 = vcombine.low %v6387_v5, %v6390_v6  ;;  %v1216_v27 = vld [vmem:[%s6381_s29 + $0x24] sm:$0xe] }
  0x5a   : > { %v1275_v26 = vrot.slane %v9133_v4, 4  ;;  %v9134_v28 = vrot.slane %v6393_v7, 5  ;;  %v9135_v3 = vmov %v9133_v4  ;;  %v5178_v13 = vcombine.low %v6460_v8, %v6467_v21  ;;  %v1218_v4 = vld [vmem:[%s6381_s29 + $0x3c] sm:$0xe] }
  0x5b   : > { %v1274_v32 = vsel %vm6711_vm7, %v5209_v42, %v9135_v3  ;;  %v5210_v44 = vrot.slane %v1215_v57, 9  ;;  %5915 = vmatmul.mubr.msk.bf16.gmra.mxu0 %vm707_vm3, %v5151_v50  ;;  %v656_v47 = vsel %vm6425_vm4, %v651_v39, %v655_v52  ;;  %v9136_v6 = vrot.slane %v6431_v41, 5  ;;  %v1217_v42 = vld [vmem:[%s6381_s29 + $0x30] sm:$0xe]  ;;  %v1219_v39 = vld [vmem:[%s6381_s29 + $0x48] sm:$0xe] }
  0x5c   : > { %v1270_v56 = vsel %vm6711_vm7, %v1268_v45, %v9134_v28  ;;  %v1280_v20 = vrot.slane %v6467_v21, 5  ;;  %v5159_v59 = vcombine.low %v646_v54, %v656_v47  ;;  %v1283_v16 = vrot.slane %v6473_v25, 5  ;;  %v1220_v47 = vld [vmem:[%s6381_s29 + $0x54] sm:$0xe]  ;;  %v7006_v21 = vld [vmem:[%s6381_s29 + $0x2c] sm:$0x1] }
  0x5d   : > { %v5225_v5 = vcombine.low %v1267_v22, %v1270_v56  ;;  %v1277_v7 = vsel %vm6711_vm7, %v1275_v26, %v9136_v6  ;;  %v1837_v52 = vsel %vm756_vm0, %v6518_v19, 0  ;;  %v1287_v18 = vrot.slane %v6512_v10, 5 }
  0x5e   : > { %v1281_v41 = vsel %vm6711_vm7, %v5210_v44, %v1280_v20  ;;  %v1282_v57 = vrot.slane %v1280_v20, 4  ;;  %5931 = vmatmul.mubr.msk.bf16.gmra.mxu1 %vm707_vm3, %v5159_v59  ;;  %v5226_v22 = vcombine.low %v1274_v32, %v1277_v7  ;;  %v2563_v25 = vsel %vm756_vm0, %v6486_v40, 0 }
  0x5f   : > { %5970 = vmatprep.mubr.msk.bf16.mxu0 %vm707_vm3, %v5225_v5  ;;  %v1294_v45 = vrot.slane %v6558_v9, 5  ;;  %5936 = vmatprep.mubr.msk.bf16.mxu1 %vm707_vm3, %v5176_v51  ;;  %v5211_v26 = vrot.slane %v1216_v27, 9  ;;  %v1290_v50 = vrot.slane %v6523_v24, 5  ;;  %v5212_v54 = vrot.slane %v1217_v42, 9  ;;  %v6778_v24 = vld [vmem:[%s9080_s1 + $0x18] sm:$0xf] }
  0x60   : > { %v1284_v19 = vsel %vm6711_vm7, %v1282_v57, %v1283_v16  ;;  %v1289_v56 = vrot.slane %v1287_v18, 4  ;;  %v1297_v32 = vrot.slane %v6566_v33, 5  ;;  %v5213_v44 = vrot.slane %v1218_v4, 9 }
  0x61   : > { %v5227_v28 = vcombine.low %v1281_v41, %v1284_v19  ;;  %v1296_v3 = vrot.slane %v1294_v45, 4  ;;  %v1301_v40 = vrot.slane %v6595_v23, 5  ;;  %v1325_v5 = vrot.slane %v6407_v15, 5 }
  0x62   : > { %v1304_v51 = vrot.slane %v6604_v48, 5  ;;  %v5214_v6 = vrot.slane %v1219_v39, 9  ;;  %v1308_v7 = vrot.slane %v6632_v17, 5  ;;  %v5179_v33 = vcombine.low %v6504_v1, %v6512_v10  ;;  %v1221_v1 = vld [vmem:[%s6381_s29 + $0x60] sm:$0xe] }
  0x63   : > { %5971 = vmatmul.mubr.msk.bf16.vlgmr.msra.gmra.mxu0 %vm707_vm3, %v5226_v22  ;;  %v1288_v20 = vsel %vm6711_vm7, %v5211_v26, %v1287_v18  ;;  %v1303_v59 = vrot.slane %v1301_v40, 4  ;;  %v1311_v16 = vrot.slane %v6638_v2, 5  ;;  %v1291_v48 = vsel %vm6711_vm7, %v1289_v56, %v1290_v50  ;;  %v6806_v22 = vld [vmem:[%s9080_s1 + $0x14] sm:$0xf]  ;;  %v6831_v50 = vld [vmem:[%s6381_s29 + $0x6c] sm:$0xe] }
  0x64   : > { %6037 = vmatpush3.bf16.msra.mxu0 %v2563_v25  ;;  %5974 = vmatprep.mubr.msk.bf16.mxu0 %vm707_vm3, %v5227_v28  ;;  %v1295_v27 = vsel %vm6711_vm7, %v5212_v54, %v1294_v45  ;;  %v1298_v42 = vsel %vm6711_vm7, %v1296_v3, %v1297_v32  ;;  %v1310_v41 = vrot.slane %v1308_v7, 4  ;;  %v6796_v10 = vsel %vm6711_vm7, %v5213_v44, %v1301_v40  ;;  %v1224_v39 = vld [vmem:[%s6381_s29 + $0x84] sm:$0xe]  ;;  %v6860_v44 = vld [vmem:[%s6381_s29 + $0x78] sm:$0xe] }
  0x65   : > { %v6800_v2 = vsel %vm6711_vm7, %v5214_v6, %v1308_v7  ;;  %v5215_v57 = vrot.slane %v1220_v47, 9  ;;  %v1315_v18 = vrot.slane %v6673_v55, 5  ;;  %6215 = vmatprep.subr.msk.bf16.mxu0 %vm756_vm0, %v6778_v24  ;;  %v6816_v25 = vsel %vm6711_vm7, %v1303_v59, %v1304_v51  ;;  %v1225_v40 = vld [vmem:[%s6381_s29 + $0x90] sm:$0xe] }
  0x66   : > { %5937 = vmatmul.mubr.msk.bf16.vlgmr.msra.gmra.mxu1 %vm707_vm3, %v5177_v38  ;;  %v6820_v45 = vsel %vm6711_vm7, %v1310_v41, %v1311_v16  ;;  %v1318_v4 = vrot.slane %v6676_v49, 5  ;;  %v1322_v19 = vrot.slane %v6404_v14, 5  ;;  %v5228_v29 = vcombine.low %v1288_v20, %v1291_v48  ;;  %v9137_v48 = vld [vmem:[#allocation3_spill] sm:$0xff] }
  0x67   : > { %6003 = vmatpush3.bf16.msra.mxu1 %v1837_v52  ;;  %5940 = vmatprep.mubr.msk.bf16.mxu1 %vm707_vm3, %v5178_v13  ;;  %v5180_v30 = vcombine.low %v6553_v60, %v6558_v9  ;;  %v1317_v38 = vrot.slane %v1315_v18, 4  ;;  %v5216_v26 = vrot.slane %v1221_v1, 9  ;;  %v5229_v49 = vcombine.low %v1295_v27, %v1298_v42  ;;  %v1226_v42 = vld [vmem:[%s6381_s29 + $0x9c] sm:$0xe] }
  0x68   : > { %v5181_v52 = vcombine.low %v6590_v11, %v6595_v23  ;;  %v5182_v8 = vcombine.low %v6623_v34, %v6632_v17  ;;  %6214 = vmatprep.subr.msk.bf16.mxu1 %vm756_vm0, %v6806_v22  ;;  %v5230_v60 = vcombine.low %v6796_v10, %v6816_v25  ;;  %v5231_v9 = vcombine.low %v6800_v2, %v6820_v45  ;;  %v9138_v10 = vld [vmem:[#allocation5_spill] sm:$0xff]  ;;  %v9139_v2 = vld [vmem:[#allocation4_spill] sm:$0xff] }
  0x69   : > { %v1324_v54 = vrot.slane %v1322_v19, 4  ;;  %v6850_v28 = vsel %vm6711_vm7, %v5215_v57, %v1315_v18  ;;  %v6854_v56 = vsel %vm6711_vm7, %v1317_v38, %v1318_v4  ;;  %v5217_v32 = vrot.slane %v6831_v50, 9  ;;  %v1227_v18 = vld [vmem:[%s6381_s29 + $0xa8] sm:$0xe]  ;;  %v9141_v38 = vld [vmem:[#allocation8_spill] sm:$0xff] }
  0x6a   : > { %v6866_v47 = vsel %vm6711_vm7, %v5216_v26, %v1322_v19  ;;  %v1329_v51 = vrot.slane %v6446_v58, 5  ;;  %v1332_v6 = vrot.slane %v6454_v63, 5  ;;  %v5219_v59 = vrot.slane %v1224_v39, 9  ;;  %v9140_v19 = vld [vmem:[#allocation6_spill] sm:$0xff]  ;;  %v9142_v26 = vld [vmem:[#allocation7_spill] sm:$0xff] }
  0x6b   : > { %5975 = vmatmul.mubr.msk.bf16.gmra.mxu0 %vm707_vm3, %v5228_v29  ;;  %v1343_v16 = vrot.slane %v6537_v43, 5  ;;  %v1346_v27 = vrot.slane %v9137_v48, 5  ;;  %v5232_v41 = vcombine.low %v6850_v28, %v6854_v56  ;;  %v6884_v63 = vsel %vm6711_vm7, %v1324_v54, %v1325_v5  ;;  %v9144_v48 = vld [vmem:[#allocation11_spill] sm:$0xff] }
  0x6c   : > { %5978 = vmatprep.mubr.msk.bf16.mxu0 %vm707_vm3, %v5229_v49  ;;  %v5218_v1 = vrot.slane %v6860_v44, 9  ;;  %v5220_v4 = vrot.slane %v1225_v40, 9  ;;  %v1350_v15 = vrot.slane %v9138_v10, 5  ;;  %v1331_v5 = vrot.slane %v1329_v51, 4  ;;  %v5322_v57 = vld [vmem:[%s6381_s29 + $0xc] sm:$0xf] }
  0x6d   : > { %v6893_v25 = vsel %vm6711_vm7, %v5219_v59, %v1343_v16  ;;  %v1345_v45 = vrot.slane %v1343_v16, 4  ;;  %v1353_v29 = vrot.slane %v9140_v19, 5  ;;  %v5221_v49 = vrot.slane %v1226_v42, 9  ;;  %v9143_v59 = vld [vmem:[#allocation9_spill] sm:$0xff]  ;;  %v9145_v42 = vld [vmem:[#allocation10_spill] sm:$0xff] }
  0x6e   : > { %5941 = vmatmul.mubr.msk.bf16.gmra.mxu1 %vm707_vm3, %v5179_v33  ;;  %v1336_v33 = vrot.slane %v6491_v46, 5  ;;  %v6907_v39 = vsel %vm6711_vm7, %v5220_v4, %v1350_v15  ;;  %v1352_v44 = vrot.slane %v1350_v15, 4  ;;  %v1357_v40 = vrot.slane %v9141_v38, 5  ;;  %v9146_v15 = vld [vmem:[#allocation12_spill] sm:$0xff] }
  0x6f   : > { %5944 = vmatprep.mubr.msk.bf16.mxu1 %vm707_vm3, %v5180_v30  ;;  %v6903_v54 = vsel %vm6711_vm7, %v1345_v45, %v1346_v27  ;;  %v1360_v16 = vrot.slane %v9143_v59, 5  ;;  %v5222_v45 = vrot.slane %v1227_v18, 9  ;;  %v1364_v4 = vrot.slane %v9144_v48, 5 }
  0x70   : > { %v6917_v27 = vsel %vm6711_vm7, %v1352_v44, %v1353_v29  ;;  %v1367_v50 = vrot.slane %v9146_v15, 5  ;;  %v6927_v19 = vsel %vm6711_vm7, %v5221_v49, %v1357_v40  ;;  %v1359_v7 = vrot.slane %v1357_v40, 4  ;;  %v9147_v29 = vld [vmem:[#allocation13_spill] sm:$0xff]  ;;  %v9148_v15 = vld [vmem:[#allocation2_spill] sm:$0xff]  ;;  %v6942_v49 = vld [vmem:[%s6381_s29 + $0x10] sm:$0xf] }
  0x71   : > { %v6934_v18 = vsel %vm6711_vm7, %v5217_v32, %v1329_v51  ;;  %v6939_v59 = vsel %vm6711_vm7, %v5222_v45, %v1364_v4  ;;  %v1366_v30 = vrot.slane %v1364_v4, 4  ;;  %v5325_v40 = vld [vmem:[%s6381_s29 + $0x18] sm:$0xf]  ;;  %v1338_v20 = vrot.slane %v1336_v33, 4 }
  0x72   : > { %v2081_v44 = vshrl.u32 %v5322_v57, 16  ;;  %v2084_v32 = vshll.u32 %v5322_v57, 16  ;;  %v5233_v51 = vcombine.low %v6866_v47, %v6884_v63  ;;  %v6957_v45 = vsel %vm6711_vm7, %v1331_v5, %v1332_v6  ;;  %v1228_v57 = vld [vmem:[%s6381_s29 + $0xb4] sm:$0xe]  ;;  %v6978_v47 = vld [vmem:[%s6381_s29 + $0x14] sm:$0x1] }
  0x73   : > { %5979 = vmatmul.mubr.msk.bf16.gmra.mxu0 %vm707_vm3, %v5230_v60  ;;  %v1339_v60 = vrot.slane %v9148_v15, 5  ;;  %v6972_v11 = vsel %vm6711_vm7, %v5218_v1, %v1336_v33  ;;  %v2090_v6 = vshll.u32 %v6942_v49, 16  ;;  %v5326_v63 = vld [vmem:[%s6381_s29 + $0x1c] sm:$0xf]  ;;  %v2094_v17 = vshrl.u32 %v6942_v49, 16 }
  0x74   : > { %5982 = vmatprep.mubr.msk.bf16.mxu0 %vm707_vm3, %v5231_v9  ;;  %v6947_v9 = vsel %vm6711_vm7, %v1359_v7, %v1360_v16  ;;  %v6963_v7 = vsel %vm6711_vm7, %v1366_v30, %v1367_v50  ;;  %v2083_v5 = vrot.slane %v2081_v44, 4  ;;  %v2086_v34 = vrot.slane %v2084_v32, 5  ;;  %v5328_v15 = vld [vmem:[%s6381_s29 + $0x24] sm:$0xf]  ;;  %v6991_v44 = vld [vmem:[%s6381_s29 + $0x28] sm:$0xf] }
  0x75   : > { %v2105_v50 = vshrl.u32 %v5325_v40, 16  ;;  %v1340_v1 = vsel %vm6711_vm7, %v1338_v20, %v1339_v60  ;;  %v5223_v33 = vrot.slane %v1228_v57, 9  ;;  %v6986_v30 = vrot.slane %v2090_v6, 5 }
  0x76   : > { %5945 = vmatmul.mubr.msk.bf16.gmra.mxu1 %vm707_vm3, %v5181_v52  ;;  %v1371_v52 = vrot.slane %v6690_v37, 5  ;;  %v2108_v16 = vshll.u32 %v5325_v40, 16  ;;  %v1374_v23 = vrot.slane %v6695_v61, 5  ;;  %v2096_v4 = vrot.slane %v2094_v17, 4 }
  0x77   : > { %5948 = vmatprep.mubr.msk.bf16.mxu1 %vm707_vm3, %v5182_v8  ;;  %v5327_v8 = vld [vmem:[%s6381_s29 + $0x20] sm:$0x1]  ;;  %v2107_v3 = vrot.slane %v2105_v50, 4  ;;  %v2114_v13 = vshll.u32 %v5326_v63, 16  ;;  %v2100_v20 = vshll.u32 %v6978_v47, 16  ;;  %v2118_v57 = vshrl.u32 %v5326_v63, 16 }
  0x78   : > { %v1373_v32 = vrot.slane %v1371_v52, 4  ;;  %v2110_v60 = vrot.slane %v2108_v16, 5  ;;  %v5234_v61 = vcombine.low %v6934_v18, %v6957_v45  ;;  %v5235_v40 = vcombine.low %v6972_v11, %v1340_v1 }
  0x79   : > { %v2087_v6 = vor.u32 %v2086_v34, %v2083_v5  ;;  %v7002_v17 = vrot.slane %v2114_v13, 5  ;;  %v2097_v28 = vor.u32 %v2096_v4, %v6986_v30  ;;  %v2124_v50 = vshll.u32 %v5327_v8, 16  ;;  %v7029_v5 = vld [vmem:[%s6381_s29 + $0x34] sm:$0xf] }
  0x7a   : > { %v2111_v56 = vor.u32 %v2110_v60, %v2107_v3  ;;  %v7014_v18 = vsel %vm6711_vm7, %v5223_v33, %v1371_v52  ;;  %v2129_v13 = vshrl.u32 %v5328_v15, 16  ;;  %v2132_v45 = vshll.u32 %v5328_v15, 16  ;;  %v5331_v52 = vld [vmem:[%s6381_s29 + $0x30] sm:$0xf] }
  0x7b   : > { %5983 = vmatmul.mubr.msk.bf16.gmra.mxu0 %vm707_vm3, %v5232_v41  ;;  %v2120_v41 = vrot.slane %v2118_v57, 4  ;;  %v2138_v11 = vshll.u32 %v6991_v44, 16  ;;  %v9150_v3 = vcombine.low %v6400_v12, %v6404_v14  ;;  %v7023_v4 = vsel %vm6711_vm7, %v1373_v32, %v1374_v23 }
  0x7c   : > { %5986 = vmatprep.mubr.msk.bf16.mxu0 %vm707_vm3, %v5233_v51  ;;  %v9149_v51 = vcombine.low %v6666_v62, %v6673_v55  ;;  %v2102_v62 = vrot.slane %v2100_v20, 5  ;;  %v2142_v63 = vshrl.u32 %v6991_v44, 16  ;;  %v2088_v34 = vrot.slane %v2087_v6, 4 }
  0x7d   : > { %v2121_v55 = vor.u32 %v2120_v41, %v7002_v17  ;;  %v2131_v8 = vrot.slane %v2129_v13, 4  ;;  %v2134_v1 = vrot.slane %v2132_v45, 5  ;;  %v7031_v33 = vrot.slane %v2138_v11, 5  ;;  %v7037_v41 = vld [vmem:[%s6381_s29 + $0x38] sm:$0x1] }
  0x7e   : > { %5949 = vmatmul.mubr.msk.bf16.gmra.mxu1 %vm707_vm3, %v9149_v51  ;;  %v2098_v12 = vrot.slane %v2097_v28, 4  ;;  %v2112_v14 = vrot.slane %v2111_v56, 4  ;;  %v2126_v16 = vrot.slane %v2124_v50, 5  ;;  %v2144_v23 = vrot.slane %v2142_v63, 4  ;;  %v5334_v13 = vld [vmem:[%s6381_s29 + $0x3c] sm:$0xf] }
  0x7f   : > { %5952 = vmatprep.mubr.msk.bf16.mxu1 %vm707_vm3, %v9150_v3  ;;  %v2122_v15 = vrot.slane %v2121_v55, 4  ;;  %v2148_v32 = vshll.u32 %v7006_v21, 16  ;;  %v2153_v20 = vshrl.u32 %v5331_v52, 16  ;;  %v2156_v60 = vshll.u32 %v5331_v52, 16 }
  0x80   : > { %v2135_v57 = vor.u32 %v2134_v1, %v2131_v8  ;;  %v2145_v6 = vor.u32 %v2144_v23, %v7031_v33  ;;  %v2162_v28 = vshll.u32 %v7029_v5, 16  ;;  %v2166_v56 = vshrl.u32 %v7029_v5, 16  ;;  %v5337_v8 = vld [vmem:[%s6381_s29 + $0x48] sm:$0xf]  ;;  %v7064_v1 = vld [vmem:[%s6381_s29 + $0x4c] sm:$0xf] }
  0x81   : > { %v2155_v50 = vrot.slane %v2153_v20, 4  ;;  %v2158_v51 = vrot.slane %v2156_v60, 5  ;;  %v9151_v3 = vcombine.low %v6442_v53, %v6446_v58  ;;  %v5240_v55 = vcombine.low %v7014_v18, %v7023_v4 }
  0x82   : > { %v7043_v45 = vrot.slane %v2162_v28, 5  ;;  %v2168_v11 = vrot.slane %v2166_v56, 4  ;;  %v2103_v63 = vsel %vm6425_vm4, %v2098_v12, %v2102_v62  ;;  %v2117_v52 = vsel %vm6425_vm4, %v2112_v14, %v7002_v17 }
  0x83   : > { %5987 = vmatmul.mubr.msk.bf16.gmra.mxu0 %vm707_vm3, %v5234_v61  ;;  %v7046_v61 = vld [vmem:[%s6381_s29 + $0x40] sm:$0xf]  ;;  %v9152_v53 = vcombine.low %v6480_v35, %v6491_v46  ;;  %v2127_v58 = vsel %vm6425_vm4, %v2122_v15, %v2126_v16  ;;  %v2136_v23 = vrot.slane %v2135_v57, 4  ;;  %v2159_v20 = vor.u32 %v2158_v51, %v2155_v50  ;;  %v7098_v50 = vld [vmem:[%s6381_s29 + $0x44] sm:$0x1] }
  0x84   : > { %5990 = vmatprep.mubr.msk.bf16.mxu0 %vm707_vm3, %v5235_v40  ;;  %v2093_v40 = vsel %vm6425_vm4, %v2088_v34, %v6986_v30  ;;  %v2146_v30 = vrot.slane %v2145_v6, 4  ;;  %v2150_v34 = vrot.slane %v2148_v32, 5  ;;  %v2172_v62 = vshll.u32 %v7037_v41, 16  ;;  %v5340_v51 = vld [vmem:[%s6381_s29 + $0x54] sm:$0xf] }
  0x85   : > { %v2177_v12 = vshrl.u32 %v5334_v13, 16  ;;  %v2180_v17 = vshll.u32 %v5334_v13, 16  ;;  %v7075_v14 = vsel %vm756_vm0, %v6806_v22, 0  ;;  %v2169_v35 = vor.u32 %v2168_v11, %v7043_v45 }
  0x86   : > { %5953 = vmatmul.mubr.msk.bf16.gmra.mxu1 %vm707_vm3, %v9151_v3  ;;  %v2186_v46 = vshll.u32 %v7046_v61, 16  ;;  %v2190_v16 = vshrl.u32 %v7046_v61, 16  ;;  %v7080_v15 = vcombine.low %v2093_v40, %v2103_v63  ;;  %v7084_v32 = vsel %vm756_vm0, %v6778_v24, 0  ;;  %v7107_v40 = vld [vmem:[%s6381_s29 + $0x58] sm:$0xf] }
  0x87   : > { %5956 = vmatprep.mubr.msk.bf16.mxu1 %vm707_vm3, %v9152_v53  ;;  %v2201_v60 = vshrl.u32 %v5337_v8, 16  ;;  %v2204_v57 = vshll.u32 %v5337_v8, 16  ;;  %v9153_v6 = vcombine.low %v6893_v25, %v6903_v54  ;;  %v7090_v22 = vcombine.low %v2117_v52, %v2127_v58  ;;  %v7112_v8 = vld [vmem:[%s6381_s29 + $0x50] sm:$0x1] }
  0x88   : > { %v2141_v28 = vsel %vm6425_vm4, %v2136_v23, %v7031_v33  ;;  %v2151_v56 = vsel %vm6425_vm4, %v2146_v30, %v2150_v34  ;;  %v2210_v24 = vshll.u32 %v7064_v1, 16  ;;  %v9154_v25 = vcombine.low %v6907_v39, %v6917_v27  ;;  %v5343_v34 = vld [vmem:[%s6381_s29 + $0x60] sm:$0xf] }
  0x89   : > { %v2160_v54 = vrot.slane %v2159_v20, 4  ;;  %v2174_v13 = vrot.slane %v2172_v62, 5  ;;  %v2179_v11 = vrot.slane %v2177_v12, 4  ;;  %v2182_v3 = vrot.slane %v2180_v17, 5 }
  0x8a   : > { %v2170_v33 = vrot.slane %v2169_v35, 4  ;;  %v7109_v63 = vrot.slane %v2186_v46, 5  ;;  %v2192_v52 = vrot.slane %v2190_v16, 4  ;;  %v2214_v53 = vshrl.u32 %v7064_v1, 16  ;;  %v7129_v35 = vld [vmem:[%s6381_s29 + $0x5c] sm:$0x1] }
  0x8b   : > { %5991 = vmatmul.mubr.msk.bf16.gmra.mxu0 %vm707_vm3, %v9153_v6  ;;  %v9155_v39 = vcombine.low %v6530_v36, %v6537_v43  ;;  %v2203_v27 = vrot.slane %v2201_v60, 4  ;;  %v2206_v58 = vrot.slane %v2204_v57, 5  ;;  %v2225_v23 = vshrl.u32 %v5340_v51, 16 }
  0x8c   : > { %5994 = vmatprep.mubr.msk.bf16.mxu0 %vm707_vm3, %v9154_v25  ;;  %v2228_v30 = vshll.u32 %v5340_v51, 16  ;;  %v9156_v20 = vcombine.low %v9139_v2, %v9138_v10  ;;  %v7124_v62 = vcombine.low %v2141_v28, %v2151_v56  ;;  %v7126_v12 = vrot.slane %v2210_v24, 5  ;;  %v7142_v28 = vld [vmem:[%s6381_s29 + $0x64] sm:$0xf] }
  0x8d   : > { %v2216_v17 = vrot.slane %v2214_v53, 4  ;;  %v2234_v36 = vshll.u32 %v7107_v40, 16  ;;  %v2196_v43 = vshll.u32 %v7098_v50, 16  ;;  %v2227_v46 = vrot.slane %v2225_v23, 4 }
  0x8e   : > { %5957 = vmatmul.mubr.msk.bf16.gmra.mxu1 %vm707_vm3, %v9155_v39  ;;  %v2230_v16 = vrot.slane %v2228_v30, 5  ;;  %v2238_v60 = vshrl.u32 %v7107_v40, 16  ;;  %v2165_v10 = vsel %vm6425_vm4, %v2160_v54, %v7043_v45  ;;  %v2175_v2 = vsel %vm6425_vm4, %v2170_v33, %v2174_v13  ;;  %v7164_v30 = vld [vmem:[%s6381_s29 + $0x68] sm:$0x1] }
  0x8f   : > { %5960 = vmatprep.mubr.msk.bf16.mxu1 %vm707_vm3, %v9156_v20  ;;  %v2183_v57 = vor.u32 %v2182_v3, %v2179_v11  ;;  %v7139_v6 = vrot.slane %v2234_v36, 5  ;;  %v2193_v56 = vor.u32 %v2192_v52, %v7109_v63  ;;  %v2207_v24 = vor.u32 %v2206_v58, %v2203_v27  ;;  %v5346_v3 = vld [vmem:[%s6381_s29 + $0x6c] sm:$0xf]  ;;  %v7161_v27 = vld [vmem:[%s6381_s29 + $0x70] sm:$0xf] }
  0x90   : > { %v2220_v51 = vshll.u32 %v7112_v8, 16  ;;  %v2240_v25 = vrot.slane %v2238_v60, 4  ;;  %v9157_v53 = vcombine.low %v6927_v19, %v6947_v9  ;;  %v2217_v45 = vor.u32 %v2216_v17, %v7126_v12 }
  0x91   : > { %v2231_v54 = vor.u32 %v2230_v16, %v2227_v46  ;;  %v2249_v13 = vshrl.u32 %v5343_v34, 16  ;;  %v2252_v11 = vshll.u32 %v5343_v34, 16  ;;  %v9158_v33 = vcombine.low %v6939_v59, %v6963_v7  ;;  %v5349_v16 = vld [vmem:[%s6381_s29 + $0x78] sm:$0xf] }
  0x92   : > { %v2241_v52 = vor.u32 %v2240_v25, %v7139_v6  ;;  %v2244_v39 = vshll.u32 %v7129_v35, 16  ;;  %v2258_v19 = vshll.u32 %v7142_v28, 16  ;;  %v2262_v9 = vshrl.u32 %v7142_v28, 16 }
  0x93   : > { %5995 = vmatmul.mubr.msk.bf16.gmra.mxu0 %vm707_vm3, %v9157_v53  ;;  %v2184_v58 = vrot.slane %v2183_v57, 4  ;;  %v2198_v23 = vrot.slane %v2196_v43, 5  ;;  %v2251_v34 = vrot.slane %v2249_v13, 4  ;;  %v2254_v20 = vrot.slane %v2252_v11, 5 }
  0x94   : > { %5998 = vmatprep.mubr.msk.bf16.mxu0 %vm707_vm3, %v9158_v33  ;;  %v9159_v59 = vcombine.low %v9142_v26, %v9141_v38  ;;  %v7170_v7 = vcombine.low %v2165_v10, %v2175_v2  ;;  %v2194_v17 = vrot.slane %v2193_v56, 4  ;;  %v2208_v36 = vrot.slane %v2207_v24, 4  ;;  %v7180_v2 = vld [vmem:[%s6381_s29 + $0x7c] sm:$0xf] }
  0x95   : > { %v7172_v46 = vrot.slane %v2258_v19, 5  ;;  %v9160_v43 = vcombine.low %v9145_v42, %v9144_v48  ;;  %v2218_v60 = vrot.slane %v2217_v45, 4  ;;  %v2222_v57 = vrot.slane %v2220_v51, 5  ;;  %9161 = vst [vmem:[#allocation3_spill] sm:$0xff] %v7180_v2  ;;  %v5352_v19 = vld [vmem:[%s6381_s29 + $0x84] sm:$0xf] }
  0x96   : > { %5961 = vmatmul.mubr.msk.bf16.gmra.mxu1 %vm707_vm3, %v9159_v59  ;;  %v2232_v25 = vrot.slane %v2231_v54, 4  ;;  %v2264_v38 = vrot.slane %v2262_v9, 4  ;;  %v2242_v26 = vrot.slane %v2241_v52, 4  ;;  %v2246_v53 = vrot.slane %v2244_v39, 5 }
  0x97   : > { %5964 = vmatprep.mubr.msk.bf16.mxu1 %vm707_vm3, %v9160_v43  ;;  %v2255_v13 = vor.u32 %v2254_v20, %v2251_v34  ;;  %v2273_v10 = vshrl.u32 %v5346_v3, 16  ;;  %v2189_v56 = vsel %vm6425_vm4, %v2184_v58, %v7109_v63  ;;  %v2276_v24 = vshll.u32 %v5346_v3, 16  ;;  %v6259_v63 = vld [vmem:[%s6381_s29 + $0xc] sm:$0xff]   ;;  %v7214_v34 = vld [vmem:[%s6381_s29 + $0x88] sm:$0xf] }
  0x98   : > { %v2282_v48 = vshll.u32 %v7161_v27, 16  ;;  %v2286_v42 = vshrl.u32 %v7161_v27, 16  ;;  %v2199_v51 = vsel %vm6425_vm4, %v2194_v17, %v2198_v23  ;;  %v2213_v45 = vsel %vm6425_vm4, %v2208_v36, %v7126_v12  ;;  %9162 = vst [vmem:[#allocation5_spill] sm:$0xff] %v7214_v34  ;;  %v7223_v36 = vld [vmem:[%s6381_s29 + $0x74] sm:$0x1] }
  0x99   : > { %v2265_v54 = vor.u32 %v2264_v38, %v7172_v46  ;;  %v2268_v11 = vshll.u32 %v7164_v30, 16  ;;  %v2223_v3 = vsel %vm6425_vm4, %v2218_v60, %v2222_v57  ;;  %v2237_v33 = vsel %vm6425_vm4, %v2232_v25, %v7139_v6  ;;  %9164 = vst [vmem:[#allocation4_spill] sm:$0xff] %v7223_v36  ;;  %v7233_v38 = vld [vmem:[%s6381_s29 + $0x80] sm:$0x1] }
  0x9a   : > { %v2297_v52 = vshrl.u32 %v5349_v16, 16  ;;  %v2300_v12 = vshll.u32 %v5349_v16, 16  ;;  %v2247_v18 = vsel %vm6425_vm4, %v2242_v26, %v2246_v53  ;;  %v2256_v4 = vrot.slane %v2255_v13, 4  ;;  %9165 = vst [vmem:[#allocation6_spill] sm:$0xff] %v7233_v38  ;;  %v7236_v26 = vld [vmem:[%s6381_s29 + $0x8c] sm:$0x1] }
  0x9b   : > { %5999 = vmatmul.mubr.msk.bf16.gmra.mxu0 %vm707_vm3, %v5240_v55  ;;  %v2275_v55 = vrot.slane %v2273_v10, 4  ;;  %v2306_v39 = vshll.u32 %v7180_v2, 16  ;;  %v2278_v9 = vrot.slane %v2276_v24, 5  ;;  %v7210_v58 = vrot.slane %v2282_v48, 5  ;;  %9166 = vst [vmem:[#allocation8_spill] sm:$0xff] %v7236_v26  ;;  %v6260_v10 = vld [vmem:[%s6381_s29 + $0x18] sm:$0xff]  }
  0x9c   : > { %6038 = vmatprep.mubr.msk.bf16.mxu0 %vm707_vm3, %v7080_v15  ;;  %v2288_v23 = vrot.slane %v2286_v42, 4  ;;  %v2310_v6 = vshrl.u32 %v7180_v2, 16  ;;  %v9163_v15 = vcombine.low %v9147_v29, %v6690_v37  ;;  %v7220_v20 = vcombine.low %v2189_v56, %v2199_v51  ;;  %v5355_v51 = vld [vmem:[%s6381_s29 + $0x90] sm:$0xf] }
  0x9d   : > { %v2266_v59 = vrot.slane %v2265_v54, 4  ;;  %v2270_v17 = vrot.slane %v2268_v11, 5  ;;  %v2299_v16 = vrot.slane %v2297_v52, 4  ;;  %v2302_v43 = vrot.slane %v2300_v12, 5 }
  0x9e   : > { %5965 = vmatmul.mubr.msk.bf16.gmra.mxu1 %vm707_vm3, %v9163_v15  ;;  %v7226_v60 = vrot.slane %v2306_v39, 5  ;;  %v2312_v57 = vrot.slane %v2310_v6, 4  ;;  %v2321_v25 = vshrl.u32 %v5352_v19, 16  ;;  %v7228_v37 = vcombine.low %v2213_v45, %v2223_v3  ;;  %v7247_v45 = vld [vmem:[%s6381_s29 + $0x94] sm:$0xf] }
  0x9f   : > { %6004 = vmatprep.mubr.msk.bf16.mxu1 %vm707_vm3, %v6259_v63  ;;  %v7230_v29 = vcombine.low %v2237_v33, %v2247_v18  ;;  %v2324_v53 = vshll.u32 %v5352_v19, 16  ;;  %v2330_v13 = vshll.u32 %v7214_v34, 16  ;;  %v2261_v56 = vsel %vm6425_vm4, %v2256_v4, %v7172_v46  ;;  %9167 = vst [vmem:[#allocation7_spill] sm:$0xff] %v7247_v45  ;;  %v7255_v33 = vld [vmem:[%s9080_s1 + $0x20] sm:$0xf]  ;;  %v6261_v46 = vld [vmem:[%s6381_s29 + $0x24] sm:$0xff]  }
  0xa0   : > { %v2279_v24 = vor.u32 %v2278_v9, %v2275_v55  ;;  %v2289_v48 = vor.u32 %v2288_v23, %v7210_v58  ;;  %v2292_v42 = vshll.u32 %v7223_v36, 16  ;;  %v2323_v54 = vrot.slane %v2321_v25, 4  ;;  %9168 = vst [vmem:[#allocation9_spill] sm:$0xff] %v7255_v33 }
  0xa1   : > { %v2326_v11 = vrot.slane %v2324_v53, 5  ;;  %v7249_v63 = vrot.slane %v2330_v13, 5  ;;  %v2334_v3 = vshrl.u32 %v7214_v34, 16  ;;  %v2271_v52 = vsel %vm6425_vm4, %v2266_v59, %v2270_v17 }
  0xa2   : > { %v2303_v12 = vor.u32 %v2302_v43, %v2299_v16  ;;  %v2313_v18 = vor.u32 %v2312_v57, %v7226_v60  ;;  %v2316_v4 = vshll.u32 %v7233_v38, 16  ;;  %v2345_v19 = vshrl.u32 %v5355_v51, 16  ;;  %v7289_v57 = vld [vmem:[%s6381_s29 + $0xa0] sm:$0xf] }
  0xa3   : > { %6039 = vmatmul.mubr.msk.bf16.vlgmr.msra.gmra.mxu0 %vm707_vm3, %v7090_v22  ;;  %v2327_v55 = vor.u32 %v2326_v11, %v2323_v54  ;;  %v2336_v39 = vrot.slane %v2334_v3, 4  ;;  %v2348_v9 = vshll.u32 %v5355_v51, 16  ;;  %v5358_v22 = vld [vmem:[%s6381_s29 + $0x9c] sm:$0xf]  ;;  %v7268_v23 = vrot.slane %v2279_v24, 4  ;;  %9170 = vst [vmem:[#allocation10_spill] sm:$0xff] %v7289_v57 }
  0xa4   : > { %6105 = vmatpush3.bf16.msra.mxu0 %v7084_v32  ;;  %6042 = vmatprep.mubr.msk.bf16.mxu0 %vm707_vm3, %v7124_v62  ;;  %v7270_v6 = vrot.slane %v2292_v42, 5  ;;  %v2340_v15 = vshll.u32 %v7236_v26, 16  ;;  %v2354_v59 = vshll.u32 %v7247_v45, 16  ;;  %v7277_v32 = vld [vmem:[%s9080_s1 + $0x1c] sm:$0xf]  ;;  %v7282_v62 = vcombine.low %v2261_v56, %v2271_v52 }
  0xa5   : > { %9169 = vst [vmem:[#allocation11_spill] sm:$0xff] %v7277_v32  ;;  %6217 = vmatprep.subr.msk.bf16.mxu0 %vm756_vm0, %v7255_v33  ;;  %v7284_v17 = vrot.slane %v2289_v48, 4  ;;  %v2337_v16 = vor.u32 %v2336_v39, %v7249_v63  ;;  %v2358_v43 = vshrl.u32 %v7247_v45, 16  ;;  %v7293_v25 = vrot.slane %v2303_v12, 4  ;;  %v7302_v56 = vld [vmem:[%s6381_s29 + $0x98] sm:$0x1] }
  0xa6   : > { %6005 = vmatmul.mubr.msk.bf16.vlgmr.msra.gmra.mxu1 %vm707_vm3, %v6260_v10  ;;  %v7295_v53 = vrot.slane %v2313_v18, 4  ;;  %v7297_v13 = vrot.slane %v2316_v4, 5  ;;  %v7299_v10 = vrot.slane %v2327_v55, 4  ;;  %9171 = vst [vmem:[#allocation12_spill] sm:$0xff] %v7302_v56  ;;  %v2347_v24 = vrot.slane %v2345_v19, 4  ;;  %v6263_v19 = vld [vmem:[%s6381_s29 + $0x3c] sm:$0xff]  }
  0xa7   : > { %6071 = vmatpush3.bf16.msra.mxu1 %v7075_v14  ;;  %6008 = vmatprep.mubr.msk.bf16.mxu1 %vm707_vm3, %v6261_v46  ;;  %v2350_v48 = vrot.slane %v2348_v9, 5  ;;  %v2369_v42 = vshrl.u32 %v5358_v22, 16  ;;  %v2372_v51 = vshll.u32 %v5358_v22, 16  ;;  %v6262_v14 = vld [vmem:[%s6381_s29 + $0x30] sm:$0xff]   ;;  %v7311_v11 = vrot.slane %v2340_v15, 5 }
  0xa8   : > { %6216 = vmatprep.subr.msk.bf16.mxu1 %vm756_vm0, %v7277_v32  ;;  %v7313_v3 = vrot.slane %v2354_v59, 5  ;;  %v2378_v46 = vshll.u32 %v7289_v57, 16  ;;  %v5361_v52 = vld [vmem:[%s6381_s29 + $0xa8] sm:$0xf]  ;;  %v7317_v12 = vrot.slane %v2337_v16, 4  ;;  %v2360_v18 = vrot.slane %v2358_v43, 4 }
  0xa9   : > { %v2364_v4 = vshll.u32 %v7302_v56, 16  ;;  %v2382_v55 = vshrl.u32 %v7289_v57, 16  ;;  %v7322_v39 = vld [vmem:[%s6381_s29 + $0xac] sm:$0xf]  ;;  %v2351_v59 = vor.u32 %v2350_v48, %v2347_v24  ;;  %v7346_v16 = vld [vmem:[%s6381_s29 + $0xa4] sm:$0x1] }
  0xaa   : > { %9172 = vst [vmem:[#allocation13_spill] sm:$0xff] %v7322_v39  ;;  %9173 = vst [vmem:[#allocation2_spill] sm:$0xff] %v7346_v16  ;;  %v2371_v43 = vrot.slane %v2369_v42, 4  ;;  %v2374_v22 = vrot.slane %v2372_v51, 5  ;;  %v2393_v54 = vshrl.u32 %v5361_v52, 16  ;;  %v7348_v9 = vrot.slane %v2378_v46, 5 }
  0xab   : > { %6043 = vmatmul.mubr.msk.bf16.gmra.mxu0 %vm707_vm3, %v7170_v7  ;;  %v2384_v32 = vrot.slane %v2382_v55, 4  ;;  %v2396_v15 = vshll.u32 %v5361_v52, 16  ;;  %v2402_v33 = vshll.u32 %v7322_v39, 16  ;;  %v5364_v57 = vld [vmem:[%s6381_s29 + $0xb4] sm:$0xf]  ;;  %v2361_v24 = vor.u32 %v2360_v18, %v7313_v3 }
  0xac   : > { %6046 = vmatprep.mubr.msk.bf16.mxu0 %vm707_vm3, %v7220_v20  ;;  %v2343_v20 = vsel %vm6425_vm4, %v7317_v12, %v7311_v11  ;;  %v7358_v48 = vrot.slane %v2364_v4, 5  ;;  %v7361_v42 = vld [vmem:[%s6381_s29 + $0xb0] sm:$0x1]  ;;  %v2395_v51 = vrot.slane %v2393_v54, 4  ;;  %v7364_v46 = vld [vmem:[%s6381_s29 + $0xb8] sm:$0xf]  ;;  %v2375_v18 = vor.u32 %v2374_v22, %v2371_v43 }
  0xad   : > { %9174 = vst [vmem:[#allocation14_spill] sm:$0xff] %v7361_v42  ;;  %9175 = vst [vmem:[#allocation15_spill] sm:$0xff] %v7364_v46  ;;  %v2398_v52 = vrot.slane %v2396_v15, 5  ;;  %v7368_v55 = vrot.slane %v2402_v33, 5  ;;  %v2406_v11 = vshrl.u32 %v7322_v39, 16  ;;  %v7371_v12 = vrot.slane %v2351_v59, 4 }
  0xae   : > { %6009 = vmatmul.mubr.msk.bf16.gmra.mxu1 %vm707_vm3, %v6262_v14  ;;  %v2388_v14 = vshll.u32 %v7346_v16, 16  ;;  %v7374_v4 = vld [vmem:[%s6381_s29 + $0xbc] sm:$0x1]  ;;  %v2417_v54 = vshrl.u32 %v5364_v57, 16  ;;  %v2420_v7 = vshll.u32 %v5364_v57, 16  ;;  %v2385_v56 = vor.u32 %v2384_v32, %v7348_v9  ;;  %v6264_v16 = vld [vmem:[%s6381_s29 + $0x48] sm:$0xff]  }
  0xaf   : > { %6012 = vmatprep.mubr.msk.bf16.mxu1 %vm707_vm3, %v6263_v19  ;;  %v2408_v45 = vrot.slane %v2406_v11, 4  ;;  %v2412_v19 = vshll.u32 %v7361_v42, 16  ;;  %v2426_v15 = vshll.u32 %v7364_v46, 16  ;;  %v5367_v33 = vld [vmem:[%s6381_s29 + $0xc0] sm:$0xf]  ;;  %v2399_v26 = vor.u32 %v2398_v52, %v2395_v51  ;;  %v6265_v57 = vld [vmem:[%s6381_s29 + $0x54] sm:$0xff]  }
  0xb0   : > { %v2419_v39 = vrot.slane %v2417_v54, 4  ;;  %v2422_v34 = vrot.slane %v2420_v7, 5  ;;  %v2430_v59 = vshrl.u32 %v7364_v46, 16  ;;  %v7383_v22 = vld [vmem:[%s6381_s29 + $0xc4] sm:$0xf]  ;;  %v2362_v43 = vrot.slane %v2361_v24, 4 }
  0xb1   : > { %v2390_v32 = vrot.slane %v2388_v14, 5  ;;  %v2409_v11 = vor.u32 %v2408_v45, %v7368_v55  ;;  %v2428_v42 = vrot.slane %v2426_v15, 5  ;;  %v2436_v7 = vshll.u32 %v7374_v4, 16  ;;  %v7395_v45 = vld [vmem:[%s6381_s29 + $0xc8] sm:$0x1] }
  0xb2   : > { %v2423_v51 = vor.u32 %v2422_v34, %v2419_v39  ;;  %v2432_v52 = vrot.slane %v2430_v59, 4  ;;  %v2441_v54 = vshrl.u32 %v5367_v33, 16  ;;  %v2376_v46 = vrot.slane %v2375_v18, 4 }
  0xb3   : > { %6047 = vmatmul.mubr.msk.bf16.gmra.mxu0 %vm707_vm3, %v7228_v37  ;;  %v2386_v38 = vrot.slane %v2385_v56, 4  ;;  %v2444_v2 = vshll.u32 %v5367_v33, 16  ;;  %v2450_v37 = vshll.u32 %v7383_v22, 16  ;;  %v2400_v24 = vrot.slane %v2399_v26, 4 }
  0xb4   : > { %6050 = vmatprep.mubr.msk.bf16.mxu0 %vm707_vm3, %v7230_v29  ;;  %v2414_v14 = vrot.slane %v2412_v19, 5  ;;  %v2433_v36 = vor.u32 %v2432_v52, %v2428_v42  ;;  %v2443_v15 = vrot.slane %v2441_v54, 4  ;;  %v2410_v34 = vrot.slane %v2409_v11, 4 }
  0xb5   : > { %v2446_v29 = vrot.slane %v2444_v2, 5  ;;  %v7398_v39 = vrot.slane %v2450_v37, 5  ;;  %v2454_v56 = vshrl.u32 %v7383_v22, 16  ;;  %v9176_v26 = vsel %vm6425_vm4, %v7284_v17, %v7270_v6 }
  0xb6   : > { %6013 = vmatmul.mubr.msk.bf16.gmra.mxu1 %vm707_vm3, %v6264_v16  ;;  %v9177_v16 = vsel %vm6425_vm4, %v7268_v23, %v7210_v58  ;;  %v2424_v19 = vrot.slane %v2423_v51, 4  ;;  %v2434_v33 = vrot.slane %v2433_v36, 4  ;;  %v2438_v2 = vrot.slane %v2436_v7, 5  ;;  %v6266_v23 = vld [vmem:[%s6381_s29 + $0x60] sm:$0xff]  }
  0xb7   : > { %6016 = vmatprep.mubr.msk.bf16.mxu1 %vm707_vm3, %v6265_v57  ;;  %v5379_v18 = vcombine.low %v9177_v16, %v9176_v26  ;;  %v9178_v59 = vsel %vm6425_vm4, %v7295_v53, %v7297_v13  ;;  %v9179_v6 = vsel %vm6425_vm4, %v7293_v25, %v7226_v60  ;;  %v2447_v57 = vor.u32 %v2446_v29, %v2443_v15  ;;  %v5405_v13 = vld [vmem:[%s6381_s29 + $0x24] sm:$0xe]  ;;  %v5408_v26 = vld [vmem:[%s6381_s29 + $0x48] sm:$0xe] }
  0xb8   : > { %v5380_v17 = vcombine.low %v9179_v6, %v9178_v59  ;;  %v2456_v11 = vrot.slane %v2454_v56, 4  ;;  %v2460_v58 = vshll.u32 %v7395_v45, 16  ;;  %v9180_v36 = vsel %vm6425_vm4, %v7299_v10, %v7249_v63  ;;  %v6267_v63 = vld [vmem:[%s6381_s29 + $0x6c] sm:$0xff]   ;;  %v5409_v6 = vld [vmem:[%s6381_s29 + $0x54] sm:$0xe] }
  0xb9   : > { %v5381_v51 = vcombine.low %v9180_v36, %v2343_v20  ;;  %v2357_v53 = vsel %vm6425_vm4, %v7371_v12, %v7313_v3  ;;  %v2367_v60 = vsel %vm6425_vm4, %v2362_v43, %v7358_v48  ;;  %v2381_v25 = vsel %vm6425_vm4, %v2376_v46, %v7348_v9  ;;  %v7451_v12 = vld [vmem:[%s6381_s29 + $0xc] sm:$0xe] }
  0xba   : > { %v2391_v10 = vsel %vm6425_vm4, %v2386_v38, %v2390_v32  ;;  %v2405_v3 = vsel %vm6425_vm4, %v2400_v24, %v7368_v55  ;;  %v2415_v20 = vsel %vm6425_vm4, %v2410_v34, %v2414_v14  ;;  %v2457_v48 = vor.u32 %v2456_v11, %v7398_v39  ;;  %v5406_v55 = vld [vmem:[%s6381_s29 + $0x30] sm:$0xe]  ;;  %v5407_v14 = vld [vmem:[%s6381_s29 + $0x3c] sm:$0xe] }
  0xbb   : > { %6051 = vmatmul.mubr.msk.bf16.gmra.mxu0 %vm707_vm3, %v7282_v62  ;;  %v2429_v62 = vsel %vm6425_vm4, %v2424_v19, %v2428_v42  ;;  %v2439_v38 = vsel %vm6425_vm4, %v2434_v33, %v2438_v2  ;;  %v7458_v9 = vrot.slane %v2447_v57, 4  ;;  %v2824_v46 = vrot.slane %v6942_v49, 5  ;;  %v6268_v57 = vld [vmem:[%s6381_s29 + $0x78] sm:$0xff]  }
  0xbc   : > { %6054 = vmatprep.mubr.msk.bf16.mxu0 %vm707_vm3, %v5379_v18  ;;  %v7462_v43 = vcombine.low %v2357_v53, %v2367_v60  ;;  %v7464_v32 = vrot.slane %v2457_v48, 4  ;;  %v7466_v52 = vrot.slane %v2460_v58, 5  ;;  %v5421_v7 = vrot.slane %v5405_v13, 9  ;;  %v6269_v53 = vld [vmem:[%s6381_s29 + $0x84] sm:$0xff]   ;;  %v5410_v13 = vld [vmem:[%s6381_s29 + $0x60] sm:$0xe] }
  0xbd   : > { %v7469_v54 = vcombine.low %v2381_v25, %v2391_v10  ;;  %v7471_v42 = vcombine.low %v2405_v3, %v2415_v20  ;;  %v5419_v37 = vrot.slane %v7451_v12, 9  ;;  %v2838_v24 = vrot.slane %v6991_v44, 5  ;;  %v6275_v49 = vld [vmem:[%s6381_s29 + $0x18] sm:$0xff]  }
  0xbe   : > { %6017 = vmatmul.mubr.msk.bf16.gmra.mxu1 %vm707_vm3, %v6266_v23  ;;  %v7477_v15 = vcombine.low %v2429_v62, %v2439_v38  ;;  %v2827_v34 = vrot.slane %v6978_v47, 5  ;;  %v2841_v29 = vrot.slane %v7006_v21, 5  ;;  %v5422_v56 = vrot.slane %v5406_v55, 9  ;;  %v5412_v55 = vld [vmem:[%s6381_s29 + $0x78] sm:$0xe] }
  0xbf   : > { %6020 = vmatprep.mubr.msk.bf16.mxu1 %vm707_vm3, %v6267_v63  ;;  %v2453_v16 = vsel %vm6425_vm4, %v7458_v9, %v7398_v39  ;;  %v7488_v44 = vrot.slane %v2824_v46, 4  ;;  %v7492_v18 = vsel %vm6711_vm7, %v5421_v7, %v2838_v24  ;;  %v2840_v19 = vrot.slane %v2838_v24, 4 }
  0xc0   : > { %v2463_v21 = vsel %vm6425_vm4, %v7464_v32, %v7466_v52  ;;  %v2845_v33 = vrot.slane %v7029_v5, 5  ;;  %v2848_v2 = vrot.slane %v7037_v41, 5  ;;  %v5423_v59 = vrot.slane %v5407_v14, 9  ;;  %v6274_v52 = vld [vmem:[%s6381_s29 + $0xc0] sm:$0xff]  }
  0xc1   : > { %v7504_v11 = vsel %vm6711_vm7, %v2840_v19, %v2841_v29  ;;  %v2852_v58 = vrot.slane %v7046_v61, 5  ;;  %v2855_v23 = vrot.slane %v7098_v50, 5  ;;  %v5424_v36 = vrot.slane %v5408_v26, 9  ;;  %v5413_v19 = vld [vmem:[%s6381_s29 + $0x84] sm:$0xe] }
  0xc2   : > { %v5438_v5 = vcombine.low %v7492_v18, %v7504_v11  ;;  %v7514_v41 = vsel %vm6711_vm7, %v5422_v56, %v2845_v33  ;;  %v2847_v60 = vrot.slane %v2845_v33, 4  ;;  %v2859_v25 = vrot.slane %v7064_v1, 5 }
  0xc3   : > { %6055 = vmatmul.mubr.msk.bf16.gmra.mxu0 %vm707_vm3, %v5380_v17  ;;  %v7521_v61 = vsel %vm6711_vm7, %v5423_v59, %v2852_v58  ;;  %v2854_v50 = vrot.slane %v2852_v58, 4  ;;  %v2862_v17 = vrot.slane %v7112_v8, 5  ;;  %v5425_v63 = vrot.slane %v5409_v6, 9  ;;  %v9181_v59 = vld [vmem:[#allocation4_spill] sm:$0xff] }
  0xc4   : > { %6058 = vmatprep.mubr.msk.bf16.mxu0 %vm707_vm3, %v5381_v51  ;;  %v7526_v10 = vsel %vm6711_vm7, %v2847_v60, %v2848_v2  ;;  %v7530_v3 = vsel %vm6711_vm7, %v5424_v36, %v2859_v25  ;;  %v2861_v1 = vrot.slane %v2859_v25, 4  ;;  %v2866_v20 = vrot.slane %v7107_v40, 5  ;;  %v5411_v51 = vld [vmem:[%s6381_s29 + $0x6c] sm:$0xe]  ;;  %v6270_v58 = vld [vmem:[%s6381_s29 + $0x90] sm:$0xff]  }
  0xc5   : > { %v5439_v48 = vcombine.low %v7514_v41, %v7526_v10  ;;  %v7539_v8 = vsel %vm6711_vm7, %v2854_v50, %v2855_v23  ;;  %v2869_v62 = vrot.slane %v7129_v35, 5  ;;  %v5426_v38 = vrot.slane %v5410_v13, 9  ;;  %v9182_v36 = vld [vmem:[#allocation3_spill] sm:$0xff]  ;;  %v5414_v60 = vld [vmem:[%s6381_s29 + $0x90] sm:$0xe]  ;;  %v9183_v50 = vld [vmem:[#allocation6_spill] sm:$0xff] }
  0xc6   : > { %6021 = vmatmul.mubr.msk.bf16.gmra.mxu1 %vm707_vm3, %v6268_v57  ;;  %v5440_v40 = vcombine.low %v7521_v61, %v7539_v8  ;;  %v7548_v7 = vsel %vm6711_vm7, %v2861_v1, %v2862_v17  ;;  %v7552_v24 = vsel %vm6711_vm7, %v5425_v63, %v2866_v20  ;;  %v2868_v14 = vrot.slane %v2866_v20, 4 }
  0xc7   : > { %6024 = vmatprep.mubr.msk.bf16.mxu1 %vm707_vm3, %v6269_v53  ;;  %v5441_v35 = vcombine.low %v7530_v3, %v7548_v7  ;;  %v2873_v29 = vrot.slane %v7142_v28, 5  ;;  %v2876_v56 = vrot.slane %v7164_v30, 5  ;;  %v5427_v26 = vrot.slane %v5411_v51, 9  ;;  %v9184_v51 = vld [vmem:[#allocation5_spill] sm:$0xff]  ;;  %v5545_v3 = vld [vmem:[%s6381_s29 + $0x48] sm:$0xf] }
  0xc8   : > { %v7561_v33 = vsel %vm6711_vm7, %v2868_v14, %v2869_v62  ;;  %v2880_v2 = vrot.slane %v7161_v27, 5  ;;  %v2883_v6 = vrot.slane %v9181_v59, 5  ;;  %v5428_v57 = vrot.slane %v5412_v55, 9  ;;  %v6271_v27 = vld [vmem:[%s6381_s29 + $0x9c] sm:$0xff]   ;;  %v9192_v55 = vld [vmem:[#allocation15_spill] sm:$0xff] }
  0xc9   : > { %v5442_v23 = vcombine.low %v7552_v24, %v7561_v33  ;;  %v7570_v28 = vsel %vm6711_vm7, %v5426_v38, %v2873_v29  ;;  %v2875_v30 = vrot.slane %v2873_v29, 4  ;;  %v2887_v53 = vrot.slane %v9182_v36, 5  ;;  %v5415_v38 = vld [vmem:[%s6381_s29 + $0x9c] sm:$0xe]  ;;  %v9187_v36 = vld [vmem:[#allocation12_spill] sm:$0xff] }
  0xca   : > { %v7579_v25 = vsel %vm6711_vm7, %v5427_v26, %v2880_v2  ;;  %v2882_v13 = vrot.slane %v2880_v2, 4  ;;  %v2890_v17 = vrot.slane %v9183_v50, 5  ;;  %v5429_v63 = vrot.slane %v5413_v19, 9  ;;  %v5416_v26 = vld [vmem:[%s6381_s29 + $0xa8] sm:$0xe] }
  0xcb   : > { %6059 = vmatmul.mubr.msk.bf16.gmra.mxu0 %vm707_vm3, %v7462_v43  ;;  %v7586_v1 = vsel %vm6711_vm7, %v2875_v30, %v2876_v56  ;;  %v7590_v43 = vsel %vm6711_vm7, %v5428_v57, %v2887_v53  ;;  %v2889_v20 = vrot.slane %v2887_v53, 4  ;;  %v2894_v62 = vrot.slane %v9184_v51, 5  ;;  %v5418_v57 = vld [vmem:[%s6381_s29 + $0xc0] sm:$0xe]  ;;  %v6272_v19 = vld [vmem:[%s6381_s29 + $0xa8] sm:$0xff]  }
  0xcc   : > { %6062 = vmatprep.mubr.msk.bf16.mxu0 %vm707_vm3, %v7469_v54  ;;  %v7598_v14 = vsel %vm6711_vm7, %v2882_v13, %v2883_v6  ;;  %v9185_v54 = vld [vmem:[#allocation8_spill] sm:$0xff]  ;;  %v5430_v56 = vrot.slane %v5414_v60, 9  ;;  %v2904_v53 = vrot.slane %v9187_v36, 5  ;;  %v5431_v60 = vrot.slane %v5415_v38, 9  ;;  %v9190_v38 = vld [vmem:[#allocation13_spill] sm:$0xff] }
  0xcd   : > { %v2897_v29 = vrot.slane %v9185_v54, 5  ;;  %v7607_v2 = vsel %vm6711_vm7, %v2889_v20, %v2890_v17  ;;  %v7611_v59 = vsel %vm6711_vm7, %v5429_v63, %v2894_v62  ;;  %v2896_v6 = vrot.slane %v2894_v62, 4  ;;  %v5417_v13 = vld [vmem:[%s6381_s29 + $0xb4] sm:$0xe]  ;;  %v9188_v17 = vld [vmem:[#allocation10_spill] sm:$0xff] }
  0xce   : > { %6025 = vmatmul.mubr.msk.bf16.gmra.mxu1 %vm707_vm3, %v6270_v58  ;;  %v9186_v58 = vld [vmem:[#allocation7_spill] sm:$0xff]  ;;  %v2908_v63 = vrot.slane %v9188_v17, 5  ;;  %v9189_v20 = vld [vmem:[#allocation2_spill] sm:$0xff]  ;;  %v5432_v62 = vrot.slane %v5416_v26, 9  ;;  %v2915_v36 = vrot.slane %v9190_v38, 5  ;;  %v5433_v26 = vrot.slane %v5417_v13, 9 }
  0xcf   : > { %6028 = vmatprep.mubr.msk.bf16.mxu1 %vm707_vm3, %v6271_v27  ;;  %v2901_v30 = vrot.slane %v9186_v58, 5  ;;  %v7621_v50 = vsel %vm6711_vm7, %v2896_v6, %v2897_v29  ;;  %v2911_v51 = vrot.slane %v9189_v20, 5  ;;  %v9191_v17 = vld [vmem:[#allocation14_spill] sm:$0xff]  ;;  %v6273_v27 = vld [vmem:[%s6381_s29 + $0xb4] sm:$0xff]   ;;  %v2828_v39 = vsel %vm6711_vm7, %v7488_v44, %v2827_v34  ;;  %v7838_v7 = vld [vmem:[%s6381_s29 + $0x4c] sm:$0xf] }
  0xd0   : > { %v7636_v29 = vsel %vm6711_vm7, %v5431_v60, %v2908_v63  ;;  %v2910_v6 = vrot.slane %v2908_v63, 4  ;;  %v2918_v20 = vrot.slane %v9191_v17, 5  ;;  %v2917_v38 = vrot.slane %v2915_v36, 4  ;;  %v6292_v44 = vld [vmem:[%s6381_s29 + $0x20] sm:$0x1] }
  0xd1   : > { %v7629_v54 = vsel %vm6711_vm7, %v5430_v56, %v2901_v30  ;;  %v2903_v58 = vrot.slane %v2901_v30, 4  ;;  %v7648_v30 = vsel %vm6711_vm7, %v5432_v62, %v2915_v36  ;;  %v2922_v60 = vrot.slane %v9192_v55, 5 }
  0xd2   : > { %v5434_v63 = vrot.slane %v5418_v57, 9  ;;  %v7664_v55 = vsel %vm6711_vm7, %v2917_v38, %v2918_v20  ;;  %v2929_v57 = vrot.slane %v7383_v22, 5  ;;  %v2825_v22 = vsel %vm6711_vm7, %v5419_v37, %v2824_v46  ;;  %v6277_v38 = vld [vmem:[%s6381_s29 + $0x30] sm:$0xff]  }
  0xd3   : > { %6063 = vmatmul.mubr.msk.bf16.gmra.mxu0 %vm707_vm3, %v7471_v42  ;;  %v7644_v56 = vsel %vm6711_vm7, %v2903_v58, %v2904_v53  ;;  %v7657_v42 = vsel %vm6711_vm7, %v2910_v6, %v2911_v51  ;;  %v2925_v53 = vrot.slane %v7374_v4, 5  ;;  %v2924_v58 = vrot.slane %v2922_v60, 4 }
  0xd4   : > { %6066 = vmatprep.mubr.msk.bf16.mxu0 %vm707_vm3, %v7477_v15  ;;  %v7668_v15 = vsel %vm6711_vm7, %v5433_v26, %v2922_v60  ;;  %v2932_v51 = vrot.slane %v7395_v45, 5  ;;  %v5404_v45 = vld [vmem:[%s6381_s29 + $0x18] sm:$0xe]  ;;  %v7708_v9 = vsel %vm6711_vm7, %v5434_v63, %v2929_v57  ;;  %v2931_v46 = vrot.slane %v2929_v57, 4  ;;  %v6276_v26 = vld [vmem:[%s6381_s29 + $0x24] sm:$0xff]  }
  0xd5   : > { %v7696_v32 = vsel %vm6711_vm7, %v2924_v58, %v2925_v53  ;;  %v5420_v37 = vrot.slane %v5404_v45, 9  ;;  %v5436_v34 = vcombine.low %v2825_v22, %v2828_v39  ;;  %v9193_v60 = vld [vmem:[#allocation9_spill] sm:$0xff] }
  0xd6   : > { %6029 = vmatmul.mubr.msk.bf16.gmra.mxu1 %vm707_vm3, %v6272_v19  ;;  %v5386_v19 = vcombine.low %v2453_v16, %v2463_v21  ;;  %v7713_v47 = vsel %vm6711_vm7, %v2931_v46, %v2932_v51  ;;  %v2834_v21 = vrot.slane %v6292_v44, 5  ;;  %v4591_v53 = vsel %vm756_vm0, %v9193_v60, 0  ;;  %v5533_v63 = vld [vmem:[%s6381_s29 + $0x18] sm:$0xf]  ;;  %v5534_v57 = vld [vmem:[%s6381_s29 + $0x1c] sm:$0xf] }
  0xd7   : > { %6032 = vmatprep.mubr.msk.bf16.mxu1 %vm707_vm3, %v6273_v27  ;;  %v6291_v27 = vld [vmem:[%s6381_s29 + $0x1c] sm:$0xf]  ;;  %v5536_v51 = vld [vmem:[%s6381_s29 + $0x24] sm:$0xf]  ;;  %v3639_v45 = vshrl.u32 %v5533_v63, 16  ;;  %v3648_v39 = vshll.u32 %v5534_v57, 16 }
  0xd8   : > { %v2831_v36 = vrot.slane %v6291_v27, 5  ;;  %v3642_v27 = vshll.u32 %v5533_v63, 16  ;;  %v3663_v46 = vshrl.u32 %v5536_v51, 16  ;;  %v6279_v44 = vld [vmem:[%s6381_s29 + $0x48] sm:$0xff]   ;;  %v5614_v60 = vld [vmem:[%s6381_s29 + $0x18] sm:$0xe] }
  0xd9   : > { %v7754_v63 = vld [vmem:[%s6381_s29 + $0x2c] sm:$0x1] }
  0xda   : > { %v2833_v16 = vrot.slane %v2831_v36, 4  ;;  %v2832_v17 = vsel %vm6711_vm7, %v5420_v37, %v2831_v36  ;;  %v7738_v36 = vld [vmem:[%s6381_s29 + $0x28] sm:$0xf]  ;;  %v6278_v37 = vld [vmem:[%s6381_s29 + $0x3c] sm:$0xff]   ;;  %v3665_v18 = vrot.slane %v3663_v46, 4 }
  0xdb   : > { %6067 = vmatmul.mubr.msk.bf16.gmra.mxu0 %vm707_vm3, %v5386_v19  ;;  %v9194_v19 = vld [vmem:[#allocation11_spill] sm:$0xff] }
  0xdc   : > { %6106 = vmatprep.mubr.msk.bf16.mxu0 %vm707_vm3, %v6275_v49  ;;  %v2835_v20 = vsel %vm6711_vm7, %v2833_v16, %v2834_v21  ;;  %v4121_v22 = vsel %vm756_vm0, %v9194_v19, 0  ;;  %v3652_v49 = vshrl.u32 %v5534_v57, 16  ;;  %v3676_v16 = vshrl.u32 %v7738_v36, 16  ;;  %v5535_v21 = vld [vmem:[%s6381_s29 + $0x20] sm:$0x1] }
  0xdd   : > { %v5437_v58 = vcombine.low %v2832_v17, %v2835_v20  ;;  %v3641_v17 = vrot.slane %v3639_v45, 4  ;;  %v3644_v20 = vrot.slane %v3642_v27, 5  ;;  %v5539_v19 = vld [vmem:[%s6381_s29 + $0x30] sm:$0xf]  ;;  %v3658_v45 = vshll.u32 %v5535_v21, 16 }
  0xde   : > { %6033 = vmatmul.mubr.msk.bf16.gmra.mxu1 %vm707_vm3, %v6274_v52  ;;  %v3666_v52 = vshll.u32 %v5536_v51, 16  ;;  %v3678_v51 = vrot.slane %v3676_v16, 4  ;;  %v5630_v27 = vrot.slane %v5614_v60, 9  ;;  %v4385_v46 = vrot.slane %v5535_v21, 5  ;;  %v5615_v16 = vld [vmem:[%s6381_s29 + $0x24] sm:$0xe] }
  0xdf   : > { %6072 = vmatprep.mubr.msk.bf16.mxu1 %vm707_vm3, %v5436_v34  ;;  %v3672_v34 = vshll.u32 %v7738_v36, 16  ;;  %v6280_v21 = vld [vmem:[%s6381_s29 + $0x54] sm:$0xff]   ;;  %v3690_v10 = vshll.u32 %v5539_v19, 16  ;;  %v6281_v60 = vld [vmem:[%s6381_s29 + $0x60] sm:$0xff]  }
  0xe0   : > { %v3668_v11 = vrot.slane %v3666_v52, 5  ;;  %v3682_v52 = vshll.u32 %v7754_v63, 16 }
  0xe3   : > { %6107 = vmatmul.mubr.msk.bf16.vlgmr.msra.gmra.mxu0 %vm707_vm3, %v6276_v26  ;;  %v7750_v26 = vrot.slane %v3648_v39, 5 }
  0xe4   : > { %6173 = vmatpush3.bf16.msra.mxu0 %v4591_v53  ;;  %6110 = vmatprep.mubr.msk.bf16.mxu0 %vm707_vm3, %v6277_v38  ;;  %v3654_v38 = vrot.slane %v3652_v49, 4  ;;  %v4382_v53 = vrot.slane %v5534_v57, 5  ;;  %v7764_v57 = vld [vmem:[%s6381_s29 + $0x34] sm:$0xf] }
  0xe6   : > { %6073 = vmatmul.mubr.msk.bf16.vlgmr.msra.gmra.mxu1 %vm707_vm3, %v5437_v58  ;;  %v7759_v58 = vrot.slane %v3672_v34, 5  ;;  %v3655_v39 = vor.u32 %v3654_v38, %v7750_v26  ;;  %v4384_v49 = vrot.slane %v4382_v53, 4  ;;  %v3669_v34 = vor.u32 %v3668_v11, %v3665_v18 }
  0xe7   : > { %6139 = vmatpush3.bf16.msra.mxu1 %v4121_v22  ;;  %6076 = vmatprep.mubr.msk.bf16.mxu1 %vm707_vm3, %v5438_v5  ;;  %v7757_v5 = vpop.f32.mrf.mxu0  ;;  %v3645_v22 = vor.u32 %v3644_v20, %v3641_v17  ;;  %v3687_v17 = vshrl.u32 %v5539_v19, 16  ;;  %v3700_v38 = vshrl.u32 %v7764_v57, 16  ;;  %v7789_v61 = vsel %vm6711_vm7, %v5630_v27, %v4382_v53  ;;  %v5542_v19 = vld [vmem:[%s6381_s29 + $0x3c] sm:$0xf] }
  0xe8   : > { %v3679_v41 = vor.u32 %v3678_v51, %v7759_v58  ;;  %v3656_v8 = vrot.slane %v3655_v39, 4  ;;  %v3684_v11 = vrot.slane %v3682_v52, 5  ;;  %v5631_v51 = vrot.slane %v5615_v16, 9  ;;  %v7803_v39 = vld [vmem:[%s6381_s29 + $0x38] sm:$0x1] }
  0xe9   : > { %v7781_v20 = vpop.f32.mrf.mxu0  ;;  %v3646_v18 = vrot.slane %v3645_v22, 4  ;;  %v3670_v12 = vrot.slane %v3669_v34, 4  ;;  %v4392_v22 = vrot.slane %v7754_v63, 5  ;;  %v3702_v52 = vrot.slane %v3700_v38, 4 }
  0xea   : > { %v3680_v27 = vrot.slane %v3679_v41, 4  ;;  %v3711_v34 = vshrl.u32 %v5542_v19, 16  ;;  %v3714_v16 = vshll.u32 %v5542_v19, 16  ;;  %v7816_v41 = vld [vmem:[%s6381_s29 + $0x40] sm:$0xf] }
  0xeb   : > { %6111 = vmatmul.mubr.msk.bf16.gmra.mxu0 %vm707_vm3, %v6278_v37  ;;  %v7800_v53 = vpop.f32.mrf.mxu0  ;;  %v3651_v63 = vsel %vm6425_vm4, %v3646_v18, %v7750_v26  ;;  %v3675_v26 = vsel %vm6425_vm4, %v3670_v12, %v7759_v58  ;;  %v5616_v18 = vld [vmem:[%s6381_s29 + $0x30] sm:$0xe]  ;;  %v3720_v24 = vshll.u32 %v7816_v41, 16  ;;  %v3724_v33 = vshrl.u32 %v7816_v41, 16 }
  0xec   : > { %6114 = vmatprep.mubr.msk.bf16.mxu0 %vm707_vm3, %v6279_v44  ;;  %v7772_v37 = vpop.f32.mrf.mxu1  ;;  %v4389_v44 = vrot.slane %v7738_v36, 5  ;;  %v3660_v36 = vrot.slane %v3658_v45, 5  ;;  %v3689_v45 = vrot.slane %v3687_v17, 4  ;;  %v3685_v58 = vsel %vm6425_vm4, %v3680_v27, %v3684_v11 }
  0xed   : > { %9195 = vst [vmem:[#allocation4_spill] sm:$0xff] %v7772_v37  ;;  %v7845_v12 = vpop.f32.mrf.mxu0  ;;  %v3716_v19 = vrot.slane %v3714_v16, 5  ;;  %v3748_v11 = vshrl.u32 %v7838_v7, 16 }
  0xee   : > { %6077 = vmatmul.mubr.msk.bf16.gmra.mxu1 %vm707_vm3, %v5439_v48  ;;  %v3696_v48 = vshll.u32 %v7764_v57, 16  ;;  %v7796_v6 = vpop.f32.mrf.mxu1  ;;  %v4391_v4 = vrot.slane %v4389_v44, 4  ;;  %v3661_v17 = vsel %vm6425_vm4, %v3656_v8, %v3660_v36  ;;  %v4396_v36 = vrot.slane %v7764_v57, 5  ;;  %v6283_v8 = vld [vmem:[%s6381_s29 + $0x78] sm:$0xff]  }
  0xef   : > { %6080 = vmatprep.mubr.msk.bf16.mxu1 %vm707_vm3, %v5440_v40  ;;  %v7793_v40 = vsel %vm6711_vm7, %v4384_v49, %v4385_v46  ;;  %9196 = vst [vmem:[#allocation3_spill] sm:$0xff] %v7796_v6  ;;  %v3692_v49 = vrot.slane %v3690_v10, 5  ;;  %v7859_v27 = vcombine.low %v3651_v63, %v3661_v17  ;;  %v7861_v57 = vcombine.low %v3675_v26, %v3685_v58  ;;  %v7875_v17 = vld [vmem:[%s6381_s29 + $0x58] sm:$0xf]  ;;  %v7881_v58 = vld [vmem:[%s6381_s29 + $0x44] sm:$0x1] }
  0xf0   : > { %v7805_v46 = vrot.slane %v3696_v48, 5  ;;  %v7822_v10 = vpop.f32.mrf.mxu1  ;;  %v7829_v48 = vsel %vm6711_vm7, %v5631_v51, %v4389_v44  ;;  %v7833_v38 = vsel %vm6711_vm7, %v4391_v4, %v4392_v22  ;;  %v3713_v51 = vrot.slane %v3711_v34, 4  ;;  %v5548_v34 = vld [vmem:[%s6381_s29 + $0x54] sm:$0xf] }
  0xf1   : > { %9197 = vst [vmem:[#allocation6_spill] sm:$0xff] %v7822_v10  ;;  %v3693_v44 = vor.u32 %v3692_v49, %v3689_v45  ;;  %v3738_v22 = vshll.u32 %v5545_v3, 16  ;;  %v4398_v13 = vrot.slane %v4396_v36, 4  ;;  %v4399_v63 = vrot.slane %v7803_v39, 5  ;;  %v5617_v49 = vld [vmem:[%s6381_s29 + $0x3c] sm:$0xe] }
  0xf2   : > { %v3703_v4 = vor.u32 %v3702_v52, %v7805_v46  ;;  %v7857_v45 = vpop.f32.mrf.mxu1  ;;  %v5632_v52 = vrot.slane %v5616_v18, 9  ;;  %v3717_v18 = vor.u32 %v3716_v19, %v3713_v51  ;;  %v9200_v6 = vcombine.low %v7570_v28, %v7586_v1 }
  0xf3   : > { %6115 = vmatmul.mubr.msk.bf16.gmra.mxu0 %vm707_vm3, %v6280_v21  ;;  %v3744_v21 = vshll.u32 %v7838_v7, 16  ;;  %9198 = vst [vmem:[#allocation5_spill] sm:$0xff] %v7857_v45  ;;  %v3740_v45 = vrot.slane %v3738_v22, 5  ;;  %v3759_v51 = vshrl.u32 %v5548_v34, 16  ;;  %v3762_v19 = vshll.u32 %v5548_v34, 16 }
  0xf4   : > { %6118 = vmatprep.mubr.msk.bf16.mxu0 %vm707_vm3, %v6281_v60  ;;  %v3706_v60 = vshll.u32 %v7803_v39, 16  ;;  %v7878_v26 = vrot.slane %v3703_v4, 4  ;;  %v3750_v39 = vrot.slane %v3748_v11, 4  ;;  %v7916_v22 = vsel %vm6711_vm7, %v4398_v13, %v4399_v63 }
  0xf5   : > { %v7886_v10 = vrot.slane %v3744_v21, 5  ;;  %v9202_v21 = vcombine.low %v7579_v25, %v7598_v14  ;;  %v4403_v25 = vrot.slane %v7816_v41, 5  ;;  %v6285_v14 = vld [vmem:[%s6381_s29 + $0x90] sm:$0xff]   ;;  %v5633_v1 = vrot.slane %v5617_v49, 9  ;;  %v5551_v41 = vld [vmem:[%s6381_s29 + $0x60] sm:$0xf] }
  0xf6   : > { %6081 = vmatmul.mubr.msk.bf16.gmra.mxu1 %vm707_vm3, %v5441_v35  ;;  %v6282_v35 = vld [vmem:[%s6381_s29 + $0x6c] sm:$0xff]   ;;  %v7871_v62 = vrot.slane %v3706_v60, 5  ;;  %v3761_v37 = vrot.slane %v3759_v51, 4 }
  0xf7   : > { %6084 = vmatprep.mubr.msk.bf16.mxu1 %vm707_vm3, %v5442_v23  ;;  %v3735_v23 = vshrl.u32 %v5545_v3, 16  ;;  %v7869_v3 = vrot.slane %v3693_v44, 4  ;;  %v3726_v44 = vrot.slane %v3724_v33, 4  ;;  %v3772_v33 = vshrl.u32 %v7875_v17, 16 }
  0xf8   : > { %v7867_v16 = vpop.f32.mrf.mxu0  ;;  %v3751_v13 = vor.u32 %v3750_v39, %v7886_v10  ;;  %v4410_v39 = vrot.slane %v7838_v7, 5  ;;  %v9206_v7 = vcombine.low %v7590_v43, %v7607_v2  ;;  %v9208_v43 = vcombine.low %v7611_v59, %v7621_v50  ;;  %v6286_v2 = vld [vmem:[%s6381_s29 + $0x9c] sm:$0xff]  }
  0xf9   : > { %9199 = vst [vmem:[#allocation8_spill] sm:$0xff] %v7867_v16  ;;  %v3737_v60 = vrot.slane %v3735_v23, 4  ;;  %v6284_v23 = vld [vmem:[%s6381_s29 + $0x84] sm:$0xff]   ;;  %v7943_v16 = vld [vmem:[%s6381_s29 + $0x5c] sm:$0x1]  ;;  %v4417_v59 = vrot.slane %v7875_v17, 5 }
  0xfa   : > { %v7904_v28 = vpop.f32.mrf.mxu0 }
  0xfb   : > { %6119 = vmatmul.mubr.msk.bf16.gmra.mxu0 %vm707_vm3, %v6282_v35  ;;  %v7883_v35 = vrot.slane %v3720_v24, 5  ;;  %v3768_v24 = vshll.u32 %v7875_v17, 16  ;;  %9203 = vst [vmem:[#allocation12_spill] sm:$0xff] %v7904_v28  ;;  %v3764_v28 = vrot.slane %v3762_v19, 5 }
  0xfc   : > { %6122 = vmatprep.mubr.msk.bf16.mxu0 %vm707_vm3, %v6283_v8  ;;  %v7892_v4 = vpop.f32.mrf.mxu1  ;;  %v7895_v8 = vld [vmem:[%s6381_s29 + $0x50] sm:$0x1]  ;;  %v7936_v49 = vpop.f32.mrf.mxu0 }
  0xfd   : > { %9201 = vst [vmem:[#allocation7_spill] sm:$0xff] %v7892_v4  ;;  %v3727_v34 = vor.u32 %v3726_v44, %v7883_v35  ;;  %v7926_v4 = vrot.slane %v3717_v18, 4  ;;  %v7933_v11 = vrot.slane %v3768_v24, 5  ;;  %v3774_v44 = vrot.slane %v3772_v33, 4  ;;  %9205 = vst [vmem:[#allocation2_spill] sm:$0xff] %v7936_v49 }
  0xfe   : > { %6085 = vmatmul.mubr.msk.bf16.gmra.mxu1 %vm707_vm3, %v9200_v6  ;;  %v7912_v6 = vsel %vm6711_vm7, %v5632_v52, %v4396_v36  ;;  %v3741_v36 = vor.u32 %v3740_v45, %v3737_v60  ;;  %v3754_v52 = vshll.u32 %v7895_v8, 16  ;;  %v7931_v63 = vpop.f32.mrf.mxu1  ;;  %v4405_v18 = vrot.slane %v4403_v25, 4  ;;  %v5618_v24 = vld [vmem:[%s6381_s29 + $0x48] sm:$0xe] }
  0xff   : > { %6088 = vmatprep.mubr.msk.bf16.mxu1 %vm707_vm3, %v9202_v21  ;;  %v3730_v21 = vshll.u32 %v7881_v58, 16  ;;  %9204 = vst [vmem:[#allocation10_spill] sm:$0xff] %v7931_v63  ;;  %v4406_v60 = vrot.slane %v7881_v58, 5  ;;  %v3728_v51 = vrot.slane %v3727_v34, 4  ;;  %v3783_v33 = vshrl.u32 %v5551_v41, 16 }
 0x100   : > { %v7949_v63 = vsel %vm6711_vm7, %v5633_v1, %v4403_v25  ;;  %v3742_v45 = vrot.slane %v3741_v36, 4  ;;  %v3752_v49 = vrot.slane %v3751_v13, 4  ;;  %v3756_v58 = vrot.slane %v3754_v52, 5  ;;  %v7964_v36 = vld [vmem:[%s6381_s29 + $0x64] sm:$0xf]  ;;  %v7971_v13 = vpop.f32.mrf.mxu0 }
 0x101   : > { %v3732_v19 = vrot.slane %v3730_v21, 5  ;;  %v3723_v34 = vsel %vm6425_vm4, %v7926_v4, %v7883_v35  ;;  %v3765_v21 = vor.u32 %v3764_v28, %v3761_v37  ;;  %v3775_v1 = vor.u32 %v3774_v44, %v7933_v11  ;;  %9209 = vst [vmem:[#allocation14_spill] sm:$0xff] %v7971_v13  ;;  %v5619_v28 = vld [vmem:[%s6381_s29 + $0x54] sm:$0xe]  ;;  %v6290_v13 = vld [vmem:[%s6381_s29 + $0xcc] sm:$0xff]  }
 0x102   : > { %v3778_v25 = vshll.u32 %v7943_v16, 16  ;;  %v7975_v52 = vsel %vm6711_vm7, %v4405_v18, %v4406_v60  ;;  %v5634_v35 = vrot.slane %v5618_v24, 9  ;;  %v4412_v37 = vrot.slane %v4410_v39, 4 }
 0x103   : > { %6123 = vmatmul.mubr.msk.bf16.gmra.mxu0 %vm707_vm3, %v6284_v23  ;;  %v3786_v23 = vshll.u32 %v5551_v41, 16  ;;  %v4413_v4 = vrot.slane %v7895_v8, 5  ;;  %v6287_v41 = vld [vmem:[%s6381_s29 + $0xa8] sm:$0xff]   ;;  %v3733_v44 = vsel %vm6425_vm4, %v3728_v51, %v3732_v19  ;;  %v3785_v50 = vrot.slane %v3783_v33, 4 }
 0x104   : > { %6126 = vmatprep.mubr.msk.bf16.mxu0 %vm707_vm3, %v6285_v14  ;;  %v7955_v14 = vpop.f32.mrf.mxu1  ;;  %v3757_v18 = vsel %vm6425_vm4, %v3752_v49, %v3756_v58  ;;  %v3792_v60 = vshll.u32 %v7964_v36, 16  ;;  %v3796_v8 = vshrl.u32 %v7964_v36, 16  ;;  %v3776_v51 = vrot.slane %v3775_v1, 4  ;;  %v7993_v33 = vld [vmem:[%s6381_s29 + $0x68] sm:$0x1] }
 0x105   : > { %9207 = vst [vmem:[#allocation13_spill] sm:$0xff] %v7955_v14  ;;  %v3766_v14 = vrot.slane %v3765_v21, 4  ;;  %v3780_v17 = vrot.slane %v3778_v25, 5  ;;  %v5635_v19 = vrot.slane %v5619_v28, 9  ;;  %v9212_v49 = vsel %vm6425_vm4, %v7878_v26, %v7871_v62  ;;  %v5554_v25 = vld [vmem:[%s6381_s29 + $0x6c] sm:$0xf] }
 0x106   : > { %6089 = vmatmul.mubr.msk.bf16.gmra.mxu1 %vm707_vm3, %v9206_v7  ;;  %v3788_v7 = vrot.slane %v3786_v23, 5  ;;  %v7990_v24 = vpop.f32.mrf.mxu1  ;;  %v8014_v21 = vsel %vm6711_vm7, %v5634_v35, %v4410_v39  ;;  %v8018_v1 = vsel %vm6711_vm7, %v4412_v37, %v4413_v4  ;;  %v8021_v62 = vcombine.low %v3723_v34, %v3733_v44  ;;  %v5620_v4 = vld [vmem:[%s6381_s29 + $0x60] sm:$0xe]  ;;  %v5560_v44 = vld [vmem:[%s6381_s29 + $0x84] sm:$0xf] }
 0x107   : > { %6092 = vmatprep.mubr.msk.bf16.mxu1 %vm707_vm3, %v9208_v43  ;;  %v3747_v43 = vsel %vm6425_vm4, %v3742_v45, %v7886_v10  ;;  %9210 = vst [vmem:[#allocation15_spill] sm:$0xff] %v7990_v24  ;;  %v9213_v45 = vsel %vm6425_vm4, %v7869_v3, %v7805_v46  ;;  %v4419_v46 = vrot.slane %v4417_v59, 4  ;;  %v4420_v3 = vrot.slane %v7943_v16, 5 }
 0x108   : > { %v8008_v23 = vcombine.low %v9213_v45, %v9212_v49  ;;  %9214 = vst [vmem:[#allocation11_spill] sm:$0xff] %v8021_v62  ;;  %v3789_v26 = vor.u32 %v3788_v7, %v3785_v50  ;;  %v8028_v28 = vcombine.low %v3747_v43, %v3757_v18  ;;  %v8030_v39 = vrot.slane %v3792_v60, 5 }
 0x109   : > { %v7996_v10 = vpop.f32.mrf.mxu0  ;;  %v8032_v35 = vrot.slane %v3796_v8, 4  ;;  %v3802_v37 = vshll.u32 %v7993_v33, 16  ;;  %v9216_v34 = vcombine.low %v7629_v54, %v7644_v56  ;;  %v3771_v50 = vsel %vm6425_vm4, %v3766_v14, %v7933_v11  ;;  %v5557_v54 = vld [vmem:[%s6381_s29 + $0x78] sm:$0xf] }
 0x10a   : > { %9211 = vst [vmem:[#allocation9_spill] sm:$0xff] %v7996_v10  ;;  %9215 = vst [vmem:[#allocation16_spill] sm:$0xff] %v8028_v28  ;;  %v3781_v7 = vsel %vm6425_vm4, %v3776_v51, %v3780_v17  ;;  %v8052_v43 = vsel %vm6711_vm7, %v5635_v19, %v4417_v59  ;;  %v9218_v56 = vcombine.low %v7636_v29, %v7657_v42  ;;  %v3807_v60 = vshrl.u32 %v5554_v25, 16  ;;  %v8064_v51 = vld [vmem:[%s6381_s29 + $0x7c] sm:$0xf]  ;;  %v6289_v59 = vld [vmem:[%s6381_s29 + $0xc0] sm:$0xff]  }
 0x10b   : > { %6127 = vmatmul.mubr.msk.bf16.gmra.mxu0 %vm707_vm3, %v6286_v2  ;;  %v8026_v2 = vld [vmem:[%s6381_s29 + $0x70] sm:$0xf]  ;;  %v8059_v18 = vpop.f32.mrf.mxu0  ;;  %v3810_v8 = vshll.u32 %v5554_v25, 16  ;;  %v8069_v17 = vsel %vm6711_vm7, %v4419_v46, %v4420_v3  ;;  %v8071_v29 = vrot.slane %v3789_v26, 4  ;;  %v5636_v42 = vrot.slane %v5620_v4, 9 }
 0x10c   : > { %6130 = vmatprep.mubr.msk.bf16.mxu0 %vm707_vm3, %v6287_v41  ;;  %v6288_v41 = vld [vmem:[%s6381_s29 + $0xb4] sm:$0xff]   ;;  %9219 = vst [vmem:[#allocation18_spill] sm:$0xff] %v8059_v18  ;;  %v3816_v11 = vshll.u32 %v8026_v2, 16  ;;  %v3820_v14 = vshrl.u32 %v8026_v2, 16  ;;  %v4424_v19 = vrot.slane %v7964_v36, 5  ;;  %v8074_v49 = vcombine.low %v3771_v50, %v3781_v7 }
 0x10d   : > { %v3799_v45 = vor.u32 %v8032_v35, %v8030_v39  ;;  %v8078_v25 = vrot.slane %v3802_v37, 5  ;;  %v3831_v46 = vshrl.u32 %v5557_v54, 16  ;;  %v3834_v3 = vshll.u32 %v5557_v54, 16  ;;  %v8090_v4 = vld [vmem:[%s6381_s29 + $0x88] sm:$0xf]  ;;  %v8093_v35 = vpop.f32.mrf.mxu0 }
 0x10e   : > { %6093 = vmatmul.mubr.msk.bf16.gmra.mxu1 %vm707_vm3, %v9216_v34  ;;  %v8040_v16 = vpop.f32.mrf.mxu1  ;;  %9220 = vst [vmem:[#allocation19_spill] sm:$0xff] %v8074_v49  ;;  %v4427_v34 = vrot.slane %v7993_v33, 5  ;;  %v3840_v36 = vshll.u32 %v8064_v51, 16  ;;  %v3844_v26 = vshrl.u32 %v8064_v51, 16  ;;  %9222 = vst [vmem:[#allocation21_spill] sm:$0xff] %v8093_v35  ;;  %v3809_v33 = vrot.slane %v3807_v60, 4 }
 0x10f   : > { %9217 = vst [vmem:[#allocation17_spill] sm:$0xff] %v8040_v16  ;;  %6096 = vmatprep.mubr.msk.bf16.mxu1 %vm707_vm3, %v9218_v56  ;;  %v8082_v56 = vld [vmem:[%s6381_s29 + $0x74] sm:$0x1]  ;;  %v3812_v37 = vrot.slane %v3810_v8, 5  ;;  %v8095_v50 = vrot.slane %v3816_v11, 5  ;;  %v3822_v7 = vrot.slane %v3820_v14, 4  ;;  %v9223_v54 = vcombine.low %v7648_v30, %v7664_v55  ;;  %v8123_v49 = vpop.f32.mrf.mxu0 }
 0x110   : > { %v8085_v58 = vpop.f32.mrf.mxu1  ;;  %v4426_v16 = vrot.slane %v4424_v19, 4  ;;  %v8108_v60 = vld [vmem:[%s6381_s29 + $0x80] sm:$0x1]  ;;  %v8111_v8 = vld [vmem:[%s6381_s29 + $0x6c] sm:$0xe]  ;;  %v3855_v11 = vshrl.u32 %v5560_v44, 16 }
 0x111   : > { %9221 = vst [vmem:[#allocation20_spill] sm:$0xff] %v8085_v58  ;;  %v8104_v58 = vsel %vm6711_vm7, %v5636_v42, %v4424_v19  ;;  %v3858_v14 = vshll.u32 %v5560_v44, 16  ;;  %v3868_v24 = vshrl.u32 %v8090_v4, 16  ;;  %v3833_v19 = vrot.slane %v3831_v46, 4  ;;  %9225 = vst [vmem:[#allocation23_spill] sm:$0xff] %v8123_v49 }
 0x112   : > { %v8119_v42 = vpop.f32.mrf.mxu1  ;;  %v3836_v35 = vrot.slane %v3834_v3, 5  ;;  %v8121_v18 = vrot.slane %v3840_v36, 5  ;;  %v3846_v10 = vrot.slane %v3844_v26, 4  ;;  %v9226_v44 = vcombine.low %v7668_v15, %v7696_v32  ;;  %v8142_v32 = vld [vmem:[%s6381_s29 + $0x8c] sm:$0x1] }
 0x113   : > { %6131 = vmatmul.mubr.msk.bf16.gmra.mxu0 %vm707_vm3, %v6288_v41  ;;  %v3826_v41 = vshll.u32 %v8082_v56, 16  ;;  %9224 = vst [vmem:[#allocation22_spill] sm:$0xff] %v8119_v42  ;;  %v3813_v30 = vor.u32 %v3812_v37, %v3809_v33  ;;  %v3823_v55 = vor.u32 %v3822_v7, %v8095_v50  ;;  %v3850_v46 = vshll.u32 %v8108_v60, 16  ;;  %v5622_v33 = vld [vmem:[%s6381_s29 + $0x78] sm:$0xe] }
 0x114   : > { %6134 = vmatprep.mubr.msk.bf16.mxu0 %vm707_vm3, %v6289_v59  ;;  %v3864_v59 = vshll.u32 %v8090_v4, 16  ;;  %v8133_v3 = vrot.slane %v3799_v45, 4  ;;  %v8137_v36 = vsel %vm6711_vm7, %v4426_v16, %v4427_v34  ;;  %v5637_v26 = vrot.slane %v8111_v8, 9  ;;  %v8147_v42 = vpop.f32.mrf.mxu1  ;;  %v5563_v8 = vld [vmem:[%s6381_s29 + $0x90] sm:$0xf] }
 0x115   : > { %v4438_v15 = vrot.slane %v8064_v51, 5  ;;  %v3857_v37 = vrot.slane %v3855_v11, 4  ;;  %v3860_v7 = vrot.slane %v3858_v14, 5  ;;  %9227 = vst [vmem:[#allocation24_spill] sm:$0xff] %v8147_v42  ;;  %v3828_v45 = vrot.slane %v3826_v41, 5 }
 0x116   : > { %6097 = vmatmul.mubr.msk.bf16.gmra.mxu1 %vm707_vm3, %v9223_v54  ;;  %v4431_v54 = vrot.slane %v8026_v2, 5  ;;  %v8145_v2 = vrot.slane %v3864_v59, 5  ;;  %v4434_v49 = vrot.slane %v8082_v56, 5  ;;  %v3837_v16 = vor.u32 %v3836_v35, %v3833_v19  ;;  %v8156_v59 = vld [vmem:[%s6381_s29 + $0x94] sm:$0xf] }
 0x117   : > { %6100 = vmatprep.mubr.msk.bf16.mxu1 %vm707_vm3, %v9226_v44  ;;  %v3870_v44 = vrot.slane %v3868_v24, 4  ;;  %v3847_v34 = vor.u32 %v3846_v10, %v8121_v18  ;;  %v3814_v51 = vrot.slane %v3813_v30, 4  ;;  %v3824_v11 = vrot.slane %v3823_v55, 4 }
 0x118   : > { %v4433_v62 = vrot.slane %v4431_v54, 4  ;;  %v3852_v14 = vrot.slane %v3850_v46, 5  ;;  %v9228_v24 = vcombine.low %v7789_v61, %v7793_v40  ;;  %v5638_v56 = vrot.slane %v5622_v33, 9 }
 0x119   : > { %v4440_v35 = vrot.slane %v4438_v15, 4  ;;  %v4441_v10 = vrot.slane %v8108_v60, 5  ;;  %v3874_v41 = vshll.u32 %v8142_v32, 16  ;;  %v3871_v30 = vor.u32 %v3870_v44, %v8145_v2 }
 0x11a   : > { %v3879_v55 = vshrl.u32 %v5563_v8, 16  ;;  %v3882_v46 = vshll.u32 %v5563_v8, 16  ;;  %v9230_v61 = vcombine.low %v7708_v9, %v7713_v47  ;;  %v3838_v40 = vrot.slane %v3837_v16, 4 }
 0x11b   : > { %v8152_v28 = vpop.f32.mrf.mxu0  ;;  %6135 = vmatmul.mubr.msk.bf16.gmra.mxu0 %vm707_vm3, %v6290_v13  ;;  %v3861_v13 = vor.u32 %v3860_v7, %v3857_v37  ;;  %v3848_v33 = vrot.slane %v3847_v34, 4  ;;  %v3888_v60 = vshll.u32 %v8156_v59, 16  ;;  %v3805_v37 = vsel %vm6425_vm4, %v8133_v3, %v8078_v25 }
 0x11c   : > { %6174 = vmatprep.mubr.msk.bf16.mxu0 %vm707_vm3, %v9228_v24  ;;  %v3892_v24 = vshrl.u32 %v8156_v59, 16  ;;  %v3819_v9 = vsel %vm6425_vm4, %v3814_v51, %v8095_v50  ;;  %v8188_v47 = vsel %vm6711_vm7, %v5637_v26, %v4431_v54  ;;  %v8192_v7 = vsel %vm6711_vm7, %v4433_v62, %v4434_v49  ;;  %v5623_v54 = vld [vmem:[%s6381_s29 + $0x84] sm:$0xe]  ;;  %v9269_v31 = vld [vmem:[#allocation24_spill] sm:$0xff] }
 0x11d   : > { %v8164_v19 = vpop.f32.mrf.mxu0  ;;  %v8200_v25 = vsel %vm6711_vm7, %v5638_v56, %v4438_v15  ;;  %v8204_v50 = vsel %vm6711_vm7, %v4440_v35, %v4441_v10  ;;  %v3876_v3 = vrot.slane %v3874_v41, 5  ;;  %v3862_v62 = vrot.slane %v3861_v13, 4  ;;  %v8228_v13 = vld [vmem:[%s6381_s29 + $0x98] sm:$0x1] }
 0x11e   : > { %9229 = vst [vmem:[#allocation25_spill] sm:$0xff] %v8164_v19  ;;  %v8167_v42 = vpop.f32.mrf.mxu1  ;;  %6101 = vmatmul.mubr.msk.bf16.gmra.mxu1 %vm707_vm3, %v9230_v61  ;;  %v3872_v49 = vrot.slane %v3871_v30, 4  ;;  %v3881_v16 = vrot.slane %v3879_v55, 4  ;;  %v3884_v34 = vrot.slane %v3882_v46, 5  ;;  %v3843_v15 = vsel %vm6425_vm4, %v3838_v40, %v8121_v18  ;;  %v5566_v30 = vld [vmem:[%s6381_s29 + $0x9c] sm:$0xf] }
 0x11f   : > { %v8175_v19 = vpop.f32.mrf.mxu0  ;;  %6140 = vmatprep.mubr.msk.bf16.mxu1 %vm707_vm3, %v7859_v27  ;;  %v3829_v27 = vsel %vm6425_vm4, %v3824_v11, %v3828_v45  ;;  %v3853_v45 = vsel %vm6425_vm4, %v3848_v33, %v3852_v14  ;;  %v8216_v51 = vrot.slane %v3888_v60, 5  ;;  %v3894_v11 = vrot.slane %v3892_v24, 4  ;;  %v8259_v24 = vld [vmem:[%s6381_s29 + $0xa0] sm:$0xf] }
 0x120   : > { %v8194_v44 = vpop.f32.mrf.mxu1  ;;  %v9231_v35 = vcombine.low %v7829_v48, %v7833_v38  ;;  %v5652_v10 = vcombine.low %v8052_v43, %v8069_v17  ;;  %v5653_v41 = vcombine.low %v8104_v58, %v8137_v36  ;;  %v5639_v18 = vrot.slane %v5623_v54, 9 }
 0x121   : > { %v8207_v26 = vpop.f32.mrf.mxu0  ;;  %v4445_v14 = vrot.slane %v8090_v4, 5  ;;  %v9232_v48 = vcombine.low %v7912_v6, %v7916_v22  ;;  %v9233_v38 = vsel %vm6425_vm4, %v8071_v29, %v8030_v39  ;;  %v8244_v61 = vcombine.low %v3819_v9, %v3829_v27  ;;  %v5624_v29 = vld [vmem:[%s6381_s29 + $0x90] sm:$0xe]  ;;  %v9240_v4 = vld [vmem:[#allocation2_spill] sm:$0xff] }
 0x122   : > { %v8209_v8 = vpop.f32.mrf.mxu1  ;;  %v8242_v46 = vcombine.low %v9233_v38, %v3805_v37  ;;  %v8250_v60 = vcombine.low %v3843_v15, %v3853_v45  ;;  %v3867_v6 = vsel %vm6425_vm4, %v3862_v62, %v8145_v2  ;;  %v3877_v22 = vsel %vm6425_vm4, %v3872_v49, %v3876_v3 }
 0x123   : > { %v5972_v56 = vpop.f32.mrf.mxu0  ;;  %6175 = vmatmul.mubr.msk.bf16.vlgmr.msra.gmra.mxu0 %vm707_vm3, %v9231_v35  ;;  %v3885_v39 = vor.u32 %v3884_v34, %v3881_v16  ;;  %v3895_v9 = vor.u32 %v3894_v11, %v8216_v51  ;;  %v3898_v27 = vshll.u32 %v8228_v13, 16  ;;  %v3903_v54 = vshrl.u32 %v5566_v30, 16 }
 0x124   : > { %v8231_v55 = vpop.f32.mrf.mxu1  ;;  %6178 = vmatprep.mubr.msk.bf16.mxu0 %vm707_vm3, %v9232_v48  ;;  %v3906_v15 = vshll.u32 %v5566_v30, 16  ;;  %v8270_v3 = vsel %vm6711_vm7, %v5639_v18, %v4445_v14  ;;  %v4447_v62 = vrot.slane %v4445_v14, 4  ;;  %v4448_v49 = vrot.slane %v8142_v32, 5 }
 0x125   : > { %v1511_v33 = vpop.f32.mrf.mxu0  ;;  %v5640_v16 = vrot.slane %v5624_v29, 9  ;;  %v4452_v34 = vrot.slane %v8156_v59, 5  ;;  %v3912_v11 = vshll.u32 %v8259_v24, 16  ;;  %v3916_v35 = vshrl.u32 %v8259_v24, 16 }
 0x126   : > { %v5938_v37 = vpop.f32.mrf.mxu1  ;;  %6141 = vmatmul.mubr.msk.bf16.vlgmr.msra.gmra.mxu1 %vm707_vm3, %v7861_v57  ;;  %v8279_v48 = vcombine.low %v3867_v6, %v3877_v22  ;;  %v8281_v18 = vrot.slane %v3885_v39, 4  ;;  %v3896_v32 = vrot.slane %v3895_v9, 4  ;;  %v3900_v38 = vrot.slane %v3898_v27, 5  ;;  %v5569_v22 = vld [vmem:[%s6381_s29 + $0xa8] sm:$0xf] }
 0x127   : > { %v1095_v45 = vadd.f32 %v5938_v37, %v7757_v5  ;;  %v5973_v2 = vpop.f32.mrf.mxu0  ;;  %6144 = vmatprep.mubr.msk.bf16.mxu1 %vm707_vm3, %v8008_v23  ;;  %v3905_v29 = vrot.slane %v3903_v54, 4  ;;  %v3908_v59 = vrot.slane %v3906_v15, 5  ;;  %v4455_v6 = vrot.slane %v8228_v13, 5  ;;  %v8307_v27 = vld [vmem:[%s6381_s29 + $0xac] sm:$0xf] }
 0x128   : > { %v1086_v57 = vpop.f32.mrf.mxu1  ;;  %v3918_v9 = vrot.slane %v3916_v35, 4  ;;  %v9237_v35 = vld [vmem:[#allocation8_spill] sm:$0xff] }
 0x129   : > { %v8276_v5 = vadd.f32 %v5972_v56, %v1095_v45  ;;  %v1087_v23 = vadd.f32 %v1086_v57, %v7781_v20  ;;  %v1514_v30 = vpop.f32.mrf.mxu0  ;;  %v9234_v45 = vcombine.low %v7949_v63, %v7975_v52  ;;  %v8292_v20 = vsel %vm6711_vm7, %v4447_v62, %v4448_v49  ;;  %v5625_v62 = vld [vmem:[%s6381_s29 + $0x9c] sm:$0xe] }
 0x12a   : > { %v5939_v14 = vpop.f32.mrf.mxu1  ;;  %v4454_v63 = vrot.slane %v4452_v34, 4  ;;  %v8304_v52 = vrot.slane %v3912_v11, 5  ;;  %v4459_v49 = vrot.slane %v8259_v24, 5  ;;  %v3936_v24 = vshll.u32 %v8307_v27, 16 }
 0x12b   : > { %v8283_v37 = vadd.f32 %v1511_v33, %v1087_v23  ;;  %v1098_v40 = vadd.f32 %v5939_v14, %v7800_v53  ;;  %v5976_v56 = vpop.f32.mrf.mxu0  ;;  %6179 = vmatmul.mubr.msk.bf16.gmra.mxu0 %vm707_vm3, %v9234_v45  ;;  %v9235_v33 = vcombine.low %v8014_v21, %v8018_v1  ;;  %v8302_v53 = vsel %vm6711_vm7, %v5640_v16, %v4452_v34  ;;  %v5568_v1 = vld [vmem:[%s6381_s29 + $0xa4] sm:$0x1]  ;;  %v9236_v16 = vld [vmem:[#allocation11_spill] sm:$0xff] }
 0x12c   : > { %v1089_v39 = vpop.f32.mrf.mxu1  ;;  %v3891_v21 = vsel %vm6425_vm4, %v8281_v18, %v8216_v51  ;;  %v3927_v34 = vshrl.u32 %v5569_v22, 16  ;;  %v9238_v51 = vld [vmem:[#allocation16_spill] sm:$0xff]  ;;  %v3940_v18 = vshrl.u32 %v8307_v27, 16 }
 0x12d   : > { %6182 = vmatprep.mubr.msk.bf16.mxu0 %vm707_vm3, %v9235_v33  ;;  %v8309_v54 = vadd.f32 %v5973_v2, %v1098_v40  ;;  %v1090_v13 = vadd.f32 %v1089_v39, %v7845_v12  ;;  %v1527_v15 = vpop.f32.mrf.mxu0  ;;  %v3901_v40 = vsel %vm6425_vm4, %v3896_v32, %v3900_v38  ;;  %v3909_v2 = vor.u32 %v3908_v59, %v3905_v29  ;;  %v9239_v59 = vld [vmem:[#allocation12_spill] sm:$0xff] }
 0x12e   : > { %v5942_v57 = vpop.f32.mrf.mxu1  ;;  %6145 = vmatmul.mubr.msk.bf16.gmra.mxu1 %vm707_vm3, %v9236_v16  ;;  %v3930_v12 = vshll.u32 %v5569_v22, 16  ;;  %v8332_v39 = vsel %vm6711_vm7, %v4454_v63, %v4455_v6  ;;  %v3919_v32 = vor.u32 %v3918_v9, %v8304_v52  ;;  %v3922_v38 = vshll.u32 %v5568_v1, 16 }
 0x12f   : > { %v8323_v11 = vadd.f32 %v1514_v30, %v1090_v13  ;;  %v1111_v23 = vadd.f32 %v5942_v57, %v9237_v35  ;;  %v5977_v14 = vpop.f32.mrf.mxu0  ;;  %6148 = vmatprep.mubr.msk.bf16.mxu1 %vm707_vm3, %v9238_v51  ;;  %v5641_v30 = vrot.slane %v5625_v62, 9  ;;  %v4461_v13 = vrot.slane %v4459_v49, 4 }
 0x130   : > { %v1102_v45 = vpop.f32.mrf.mxu1  ;;  %v4462_v57 = vrot.slane %v5568_v1, 5  ;;  %v8340_v51 = vrot.slane %v3909_v2, 4  ;;  %v3929_v6 = vrot.slane %v3927_v34, 4  ;;  %v3932_v63 = vrot.slane %v3930_v12, 5  ;;  %v8350_v1 = vld [vmem:[%s6381_s29 + $0xb0] sm:$0x1] }
 0x131   : > { %v8335_v29 = vadd.f32 %v5976_v56, %v1111_v23  ;;  %v1103_v22 = vadd.f32 %v1102_v45, %v9239_v59  ;;  %v1530_v33 = vpop.f32.mrf.mxu0  ;;  %v8352_v23 = vrot.slane %v3936_v24, 5  ;;  %v3942_v2 = vrot.slane %v3940_v18, 4  ;;  %v9241_v12 = vld [vmem:[#allocation14_spill] sm:$0xff] }
 0x132   : > { %v5943_v16 = vpop.f32.mrf.mxu1  ;;  %v8362_v43 = vrot.slane %v3919_v32, 4  ;;  %v8364_v17 = vrot.slane %v3922_v38, 5  ;;  %v8372_v58 = vsel %vm6711_vm7, %v5641_v30, %v4459_v49  ;;  %v8376_v36 = vsel %vm6711_vm7, %v4461_v13, %v4462_v57  ;;  %v8388_v30 = vld [vmem:[%s6381_s29 + $0xb8] sm:$0xf] }
 0x133   : > { %v8342_v9 = vadd.f32 %v1527_v15, %v1103_v22  ;;  %v1114_v62 = vadd.f32 %v5943_v16, %v9240_v4  ;;  %v5980_v56 = vpop.f32.mrf.mxu0  ;;  %6183 = vmatmul.mubr.msk.bf16.gmra.mxu0 %vm707_vm3, %v5652_v10  ;;  %v8358_v15 = vcombine.low %v3891_v21, %v3901_v40  ;;  %v5626_v10 = vld [vmem:[%s6381_s29 + $0xa8] sm:$0xe]  ;;  %v3933_v32 = vor.u32 %v3932_v63, %v3929_v6  ;;  %v9243_v22 = vld [vmem:[#allocation9_spill] sm:$0xff] }
 0x134   : > { %v1105_v45 = vpop.f32.mrf.mxu1  ;;  %6186 = vmatprep.mubr.msk.bf16.mxu0 %vm707_vm3, %v5653_v41  ;;  %v5572_v41 = vld [vmem:[%s6381_s29 + $0xb4] sm:$0xf]  ;;  %v9242_v40 = vld [vmem:[#allocation19_spill] sm:$0xff]  ;;  %v3946_v38 = vshll.u32 %v8350_v1, 16  ;;  %v4466_v49 = vrot.slane %v8307_v27, 5  ;;  %v3943_v16 = vor.u32 %v3942_v2, %v8352_v23  ;;  %v3925_v27 = vsel %vm6425_vm4, %v8362_v43, %v8364_v17 }
 0x135   : > { %v8367_v34 = vadd.f32 %v5977_v14, %v1114_v62  ;;  %v1106_v24 = vadd.f32 %v1105_v45, %v9241_v12  ;;  %v1543_v18 = vpop.f32.mrf.mxu0  ;;  %v5642_v62 = vrot.slane %v5626_v10, 9  ;;  %v3951_v6 = vshrl.u32 %v5572_v41, 16 }
 0x136   : > { %v5946_v21 = vpop.f32.mrf.mxu1  ;;  %6149 = vmatmul.mubr.msk.bf16.gmra.mxu1 %vm707_vm3, %v9242_v40  ;;  %v3954_v63 = vshll.u32 %v5572_v41, 16  ;;  %v3960_v2 = vshll.u32 %v8388_v30, 16  ;;  %v3964_v10 = vshrl.u32 %v8388_v30, 16  ;;  %v5575_v40 = vld [vmem:[%s6381_s29 + $0xc0] sm:$0xf]  ;;  %v3934_v4 = vrot.slane %v3933_v32, 4 }
 0x137   : > { %v8390_v59 = vadd.f32 %v1530_v33, %v1106_v24  ;;  %v1127_v13 = vadd.f32 %v5946_v21, %v9243_v22  ;;  %v5981_v57 = vpop.f32.mrf.mxu0  ;;  %6152 = vmatprep.mubr.msk.bf16.mxu1 %vm707_vm3, %v8242_v46  ;;  %v9245_v24 = vld [vmem:[#allocation18_spill] sm:$0xff]  ;;  %v3948_v43 = vrot.slane %v3946_v38, 5  ;;  %v4468_v17 = vrot.slane %v4466_v49, 4 }
 0x138   : > { %v1118_v45 = vpop.f32.mrf.mxu1  ;;  %v4469_v33 = vrot.slane %v8350_v1, 5  ;;  %v8418_v14 = vsel %vm6711_vm7, %v5642_v62, %v4466_v49  ;;  %v8421_v32 = vld [vmem:[%s6381_s29 + $0xc4] sm:$0xf]  ;;  %v9249_v1 = vcombine.low %v8200_v25, %v8204_v50  ;;  %v8433_v62 = vrot.slane %v3960_v2, 5 }
 0x139   : > { %v8402_v12 = vadd.f32 %v5980_v56, %v1127_v13  ;;  %v1119_v21 = vadd.f32 %v1118_v45, %v9245_v24  ;;  %v1546_v46 = vpop.f32.mrf.mxu0  ;;  %v9247_v56 = vld [vmem:[#allocation21_spill] sm:$0xff]  ;;  %v9248_v45 = vcombine.low %v8188_v47, %v8192_v7  ;;  %v3944_v24 = vrot.slane %v3943_v16, 4  ;;  %v9250_v16 = vld [vmem:[#allocation23_spill] sm:$0xff] }
 0x13a   : > { %v5947_v22 = vpop.f32.mrf.mxu1  ;;  %v3975_v47 = vshrl.u32 %v5575_v40, 16  ;;  %v3978_v7 = vshll.u32 %v5575_v40, 16  ;;  %v3939_v25 = vsel %vm6425_vm4, %v3934_v4, %v8352_v23  ;;  %v8442_v50 = vsel %vm6711_vm7, %v4468_v17, %v4469_v33  ;;  %v5627_v40 = vld [vmem:[%s6381_s29 + $0xb4] sm:$0xe] }
 0x13b   : > { %9244 = vst [vmem:[#allocation11_spill] sm:$0xff] %v8402_v12  ;;  %v8409_v35 = vadd.f32 %v1543_v18, %v1119_v21  ;;  %v1130_v41 = vadd.f32 %v5947_v22, %v9247_v56  ;;  %v5984_v13 = vpop.f32.mrf.mxu0  ;;  %6187 = vmatmul.mubr.msk.bf16.gmra.mxu0 %vm707_vm3, %v9248_v45  ;;  %v8428_v18 = vld [vmem:[%s6381_s29 + $0xbc] sm:$0x1]  ;;  %v3953_v21 = vrot.slane %v3951_v6, 4  ;;  %v3956_v22 = vrot.slane %v3954_v63, 5 }
 0x13c   : > { %v1121_v38 = vpop.f32.mrf.mxu1  ;;  %6190 = vmatprep.mubr.msk.bf16.mxu0 %vm707_vm3, %v9249_v1  ;;  %v3988_v6 = vshrl.u32 %v8421_v32, 16  ;;  %v3970_v23 = vshll.u32 %v8428_v18, 16  ;;  %v4473_v17 = vrot.slane %v8388_v30, 5  ;;  %v9251_v1 = vld [vmem:[#allocation25_spill] sm:$0xff] }
 0x13d   : > { %9246 = vst [vmem:[#allocation8_spill] sm:$0xff] %v8409_v35  ;;  %v8430_v56 = vadd.f32 %v5981_v57, %v1130_v41  ;;  %v1122_v45 = vadd.f32 %v1121_v38, %v9250_v16  ;;  %v1559_v49 = vpop.f32.mrf.mxu0  ;;  %v3966_v35 = vrot.slane %v3964_v10, 4  ;;  %v3984_v57 = vshll.u32 %v8421_v32, 16 }
 0x13e   : > { %v5950_v12 = vpop.f32.mrf.mxu1  ;;  %6153 = vmatmul.mubr.msk.bf16.gmra.mxu1 %vm707_vm3, %v8244_v61  ;;  %v3949_v61 = vsel %vm6425_vm4, %v3944_v24, %v3948_v43  ;;  %v3957_v33 = vor.u32 %v3956_v22, %v3953_v21  ;;  %v3977_v41 = vrot.slane %v3975_v47, 4  ;;  %v3980_v38 = vrot.slane %v3978_v7, 5 }
 0x13f   : > { %v8446_v63 = vadd.f32 %v1546_v46, %v1122_v45  ;;  %v1143_v2 = vadd.f32 %v5950_v12, %v8152_v28  ;;  %v5985_v10 = vpop.f32.mrf.mxu0  ;;  %6156 = vmatprep.mubr.msk.bf16.mxu1 %vm707_vm3, %v8250_v60  ;;  %v9252_v60 = vsel %vm6425_vm4, %v8340_v51, %v8304_v52  ;;  %v3967_v24 = vor.u32 %v3966_v35, %v8433_v62 }
 0x140   : > { %v1134_v4 = vpop.f32.mrf.mxu1  ;;  %v8464_v43 = vcombine.low %v9252_v60, %v3925_v27  ;;  %v8467_v30 = vcombine.low %v3939_v25, %v3949_v61  ;;  %v8471_v22 = vrot.slane %v3984_v57, 5  ;;  %v3990_v47 = vrot.slane %v3988_v6, 4  ;;  %v5577_v27 = vld [vmem:[%s6381_s29 + $0xc8] sm:$0x1] }
 0x141   : > { %v8456_v46 = vadd.f32 %v5984_v13, %v1143_v2  ;;  %v1135_v28 = vadd.f32 %v1134_v4, %v9251_v1  ;;  %v1562_v12 = vpop.f32.mrf.mxu0  ;;  %v5659_v13 = vcombine.low %v8418_v14, %v8442_v50  ;;  %v9253_v52 = vcombine.low %v8270_v3, %v8292_v20  ;;  %v5578_v14 = vld [vmem:[%s6381_s29 + $0xcc] sm:$0xf]  ;;  %v8492_v20 = vld [vmem:[%s6381_s29 + $0xd0] sm:$0xf]  ;;  %v5628_v4 = vld [vmem:[%s6381_s29 + $0xc0] sm:$0xe] }
 0x142   : > { %v5951_v21 = vpop.f32.mrf.mxu1  ;;  %v8480_v35 = vrot.slane %v3970_v23, 5  ;;  %v5643_v51 = vrot.slane %v5627_v40, 9  ;;  %v9254_v50 = vcombine.low %v8302_v53, %v8332_v39  ;;  %v4476_v57 = vrot.slane %v8428_v18, 5 }
 0x143   : > { %v8473_v7 = vadd.f32 %v1559_v49, %v1135_v28  ;;  %v1146_v16 = vadd.f32 %v5951_v21, %v8175_v19  ;;  %v5988_v45 = vpop.f32.mrf.mxu0  ;;  %6191 = vmatmul.mubr.msk.bf16.gmra.mxu0 %vm707_vm3, %v9253_v52  ;;  %v8488_v49 = vrot.slane %v3957_v33, 4  ;;  %v4475_v19 = vrot.slane %v4473_v17, 4 }
 0x144   : > { %v1137_v25 = vpop.f32.mrf.mxu1  ;;  %6194 = vmatprep.mubr.msk.bf16.mxu0 %vm707_vm3, %v9254_v50  ;;  %v3981_v3 = vor.u32 %v3980_v38, %v3977_v41  ;;  %v8497_v23 = vrot.slane %v3967_v24, 4  ;;  %v4480_v53 = vrot.slane %v8421_v32, 5  ;;  %v3991_v33 = vor.u32 %v3990_v47, %v8471_v22 }
 0x145   : > { %v8494_v6 = vadd.f32 %v5985_v10, %v1146_v16  ;;  %v1138_v2 = vadd.f32 %v1137_v25, %v8207_v26  ;;  %v1575_v61 = vpop.f32.mrf.mxu0  ;;  %v3994_v18 = vshll.u32 %v5577_v27, 16  ;;  %v3999_v40 = vshrl.u32 %v5578_v14, 16  ;;  %v9257_v10 = vld [vmem:[#allocation4_spill] sm:$0xff]  ;;  %v9258_v16 = vld [vmem:[#allocation3_spill] sm:$0xff] }
 0x146   : > { %v5954_v39 = vpop.f32.mrf.mxu1  ;;  %6157 = vmatmul.mubr.msk.bf16.gmra.mxu1 %vm707_vm3, %v8279_v48  ;;  %v4002_v41 = vshll.u32 %v5578_v14, 16  ;;  %v4008_v28 = vshll.u32 %v8492_v20, 16  ;;  %v4012_v32 = vshrl.u32 %v8492_v20, 16  ;;  %v4474_v48 = vsel %vm6711_vm7, %v5643_v51, %v4473_v17  ;;  %v9259_v17 = vld [vmem:[#allocation6_spill] sm:$0xff] }
 0x147   : > { %9255 = vst [vmem:[#allocation16_spill] sm:$0xff] %v8494_v6  ;;  %v8504_v38 = vadd.f32 %v1562_v12, %v1138_v2  ;;  %v1159_v1 = vadd.f32 %v5954_v39, %v9257_v10  ;;  %v5989_v26 = vpop.f32.mrf.mxu0  ;;  %6160 = vmatprep.mubr.msk.bf16.mxu1 %vm707_vm3, %v8358_v15  ;;  %v4477_v24 = vsel %vm6711_vm7, %v4475_v19, %v4476_v57  ;;  %v3982_v21 = vrot.slane %v3981_v3, 4 }
 0x148   : > { %v1150_v60 = vpop.f32.mrf.mxu1  ;;  %v5644_v12 = vrot.slane %v5628_v4, 9  ;;  %v4482_v25 = vrot.slane %v4480_v53, 4  ;;  %v4483_v15 = vrot.slane %v5577_v27, 5  ;;  %v3992_v2 = vrot.slane %v3991_v33, 4  ;;  %v5580_v33 = vld [vmem:[%s6381_s29 + $0xd4] sm:$0x1] }
 0x149   : > { %9256 = vst [vmem:[#allocation12_spill] sm:$0xff] %v8504_v38  ;;  %v8515_v47 = vadd.f32 %v5988_v45, %v1159_v1  ;;  %v1151_v52 = vadd.f32 %v1150_v60, %v9258_v16  ;;  %v1578_v14 = vpop.f32.mrf.mxu0  ;;  %v3996_v39 = vrot.slane %v3994_v18, 5  ;;  %v4001_v10 = vrot.slane %v3999_v40, 4  ;;  %v9261_v18 = vld [vmem:[#allocation5_spill] sm:$0xff] }
 0x14a   : > { %v5955_v50 = vpop.f32.mrf.mxu1  ;;  %v4004_v38 = vrot.slane %v4002_v41, 5  ;;  %v9260_v45 = vcombine.low %v8372_v58, %v8376_v36  ;;  %v8525_v57 = vrot.slane %v4008_v28, 5  ;;  %v4014_v27 = vrot.slane %v4012_v32, 4 }
 0x14b   : > { %v8518_v6 = vadd.f32 %v1575_v61, %v1151_v52  ;;  %v1162_v51 = vadd.f32 %v5955_v50, %v9259_v17  ;;  %v5992_v19 = vpop.f32.mrf.mxu0  ;;  %v3963_v61 = vsel %vm6425_vm4, %v8488_v49, %v8433_v62  ;;  %v3973_v4 = vsel %vm6425_vm4, %v8497_v23, %v8480_v35  ;;  %v5629_v62 = vld [vmem:[%s6381_s29 + $0xcc] sm:$0xe] }
 0x14c   : > { %6195 = vmatmul.mubr.msk.bf16.gmra.mxu0 %vm707_vm3, %v9260_v45  ;;  %v1153_v3 = vpop.f32.mrf.mxu1  ;;  %v4487_v58 = vrot.slane %v8492_v20, 5  ;;  %v4484_v1 = vsel %vm6711_vm7, %v4482_v25, %v4483_v15  ;;  %v5660_v35 = vcombine.low %v4474_v48, %v4477_v24  ;;  %v3987_v20 = vsel %vm6425_vm4, %v3982_v21, %v8471_v22  ;;  %v9263_v25 = vld [vmem:[#allocation10_spill] sm:$0xff] }
 0x14d   : > { %6198 = vmatprep.mubr.msk.bf16.mxu0 %vm707_vm3, %v5659_v13  ;;  %v8538_v36 = vadd.f32 %v5989_v26, %v1162_v51  ;;  %v1154_v40 = vadd.f32 %v1153_v3, %v9261_v18  ;;  %v1591_v41 = vpop.f32.mrf.mxu0  ;;  %v4481_v13 = vsel %vm6711_vm7, %v5644_v12, %v4480_v53  ;;  %v3997_v23 = vsel %vm6425_vm4, %v3992_v2, %v3996_v39  ;;  %v9262_v53 = vld [vmem:[#allocation7_spill] sm:$0xff] }
 0x14e   : > { %v5958_v49 = vpop.f32.mrf.mxu1  ;;  %6161 = vmatmul.mubr.msk.bf16.gmra.mxu1 %vm707_vm3, %v8464_v43  ;;  %v4005_v26 = vor.u32 %v4004_v38, %v4001_v10  ;;  %v4015_v12 = vor.u32 %v4014_v27, %v8525_v57  ;;  %v4018_v43 = vshll.u32 %v5580_v33, 16  ;;  %v5661_v24 = vcombine.low %v4481_v13, %v4484_v1 }
 0x14f   : > { %v8553_v28 = vadd.f32 %v1578_v14, %v1154_v40  ;;  %v1175_v32 = vadd.f32 %v5958_v49, %v9262_v53  ;;  %v5993_v60 = vpop.f32.mrf.mxu0  ;;  %6164 = vmatprep.mubr.msk.bf16.mxu1 %vm707_vm3, %v8467_v30  ;;  %v5645_v16 = vrot.slane %v5629_v62, 9  ;;  %v4489_v52 = vrot.slane %v4487_v58, 4  ;;  %v9264_v30 = vld [vmem:[#allocation13_spill] sm:$0xff] }
 0x150   : > { %v1166_v48 = vpop.f32.mrf.mxu1  ;;  %v4490_v22 = vrot.slane %v5580_v33, 5  ;;  %v5595_v50 = vcombine.low %v3963_v61, %v3973_v4  ;;  %v5596_v2 = vcombine.low %v3987_v20, %v3997_v23  ;;  %v4006_v39 = vrot.slane %v4005_v26, 4  ;;  %v9265_v33 = vld [vmem:[#allocation15_spill] sm:$0xff]  ;;  %v9266_v62 = vld [vmem:[#allocation17_spill] sm:$0xff]  ;;  %v9267_v26 = vld [vmem:[#allocation20_spill] sm:$0xff] }
 0x151   : > { %v8559_v21 = vadd.f32 %v5992_v19, %v1175_v32  ;;  %v1167_v38 = vadd.f32 %v1166_v48, %v9263_v25  ;;  %v1594_v14 = vpop.f32.mrf.mxu0  ;;  %v4016_v45 = vrot.slane %v4015_v12, 4  ;;  %v4020_v27 = vrot.slane %v4018_v43, 5  ;;  %v9268_v43 = vld [vmem:[#allocation22_spill] sm:$0xff] }
 0x152   : > { %v5959_v15 = vpop.f32.mrf.mxu1  ;;  %v4488_v19 = vsel %vm6711_vm7, %v5645_v16, %v4487_v58  ;;  %v4491_v61 = vsel %vm6711_vm7, %v4489_v52, %v4490_v22  ;;  %v4011_v13 = vsel %vm6425_vm4, %v4006_v39, %v8525_v57 }
 0x153   : > { %v8562_v10 = vadd.f32 %v1591_v41, %v1167_v38  ;;  %v1178_v17 = vadd.f32 %v5959_v15, %v9264_v30  ;;  %v5996_v51 = vpop.f32.mrf.mxu0  ;;  %v4021_v0 = vsel %vm6425_vm4, %v4016_v45, %v4020_v27 }
 0x154   : > { %6199 = vmatmul.mubr.msk.bf16.gmra.mxu0 %vm707_vm3, %v5660_v35  ;;  %v1169_v3 = vpop.f32.mrf.mxu1  ;;  %v5662_v35 = vcombine.low %v4488_v19, %v4491_v61  ;;  %v5597_v12 = vcombine.low %v4011_v13, %v4021_v0 }
 0x155   : > { %6202 = vmatprep.mubr.msk.bf16.mxu0 %vm707_vm3, %v5661_v24  ;;  %v8571_v4 = vadd.f32 %v5993_v60, %v1178_v17  ;;  %v1170_v18 = vadd.f32 %v1169_v3, %v9265_v33  ;;  %v1607_v40 = vpop.f32.mrf.mxu0 }
 0x156   : > { %v5962_v41 = vpop.f32.mrf.mxu1  ;;  %6165 = vmatmul.mubr.msk.bf16.gmra.mxu1 %vm707_vm3, %v5595_v50 }
 0x157   : > { %v8578_v1 = vadd.f32 %v1594_v14, %v1170_v18  ;;  %v1191_v49 = vadd.f32 %v5962_v41, %v9266_v62  ;;  %v5997_v58 = vpop.f32.mrf.mxu0  ;;  %6168 = vmatprep.mubr.msk.bf16.mxu1 %vm707_vm3, %v5596_v2 }
 0x158   : > { %v1182_v20 = vpop.f32.mrf.mxu1 }
 0x159   : > { %v8584_v23 = vadd.f32 %v5996_v51, %v1191_v49  ;;  %v1183_v53 = vadd.f32 %v1182_v20, %v9267_v26  ;;  %v1610_v32 = vpop.f32.mrf.mxu0 }
 0x15a   : > { %v5963_v60 = vpop.f32.mrf.mxu1 }
 0x15b   : > { %v8587_v57 = vadd.f32 %v1607_v40, %v1183_v53  ;;  %v1194_v48 = vadd.f32 %v5963_v60, %v9268_v43  ;;  %v6000_v24 = vpop.f32.mrf.mxu0 }
 0x15c   : > { %6203 = vmatmul.mubr.msk.bf16.gmra.mxu0 %vm707_vm3, %v5662_v35  ;;  %v1185_v16 = vpop.f32.mrf.mxu1 }
 0x15d   : > { %v8591_v52 = vadd.f32 %v5997_v58, %v1194_v48  ;;  %v1186_v22 = vadd.f32 %v1185_v16, %v9269_v31  ;;  %v1623_v25 = vpop.f32.mrf.mxu0 }
 0x15e   : > { %v5966_v38 = vpop.f32.mrf.mxu1  ;;  %6169 = vmatmul.mubr.msk.bf16.gmra.mxu1 %vm707_vm3, %v5597_v12 }
 0x15f   : > { %v8595_v14 = vadd.f32 %v1610_v32, %v1186_v22  ;;  %v1207_v15 = vadd.f32 %v5966_v38, %v8167_v42  ;;  %v6001_v50 = vpop.f32.mrf.mxu0 }
 0x160   : > { %v1198_v2 = vpop.f32.mrf.mxu1 }
 0x161   : > { %v8598_v39 = vadd.f32 %v6000_v24, %v1207_v15  ;;  %v1199_v30 = vadd.f32 %v1198_v2, %v8194_v44  ;;  %v1626_v17 = vpop.f32.mrf.mxu0 }
 0x162   : > { %v5967_v51 = vpop.f32.mrf.mxu1 }
 0x163   : > { %v8601_v45 = vadd.f32 %v1623_v25, %v1199_v30  ;;  %v1210_v27 = vadd.f32 %v5967_v51, %v8209_v8  ;;  %v6040_v3 = vpop.f32.mrf.mxu0  ;;  %v9270_v30 = vld [vmem:[#allocation11_spill] sm:$0xff] }
 0x164   : > { %v1201_v19 = vpop.f32.mrf.mxu1 }
 0x165   : > { %v8604_v61 = vadd.f32 %v6001_v50, %v1210_v27  ;;  %v1202_v33 = vadd.f32 %v1201_v19, %v8231_v55  ;;  %v2599_v18 = vpop.f32.mrf.mxu0 }
 0x166   : > { %v6006_v42 = vpop.f32.mrf.mxu1 }
 0x167   : > { %v8607_v40 = vadd.f32 %v1626_v17, %v1202_v33  ;;  %v2002_v41 = vadd.f32 %v6006_v42, %v8276_v5  ;;  %v6041_v13 = vpop.f32.mrf.mxu0 }
 0x168   : > { %v1873_v44 = vpop.f32.mrf.mxu1 }
 0x169   : > { %v8610_v62 = vadd.f32 %v6040_v3, %v2002_v41  ;;  %v2000_v49 = vadd.f32 %v1873_v44, %v8283_v37  ;;  %v2602_v58 = vpop.f32.mrf.mxu0  ;;  %v9271_v3 = vld [vmem:[#allocation8_spill] sm:$0xff] }
 0x16a   : > { %v6007_v8 = vpop.f32.mrf.mxu1 }
 0x16b   : > { %v8613_v0 = vadd.f32 %v2599_v18, %v2000_v49  ;;  %v2003_v35 = vadd.f32 %v6007_v8, %v8309_v54  ;;  %v6044_v20 = vpop.f32.mrf.mxu0 }
 0x16c   : > { %v1876_v55 = vpop.f32.mrf.mxu1 }
 0x16d   : > { %v8616_v26 = vadd.f32 %v6041_v13, %v2003_v35  ;;  %v2001_v53 = vadd.f32 %v1876_v55, %v8323_v11  ;;  %v2615_v32 = vpop.f32.mrf.mxu0 }
 0x16e   : > { %v6010_v5 = vpop.f32.mrf.mxu1 }
 0x16f   : > { %v8619_v60 = vadd.f32 %v2602_v58, %v2001_v53  ;;  %v2006_v12 = vadd.f32 %v6010_v5, %v8335_v29  ;;  %v6045_v43 = vpop.f32.mrf.mxu0 }
 0x170   : > { %v1889_v37 = vpop.f32.mrf.mxu1 }
 0x171   : > { %v8622_v48 = vadd.f32 %v6044_v20, %v2006_v12  ;;  %v2004_v24 = vadd.f32 %v1889_v37, %v8342_v9  ;;  %v2618_v16 = vpop.f32.mrf.mxu0 }
 0x172   : > { %v6011_v54 = vpop.f32.mrf.mxu1 }
 0x173   : > { %v8625_v31 = vadd.f32 %v2615_v32, %v2004_v24  ;;  %v2007_v22 = vadd.f32 %v6011_v54, %v8367_v34  ;;  %v6048_v25 = vpop.f32.mrf.mxu0  ;;  %v9273_v54 = vld [vmem:[#allocation12_spill] sm:$0xff] }
 0x174   : > { %v1892_v11 = vpop.f32.mrf.mxu1 }
 0x175   : > { %v8628_v38 = vadd.f32 %v6045_v43, %v2007_v22  ;;  %v2005_v15 = vadd.f32 %v1892_v11, %v8390_v59  ;;  %v2631_v50 = vpop.f32.mrf.mxu0  ;;  %v9272_v43 = vld [vmem:[#allocation16_spill] sm:$0xff] }
 0x176   : > { %v6014_v29 = vpop.f32.mrf.mxu1 }
 0x177   : > { %v8631_v2 = vadd.f32 %v2618_v16, %v2005_v15  ;;  %v2010_v17 = vadd.f32 %v6014_v29, %v9270_v30  ;;  %v6049_v51 = vpop.f32.mrf.mxu0 }
 0x178   : > { %v1905_v9 = vpop.f32.mrf.mxu1 }
 0x179   : > { %v8634_v27 = vadd.f32 %v6048_v25, %v2010_v17  ;;  %v2008_v19 = vadd.f32 %v1905_v9, %v9271_v3  ;;  %v2634_v33 = vpop.f32.mrf.mxu0 }
 0x17a   : > { %v6015_v34 = vpop.f32.mrf.mxu1 }
 0x17b   : > { %v8637_v18 = vadd.f32 %v2631_v50, %v2008_v19  ;;  %v2011_v42 = vadd.f32 %v6015_v34, %v8430_v56  ;;  %v6052_v41 = vpop.f32.mrf.mxu0 }
 0x17c   : > { %v1908_v59 = vpop.f32.mrf.mxu1 }
 0x17d   : > { %v8640_v13 = vadd.f32 %v6049_v51, %v2011_v42  ;;  %v2009_v44 = vadd.f32 %v1908_v59, %v8446_v63  ;;  %v2647_v49 = vpop.f32.mrf.mxu0 }
 0x17e   : > { %v6018_v58 = vpop.f32.mrf.mxu1 }
 0x17f   : > { %v8643_v8 = vadd.f32 %v2634_v33, %v2009_v44  ;;  %v2014_v35 = vadd.f32 %v6018_v58, %v8456_v46  ;;  %v6053_v20 = vpop.f32.mrf.mxu0 }
 0x180   : > { %v1921_v55 = vpop.f32.mrf.mxu1 }
 0x181   : > { %v8646_v53 = vadd.f32 %v6052_v41, %v2014_v35  ;;  %v2012_v32 = vadd.f32 %v1921_v55, %v8473_v7  ;;  %v2650_v5 = vpop.f32.mrf.mxu0 }
 0x182   : > { %v6019_v56 = vpop.f32.mrf.mxu1 }
 0x183   : > { %v8649_v12 = vadd.f32 %v2647_v49, %v2012_v32  ;;  %v2015_v37 = vadd.f32 %v6019_v56, %v9272_v43  ;;  %v6056_v24 = vpop.f32.mrf.mxu0 }
 0x184   : > { %v1924_v63 = vpop.f32.mrf.mxu1 }
 0x185   : > { %v8652_v16 = vadd.f32 %v6053_v20, %v2015_v37  ;;  %v2013_v22 = vadd.f32 %v1924_v63, %v9273_v54  ;;  %v2663_v25 = vpop.f32.mrf.mxu0 }
 0x186   : > { %v6022_v46 = vpop.f32.mrf.mxu1 }
 0x187   : > { %v8655_v11 = vadd.f32 %v2650_v5, %v2013_v22  ;;  %v2018_v15 = vadd.f32 %v6022_v46, %v8515_v47  ;;  %v6057_v50 = vpop.f32.mrf.mxu0 }
 0x188   : > { %v1937_v7 = vpop.f32.mrf.mxu1 }
 0x189   : > { %v8658_v29 = vadd.f32 %v6056_v24, %v2018_v15  ;;  %v2016_v30 = vadd.f32 %v1937_v7, %v8518_v6  ;;  %v2666_v17 = vpop.f32.mrf.mxu0 }
 0x18a   : > { %v6023_v51 = vpop.f32.mrf.mxu1 }
 0x18b   : > { %v8661_v9 = vadd.f32 %v2663_v25, %v2016_v30  ;;  %v2019_v3 = vadd.f32 %v6023_v51, %v8538_v36  ;;  %v6060_v19 = vpop.f32.mrf.mxu0 }
 0x18c   : > { %v1940_v33 = vpop.f32.mrf.mxu1 }
 0x18d   : > { %v8664_v34 = vadd.f32 %v6057_v50, %v2019_v3  ;;  %v2017_v42 = vadd.f32 %v1940_v33, %v8553_v28  ;;  %v2679_v41 = vpop.f32.mrf.mxu0 }
 0x18e   : > { %v6026_v47 = vpop.f32.mrf.mxu1 }
 0x18f   : > { %9274 = vst [vmem:[#allocation2_spill] sm:$0xff] %v8664_v34  ;;  %v8667_v59 = vadd.f32 %v2666_v17, %v2017_v42  ;;  %v2022_v44 = vadd.f32 %v6026_v47, %v8559_v21  ;;  %v6061_v49 = vpop.f32.mrf.mxu0 }
 0x190   : > { %v1953_v6 = vpop.f32.mrf.mxu1 }
 0x191   : > { %9275 = vst [vmem:[#allocation14_spill] sm:$0xff] %v8667_v59  ;;  %v8670_v58 = vadd.f32 %v6060_v19, %v2022_v44  ;;  %v2020_v35 = vadd.f32 %v1953_v6, %v8562_v10  ;;  %v2682_v20 = vpop.f32.mrf.mxu0 }
 0x192   : > { %v6027_v36 = vpop.f32.mrf.mxu1 }
 0x193   : > { %9276 = vst [vmem:[#allocation19_spill] sm:$0xff] %v8670_v58  ;;  %v8673_v55 = vadd.f32 %v2679_v41, %v2020_v35  ;;  %v2023_v32 = vadd.f32 %v6027_v36, %v8571_v4  ;;  %v6064_v5 = vpop.f32.mrf.mxu0 }
 0x194   : > { %v1956_v28 = vpop.f32.mrf.mxu1 }
 0x195   : > { %9277 = vst [vmem:[#allocation9_spill] sm:$0xff] %v8673_v55  ;;  %v8676_v56 = vadd.f32 %v6061_v49, %v2023_v32  ;;  %v2021_v43 = vadd.f32 %v1956_v28, %v8578_v1  ;;  %v2695_v37 = vpop.f32.mrf.mxu0 }
 0x196   : > { %v6030_v21 = vpop.f32.mrf.mxu1 }
 0x197   : > { %9278 = vst [vmem:[#allocation18_spill] sm:$0xff] %v8676_v56  ;;  %v8679_v24 = vadd.f32 %v2682_v20, %v2021_v43  ;;  %v2026_v63 = vadd.f32 %v6030_v21, %v8584_v23  ;;  %v6065_v54 = vpop.f32.mrf.mxu0 }
 0x198   : > { %v1969_v10 = vpop.f32.mrf.mxu1 }
 0x199   : > { %9279 = vst [vmem:[#allocation21_spill] sm:$0xff] %v8679_v24  ;;  %v8682_v22 = vadd.f32 %v6064_v5, %v2026_v63  ;;  %v2024_v25 = vadd.f32 %v1969_v10, %v8587_v57  ;;  %v2698_v46 = vpop.f32.mrf.mxu0 }
 0x19a   : > { %v6031_v4 = vpop.f32.mrf.mxu1 }
 0x19b   : > { %9280 = vst [vmem:[#allocation23_spill] sm:$0xff] %v8682_v22  ;;  %v8685_v15 = vadd.f32 %v2695_v37, %v2024_v25  ;;  %v2027_v50 = vadd.f32 %v6031_v4, %v8591_v52  ;;  %v6068_v7 = vpop.f32.mrf.mxu0 }
 0x19c   : > { %v1972_v1 = vpop.f32.mrf.mxu1 }
 0x19d   : > { %9281 = vst [vmem:[#allocation25_spill] sm:$0xff] %v8685_v15  ;;  %v8688_v30 = vadd.f32 %v6065_v54, %v2027_v50  ;;  %v2025_v17 = vadd.f32 %v1972_v1, %v8595_v14  ;;  %v2711_v51 = vpop.f32.mrf.mxu0 }
 0x19e   : > { %v6034_v23 = vpop.f32.mrf.mxu1 }
 0x19f   : > { %9282 = vst [vmem:[#allocation4_spill] sm:$0xff] %v8688_v30  ;;  %v8691_v3 = vadd.f32 %v2698_v46, %v2025_v17  ;;  %v2030_v19 = vadd.f32 %v6034_v23, %v8598_v39  ;;  %v6069_v33 = vpop.f32.mrf.mxu0 }
 0x1a0   : > { %v1985_v57 = vpop.f32.mrf.mxu1 }
 0x1a1   : > { %9283 = vst [vmem:[#allocation3_spill] sm:$0xff] %v8691_v3  ;;  %v8694_v42 = vadd.f32 %v6068_v7, %v2030_v19  ;;  %v2028_v41 = vadd.f32 %v1985_v57, %v8601_v45  ;;  %v2714_v47 = vpop.f32.mrf.mxu0 }
 0x1a2   : > { %v6035_v52 = vpop.f32.mrf.mxu1 }
 0x1a3   : > { %9284 = vst [vmem:[#allocation6_spill] sm:$0xff] %v8694_v42  ;;  %v8697_v44 = vadd.f32 %v2711_v51, %v2028_v41  ;;  %v2031_v49 = vadd.f32 %v6035_v52, %v8604_v61  ;;  %v8700_v6 = vpop.f32.mrf.mxu0 }
 0x1a4   : > { %v1988_v14 = vpop.f32.mrf.mxu1 }
 0x1a5   : > { %9285 = vst [vmem:[#allocation5_spill] sm:$0xff] %v8697_v44  ;;  %v8702_v35 = vadd.f32 %v6069_v33, %v2031_v49  ;;  %v2029_v20 = vadd.f32 %v1988_v14, %v8607_v40  ;;  %v8705_v39 = vpop.f32.mrf.mxu0 }
 0x1a6   : > { %v6074_v36 = vpop.f32.mrf.mxu1 }
 0x1a7   : > { %9286 = vst [vmem:[#allocation7_spill] sm:$0xff] %v8702_v35  ;;  %v8707_v32 = vadd.f32 %v2714_v47, %v2029_v20  ;;  %v8709_v5 = vpop.f32.mrf.mxu0 }
 0x1a8   : > { %v3069_v45 = vpop.f32.mrf.mxu1 }
 0x1a9   : > { %9287 = vst [vmem:[#allocation10_spill] sm:$0xff] %v8707_v32  ;;  %v8711_v28 = vpop.f32.mrf.mxu0 }
 0x1aa   : > { %v8713_v43 = vpop.f32.mrf.mxu1 }
 0x1ab   : > { %v8715_v61 = vpop.f32.mrf.mxu0 }
 0x1ac   : > { %v8717_v37 = vpop.f32.mrf.mxu1 }
 0x1ad   : > { %v8719_v21 = vpop.f32.mrf.mxu0 }
 0x1ae   : > { %v8721_v63 = vpop.f32.mrf.mxu1 }
 0x1af   : > { %v8723_v40 = vpop.f32.mrf.mxu0 }
 0x1b0   : > { %v8725_v54 = vpop.f32.mrf.mxu1 }
 0x1b1   : > { %v8727_v10 = vpop.f32.mrf.mxu0 }
 0x1b2   : > { %v8729_v25 = vpop.f32.mrf.mxu1 }
 0x1b3   : > { %v8731_v46 = vpop.f32.mrf.mxu0 }
 0x1b4   : > { %v8733_v4 = vpop.f32.mrf.mxu1 }
 0x1b5   : > { %v8735_v50 = vpop.f32.mrf.mxu0 }
 0x1b6   : > { %v8737_v7 = vpop.f32.mrf.mxu1 }
 0x1b7   : > { %v8739_v1 = vpop.f32.mrf.mxu0 }
 0x1b8   : > { %v8741_v17 = vpop.f32.mrf.mxu1 }
 0x1b9   : > { %v8743_v51 = vpop.f32.mrf.mxu0 }
 0x1ba   : > { %v8745_v23 = vpop.f32.mrf.mxu1 }
 0x1bb   : > { %v8747_v19 = vpop.f32.mrf.mxu0 }
 0x1bc   : > { %v8749_v33 = vpop.f32.mrf.mxu1 }
 0x1bd   : > { %v8751_v57 = vpop.f32.mrf.mxu0 }
 0x1be   : > { %v8753_v41 = vpop.f32.mrf.mxu1 }
 0x1bf   : > { %v8755_v47 = vpop.f32.mrf.mxu0 }
 0x1c0   : > { %v8757_v52 = vpop.f32.mrf.mxu1 }
 0x1c1   : > { %v8759_v49 = vpop.f32.mrf.mxu0 }
 0x1c2   : > { %v8761_v14 = vpop.f32.mrf.mxu1 }
 0x1c3   : > { %v8763_v20 = vpop.f32.mrf.mxu0 }
 0x1c4   : > { %v8765_v32 = vpop.f32.mrf.mxu1 }
 0x1c5   : > { %v8767_v35 = vpop.f32.mrf.mxu0 }
 0x1c6   : > { %9288 = vst [vmem:[#allocation13_spill] sm:$0xff] %v8767_v35  ;;  %v8769_v44 = vpop.f32.mrf.mxu1 }
 0x1c7   : > { %v8771_v42 = vpop.f32.mrf.mxu0 }
 0x1c8   : > { %9289 = vst [vmem:[#allocation15_spill] sm:$0xff] %v8771_v42  ;;  %v8773_v3 = vpop.f32.mrf.mxu1 }
 0x1c9   : > { %v8775_v30 = vpop.f32.mrf.mxu0 }
 0x1ca   : > { %9290 = vst [vmem:[#allocation17_spill] sm:$0xff] %v8775_v30  ;;  %v8777_v15 = vpop.f32.mrf.mxu1 }
 0x1cb   : > { %9291 = vst [vmem:[#allocation20_spill] sm:$0xff] %v8777_v15  ;;  %v8779_v22 = vpop.f32.mrf.mxu0 }
 0x1cc   : > { %9292 = vst [vmem:[#allocation22_spill] sm:$0xff] %v8779_v22  ;;  %v8781_v24 = vpop.f32.mrf.mxu1 }
 0x1cd   : > { %9293 = vst [vmem:[#allocation24_spill] sm:$0xff] %v8781_v24  ;;  %v8783_v56 = vpop.f32.mrf.mxu0 }
 0x1ce   : > { %9294 = vst [vmem:[#allocation11_spill] sm:$0xff] %v8783_v56  ;;  %v8785_v55 = vpop.f32.mrf.mxu1 }
 0x1cf   : > { %9295 = vst [vmem:[#allocation8_spill] sm:$0xff] %v8785_v55  ;;  %v8787_v58 = vpop.f32.mrf.mxu0 }
 0x1d0   : > { %9296 = vst [vmem:[#allocation16_spill] sm:$0xff] %v8787_v58  ;;  %v8789_v59 = vpop.f32.mrf.mxu1 }
 0x1d1   : > { %9297 = vst [vmem:[#allocation12_spill] sm:$0xff] %v8789_v59  ;;  %v8791_v35 = vpop.f32.mrf.mxu0 }
 0x1d2   : > { %9298 = vst [vmem:[#allocation26_spill] sm:$0xff] %v8791_v35  ;;  %v8793_v42 = vpop.f32.mrf.mxu1 }
 0x1d3   : > { %9299 = vst [vmem:[#allocation27_spill] sm:$0xff] %v8793_v42  ;;  %v8795_v34 = vpop.f32.mrf.mxu0 }
 0x1d4   : > { %9300 = vst [vmem:[#allocation28_spill] sm:$0xff] %v8795_v34  ;;  %v8797_v30 = vpop.f32.mrf.mxu1 }
 0x1d5   : > { %9301 = vst [vmem:[#allocation29_spill] sm:$0xff] %v8797_v30  ;;  %v8799_v22 = vpop.f32.mrf.mxu0 }
 0x1d6   : > { %9302 = vst [vmem:[#allocation30_spill] sm:$0xff] %v8799_v22  ;;  %v8801_v24 = vpop.f32.mrf.mxu1 }
 0x1d7   : > { %9303 = vst [vmem:[#allocation31_spill] sm:$0xff] %v8801_v24  ;;  %v8803_v56 = vpop.f32.mrf.mxu0 }
 0x1d8   : > { %9304 = vst [vmem:[#allocation32_spill] sm:$0xff] %v8803_v56  ;;  %v8805_v55 = vpop.f32.mrf.mxu1  ;;  %v3198_v56 = vadd.f32 %v6074_v36, %v8610_v62  ;;  %v3197_v36 = vadd.f32 %v8717_v37, %v8619_v60  ;;  %v8851_v60 = vld [vmem:[%s9082_s3] ss:$0 sm:$0xff] }
 0x1d9   : > { %9305 = vst [vmem:[#allocation33_spill] sm:$0xff] %v8805_v55  ;;  %v8807_v58 = vpop.f32.mrf.mxu0 }
 0x1da   : > { %9306 = vst [vmem:[#allocation34_spill] sm:$0xff] %v8807_v58  ;;  %v8809_v59 = vpop.f32.mrf.mxu1  ;;  %v3196_v58 = vadd.f32 %v3069_v45, %v8613_v0  ;;  %v8841_v0 = vld [vmem:[%s9081_s2] ss:$0 sm:$0xff] }
 0x1db   : > { %9307 = vst [vmem:[#allocation35_spill] sm:$0xff] %v8809_v59  ;;  %v8811_v35 = vpop.f32.mrf.mxu0 }
 0x1dc   : > { %9308 = vst [vmem:[#allocation36_spill] sm:$0xff] %v8811_v35  ;;  %v8813_v42 = vpop.f32.mrf.mxu1  ;;  %v3558_v62 = vadd.f32 %v8705_v39, %v3196_v58  ;;  %v3202_v58 = vadd.f32 %v8721_v63, %v8622_v48 }
 0x1dd   : > { %v8815_v34 = vpop.f32.mrf.mxu0 }
 0x1de   : > { %9309 = vst [vmem:[#allocation37_spill] sm:$0xff] %v8815_v34  ;;  %v8817_v30 = vpop.f32.mrf.mxu1  ;;  %v3560_v34 = vadd.f32 %v8700_v6, %v3198_v56 }
 0x1df   : > { %9310 = vst [vmem:[#allocation38_spill] sm:$0xff] %v8817_v30  ;;  %v8819_v15 = vpop.f32.mrf.mxu0  ;;  %v3199_v30 = vadd.f32 %v8713_v43, %v8616_v26 }
 0x1e0   : > { %9311 = vst [vmem:[#allocation39_spill] sm:$0xff] %v8819_v15  ;;  %v8821_v22 = vpop.f32.mrf.mxu1 }
 0x1e1   : > { %9312 = vst [vmem:[#allocation40_spill] sm:$0xff] %v8821_v22  ;;  %v8824_v24 = vpop.f32.mrf.mxu0  ;;  %v3561_v56 = vadd.f32 %v8709_v5, %v3199_v30 }
 0x1e2   : > { %9313 = vst [vmem:[#allocation41_spill] sm:$0xff] %v8824_v24  ;;  %v8826_v55 = vpop.f32.mrf.mxu1 }
 0x1e3   : > { %9314 = vst [vmem:[#allocation42_spill] sm:$0xff] %v8826_v55  ;;  %v6176_v35 = vpop.f32.mrf.mxu0 }
 0x1e4   : > { %v8830_v59 = vpop.f32.mrf.mxu1 }
 0x1e5   : > { %9315 = vst [vmem:[#allocation43_spill] sm:$0xff] %v8830_v59  ;;  %v4627_v15 = vpop.f32.mrf.mxu0 }
 0x1e6   : > { %v6142_v22 = vpop.f32.mrf.mxu1 }
 0x1e7   : > { %v4286_v24 = vadd.f32 %v6142_v22, %v3560_v34  ;;  %v6177_v55 = vpop.f32.mrf.mxu0  ;;  %v3559_v22 = vadd.f32 %v8711_v28, %v3197_v36  ;;  %v3564_v36 = vadd.f32 %v8715_v61, %v3202_v58 }
 0x1e8   : > { %v4157_v45 = vpop.f32.mrf.mxu1 }
 0x1e9   : > { %v4756_v26 = vadd.f32 %v6176_v35, %v4286_v24  ;;  %v4284_v6 = vadd.f32 %v4157_v45, %v3558_v62  ;;  %v4630_v43 = vpop.f32.mrf.mxu0  ;;  %v3200_v24 = vadd.f32 %v8725_v54, %v8625_v31  ;;  %v3203_v35 = vadd.f32 %v8729_v25, %v8628_v38 }
 0x1ea   : > { %v6143_v34 = vpop.f32.mrf.mxu1 }
 0x1eb   : > { %v4795_v39 = vmul.f32 %v8841_v0, %v4756_v26  ;;  %v4754_v30 = vadd.f32 %v4627_v15, %v4284_v6  ;;  %v4287_v5 = vadd.f32 %v6143_v34, %v3561_v56  ;;  %v6180_v37 = vpop.f32.mrf.mxu0  ;;  %v3201_v15 = vadd.f32 %v8733_v4, %v8631_v2 }
 0x1ec   : > { %v4160_v48 = vpop.f32.mrf.mxu1  ;;  %v3562_v6 = vadd.f32 %v8719_v21, %v3200_v24  ;;  %v3206_v34 = vadd.f32 %v8737_v7, %v8634_v27  ;;  %v3204_v27 = vadd.f32 %v8741_v17, %v8637_v18 }
 0x1ed   : > { %v4834_v63 = vadd.f32 %v8851_v60, %v4795_v39  ;;  %v4793_v62 = vmul.f32 %v8841_v0, %v4754_v30  ;;  %v4757_v45 = vadd.f32 %v6177_v55, %v4287_v5  ;;  %v4285_v59 = vadd.f32 %v4160_v48, %v3559_v22  ;;  %v4643_v28 = vpop.f32.mrf.mxu0 }
 0x1ee   : > { %v6146_v56 = vpop.f32.mrf.mxu1  ;;  %v3565_v55 = vadd.f32 %v8723_v40, %v3203_v35  ;;  %v3563_v40 = vadd.f32 %v8727_v10, %v3201_v15  ;;  %v3207_v10 = vadd.f32 %v8745_v23, %v8640_v13 }
 0x1ef   : > { %v4866_v31 = vmax.f32 %v4834_v63, 0.0  ;;  %v4832_v54 = vadd.f32 %v8851_v60, %v4793_v62  ;;  %v4796_v38 = vmul.f32 %v8841_v0, %v4757_v45  ;;  %v4755_v25 = vadd.f32 %v4630_v43, %v4285_v59  ;;  %v6181_v26 = vpop.f32.mrf.mxu0 }
 0x1f0   : > { %v4290_v2 = vadd.f32 %v6146_v56, %v3564_v36  ;;  %v4173_v61 = vpop.f32.mrf.mxu1  ;;  %v3568_v63 = vadd.f32 %v8731_v46, %v3206_v34  ;;  %v3205_v46 = vadd.f32 %v8749_v33, %v8643_v8 }
 0x1f1   : > { %v5717_v4 = vpack.c.bf16 %v4866_v31, %v4866_v31  ;;  %v4864_v58 = vmax.f32 %v4832_v54, 0.0  ;;  %v4835_v59 = vadd.f32 %v8851_v60, %v4796_v38  ;;  %v4794_v43 = vmul.f32 %v8841_v0, %v4755_v25  ;;  %v4646_v21 = vpop.f32.mrf.mxu0 }
 0x1f2   : > { %v4760_v7 = vadd.f32 %v6180_v37, %v4290_v2  ;;  %v4288_v22 = vadd.f32 %v4173_v61, %v3562_v6  ;;  %v6147_v39 = vpop.f32.mrf.mxu1  ;;  %v3566_v31 = vadd.f32 %v8735_v50, %v3204_v27  ;;  %v3210_v50 = vadd.f32 %v8753_v41, %v8646_v53 }
 0x1f3   : > { %5027 = vst.msk [vmem:[%s8874_s27 + $0x8] sm:$0xf] %vm5024_vm8, %v5717_v4  ;;  %v5715_v30 = vpack.c.bf16 %v4864_v58, %v4864_v58  ;;  %v4867_v5 = vmax.f32 %v4835_v59, 0.0  ;;  %v4833_v24 = vadd.f32 %v8851_v60, %v4794_v43  ;;  %v4291_v35 = vadd.f32 %v6147_v39, %v3565_v55  ;;  %v6184_v48 = vpop.f32.mrf.mxu0 }
 0x1f4   : > { %v4799_v62 = vmul.f32 %v8841_v0, %v4760_v7  ;;  %v4758_v18 = vadd.f32 %v4643_v28, %v4288_v22  ;;  %v4176_v17 = vpop.f32.mrf.mxu1  ;;  %v3569_v55 = vadd.f32 %v8739_v1, %v3207_v10  ;;  %v3567_v43 = vadd.f32 %v8743_v51, %v3205_v46 }
 0x1f5   : > { %5025 = vst.msk [vmem:[%s8874_s27] sm:$0xf] %vm5024_vm8, %v5715_v30  ;;  %v5718_v37 = vpack.c.bf16 %v4867_v5, %v4867_v5  ;;  %v4865_v45 = vmax.f32 %v4833_v24, 0.0  ;;  %v4761_v36 = vadd.f32 %v6181_v26, %v4291_v35  ;;  %v4289_v15 = vadd.f32 %v4176_v17, %v3563_v40  ;;  %v4659_v56 = vpop.f32.mrf.mxu0 }
 0x1f6   : > { %v4838_v54 = vadd.f32 %v8851_v60, %v4799_v62  ;;  %v4797_v13 = vmul.f32 %v8841_v0, %v4758_v18  ;;  %v6150_v23 = vpop.f32.mrf.mxu1  ;;  %v3208_v1 = vadd.f32 %v8757_v52, %v8649_v12  ;;  %v3572_v30 = vadd.f32 %v8747_v19, %v3210_v50 }
 0x1f7   : > { %5028 = vst.msk [vmem:[%s8874_s27 + $0xc] sm:$0xf] %vm5024_vm8, %v5718_v37  ;;  %v5716_v28 = vpack.c.bf16 %v4865_v45, %v4865_v45  ;;  %v4800_v38 = vmul.f32 %v8841_v0, %v4761_v36  ;;  %v4759_v25 = vadd.f32 %v4646_v21, %v4289_v15  ;;  %v4294_v26 = vadd.f32 %v6150_v23, %v3568_v63  ;;  %v6185_v6 = vpop.f32.mrf.mxu0 }
 0x1f8   : > { %v4870_v34 = vmax.f32 %v4838_v54, 0.0  ;;  %v4836_v8 = vadd.f32 %v8851_v60, %v4797_v13  ;;  %v4189_v33 = vpop.f32.mrf.mxu1  ;;  %v3211_v5 = vadd.f32 %v8761_v14, %v8652_v16  ;;  %v3570_v62 = vadd.f32 %v8751_v57, %v3208_v1 }
 0x1f9   : > { %5026 = vst.msk [vmem:[%s8874_s27 + $0x4] sm:$0xf] %vm5024_vm8, %v5716_v28  ;;  %v4839_v2 = vadd.f32 %v8851_v60, %v4800_v38  ;;  %v4798_v61 = vmul.f32 %v8841_v0, %v4759_v25  ;;  %v4764_v4 = vadd.f32 %v6184_v48, %v4294_v26  ;;  %v4292_v58 = vadd.f32 %v4189_v33, %v3566_v31  ;;  %v4662_v59 = vpop.f32.mrf.mxu0  ;;  %v9317_v33 = vld [vmem:[#allocation20_spill] sm:$0xff] }
 0x1fa   : > { %v5721_v53 = vpack.c.bf16 %v4870_v34, %v4870_v34  ;;  %v4868_v41 = vmax.f32 %v4836_v8, 0.0  ;;  %v6151_v21 = vpop.f32.mrf.mxu1  ;;  %v3209_v19 = vadd.f32 %v8765_v32, %v8655_v11  ;;  %v3214_v11 = vadd.f32 %v8769_v44, %v8658_v29 }
 0x1fb   : > { %v4871_v40 = vmax.f32 %v4839_v2, 0.0  ;;  %v4837_v27 = vadd.f32 %v8851_v60, %v4798_v61  ;;  %v4803_v7 = vmul.f32 %v8841_v0, %v4764_v4  ;;  %v4762_v22 = vadd.f32 %v4659_v56, %v4292_v58  ;;  %v6188_v39 = vpop.f32.mrf.mxu0 }
 0x1fc   : > { %5031 = vst.msk [vmem:[%s8874_s27 + $0x18] sm:$0xf] %vm5024_vm8, %v5721_v53  ;;  %v5719_v12 = vpack.c.bf16 %v4868_v41, %v4868_v41  ;;  %v4295_v51 = vadd.f32 %v6151_v21, %v3569_v55  ;;  %v4192_v52 = vpop.f32.mrf.mxu1  ;;  %v3573_v56 = vadd.f32 %v8755_v47, %v3211_v5  ;;  %v3571_v38 = vadd.f32 %v8759_v49, %v3209_v19  ;;  %v9316_v49 = vld [vmem:[#allocation2_spill] sm:$0xff]  ;;  %v9318_v53 = vld [vmem:[#allocation13_spill] sm:$0xff]  ;;  %v9320_v21 = vld [vmem:[#allocation24_spill] sm:$0xff] }
 0x1fd   : > { %v5722_v24 = vpack.c.bf16 %v4871_v40, %v4871_v40  ;;  %v4869_v35 = vmax.f32 %v4837_v27, 0.0  ;;  %v4842_v48 = vadd.f32 %v8851_v60, %v4803_v7  ;;  %v4801_v63 = vmul.f32 %v8841_v0, %v4762_v22  ;;  %v4675_v10 = vpop.f32.mrf.mxu0 }
 0x1fe   : > { %5029 = vst.msk [vmem:[%s8874_s27 + $0x10] sm:$0xf] %vm5024_vm8, %v5719_v12  ;;  %v4765_v16 = vadd.f32 %v6185_v6, %v4295_v51  ;;  %v4293_v14 = vadd.f32 %v4192_v52, %v3567_v43  ;;  %v6154_v18 = vpop.f32.mrf.mxu1  ;;  %v3212_v47 = vadd.f32 %v8773_v3, %v8661_v9  ;;  %v3576_v8 = vadd.f32 %v8763_v20, %v3214_v11  ;;  %v9319_v20 = vld [vmem:[#allocation14_spill] sm:$0xff]  ;;  %v9321_v52 = vld [vmem:[#allocation15_spill] sm:$0xff] }
 0x1ff   : > { %5032 = vst.msk [vmem:[%s8874_s27 + $0x1c] sm:$0xf] %vm5024_vm8, %v5722_v24  ;;  %v5720_v17 = vpack.c.bf16 %v4869_v35, %v4869_v35  ;;  %v4874_v37 = vmax.f32 %v4842_v48, 0.0  ;;  %v4840_v45 = vadd.f32 %v8851_v60, %v4801_v63  ;;  %v4298_v36 = vadd.f32 %v6154_v18, %v3572_v30  ;;  %v6189_v15 = vpop.f32.mrf.mxu0  ;;  %v9322_v35 = vld [vmem:[#allocation19_spill] sm:$0xff]  ;;  %v9323_v48 = vld [vmem:[#allocation8_spill] sm:$0xff] }
 0x200   : > { %v4804_v32 = vmul.f32 %v8841_v0, %v4765_v16  ;;  %v4763_v57 = vadd.f32 %v4662_v59, %v4293_v14  ;;  %v4205_v31 = vpop.f32.mrf.mxu1  ;;  %v3215_v2 = vadd.f32 %v9317_v33, %v9316_v49  ;;  %v3574_v41 = vadd.f32 %v9318_v53, %v3212_v47 }
 0x201   : > { %5030 = vst.msk [vmem:[%s8874_s27 + $0x14] sm:$0xf] %vm5024_vm8, %v5720_v17  ;;  %v5725_v46 = vpack.c.bf16 %v4874_v37, %v4874_v37  ;;  %v4872_v54 = vmax.f32 %v4840_v45, 0.0  ;;  %v4768_v13 = vadd.f32 %v6188_v39, %v4298_v36  ;;  %v4296_v23 = vadd.f32 %v4205_v31, %v3570_v62  ;;  %v4678_v28 = vpop.f32.mrf.mxu0  ;;  %v9324_v45 = vld [vmem:[#allocation17_spill] sm:$0xff] }
 0x202   : > { %v4843_v25 = vadd.f32 %v8851_v60, %v4804_v32  ;;  %v4802_v29 = vmul.f32 %v8841_v0, %v4763_v57  ;;  %v6155_v44 = vpop.f32.mrf.mxu1  ;;  %v3213_v40 = vadd.f32 %v9320_v21, %v9319_v20  ;;  %v3577_v24 = vadd.f32 %v9321_v52, %v3215_v2  ;;  %v9330_v2 = vld [vmem:[#allocation11_spill] sm:$0xff] }
 0x203   : > { %5035 = vst.msk [vmem:[%s8874_s27 + $0x28] sm:$0xf] %vm5024_vm8, %v5725_v46  ;;  %v5723_v26 = vpack.c.bf16 %v4872_v54, %v4872_v54  ;;  %v4807_v6 = vmul.f32 %v8841_v0, %v4768_v13  ;;  %v4766_v55 = vadd.f32 %v4675_v10, %v4296_v23  ;;  %v4299_v50 = vadd.f32 %v6155_v44, %v3573_v56  ;;  %v6192_v34 = vpop.f32.mrf.mxu0  ;;  %v9326_v56 = vld [vmem:[#allocation12_spill] sm:$0xff] }
 0x204   : > { %v4875_v61 = vmax.f32 %v4843_v25, 0.0  ;;  %v4841_v9 = vadd.f32 %v8851_v60, %v4802_v29  ;;  %v4208_v3 = vpop.f32.mrf.mxu1  ;;  %v3218_v63 = vadd.f32 %v9323_v48, %v9322_v35  ;;  %v3575_v36 = vadd.f32 %v9324_v45, %v3213_v40  ;;  %v9328_v25 = vld [vmem:[#allocation18_spill] sm:$0xff]  ;;  %v9329_v29 = vld [vmem:[#allocation27_spill] sm:$0xff]  ;;  %v9333_v40 = vld [vmem:[#allocation16_spill] sm:$0xff] }
 0x205   : > { %5033 = vst.msk [vmem:[%s8874_s27 + $0x20] sm:$0xf] %vm5024_vm8, %v5723_v26  ;;  %v4846_v4 = vadd.f32 %v8851_v60, %v4807_v6  ;;  %v4805_v58 = vmul.f32 %v8841_v0, %v4766_v55  ;;  %v4769_v59 = vadd.f32 %v6189_v15, %v4299_v50  ;;  %v4297_v43 = vadd.f32 %v4208_v3, %v3571_v38  ;;  %v4691_v1 = vpop.f32.mrf.mxu0  ;;  %v9325_v15 = vld [vmem:[#allocation9_spill] sm:$0xff]  ;;  %v9327_v38 = vld [vmem:[#allocation22_spill] sm:$0xff] }
 0x206   : > { %v5726_v27 = vpack.c.bf16 %v4875_v61, %v4875_v61  ;;  %v4873_v7 = vmax.f32 %v4841_v9, 0.0  ;;  %v6158_v22 = vpop.f32.mrf.mxu1  ;;  %v3216_v11 = vadd.f32 %v9326_v56, %v9325_v15  ;;  %v3580_v47 = vadd.f32 %v9327_v38, %v3218_v63  ;;  %v9331_v9 = vld [vmem:[#allocation21_spill] sm:$0xff]  ;;  %v9336_v63 = vld [vmem:[#allocation26_spill] sm:$0xff] }
 0x207   : > { %v4878_v39 = vmax.f32 %v4846_v4, 0.0  ;;  %v4844_v30 = vadd.f32 %v8851_v60, %v4805_v58  ;;  %v4808_v5 = vmul.f32 %v8841_v0, %v4769_v59  ;;  %v4767_v12 = vadd.f32 %v4678_v28, %v4297_v43  ;;  %v6193_v51 = vpop.f32.mrf.mxu0  ;;  %v9332_v3 = vld [vmem:[#allocation29_spill] sm:$0xff] }
 0x208   : > { %5036 = vst.msk [vmem:[%s8874_s27 + $0x2c] sm:$0xf] %vm5024_vm8, %v5726_v27  ;;  %v5724_v10 = vpack.c.bf16 %v4873_v7, %v4873_v7  ;;  %v4302_v62 = vadd.f32 %v6158_v22, %v3576_v8  ;;  %v4221_v19 = vpop.f32.mrf.mxu1  ;;  %v3219_v44 = vadd.f32 %v9329_v29, %v9328_v25  ;;  %v3578_v61 = vadd.f32 %v9330_v2, %v3216_v11  ;;  %v9334_v7 = vld [vmem:[#allocation23_spill] sm:$0xff]  ;;  %v9339_v11 = vld [vmem:[#allocation28_spill] sm:$0xff] }
 0x209   : > { %v5729_v16 = vpack.c.bf16 %v4878_v39, %v4878_v39  ;;  %v4876_v14 = vmax.f32 %v4844_v30, 0.0  ;;  %v4847_v18 = vadd.f32 %v8851_v60, %v4808_v5  ;;  %v4806_v17 = vmul.f32 %v8841_v0, %v4767_v12  ;;  %v4694_v37 = vpop.f32.mrf.mxu0  ;;  %v9335_v22 = vld [vmem:[#allocation31_spill] sm:$0xff] }
 0x20a   : > { %5034 = vst.msk [vmem:[%s8874_s27 + $0x24] sm:$0xf] %vm5024_vm8, %v5724_v10  ;;  %v4772_v32 = vadd.f32 %v6192_v34, %v4302_v62  ;;  %v4300_v57 = vadd.f32 %v4221_v19, %v3574_v41  ;;  %v6159_v31 = vpop.f32.mrf.mxu1  ;;  %v3217_v4 = vadd.f32 %v9332_v3, %v9331_v9  ;;  %v3581_v27 = vadd.f32 %v9333_v40, %v3219_v44  ;;  %v9337_v62 = vld [vmem:[#allocation25_spill] sm:$0xff]  ;;  %v9342_v44 = vld [vmem:[#allocation30_spill] sm:$0xff]  ;;  %v9344_v3 = vld [vmem:[#allocation32_spill] sm:$0xff] }
 0x20b   : > { %5039 = vst.msk [vmem:[%s8874_s27 + $0x38] sm:$0xf] %vm5024_vm8, %v5729_v16  ;;  %v5727_v46 = vpack.c.bf16 %v4876_v14, %v4876_v14  ;;  %v4879_v54 = vmax.f32 %v4847_v18, 0.0  ;;  %v4845_v13 = vadd.f32 %v8851_v60, %v4806_v17  ;;  %v4303_v23 = vadd.f32 %v6159_v31, %v3577_v24  ;;  %v9338_v19 = vld [vmem:[#allocation33_spill] sm:$0xff]  ;;  %v9341_v31 = vld [vmem:[#allocation35_spill] sm:$0xff] }
 0x20c   : > { %v6196_v28 = vpop.f32.mrf.mxu0  ;;  %v4811_v26 = vmul.f32 %v8841_v0, %v4772_v32  ;;  %v4770_v6 = vadd.f32 %v4691_v1, %v4300_v57  ;;  %v4224_v55 = vpop.f32.mrf.mxu1  ;;  %v3222_v39 = vadd.f32 %v9335_v22, %v9334_v7  ;;  %v3579_v10 = vadd.f32 %v9336_v63, %v3217_v4  ;;  %v9340_v57 = vld [vmem:[#allocation4_spill] sm:$0xff]  ;;  %v9347_v7 = vld [vmem:[#allocation38_spill] sm:$0xff] }
 0x20d   : > { %5037 = vst.msk [vmem:[%s8874_s27 + $0x30] sm:$0xf] %vm5024_vm8, %v5727_v46  ;;  %v5730_v50 = vpack.c.bf16 %v4879_v54, %v4879_v54  ;;  %v4877_v34 = vmax.f32 %v4845_v13, 0.0  ;;  %v4773_v8 = vadd.f32 %v6193_v51, %v4303_v23  ;;  %v4301_v49 = vadd.f32 %v4224_v55, %v3575_v36  ;;  %v9349_v63 = vld [vmem:[#allocation40_spill] sm:$0xff] }
 0x20e   : > { %v4707_v33 = vpop.f32.mrf.mxu0  ;;  %v4850_v58 = vadd.f32 %v8851_v60, %v4811_v26  ;;  %v4809_v59 = vmul.f32 %v8841_v0, %v4770_v6  ;;  %v6162_v43 = vpop.f32.mrf.mxu1  ;;  %v3220_v16 = vadd.f32 %v9338_v19, %v9337_v62  ;;  %v3584_v32 = vadd.f32 %v9339_v11, %v3222_v39  ;;  %v9343_v6 = vld [vmem:[#allocation3_spill] sm:$0xff]  ;;  %v9351_v19 = vld [vmem:[#allocation42_spill] sm:$0xff] }
 0x20f   : > { %5040 = vst.msk [vmem:[%s8874_s27 + $0x3c] sm:$0xf] %vm5024_vm8, %v5730_v50  ;;  %v5728_v1 = vpack.c.bf16 %v4877_v34, %v4877_v34  ;;  %v4812_v53 = vmul.f32 %v8841_v0, %v4773_v8  ;;  %v4771_v41 = vadd.f32 %v4694_v37, %v4301_v49  ;;  %v4306_v20 = vadd.f32 %v6162_v43, %v3580_v47  ;;  %v9350_v62 = vld [vmem:[#allocation7_spill] sm:$0xff] }
 0x210   : > { %v6197_v21 = vpop.f32.mrf.mxu0  ;;  %v4882_v30 = vmax.f32 %v4850_v58, 0.0  ;;  %v4848_v5 = vadd.f32 %v8851_v60, %v4809_v59  ;;  %v4237_v12 = vpop.f32.mrf.mxu1  ;;  %v3223_v46 = vadd.f32 %v9341_v31, %v9340_v57  ;;  %v3582_v26 = vadd.f32 %v9342_v44, %v3220_v16  ;;  %v9354_v57 = vld [vmem:[#allocation43_spill] sm:$0xff] }
 0x211   : > { %5038 = vst.msk [vmem:[%s8874_s27 + $0x34] sm:$0xf] %vm5024_vm8, %v5728_v1  ;;  %v4851_v51 = vadd.f32 %v8851_v60, %v4812_v53  ;;  %v4810_v52 = vmul.f32 %v8841_v0, %v4771_v41  ;;  %v4776_v24 = vadd.f32 %v6196_v28, %v4306_v20  ;;  %v4304_v35 = vadd.f32 %v4237_v12, %v3578_v61 }
 0x212   : > { %v4710_v48 = vpop.f32.mrf.mxu0  ;;  %v5733_v14 = vpack.c.bf16 %v4882_v30, %v4882_v30  ;;  %v4880_v18 = vmax.f32 %v4848_v5, 0.0  ;;  %v6163_v17 = vpop.f32.mrf.mxu1  ;;  %v3221_v55 = vadd.f32 %v8813_v42, %v9343_v6  ;;  %v3585_v4 = vadd.f32 %v9344_v3, %v3223_v46 }
 0x213   : > { %v4883_v37 = vmax.f32 %v4851_v51, 0.0  ;;  %v4849_v45 = vadd.f32 %v8851_v60, %v4810_v52  ;;  %v4815_v36 = vmul.f32 %v8841_v0, %v4776_v24  ;;  %v4774_v15 = vadd.f32 %v4707_v33, %v4304_v35 }
 0x214   : > { %v6200_v56 = vpop.f32.mrf.mxu0  ;;  %5043 = vst.msk [vmem:[%s8874_s27 + $0x48] sm:$0xf] %vm5024_vm8, %v5733_v14  ;;  %v5731_v54 = vpack.c.bf16 %v4880_v18, %v4880_v18  ;;  %v4307_v13 = vadd.f32 %v6163_v17, %v3581_v27  ;;  %v4240_v23 = vpop.f32.mrf.mxu1  ;;  %v9346_v27 = vld [vmem:[#allocation6_spill] sm:$0xff]  ;;  %v3227_v16 = vadd.f32 %v9351_v19, %v9350_v62 }
 0x215   : > { %v5734_v28 = vpack.c.bf16 %v4883_v37, %v4883_v37  ;;  %v4881_v38 = vmax.f32 %v4849_v45, 0.0  ;;  %v4854_v47 = vadd.f32 %v8851_v60, %v4815_v36  ;;  %v4813_v25 = vmul.f32 %v8841_v0, %v4774_v15 }
 0x216   : > { %v4723_v29 = vpop.f32.mrf.mxu0  ;;  %5041 = vst.msk [vmem:[%s8874_s27 + $0x40] sm:$0xf] %vm5024_vm8, %v5731_v54  ;;  %v4777_v50 = vadd.f32 %v6197_v21, %v4307_v13  ;;  %v4305_v34 = vadd.f32 %v4240_v23, %v3579_v10  ;;  %v6166_v8 = vpop.f32.mrf.mxu1  ;;  %v9345_v21 = vld [vmem:[#allocation34_spill] sm:$0xff]  ;;  %v3226_v22 = vadd.f32 %v9347_v7, %v9346_v27 }
 0x217   : > { %5044 = vst.msk [vmem:[%s8874_s27 + $0x4c] sm:$0xf] %vm5024_vm8, %v5734_v28  ;;  %v5732_v49 = vpack.c.bf16 %v4881_v38, %v4881_v38  ;;  %v4886_v33 = vmax.f32 %v4854_v47, 0.0  ;;  %v4852_v2 = vadd.f32 %v8851_v60, %v4813_v25  ;;  %v4310_v61 = vadd.f32 %v6166_v8, %v3584_v32  ;;  %v9353_v32 = vld [vmem:[#allocation10_spill] sm:$0xff] }
 0x218   : > { %v6201_v9 = vpop.f32.mrf.mxu0  ;;  %v4816_v58 = vmul.f32 %v8841_v0, %v4777_v50  ;;  %v4775_v59 = vadd.f32 %v4710_v48, %v4305_v34  ;;  %v4253_v42 = vpop.f32.mrf.mxu1  ;;  %v3583_v40 = vadd.f32 %v9345_v21, %v3221_v55  ;;  %v9348_v48 = vld [vmem:[#allocation5_spill] sm:$0xff]  ;;  %v3225_v31 = vadd.f32 %v9354_v57, %v9353_v32 }
 0x219   : > { %5042 = vst.msk [vmem:[%s8874_s27 + $0x44] sm:$0xf] %vm5024_vm8, %v5732_v49  ;;  %v5737_v43 = vpack.c.bf16 %v4886_v33, %v4886_v33  ;;  %v4884_v1 = vmax.f32 %v4852_v2, 0.0  ;;  %v4780_v53 = vadd.f32 %v6200_v56, %v4310_v61  ;;  %v4308_v41 = vadd.f32 %v4253_v42, %v3582_v26  ;;  %v9352_v56 = vld [vmem:[#allocation36_spill] sm:$0xff]  ;;  %v9356_v26 = vld [vmem:[#allocation39_spill] sm:$0xff]  ;;  %v9357_v61 = vld [vmem:[#allocation41_spill] sm:$0xff] }
 0x21a   : > { %v4726_v20 = vpop.f32.mrf.mxu0  ;;  %v4855_v39 = vadd.f32 %v8851_v60, %v4816_v58  ;;  %v4814_v30 = vmul.f32 %v8841_v0, %v4775_v59  ;;  %v6167_v5 = vpop.f32.mrf.mxu1  ;;  %v3224_v10 = vadd.f32 %v9349_v63, %v9348_v48  ;;  %v3588_v11 = vadd.f32 %v9352_v56, %v3226_v22 }
 0x21b   : > { %5047 = vst.msk [vmem:[%s8874_s27 + $0x58] sm:$0xf] %vm5024_vm8, %v5737_v43  ;;  %v5735_v12 = vpack.c.bf16 %v4884_v1, %v4884_v1  ;;  %v4819_v51 = vmul.f32 %v8841_v0, %v4780_v53  ;;  %v4778_v52 = vadd.f32 %v4723_v29, %v4308_v41  ;;  %v4311_v24 = vadd.f32 %v6167_v5, %v3585_v4  ;;  %v9355_v29 = vld [vmem:[#allocation37_spill] sm:$0xff] }
 0x21c   : > { %v6204_v35 = vpop.f32.mrf.mxu0  ;;  %v4887_v14 = vmax.f32 %v4855_v39, 0.0  ;;  %v4853_v18 = vadd.f32 %v8851_v60, %v4814_v30  ;;  %v4256_v17 = vpop.f32.mrf.mxu1  ;;  %v3586_v44 = vadd.f32 %v9355_v29, %v3224_v10  ;;  %v3589_v6 = vadd.f32 %v9356_v26, %v3227_v16 }
 0x21d   : > { %5045 = vst.msk [vmem:[%s8874_s27 + $0x50] sm:$0xf] %vm5024_vm8, %v5735_v12  ;;  %v4858_v37 = vadd.f32 %v8851_v60, %v4819_v51  ;;  %v4817_v45 = vmul.f32 %v8841_v0, %v4778_v52  ;;  %v4781_v36 = vadd.f32 %v6201_v9, %v4311_v24  ;;  %v4309_v15 = vadd.f32 %v4256_v17, %v3583_v40 }
 0x21e   : > { %v5738_v46 = vpack.c.bf16 %v4887_v14, %v4887_v14  ;;  %v4885_v54 = vmax.f32 %v4853_v18, 0.0  ;;  %v6170_v13 = vpop.f32.mrf.mxu1  ;;  %v4739_v23 = vpop.f32.mrf.mxu0  ;;  %v3587_v9 = vadd.f32 %v9357_v61, %v3225_v31 }
 0x21f   : > { %v4890_v28 = vmax.f32 %v4858_v37, 0.0  ;;  %v4856_v38 = vadd.f32 %v8851_v60, %v4817_v45  ;;  %v4820_v47 = vmul.f32 %v8841_v0, %v4781_v36  ;;  %v4779_v25 = vadd.f32 %v4726_v20, %v4309_v15 }
 0x220   : > { %5048 = vst.msk [vmem:[%s8874_s27 + $0x5c] sm:$0xf] %vm5024_vm8, %v5738_v46  ;;  %v5736_v55 = vpack.c.bf16 %v4885_v54, %v4885_v54  ;;  %v4314_v50 = vadd.f32 %v6170_v13, %v3588_v11  ;;  %v4269_v34 = vpop.f32.mrf.mxu1  ;;  %v6205_v59 = vpop.f32.mrf.mxu0 }
 0x221   : > { %v5741_v8 = vpack.c.bf16 %v4890_v28, %v4890_v28  ;;  %v4888_v49 = vmax.f32 %v4856_v38, 0.0  ;;  %v4859_v33 = vadd.f32 %v8851_v60, %v4820_v47  ;;  %v4818_v2 = vmul.f32 %v8841_v0, %v4779_v25 }
 0x222   : > { %5046 = vst.msk [vmem:[%s8874_s27 + $0x54] sm:$0xf] %vm5024_vm8, %v5736_v55  ;;  %v4784_v3 = vadd.f32 %v6204_v35, %v4314_v50  ;;  %v4312_v4 = vadd.f32 %v4269_v34, %v3586_v44  ;;  %v6171_v58 = vpop.f32.mrf.mxu1  ;;  %v4742_v5 = vpop.f32.mrf.mxu0 }
 0x223   : > { %5051 = vst.msk [vmem:[%s8874_s27 + $0x68] sm:$0xf] %vm5024_vm8, %v5741_v8  ;;  %v5739_v42 = vpack.c.bf16 %v4888_v49, %v4888_v49  ;;  %v4891_v43 = vmax.f32 %v4859_v33, 0.0  ;;  %v4857_v1 = vadd.f32 %v8851_v60, %v4818_v2  ;;  %v4315_v53 = vadd.f32 %v6171_v58, %v3589_v6 }
 0x224   : > { %v4823_v41 = vmul.f32 %v8841_v0, %v4784_v3  ;;  %v4782_v20 = vadd.f32 %v4739_v23, %v4312_v4  ;;  %v4272_v21 = vpop.f32.mrf.mxu1 }
 0x225   : > { %5049 = vst.msk [vmem:[%s8874_s27 + $0x60] sm:$0xf] %vm5024_vm8, %v5739_v42  ;;  %v5742_v40 = vpack.c.bf16 %v4891_v43, %v4891_v43  ;;  %v4889_v27 = vmax.f32 %v4857_v1, 0.0  ;;  %v4785_v7 = vadd.f32 %v6205_v59, %v4315_v53  ;;  %v4313_v22 = vadd.f32 %v4272_v21, %v3587_v9 }
 0x226   : > { %v4862_v39 = vadd.f32 %v8851_v60, %v4823_v41  ;;  %v4821_v30 = vmul.f32 %v8841_v0, %v4782_v20 }
 0x227   : > { %5052 = vst.msk [vmem:[%s8874_s27 + $0x6c] sm:$0xf] %vm5024_vm8, %v5742_v40  ;;  %v5740_v12 = vpack.c.bf16 %v4889_v27, %v4889_v27  ;;  %v4824_v51 = vmul.f32 %v8841_v0, %v4785_v7  ;;  %v4783_v52 = vadd.f32 %v4742_v5, %v4313_v22 }
 0x228   : > { %v4894_v24 = vmax.f32 %v4862_v39, 0.0  ;;  %v4860_v35 = vadd.f32 %v8851_v60, %v4821_v30 }
 0x229   : > { %5050 = vst.msk [vmem:[%s8874_s27 + $0x64] sm:$0xf] %vm5024_vm8, %v5740_v12  ;;  %v4863_v48 = vadd.f32 %v8851_v60, %v4824_v51  ;;  %v4822_v63 = vmul.f32 %v8841_v0, %v4783_v52 }
 0x22a   : > { %v5745_v10 = vpack.c.bf16 %v4894_v24, %v4894_v24  ;;  %v4892_v62 = vmax.f32 %v4860_v35, 0.0 }
 0x22b   : > { %v4895_v19 = vmax.f32 %v4863_v48, 0.0  ;;  %v4861_v16 = vadd.f32 %v8851_v60, %v4822_v63 }
 0x22c   : > { %5055 = vst.msk [vmem:[%s8874_s27 + $0x78] sm:$0xf] %vm5024_vm8, %v5745_v10  ;;  %v5743_v14 = vpack.c.bf16 %v4892_v62, %v4892_v62 }
 0x22d   : > { %v5746_v18 = vpack.c.bf16 %v4895_v19, %v4895_v19  ;;  %v4893_v17 = vmax.f32 %v4861_v16, 0.0 }
 0x22e   : > { %5053 = vst.msk [vmem:[%s8874_s27 + $0x70] sm:$0xf] %vm5024_vm8, %v5743_v14 }
 0x22f   : > { %5056 = vst.msk [vmem:[%s8874_s27 + $0x7c] sm:$0xf] %vm5024_vm8, %v5746_v18  ;;  %v5744_v37 = vpack.c.bf16 %v4893_v17, %v4893_v17 }
 0x231   : > { %5054 = vst.msk [vmem:[%s8874_s27 + $0x74] sm:$0xf] %vm5024_vm8, %v5744_v37 }
 0x232 PF: > { %s14_s17 = sadd.s32 1, %s6315_s17   ;;  %s9358_s15 = smov %s6311_s16 }
 0x233   : > { %p11_p6 = scmp.ge.s32.totalorder %s14_s17, 4   ;;  %s9359_s16 = smov %s9361_s18 }
 0x235   :  { %13 = sbr.rel (!%p11_p6) target bundleno = 2 (0x2), region = 77 }

// kernel: _forward.10
= control target key start
LH: loop header
LB: loop body
LE: loop exit
PB: predicated region body
PF: predicated region fallthrough
CT: control target
= control target key end

     0   :  { %s2091_s15 = smov 0   ;;  %s2093_s16 = smov 0   ;;  %s2594_s0 = inlined_call_operand.vmem [shape: bf16[2,10,10,16], index: 0, kind: input, shape index: {}]   ;;  %s2595_s1 = inlined_call_operand.vmem [shape: bf16[3,3,16,16], index: 1, kind: input, shape index: {}]   ;;  %s2596_s2 = inlined_call_operand.vmem [shape: f32[1,16], index: 2, kind: input, shape index: {}]   ;;  %s2597_s3 = inlined_call_operand.vmem [shape: f32[1,16], index: 3, kind: input, shape index: {}]   ;;  %s2598_s4 = inlined_call_operand.vmem [shape: bf16[128,16], index: 4, kind: output, shape index: {}]  }
   0x1   :  { %s2095_s17 = smov 0  }
   0x2 LB: > { %s26_s18 = sadd.s32 1, %s2060_s16  ;;  %p1698_p0 = scmp.ge.s32.totalorder %s2064_s17, 1  ;;  %s2064_s17 = sphi %s2095_s17, %s14_s17   ;;  %s2060_s16 = sphi %s2093_s16, %s2601_s16   ;;  %s2056_s15 = sphi %s2091_s15, %s2600_s15  }
   0x3   : > { %p28_p1 = scmp.ge.s32.totalorder %s26_s18, 2  ;;  %p176_p2 = scmp.lt.s32.totalorder %s2064_s17, 3 }
   0x5   : > { %s2603_s18 = smov (%p28_p1, %s26_s18), 0  ;;  %p177_p3 = pnand %p1698_p0, %p176_p2 }
   0x6   : > { %p203_p4 = scmp.lt.s32.totalorder (!%p177_p3), %s2056_s15, 1  ;;  %s1700_s20 = sshll.u32 (!%p177_p3), %s2056_s15, 3 }
   0x7   : > { %180 = sbr.rel (%p177_p3) target bundleno = 311 (0x137), region = 36  ;;  %p2520_p5 = scmp.lt.s32.totalorder (!%p177_p3), %s1700_s20, 15 }
   0xc   : > { %v2021_v0 = vld [vmem:[%s2595_s1 + $0x8] sm:$0xff]   ;;  %s204_s21 = scalar_select %p203_p4, %s2056_s15, 1  ;;  %v2119_v1 = vld [vmem:[%s2595_s1] sm:$0xff]   ;;  %v2124_v2 = vld [vmem:[%s2595_s1 + $0x10] sm:$0xff]   ;;  %vm275_vm0 = vcmask 1046528   ;;  %vm321_vm1 = vcmask 130048  }
   0xd   : > { %1994 = vmatprep.subr.bf16.mxu1 %v2021_v0  ;;  %1904 = vmatprep.subr.bf16.mxu0 %v2021_v0  ;;  %vm506_vm2 = vcmask 1045504   ;;  %s2605_s20 = smov (!%p2520_p5, %s1700_s20), 15  ;;  %vm1607_vm3 = vcmask 125952  }
   0xe   : > { %1995 = vmatpush3.bf16.msra.mxu1 %v2021_v0  ;;  %1905 = vmatpush3.bf16.msra.mxu0 %v2021_v0  ;;  %s1996_s26 = smul.u32 80, %s204_s21  ;;  %s1701_s25 = sshll.u32 %s2605_s20, 2 }
   0xf   : > { %1914 = vmatprep.subr.bf16.mxu1 %v2119_v1  ;;  %1924 = vmatprep.subr.bf16.mxu0 %v2124_v2  ;;  %s2555_s28 = scalar_lea.vmem %s2598_s4, %s1701_s25 }
  0x10   : > { %s2131_s29 = scalar_lea.vmem %s2594_s0, %s1996_s26 }
  0x11   : > { %v2134_v3 = vld [vmem:[%s2131_s29] sm:$0xf]  ;;  %v2137_v4 = vld [vmem:[%s2131_s29 + $0x8] sm:$0xf]  ;;  %v243_v5 = vld [vmem:[%s2131_s29 + $0x4] sm:$0x1] }
  0x12   : > { %v229_v6 = vunpack.c.l.bf16 %v2134_v3  ;;  %v230_v7 = vunpack.c.l.bf16 %v2137_v4  ;;  %v244_v8 = vld [vmem:[%s2131_s29 + $0xc] sm:$0x1]  ;;  %v251_v9 = vunpack.c.l.bf16 %v243_v5  ;;  %v2144_v10 = vld [vmem:[%s2131_s29 + $0x20] sm:$0xf]  ;;  %v2147_v11 = vld [vmem:[%s2131_s29 + $0x28] sm:$0xf]  ;;  %v1702_v21 = vcombine.low %v2134_v3, %v2137_v4 }
  0x13   : > { %v252_v12 = vunpack.c.l.bf16 %v244_v8  ;;  %v233_v13 = vunpack.c.l.bf16 %v2144_v10  ;;  %v234_v14 = vunpack.c.l.bf16 %v2147_v11  ;;  %v247_v15 = vld [vmem:[%s2131_s29 + $0x24] sm:$0x1]  ;;  %v2153_v16 = vld [vmem:[%s2131_s29 + $0x2c] sm:$0x1]  ;;  %v2156_v17 = vld [vmem:[%s2131_s29 + $0x10] sm:$0xf]  ;;  %v1704_v43 = vcombine.low %v2144_v10, %v2147_v11 }
  0x14   : > { %v276_v18 = vrot.slane %v229_v6, 1  ;;  %v277_v19 = vrot.slane %v251_v9, 1  ;;  %v279_v20 = vrot.slane %v230_v7, 1  ;;  %v2160_v23 = vrot.slane %v251_v9, 2  ;;  %v2164_v26 = vld [vmem:[%s2131_s29 + $0x18] sm:$0xf] }
  0x15   : > { %v280_v22 = vrot.slane %v252_v12, 1  ;;  %v255_v24 = vunpack.c.l.bf16 %v247_v15  ;;  %v256_v25 = vunpack.c.l.bf16 %v2153_v16  ;;  %v245_v27 = vld [vmem:[%s2131_s29 + $0x14] sm:$0x1]  ;;  %v288_v29 = vrot.slane %v233_v13, 1  ;;  %v246_v32 = vld [vmem:[%s2131_s29 + $0x1c] sm:$0x1] }
  0x16   : > { %v278_v28 = vsel %vm275_vm0, %v276_v18, %v277_v19  ;;  %v291_v30 = vrot.slane %v234_v14, 1  ;;  %v231_v31 = vunpack.c.l.bf16 %v2156_v17  ;;  %v511_v34 = vrot.slane %v252_v12, 2  ;;  %v2175_v40 = vld [vmem:[%s2131_s29 + $0x30] sm:$0xf]  ;;  %v2178_v41 = vld [vmem:[%s2131_s29 + $0x38] sm:$0xf] }
  0x17   : > { %v281_v33 = vsel %vm275_vm0, %v279_v20, %v280_v22  ;;  %v289_v35 = vrot.slane %v255_v24, 1  ;;  %v292_v36 = vrot.slane %v256_v25, 1  ;;  %v232_v38 = vunpack.c.l.bf16 %v2164_v26  ;;  %v2181_v42 = vld [vmem:[%s2131_s29 + $0x34] sm:$0x1]  ;;  %v2188_v48 = vld [vmem:[%s2131_s29 + $0x3c] sm:$0x1] }
  0x18   : > { %v308_v37 = vpack.c.bf16 %v281_v33, %v278_v28  ;;  %v253_v39 = vunpack.c.l.bf16 %v245_v27  ;;  %v254_v46 = vunpack.c.l.bf16 %v246_v32  ;;  %v282_v47 = vrot.slane %v231_v31, 1  ;;  %v482_v49 = vld [vmem:[%s2131_s29] sm:$0xe]  ;;  %v483_v54 = vld [vmem:[%s2131_s29 + $0x8] sm:$0xe]  ;;  %v2248_v4 = vld [vmem:[%s2595_s1 + $0x30] sm:$0xff]  }
  0x19   : > { %v290_v44 = vsel %vm275_vm0, %v288_v29, %v289_v35  ;;  %v293_v45 = vsel %vm275_vm0, %v291_v30, %v292_v36  ;;  %v520_v51 = vrot.slane %v255_v24, 2  ;;  %v285_v53 = vrot.slane %v232_v38, 1  ;;  %v484_v63 = vld [vmem:[%s2131_s29 + $0x10] sm:$0xe]  ;;  %v485_v0 = vld [vmem:[%s2131_s29 + $0x18] sm:$0xe] }
  0x1a   : > { %1906 = vmatprep.mubr.msk.bf16.mxu0 %vm321_vm1, %v308_v37  ;;  %v310_v50 = vpack.c.bf16 %v293_v45, %v290_v44  ;;  %v283_v52 = vrot.slane %v253_v39, 1  ;;  %v286_v55 = vrot.slane %v254_v46, 1  ;;  %v514_v56 = vrot.slane %v253_v39, 2  ;;  %v486_v9 = vld [vmem:[%s2131_s29 + $0x20] sm:$0xe]  ;;  %v2221_v37 = vld [vmem:[%s2595_s1 + $0x18] sm:$0xff]  }
  0x1b   : > { %v235_v57 = vunpack.c.l.bf16 %v2175_v40  ;;  %v236_v58 = vunpack.c.l.bf16 %v2178_v41  ;;  %v257_v60 = vunpack.c.l.bf16 %v2181_v42  ;;  %v258_v61 = vunpack.c.l.bf16 %v2188_v48  ;;  %v2206_v18 = vld [vmem:[%s2595_s1 + $0x20] sm:$0xff]   ;;  %v487_v27 = vld [vmem:[%s2131_s29 + $0x28] sm:$0xe]  ;;  %v488_v28 = vld [vmem:[%s2131_s29 + $0x30] sm:$0xe] }
  0x1c   : > { %1910 = vmatprep.mubr.msk.bf16.mxu1 %vm321_vm1, %v310_v50  ;;  %v284_v59 = vsel %vm275_vm0, %v282_v47, %v283_v52  ;;  %v490_v62 = vunpack.c.l.bf16 %v482_v49  ;;  %v287_v5 = vsel %vm275_vm0, %v285_v53, %v286_v55  ;;  %v491_v8 = vunpack.c.l.bf16 %v483_v54  ;;  %v489_v33 = vld [vmem:[%s2131_s29 + $0x38] sm:$0xe]  ;;  %v1744_v45 = vld [vmem:[%s2131_s29 + $0x8] ss:$8 sps:$4 sm:$0xff]   ;;  %v2231_v49 = vld [vmem:[%s2131_s29 + $0xc] sm:$0x1] }
  0x1d   : > { %v294_v6 = vrot.slane %v235_v57, 1  ;;  %v297_v7 = vrot.slane %v236_v58, 1  ;;  %v309_v12 = vpack.c.bf16 %v287_v5, %v284_v59  ;;  %v295_v13 = vrot.slane %v257_v60, 1  ;;  %v2234_v50 = vld [vmem:[%s2131_s29 + $0x14] sm:$0x1] }
  0x1e   : > { %v298_v14 = vrot.slane %v258_v61, 1  ;;  %v507_v15 = vrot.slane %v490_v62, 2  ;;  %v517_v19 = vrot.slane %v254_v46, 2  ;;  %v510_v20 = vrot.slane %v491_v8, 2  ;;  %v1748_v54 = vld [vmem:[%s2131_s29 + $0x18] ss:$8 sps:$4 sm:$0xff]  }
  0x1f   : > { %v492_v22 = vunpack.c.l.bf16 %v484_v63  ;;  %v493_v24 = vunpack.c.l.bf16 %v485_v0  ;;  %1907 = vmatmul.mubr.msk.bf16.vlgmr.msra.gmra.mxu0 %vm321_vm1, %v309_v12  ;;  %v296_v29 = vsel %vm275_vm0, %v294_v6, %v295_v13  ;;  %v494_v32 = vunpack.c.l.bf16 %v486_v9  ;;  %v2254_v59 = vld [vmem:[%s2131_s29 + $0x1c] sm:$0x1]  ;;  %v1752_v5 = vld [vmem:[%s2131_s29 + $0x28] ss:$8 sps:$4 sm:$0xff]   ;;  %v2264_v6 = vld [vmem:[%s2131_s29 + $0x2c] sm:$0x1] }
  0x20   : > { %v299_v30 = vsel %vm275_vm0, %v297_v7, %v298_v14  ;;  %v509_v31 = vsel %vm506_vm2, %v507_v15, %v2160_v23  ;;  %1925 = vmatpush3.bf16.msra.mxu0 %v2124_v2  ;;  %v512_v36 = vsel %vm506_vm2, %v510_v20, %v511_v34  ;;  %v523_v42 = vrot.slane %v256_v25, 2  ;;  %v1768_v11 = vld [vmem:[%s2131_s29 + $0x10] sm:$0xe] }
  0x21   : > { %v311_v35 = vpack.c.bf16 %v299_v30, %v296_v29  ;;  %v513_v38 = vrot.slane %v492_v22, 2  ;;  %v516_v39 = vrot.slane %v493_v24, 2  ;;  %v539_v23 = vpack.c.bf16 %v512_v36, %v509_v31  ;;  %1944 = vmatprep.subr.bf16.mxu0 %v2206_v18 }
  0x22   : > { %v495_v44 = vunpack.c.l.bf16 %v487_v27  ;;  %v519_v2 = vrot.slane %v494_v32, 2  ;;  %v496_v47 = vunpack.c.l.bf16 %v488_v28  ;;  %v497_v48 = vunpack.c.l.bf16 %v489_v33  ;;  %v1756_v27 = vld [vmem:[%s2131_s29 + $0x38] ss:$8 sps:$4 sm:$0xff]   ;;  %v2290_v28 = vld [vmem:[%s2131_s29 + $0x3c] sm:$0x1] }
  0x23   : > { %1911 = vmatmul.mubr.msk.bf16.vlgmr.msra.gmra.mxu1 %vm321_vm1, %v311_v35  ;;  %v515_v34 = vsel %vm506_vm2, %v513_v38, %v514_v56  ;;  %v518_v46 = vsel %vm506_vm2, %v516_v39, %v517_v19  ;;  %v526_v53 = vrot.slane %v257_v60, 2  ;;  %1926 = vmatprep.mubr.msk.bf16.mxu0 %vm321_vm1, %v539_v23  ;;  %v529_v56 = vrot.slane %v258_v61, 2  ;;  %v2257_v60 = vld [vmem:[%s2131_s29 + $0x24] sm:$0x1]  ;;  %v2282_v19 = vld [vmem:[%s2131_s29 + $0x34] sm:$0x1] }
  0x24   : > { %1915 = vmatpush3.bf16.msra.mxu1 %v2119_v1  ;;  %1916 = vmatprep.mubr.msk.bf16.mxu1 %vm321_vm1, %v1702_v21  ;;  %v540_v16 = vpack.c.bf16 %v518_v46, %v515_v34  ;;  %v521_v25 = vsel %vm506_vm2, %v519_v2, %v520_v51  ;;  %v522_v52 = vrot.slane %v495_v44, 2  ;;  %v525_v55 = vrot.slane %v496_v47, 2  ;;  %v2296_v32 = vld [vmem:[%s2131_s29 + $0x44] sm:$0x1]  ;;  %v1767_v39 = vld [vmem:[%s2131_s29 + $0x8] sm:$0xe] }
  0x25   : > { %1934 = vmatprep.subr.bf16.mxu1 %v2221_v37  ;;  %v528_v1 = vrot.slane %v497_v48, 2  ;;  %v771_v3 = vunpack.c.l.bf16 %v1744_v45  ;;  %v772_v51 = vunpack.c.l.bf16 %v2231_v49  ;;  %v773_v57 = vunpack.c.h.bf16 %v1744_v45  ;;  %v2030_v45 = vld [vmem:[%s2131_s29 + $0x8] ss:$8 sps:$4 sm:$0xff]   ;;  %v2344_v49 = vld [vmem:[%s2595_s1 + $0x40] sm:$0xff]  }
  0x26   : > { %v524_v21 = vsel %vm506_vm2, %v522_v52, %v523_v42  ;;  %v774_v58 = vunpack.c.l.bf16 %v2234_v50  ;;  %v1703_v61 = vcombine.low %v2156_v17, %v2164_v26  ;;  %v527_v63 = vsel %vm506_vm2, %v525_v55, %v526_v53  ;;  %v2275_v26 = vld [vmem:[%s2595_s1 + $0x28] sm:$0xff]   ;;  %v2032_v50 = vld [vmem:[%s2131_s29 + $0x18] ss:$8 sps:$4 sm:$0xff]  }
  0x27   : > { %v541_v62 = vpack.c.bf16 %v524_v21, %v521_v25  ;;  %v803_v0 = vrot.slane %v771_v3, 1  ;;  %1927 = vmatmul.mubr.msk.bf16.vlgmr.msra.gmra.mxu0 %vm321_vm1, %v540_v16  ;;  %v530_v7 = vsel %vm506_vm2, %v528_v1, %v529_v56  ;;  %v804_v8 = vrot.slane %v772_v51, 1  ;;  %v1769_v16 = vld [vmem:[%s2131_s29 + $0x18] sm:$0xe]  ;;  %v1771_v56 = vld [vmem:[%s2131_s29 + $0x28] sm:$0xe] }
  0x28   : > { %v806_v9 = vrot.slane %v773_v57, 1  ;;  %v807_v17 = vrot.slane %v774_v58, 1  ;;  %1945 = vmatpush3.bf16.msra.mxu0 %v2206_v18  ;;  %v775_v12 = vunpack.c.l.bf16 %v1748_v54  ;;  %v776_v13 = vunpack.c.l.bf16 %v2254_v59  ;;  %v1772_v3 = vld [vmem:[%s2131_s29 + $0x30] sm:$0xe] }
  0x29   : > { %1930 = vmatprep.mubr.msk.bf16.mxu0 %vm321_vm1, %v541_v62  ;;  %v777_v14 = vunpack.c.h.bf16 %v1748_v54  ;;  %v778_v15 = vunpack.c.l.bf16 %v2257_v60  ;;  %v805_v20 = vsel %vm275_vm0, %v803_v0, %v804_v8  ;;  %1964 = vmatprep.subr.bf16.mxu0 %v2248_v4  ;;  %v779_v24 = vunpack.c.l.bf16 %v1752_v5  ;;  %v2034_v59 = vld [vmem:[%s2131_s29 + $0x28] ss:$8 sps:$4 sm:$0xff]  }
  0x2a   : > { %v808_v22 = vsel %vm275_vm0, %v806_v9, %v807_v17  ;;  %v780_v18 = vunpack.c.l.bf16 %v2264_v6  ;;  %v809_v29 = vrot.slane %v775_v12, 1  ;;  %v810_v30 = vrot.slane %v776_v13, 1 }
  0x2b   : > { %1917 = vmatmul.mubr.msk.bf16.vlgmr.msra.gmra.mxu1 %vm321_vm1, %v1703_v61  ;;  %v812_v31 = vrot.slane %v777_v14, 1  ;;  %v542_v33 = vpack.c.bf16 %v530_v7, %v527_v63  ;;  %v813_v35 = vrot.slane %v778_v15, 1  ;;  %v781_v36 = vunpack.c.h.bf16 %v1752_v5  ;;  %v1773_v14 = vld [vmem:[%s2131_s29 + $0x38] sm:$0xe] }
  0x2c   : > { %1935 = vmatpush3.bf16.msra.mxu1 %v2221_v37  ;;  %1920 = vmatprep.mubr.msk.bf16.mxu1 %vm321_vm1, %v1704_v43  ;;  %v782_v38 = vunpack.c.l.bf16 %v2282_v19  ;;  %v835_v42 = vpack.c.bf16 %v808_v22, %v805_v20  ;;  %v815_v23 = vrot.slane %v779_v24, 1  ;;  %v816_v10 = vrot.slane %v780_v18, 1 }
  0x2d   : > { %1954 = vmatprep.subr.bf16.mxu1 %v2275_v26  ;;  %v1705_v43 = vcombine.low %v2175_v40, %v2178_v41  ;;  %v811_v37 = vsel %vm275_vm0, %v809_v29, %v810_v30  ;;  %v818_v44 = vrot.slane %v781_v36, 1  ;;  %v814_v34 = vsel %vm275_vm0, %v812_v31, %v813_v35  ;;  %v1770_v40 = vld [vmem:[%s2131_s29 + $0x20] sm:$0xe]  ;;  %v2365_v31 = vld [vmem:[%s2595_s1 + $0x38] sm:$0xff]   ;;  %v1802_v36 = vld [vmem:[%s2131_s29 + $0x14] sm:$0x1] }
  0x2e   : > { %v819_v2 = vrot.slane %v782_v38, 1  ;;  %v783_v46 = vunpack.c.l.bf16 %v1756_v27  ;;  %v784_v47 = vunpack.c.l.bf16 %v2290_v28  ;;  %v785_v48 = vunpack.c.h.bf16 %v1756_v27  ;;  %v2375_v35 = vld [vmem:[%s2131_s29 + $0x10] ss:$8 sps:$4 sm:$0xff]  }
  0x2f   : > { %1931 = vmatmul.mubr.msk.bf16.gmra.mxu0 %vm321_vm1, %v542_v33  ;;  %v786_v25 = vunpack.c.l.bf16 %v2296_v32  ;;  %v941_v52 = vunpack.c.l.bf16 %v1767_v39  ;;  %v817_v41 = vsel %vm275_vm0, %v815_v23, %v816_v10  ;;  %v942_v54 = vunpack.c.l.bf16 %v1768_v11  ;;  %v1824_v23 = vld [vmem:[%s2131_s29 + $0x10] sm:$0xe]  ;;  %v1825_v10 = vld [vmem:[%s2131_s29 + $0x18] sm:$0xe]  ;;  %v1805_v11 = vld [vmem:[%s2131_s29 + $0x20] ss:$8 sps:$4 sm:$0xff]  }
  0x30   : > { %1946 = vmatprep.mubr.msk.bf16.mxu0 %vm321_vm1, %v835_v42  ;;  %v820_v53 = vsel %vm275_vm0, %v818_v44, %v819_v2  ;;  %v836_v55 = vpack.c.bf16 %v814_v34, %v811_v37  ;;  %v943_v1 = vunpack.c.l.bf16 %v1769_v16  ;;  %v821_v21 = vrot.slane %v783_v46, 1  ;;  %v2396_v34 = vld [vmem:[%s2131_s29 + $0x24] sm:$0x1]  ;;  %v2036_v46 = vld [vmem:[%s2131_s29 + $0x10] ss:$8 sps:$4 sm:$0xff]  }
  0x31   : > { %v822_v57 = vrot.slane %v784_v47, 1  ;;  %v824_v61 = vrot.slane %v785_v48, 1  ;;  %v944_v62 = vunpack.c.l.bf16 %v1770_v40  ;;  %v837_v63 = vpack.c.bf16 %v820_v53, %v817_v41  ;;  %v2406_v40 = vld [vmem:[%s2131_s29 + $0x2c] sm:$0x1] }
  0x32   : > { %v825_v0 = vrot.slane %v786_v25, 1  ;;  %v957_v5 = vrot.slane %v941_v52, 2  ;;  %v958_v7 = vrot.slane %v772_v51, 2  ;;  %v960_v8 = vrot.slane %v942_v54, 2  ;;  %v2035_v54 = vld [vmem:[%s2131_s29 + $0x38] ss:$8 sps:$4 sm:$0xff]  }
  0x33   : > { %1921 = vmatmul.mubr.msk.bf16.gmra.mxu1 %vm321_vm1, %v1705_v43  ;;  %v961_v9 = vrot.slane %v774_v58, 2  ;;  %v945_v17 = vunpack.c.l.bf16 %v1771_v56  ;;  %v946_v12 = vunpack.c.l.bf16 %v1772_v3  ;;  %v963_v19 = vrot.slane %v943_v1, 2 }
  0x34   : > { %1936 = vmatprep.mubr.msk.bf16.mxu1 %vm321_vm1, %v2030_v45  ;;  %v964_v20 = vrot.slane %v776_v13, 2  ;;  %v966_v22 = vrot.slane %v944_v62, 2  ;;  %v967_v24 = vrot.slane %v778_v15, 2  ;;  %v970_v58 = vrot.slane %v780_v18, 2  ;;  %v1774_v13 = vld [vmem:[%s2131_s29 + $0x40] sm:$0xe] }
  0x35   : > { %v969_v51 = vrot.slane %v945_v17, 2  ;;  %v972_v27 = vrot.slane %v946_v12, 2  ;;  %v973_v29 = vrot.slane %v782_v38, 2  ;;  %v823_v60 = vsel %vm275_vm0, %v821_v21, %v822_v57  ;;  %v1804_v45 = vld [vmem:[%s2131_s29 + $0x1c] sm:$0x1] }
  0x36   : > { %v947_v15 = vunpack.c.l.bf16 %v1773_v14  ;;  %v826_v6 = vsel %vm275_vm0, %v824_v61, %v825_v0  ;;  %v2357_v18 = vsel %vm506_vm2, %v957_v5, %v958_v7  ;;  %v2360_v30 = vsel %vm506_vm2, %v960_v8, %v961_v9  ;;  %v1809_v61 = vld [vmem:[%s2131_s29 + $0x30] ss:$8 sps:$4 sm:$0xff]   ;;  %v2420_v62 = vld [vmem:[%s2131_s29 + $0x34] sm:$0x1]  ;;  %v2426_v8 = vld [vmem:[%s2131_s29 + $0x3c] sm:$0x1] }
  0x37   : > { %1947 = vmatmul.mubr.msk.bf16.vlgmr.msra.gmra.mxu0 %vm321_vm1, %v836_v55  ;;  %v2368_v33 = vsel %vm506_vm2, %v963_v19, %v964_v20  ;;  %v2380_v38 = vsel %vm506_vm2, %v969_v51, %v970_v58  ;;  %v2383_v39 = vsel %vm506_vm2, %v972_v27, %v973_v29  ;;  %v948_v42 = vunpack.c.l.bf16 %v1774_v13  ;;  %v2038_v9 = vld [vmem:[%s2131_s29 + $0x20] ss:$8 sps:$4 sm:$0xff]   ;;  %v2040_v20 = vld [vmem:[%s2131_s29 + $0x30] ss:$8 sps:$4 sm:$0xff]  }
  0x38   : > { %1965 = vmatpush3.bf16.msra.mxu0 %v2248_v4  ;;  %1950 = vmatprep.mubr.msk.bf16.mxu0 %vm321_vm1, %v837_v63  ;;  %v2371_v4 = vsel %vm506_vm2, %v966_v22, %v967_v24  ;;  %v838_v43 = vpack.c.bf16 %v826_v6, %v823_v60  ;;  %v989_v37 = vpack.c.bf16 %v2360_v30, %v2357_v18  ;;  %v975_v44 = vrot.slane %v947_v15, 2  ;;  %v1828_v15 = vld [vmem:[%s2131_s29 + $0x30] sm:$0xe]  ;;  %v1829_v6 = vld [vmem:[%s2131_s29 + $0x38] sm:$0xe] }
  0x39   : > { %1984 = vmatprep.subr.bf16.mxu0 %v2344_v49  ;;  %v976_v2 = vrot.slane %v784_v47, 2  ;;  %v979_v48 = vrot.slane %v786_v25, 2  ;;  %v1221_v16 = vunpack.c.l.bf16 %v2375_v35  ;;  %v1222_v52 = vunpack.c.l.bf16 %v1802_v36 }
  0x3a   : > { %v991_v28 = vpack.c.bf16 %v2383_v39, %v2380_v38  ;;  %v1391_v47 = vunpack.c.l.bf16 %v1824_v23  ;;  %v1392_v41 = vunpack.c.l.bf16 %v1825_v10  ;;  %v1225_v53 = vunpack.c.l.bf16 %v1805_v11 }
  0x3b   : > { %1937 = vmatmul.mubr.msk.bf16.vlgmr.msra.gmra.mxu1 %vm321_vm1, %v2032_v50  ;;  %v978_v55 = vrot.slane %v948_v42, 2  ;;  %v1224_v1 = vunpack.c.l.bf16 %v1804_v45  ;;  %v1226_v32 = vunpack.c.l.bf16 %v2396_v34  ;;  %v1227_v25 = vunpack.c.h.bf16 %v1805_v11  ;;  %v1826_v50 = vld [vmem:[%s2131_s29 + $0x20] sm:$0xe] }
  0x3c   : > { %1955 = vmatpush3.bf16.msra.mxu1 %v2275_v26  ;;  %1940 = vmatprep.mubr.msk.bf16.mxu1 %vm321_vm1, %v2034_v59  ;;  %v990_v26 = vpack.c.bf16 %v2371_v4, %v2368_v33  ;;  %v2414_v56 = vsel %vm506_vm2, %v975_v44, %v976_v2  ;;  %v1223_v3 = vunpack.c.h.bf16 %v2375_v35  ;;  %v1228_v21 = vunpack.c.l.bf16 %v2406_v40  ;;  %v1827_v59 = vld [vmem:[%s2131_s29 + $0x28] sm:$0xe] }
  0x3d   : > { %1974 = vmatprep.subr.bf16.mxu1 %v2365_v31  ;;  %v1259_v57 = vrot.slane %v1225_v53, 1  ;;  %v1253_v63 = vrot.slane %v1221_v16, 1  ;;  %v1254_v0 = vrot.slane %v1222_v52, 1  ;;  %v1260_v5 = vrot.slane %v1226_v32, 1  ;;  %v1813_v42 = vld [vmem:[%s2131_s29 + $0x40] ss:$8 sps:$4 sm:$0xff]  }
  0x3e   : > { %v1262_v7 = vrot.slane %v1227_v25, 1  ;;  %v1407_v17 = vrot.slane %v1391_v47, 2  ;;  %v1408_v12 = vrot.slane %v1222_v52, 2  ;;  %v1410_v14 = vrot.slane %v1392_v41, 2 }
  0x3f   : > { %1951 = vmatmul.mubr.msk.bf16.gmra.mxu0 %vm321_vm1, %v838_v43  ;;  %v1263_v19 = vrot.slane %v1228_v21, 1  ;;  %v1411_v22 = vrot.slane %v1224_v1, 2  ;;  %v2432_v24 = vsel %vm275_vm0, %v1259_v57, %v1260_v5  ;;  %v1229_v51 = vunpack.c.l.bf16 %v1809_v61 }
  0x40   : > { %1966 = vmatprep.mubr.msk.bf16.mxu0 %vm321_vm1, %v2036_v46  ;;  %v1230_v58 = vunpack.c.l.bf16 %v2420_v62  ;;  %v2438_v27 = vsel %vm506_vm2, %v978_v55, %v979_v48  ;;  %v1231_v60 = vunpack.c.h.bf16 %v1809_v61  ;;  %v1232_v13 = vunpack.c.l.bf16 %v2426_v8  ;;  %v1816_v48 = vld [vmem:[%s2131_s29 + $0x4c] sm:$0x1] }
  0x41   : > { %v2441_v29 = vsel %vm275_vm0, %v1262_v7, %v1263_v19  ;;  %v1256_v18 = vrot.slane %v1223_v3, 1  ;;  %v1265_v35 = vrot.slane %v1229_v51, 1  ;;  %v1255_v23 = vsel %vm275_vm0, %v1253_v63, %v1254_v0  ;;  %v2041_v0 = vld [vmem:[%s2131_s29 + $0x40] ss:$8 sps:$4 sm:$0xff]  }
  0x42   : > { %v1286_v30 = vpack.c.bf16 %v2441_v29, %v2432_v24  ;;  %v1266_v36 = vrot.slane %v1230_v58, 1  ;;  %v1257_v10 = vrot.slane %v1224_v1, 1  ;;  %v1268_v11 = vrot.slane %v1231_v60, 1 }
  0x43   : > { %1941 = vmatmul.mubr.msk.bf16.gmra.mxu1 %vm321_vm1, %v2035_v54  ;;  %v1269_v43 = vrot.slane %v1232_v13, 1  ;;  %v1409_v44 = vsel %vm506_vm2, %v1407_v17, %v1408_v12  ;;  %v1412_v2 = vsel %vm506_vm2, %v1410_v14, %v1411_v22  ;;  %v1393_v45 = vunpack.c.l.bf16 %v1826_v50  ;;  %v1831_v17 = vld [vmem:[%s2131_s29 + $0x48] sm:$0xe] }
  0x44   : > { %1956 = vmatprep.mubr.msk.bf16.mxu1 %vm321_vm1, %v989_v37  ;;  %v1814_v37 = vld [vmem:[%s2131_s29 + $0x44] sm:$0x1]  ;;  %v1267_v46 = vsel %vm275_vm0, %v1265_v35, %v1266_v36  ;;  %v1394_v16 = vunpack.c.l.bf16 %v1827_v59  ;;  %v1395_v40 = vunpack.c.l.bf16 %v1828_v15  ;;  %v1233_v47 = vunpack.c.l.bf16 %v1813_v42 }
  0x45   : > { %v1270_v52 = vsel %vm275_vm0, %v1268_v11, %v1269_v43  ;;  %v1396_v53 = vunpack.c.l.bf16 %v1829_v6  ;;  %v1234_v54 = vunpack.c.l.bf16 %v1814_v37  ;;  %v1235_v55 = vunpack.c.h.bf16 %v1813_v42 }
  0x46   : > { %v1287_v41 = vpack.c.bf16 %v1270_v52, %v1267_v46  ;;  %v1258_v1 = vsel %vm275_vm0, %v1256_v18, %v1257_v10  ;;  %v1439_v25 = vpack.c.bf16 %v1412_v2, %v1409_v44  ;;  %v1236_v3 = vunpack.c.l.bf16 %v1816_v48 }
  0x47   : > { %1967 = vmatmul.mubr.msk.bf16.vlgmr.msra.gmra.mxu0 %vm321_vm1, %v2038_v9  ;;  %v1271_v57 = vrot.slane %v1233_v47, 1  ;;  %v1417_v61 = vrot.slane %v1228_v21, 2  ;;  %v1272_v62 = vrot.slane %v1234_v54, 1  ;;  %v1274_v63 = vrot.slane %v1235_v55, 1  ;;  %v1830_v9 = vld [vmem:[%s2131_s29 + $0x40] sm:$0xe] }
  0x48   : > { %1985 = vmatpush3.bf16.msra.mxu0 %v2344_v49  ;;  %1970 = vmatprep.mubr.msk.bf16.mxu0 %vm321_vm1, %v2040_v20  ;;  %v1414_v49 = vrot.slane %v1226_v32, 2  ;;  %v1413_v5 = vrot.slane %v1393_v45, 2  ;;  %v1416_v33 = vrot.slane %v1394_v16, 2  ;;  %v1420_v4 = vrot.slane %v1230_v58, 2 }
  0x49   : > { %v1419_v7 = vrot.slane %v1395_v40, 2  ;;  %v1422_v34 = vrot.slane %v1396_v53, 2  ;;  %v1423_v32 = vrot.slane %v1232_v13, 2  ;;  %v1273_v21 = vsel %vm275_vm0, %v1271_v57, %v1272_v62 }
  0x4a   : > { %v1285_v39 = vpack.c.bf16 %v1258_v1, %v1255_v23  ;;  %v1418_v12 = vsel %vm506_vm2, %v1416_v33, %v1417_v61  ;;  %v1397_v20 = vunpack.c.l.bf16 %v1830_v9  ;;  %v1398_v22 = vunpack.c.l.bf16 %v1831_v17 }
  0x4b   : > { %1957 = vmatmul.mubr.msk.bf16.vlgmr.msra.gmra.mxu1 %vm321_vm1, %v990_v26  ;;  %v1275_v26 = vrot.slane %v1236_v3, 1  ;;  %v1421_v14 = vsel %vm506_vm2, %v1419_v7, %v1420_v4  ;;  %v1424_v19 = vsel %vm506_vm2, %v1422_v34, %v1423_v32  ;;  %v1426_v58 = vrot.slane %v1234_v54, 2 }
  0x4c   : > { %1975 = vmatpush3.bf16.msra.mxu1 %v2365_v31  ;;  %1960 = vmatprep.mubr.msk.bf16.mxu1 %vm321_vm1, %v991_v28  ;;  %v992_v31 = vpack.c.bf16 %v2438_v27, %v2414_v56  ;;  %v1415_v28 = vsel %vm506_vm2, %v1413_v5, %v1414_v49  ;;  %v1441_v50 = vpack.c.bf16 %v1424_v19, %v1421_v14  ;;  %v1425_v51 = vrot.slane %v1397_v20, 2 }
  0x4d   : > { %v1276_v8 = vsel %vm275_vm0, %v1274_v63, %v1275_v26  ;;  %v1440_v56 = vpack.c.bf16 %v1418_v12, %v1415_v28  ;;  %v1428_v27 = vrot.slane %v1398_v22, 2  ;;  %v1429_v59 = vrot.slane %v1236_v3, 2 }
  0x4e   : > { %v1288_v38 = vpack.c.bf16 %v1276_v8, %v1273_v21  ;;  %v1427_v60 = vsel %vm506_vm2, %v1425_v51, %v1426_v58 }
  0x4f   : > { %1971 = vmatmul.mubr.msk.bf16.gmra.mxu0 %vm321_vm1, %v2041_v0  ;;  %v1430_v13 = vsel %vm506_vm2, %v1428_v27, %v1429_v59 }
  0x50   : > { %1986 = vmatprep.mubr.msk.bf16.mxu0 %vm321_vm1, %v1439_v25  ;;  %v1442_v15 = vpack.c.bf16 %v1430_v13, %v1427_v60 }
  0x53   : > { %1961 = vmatmul.mubr.msk.bf16.gmra.mxu1 %vm321_vm1, %v992_v31 }
  0x54   : > { %1976 = vmatprep.mubr.msk.bf16.mxu1 %vm321_vm1, %v1285_v39 }
  0x57   : > { %1987 = vmatmul.mubr.msk.bf16.vlgmr.msra.gmra.mxu0 %vm321_vm1, %v1440_v56 }
  0x58   : > { %1990 = vmatprep.mubr.msk.bf16.mxu0 %vm321_vm1, %v1441_v50 }
  0x5b   : > { %1977 = vmatmul.mubr.msk.bf16.vlgmr.msra.gmra.mxu1 %vm321_vm1, %v1286_v30 }
  0x5c   : > { %1980 = vmatprep.mubr.msk.bf16.mxu1 %vm321_vm1, %v1287_v41 }
  0x5f   : > { %1991 = vmatmul.mubr.msk.bf16.gmra.mxu0 %vm321_vm1, %v1442_v15 }
  0x63   : > { %1981 = vmatmul.mubr.msk.bf16.gmra.mxu1 %vm321_vm1, %v1288_v38 }
  0xdf   : > { %v1908_v6 = vpop.f32.mrf.mxu0 }
  0xe1   : > { %v368_v18 = vpop.f32.mrf.mxu0 }
  0xe3   : > { %v1912_v35 = vpop.f32.mrf.mxu1  ;;  %v1909_v36 = vpop.f32.mrf.mxu0 }
  0xe5   : > { %v384_v42 = vpop.f32.mrf.mxu1  ;;  %v371_v23 = vpop.f32.mrf.mxu0 }
  0xe7   : > { %v1913_v10 = vpop.f32.mrf.mxu1  ;;  %v1928_v11 = vpop.f32.mrf.mxu0 }
  0xe9   : > { %v2498_v43 = vpop.f32.mrf.mxu1  ;;  %v598_v24 = vpop.f32.mrf.mxu0 }
  0xeb   : > { %v1918_v29 = vpop.f32.mrf.mxu1  ;;  %v1929_v30 = vpop.f32.mrf.mxu0 }
  0xec   : > { %v460_v32 = vadd.f32 %v1918_v29, %v1908_v6 }
  0xed   : > { %v451_v37 = vpop.f32.mrf.mxu1  ;;  %v601_v44 = vpop.f32.mrf.mxu0 }
  0xee   : > { %v452_v9 = vadd.f32 %v451_v37, %v368_v18  ;;  %v631_v38 = vadd.f32 %v1928_v11, %v460_v32 }
  0xef   : > { %v1919_v2 = vpop.f32.mrf.mxu1  ;;  %v1932_v45 = vpop.f32.mrf.mxu0 }
  0xf0   : > { %v463_v39 = vadd.f32 %v1919_v2, %v1909_v36  ;;  %v629_v14 = vadd.f32 %v598_v24, %v452_v9 }
  0xf1   : > { %v454_v46 = vpop.f32.mrf.mxu1  ;;  %v614_v48 = vpop.f32.mrf.mxu0 }
  0xf2   : > { %v455_v19 = vadd.f32 %v454_v46, %v371_v23  ;;  %v632_v50 = vadd.f32 %v1929_v30, %v463_v39 }
  0xf3   : > { %v1922_v16 = vpop.f32.mrf.mxu1  ;;  %v1933_v52 = vpop.f32.mrf.mxu0 }
  0xf4   : > { %v476_v27 = vadd.f32 %v1922_v16, %v1912_v35  ;;  %v630_v60 = vadd.f32 %v601_v44, %v455_v19 }
  0xf5   : > { %v467_v40 = vpop.f32.mrf.mxu1  ;;  %v2500_v47 = vpop.f32.mrf.mxu0 }
  0xf6   : > { %v468_v18 = vadd.f32 %v467_v40, %v384_v42  ;;  %v635_v30 = vadd.f32 %v1932_v45, %v476_v27 }
  0xf7   : > { %v1923_v41 = vpop.f32.mrf.mxu1  ;;  %v1948_v53 = vpop.f32.mrf.mxu0 }
  0xf8   : > { %v479_v36 = vadd.f32 %v1923_v41, %v1913_v10 }
  0xf9   : > { %v470_v54 = vpop.f32.mrf.mxu1  ;;  %v894_v55 = vpop.f32.mrf.mxu0 }
  0xfa   : > { %v471_v2 = vadd.f32 %v470_v54, %v2498_v43 }
  0xfb   : > { %v1938_v1 = vpop.f32.mrf.mxu1  ;;  %v1949_v25 = vpop.f32.mrf.mxu0 }
  0xfc   : > { %v749_v20 = vadd.f32 %v1938_v1, %v631_v38  ;;  %v636_v1 = vadd.f32 %v1933_v52, %v479_v36  ;;  %v634_v43 = vadd.f32 %v2500_v47, %v471_v2 }
  0xfd   : > { %v716_v3 = vpop.f32.mrf.mxu1  ;;  %v897_v57 = vpop.f32.mrf.mxu0 }
  0xfe   : > { %v747_v51 = vadd.f32 %v716_v3, %v629_v14  ;;  %v927_v13 = vadd.f32 %v1948_v53, %v749_v20  ;;  %v633_v53 = vadd.f32 %v614_v48, %v468_v18 }
  0xff   : > { %v1939_v49 = vpop.f32.mrf.mxu1  ;;  %v2502_v61 = vpop.f32.mrf.mxu0 }
 0x100   : > { %v750_v15 = vadd.f32 %v1939_v49, %v632_v50  ;;  %v925_v23 = vadd.f32 %v894_v55, %v747_v51 }
 0x101   : > { %v719_v62 = vpop.f32.mrf.mxu1  ;;  %v2504_v63 = vpop.f32.mrf.mxu0 }
 0x102   : > { %v748_v24 = vadd.f32 %v719_v62, %v630_v60  ;;  %v928_v35 = vadd.f32 %v1949_v25, %v750_v15 }
 0x103   : > { %v1942_v0 = vpop.f32.mrf.mxu1  ;;  %v2506_v5 = vpop.f32.mrf.mxu0 }
 0x104   : > { %v753_v3 = vadd.f32 %v1942_v0, %v635_v30  ;;  %v926_v42 = vadd.f32 %v897_v57, %v748_v24 }
 0x105   : > { %v732_v33 = vpop.f32.mrf.mxu1  ;;  %v2508_v4 = vpop.f32.mrf.mxu0 }
 0x106   : > { %v751_v41 = vadd.f32 %v732_v33, %v633_v53  ;;  %v931_v0 = vadd.f32 %v2502_v61, %v753_v3 }
 0x107   : > { %v1943_v26 = vpop.f32.mrf.mxu1  ;;  %v1968_v7 = vpop.f32.mrf.mxu0 }
 0x108   : > { %v754_v54 = vadd.f32 %v1943_v26, %v636_v1 }
 0x109   : > { %v735_v34 = vpop.f32.mrf.mxu1  ;;  %v1166_v21 = vpop.f32.mrf.mxu0 }
 0x10a   : > { %v752_v57 = vadd.f32 %v735_v34, %v634_v43  ;;  %v932_v9 = vadd.f32 %v2506_v5, %v754_v54  ;;  %v2540_v34 = vld [vmem:[%s2597_s3] ss:$0 sm:$0xff] }
 0x10b   : > { %v1958_v8 = vpop.f32.mrf.mxu1  ;;  %v1969_v17 = vpop.f32.mrf.mxu0 }
 0x10c   : > { %v1081_v29 = vadd.f32 %v1958_v8, %v927_v13  ;;  %v930_v19 = vadd.f32 %v2508_v4, %v752_v57 }
 0x10d   : > { %v1048_v31 = vpop.f32.mrf.mxu1  ;;  %v1169_v28 = vpop.f32.mrf.mxu0 }
 0x10e   : > { %v1079_v16 = vadd.f32 %v1048_v31, %v925_v23  ;;  %v1199_v10 = vadd.f32 %v1968_v7, %v1081_v29  ;;  %v2529_v7 = vld [vmem:[%s2596_s2] ss:$0 sm:$0xff] }
 0x10f   : > { %v1959_v12 = vpop.f32.mrf.mxu1  ;;  %v2510_v22 = vpop.f32.mrf.mxu0 }
 0x110   : > { %v1082_v40 = vadd.f32 %v1959_v12, %v928_v35  ;;  %v1197_v25 = vadd.f32 %v1166_v21, %v1079_v16  ;;  %v929_v21 = vadd.f32 %v2504_v63, %v751_v41 }
 0x111   : > { %v1051_v56 = vpop.f32.mrf.mxu1  ;;  %v2512_v58 = vpop.f32.mrf.mxu0 }
 0x112   : > { %v1080_v62 = vadd.f32 %v1051_v56, %v926_v42  ;;  %v1200_v8 = vadd.f32 %v1969_v17, %v1082_v40 }
 0x113   : > { %v1962_v59 = vpop.f32.mrf.mxu1  ;;  %v2514_v6 = vpop.f32.mrf.mxu0 }
 0x114   : > { %v1085_v61 = vadd.f32 %v1962_v59, %v931_v0  ;;  %v1198_v38 = vadd.f32 %v1169_v28, %v1080_v62 }
 0x115   : > { %v1064_v11 = vpop.f32.mrf.mxu1  ;;  %v2516_v37 = vpop.f32.mrf.mxu0 }
 0x116   : > { %v1083_v20 = vadd.f32 %v1064_v11, %v929_v21  ;;  %v1203_v59 = vadd.f32 %v2510_v22, %v1085_v61 }
 0x117   : > { %v1963_v46 = vpop.f32.mrf.mxu1  ;;  %v1988_v44 = vpop.f32.mrf.mxu0 }
 0x118   : > { %v1086_v56 = vadd.f32 %v1963_v46, %v932_v9  ;;  %v1201_v11 = vadd.f32 %v2512_v58, %v1083_v20 }
 0x119   : > { %v1067_v49 = vpop.f32.mrf.mxu1  ;;  %v1498_v45 = vpop.f32.mrf.mxu0 }
 0x11a   : > { %v1084_v28 = vadd.f32 %v1067_v49, %v930_v19  ;;  %v1204_v23 = vadd.f32 %v2514_v6, %v1086_v56 }
 0x11b   : > { %v1978_v55 = vpop.f32.mrf.mxu1  ;;  %v1989_v52 = vpop.f32.mrf.mxu0 }
 0x11c   : > { %v1377_v48 = vadd.f32 %v1978_v55, %v1199_v10  ;;  %v1202_v58 = vadd.f32 %v2516_v37, %v1084_v28 }
 0x11d   : > { %v1344_v32 = vpop.f32.mrf.mxu1  ;;  %v1501_v26 = vpop.f32.mrf.mxu0 }
 0x11e   : > { %v1531_v47 = vadd.f32 %v1988_v44, %v1377_v48  ;;  %v1375_v33 = vadd.f32 %v1344_v32, %v1197_v25 }
 0x11f   : > { %v1979_v31 = vpop.f32.mrf.mxu1  ;;  %v1992_v14 = vpop.f32.mrf.mxu0 }
 0x120   : > { %v1546_v17 = vmul.f32 %v2529_v7, %v1531_v47  ;;  %v1529_v39 = vadd.f32 %v1498_v45, %v1375_v33  ;;  %v1378_v12 = vadd.f32 %v1979_v31, %v1200_v8 }
 0x121   : > { %v1347_v63 = vpop.f32.mrf.mxu1  ;;  %v1514_v13 = vpop.f32.mrf.mxu0 }
 0x122   : > { %v1561_v5 = vadd.f32 %v2540_v34, %v1546_v17  ;;  %v1544_v50 = vmul.f32 %v2529_v7, %v1529_v39  ;;  %v1532_v51 = vadd.f32 %v1989_v52, %v1378_v12  ;;  %v1376_v27 = vadd.f32 %v1347_v63, %v1198_v38 }
 0x123   : > { %v1982_v60 = vpop.f32.mrf.mxu1  ;;  %v1993_v44 = vpop.f32.mrf.mxu0 }
 0x124   : > { %v1569_v15 = vmax.f32 %v1561_v5, 0.0  ;;  %v1559_v18 = vadd.f32 %v2540_v34, %v1544_v50  ;;  %v1547_v4 = vmul.f32 %v2529_v7, %v1532_v51  ;;  %v1530_v36 = vadd.f32 %v1501_v26, %v1376_v27 }
 0x125   : > { %v1381_v22 = vadd.f32 %v1982_v60, %v1203_v59  ;;  %v1360_v24 = vpop.f32.mrf.mxu1  ;;  %v1517_v25 = vpop.f32.mrf.mxu0 }
 0x126   : > { %v1853_v29 = vpack.c.bf16 %v1569_v15, %v1569_v15  ;;  %v1567_v30 = vmax.f32 %v1559_v18, 0.0  ;;  %v1562_v2 = vadd.f32 %v2540_v34, %v1547_v4  ;;  %v1545_v46 = vmul.f32 %v2529_v7, %v1530_v36 }
 0x127   : > { %v1535_v35 = vadd.f32 %v1992_v14, %v1381_v22  ;;  %v1379_v6 = vadd.f32 %v1360_v24, %v1201_v11  ;;  %v1983_v16 = vpop.f32.mrf.mxu1 }
 0x128   : > { %1610 = vst.msk [vmem:[%s2555_s28 + $0x8] sm:$0xf] %vm1607_vm3, %v1853_v29  ;;  %v1851_v53 = vpack.c.bf16 %v1567_v30, %v1567_v30  ;;  %v1570_v1 = vmax.f32 %v1562_v2, 0.0  ;;  %v1560_v3 = vadd.f32 %v2540_v34, %v1545_v46  ;;  %v1382_v49 = vadd.f32 %v1983_v16, %v1204_v23 }
 0x129   : > { %v1550_v42 = vmul.f32 %v2529_v7, %v1535_v35  ;;  %v1533_v10 = vadd.f32 %v1514_v13, %v1379_v6  ;;  %v1363_v40 = vpop.f32.mrf.mxu1 }
 0x12a   : > { %1608 = vst.msk [vmem:[%s2555_s28] sm:$0xf] %vm1607_vm3, %v1851_v53  ;;  %v1854_v37 = vpack.c.bf16 %v1570_v1, %v1570_v1  ;;  %v1568_v45 = vmax.f32 %v1560_v3, 0.0  ;;  %v1536_v43 = vadd.f32 %v1993_v44, %v1382_v49  ;;  %v1380_v41 = vadd.f32 %v1363_v40, %v1202_v58 }
 0x12b   : > { %v1565_v54 = vadd.f32 %v2540_v34, %v1550_v42  ;;  %v1548_v55 = vmul.f32 %v2529_v7, %v1533_v10 }
 0x12c   : > { %1611 = vst.msk [vmem:[%s2555_s28 + $0xc] sm:$0xf] %vm1607_vm3, %v1854_v37  ;;  %v1852_v62 = vpack.c.bf16 %v1568_v45, %v1568_v45  ;;  %v1551_v48 = vmul.f32 %v2529_v7, %v1536_v43  ;;  %v1534_v52 = vadd.f32 %v1517_v25, %v1380_v41 }
 0x12d   : > { %v1573_v0 = vmax.f32 %v1565_v54, 0.0  ;;  %v1563_v57 = vadd.f32 %v2540_v34, %v1548_v55 }
 0x12e   : > { %1609 = vst.msk [vmem:[%s2555_s28 + $0x4] sm:$0xf] %vm1607_vm3, %v1852_v62  ;;  %v1566_v32 = vadd.f32 %v2540_v34, %v1551_v48  ;;  %v1549_v8 = vmul.f32 %v2529_v7, %v1534_v52 }
 0x12f   : > { %v1857_v47 = vpack.c.bf16 %v1573_v0, %v1573_v0  ;;  %v1571_v33 = vmax.f32 %v1563_v57, 0.0 }
 0x130   : > { %v1574_v26 = vmax.f32 %v1566_v32, 0.0  ;;  %v1564_v21 = vadd.f32 %v2540_v34, %v1549_v8 }
 0x131   : > { %1614 = vst.msk [vmem:[%s2555_s28 + $0x18] sm:$0xf] %vm1607_vm3, %v1857_v47  ;;  %v1855_v9 = vpack.c.bf16 %v1571_v33, %v1571_v33 }
 0x132   : > { %v1858_v61 = vpack.c.bf16 %v1574_v26, %v1574_v26  ;;  %v1572_v31 = vmax.f32 %v1564_v21, 0.0 }
 0x133   : > { %1612 = vst.msk [vmem:[%s2555_s28 + $0x10] sm:$0xf] %vm1607_vm3, %v1855_v9 }
 0x134   : > { %1615 = vst.msk [vmem:[%s2555_s28 + $0x1c] sm:$0xf] %vm1607_vm3, %v1858_v61  ;;  %v1856_v38 = vpack.c.bf16 %v1572_v31, %v1572_v31 }
 0x136   : > { %1613 = vst.msk [vmem:[%s2555_s28 + $0x14] sm:$0xf] %vm1607_vm3, %v1856_v38 }
 0x137 PF: > { %s14_s17 = sadd.s32 1, %s2064_s17   ;;  %s2600_s15 = smov %s2060_s16 }
 0x138   : > { %p11_p6 = scmp.ge.s32.totalorder %s14_s17, 4   ;;  %s2601_s16 = smov %s2603_s18 }
 0x13a   :  { %13 = sbr.rel (!%p11_p6) target bundleno = 2 (0x2), region = 77 }

// kernel: _forward.11
= control target key start
LH: loop header
LB: loop body
LE: loop exit
PB: predicated region body
PF: predicated region fallthrough
CT: control target
= control target key end

     0   :  { %vm82_vm0 = vcmask 130048   ;;  %vm330_vm1 = vcmask 257024   ;;  %s606_s1 = inlined_call_operand.vmem [shape: bf16[16,32], index: 1, kind: input, shape index: {}]   ;;  %s607_s0 = inlined_call_operand.vmem [shape: bf16[128,16], index: 0, kind: input, shape index: {}]   ;;  %s608_s2 = inlined_call_operand.vmem [shape: f32[1,32], index: 2, kind: input, shape index: {}]   ;;  %s609_s3 = inlined_call_operand.vmem [shape: f32[1,32], index: 3, kind: input, shape index: {}]   ;;  %s610_s4 = inlined_call_operand.vmem [shape: bf16[128,32], index: 4, kind: output, shape index: {}]  }
   0x1   :  { %v431_v0 = vld [vmem:[%s606_s1] sm:$0xff]   ;;  %v434_v3 = vld [vmem:[%s607_s0 + $0x8] sm:$0xff]   ;;  %v436_v5 = vld [vmem:[%s607_s0 + $0x10] sm:$0xff]  }
   0x2   :  { %v432_v1 = vld [vmem:[%s607_s0] sm:$0xff]   ;;  %411 = vmatprep.subr.bf16.mxu0 %v431_v0  ;;  %429 = vmatprep.subr.bf16.mxu1 %v431_v0  ;;  %v435_v4 = vld [vmem:[%s607_s0 + $0x28] sm:$0xff]   ;;  %v437_v6 = vld [vmem:[%s607_s0 + $0x30] sm:$0xff]  }
   0x3   :  { %v433_v2 = vld [vmem:[%s607_s0 + $0x20] sm:$0xff]   ;;  %412 = vmatpush3.bf16.msra.mxu0 %v431_v0  ;;  %430 = vmatpush3.bf16.msra.mxu1 %v431_v0  ;;  %v438_v7 = vld [vmem:[%s607_s0 + $0x18] sm:$0xff]  }
   0x4   :  { %413 = vmatprep.mubr.msk.bf16.mxu0 %vm82_vm0, %v432_v1  ;;  %421 = vmatprep.mubr.msk.bf16.mxu1 %vm82_vm0, %v433_v2  ;;  %v439_v8 = vld [vmem:[%s607_s0 + $0x38] sm:$0xff]   ;;  %v503_v9 = vld [vmem:[%s608_s2] ss:$0 sm:$0xff] }
   0x5   :  { %v508_v11 = vld [vmem:[%s609_s3] ss:$0 sm:$0xff] }
   0x6   :  { %414 = vmatmul.mubr.msk.bf16.vlgmr.msra.gmra.mxu0 %vm82_vm0, %v434_v3  ;;  %422 = vmatmul.mubr.msk.bf16.vlgmr.msra.gmra.mxu1 %vm82_vm0, %v435_v4 }
   0x7   :  { %417 = vmatprep.mubr.msk.bf16.mxu0 %vm82_vm0, %v436_v5  ;;  %425 = vmatprep.mubr.msk.bf16.mxu1 %vm82_vm0, %v437_v6 }
   0xe   :  { %418 = vmatmul.mubr.msk.bf16.gmra.mxu0 %vm82_vm0, %v438_v7  ;;  %426 = vmatmul.mubr.msk.bf16.gmra.mxu1 %vm82_vm0, %v439_v8 }
  0xc6   :  { %v415_v10 = vpop.f32.mrf.mxu0  ;;  %v423_v12 = vpop.f32.mrf.mxu1 }
  0xc7   :  { %v213_v13 = vmul.f32 %v415_v10, %v503_v9  ;;  %v221_v14 = vmul.f32 %v423_v12, %v503_v9 }
  0xc8   :  { %v141_v15 = vpop.f32.mrf.mxu0  ;;  %v173_v16 = vpop.f32.mrf.mxu1 }
  0xc9   :  { %v236_v17 = vadd.f32 %v508_v11, %v213_v13  ;;  %v244_v18 = vadd.f32 %v508_v11, %v221_v14  ;;  %v211_v19 = vmul.f32 %v503_v9, %v141_v15  ;;  %v219_v20 = vmul.f32 %v503_v9, %v173_v16 }
  0xca   :  { %v416_v21 = vpop.f32.mrf.mxu0  ;;  %v424_v22 = vpop.f32.mrf.mxu1 }
  0xcb   :  { %v252_v23 = vmax.f32 %v236_v17, 0.0  ;;  %v260_v24 = vmax.f32 %v244_v18, 0.0  ;;  %v234_v25 = vadd.f32 %v508_v11, %v211_v19  ;;  %v242_v26 = vadd.f32 %v508_v11, %v219_v20 }
  0xcc   :  { %v214_v27 = vmul.f32 %v416_v21, %v503_v9  ;;  %v222_v28 = vmul.f32 %v424_v22, %v503_v9  ;;  %v144_v29 = vpop.f32.mrf.mxu0  ;;  %v176_v30 = vpop.f32.mrf.mxu1 }
  0xcd   :  { %v388_v31 = vpack.c.bf16 %v252_v23, %v252_v23  ;;  %v396_v32 = vpack.c.bf16 %v260_v24, %v260_v24  ;;  %v250_v33 = vmax.f32 %v234_v25, 0.0  ;;  %v258_v34 = vmax.f32 %v242_v26, 0.0 }
  0xce   :  { %v237_v35 = vadd.f32 %v508_v11, %v214_v27  ;;  %v245_v36 = vadd.f32 %v508_v11, %v222_v28  ;;  %v212_v37 = vmul.f32 %v503_v9, %v144_v29  ;;  %v220_v38 = vmul.f32 %v503_v9, %v176_v30  ;;  %v419_v39 = vpop.f32.mrf.mxu0  ;;  %v427_v40 = vpop.f32.mrf.mxu1 }
  0xcf   :  { %333 = vst.msk [vmem:[%s610_s4 + $0x8] sm:$0xf] %vm330_vm1, %v388_v31  ;;  %341 = vst.msk [vmem:[%s610_s4 + $0x28] sm:$0xf] %vm330_vm1, %v396_v32  ;;  %v386_v41 = vpack.c.bf16 %v250_v33, %v250_v33  ;;  %v394_v42 = vpack.c.bf16 %v258_v34, %v258_v34  ;;  %v217_v43 = vmul.f32 %v419_v39, %v503_v9 }
  0xd0   :  { %v225_v44 = vmul.f32 %v427_v40, %v503_v9  ;;  %v253_v45 = vmax.f32 %v237_v35, 0.0  ;;  %v261_v46 = vmax.f32 %v245_v36, 0.0  ;;  %v235_v47 = vadd.f32 %v508_v11, %v212_v37  ;;  %v157_v49 = vpop.f32.mrf.mxu0  ;;  %v189_v50 = vpop.f32.mrf.mxu1 }
  0xd1   :  { %v243_v48 = vadd.f32 %v508_v11, %v220_v38  ;;  %331 = vst.msk [vmem:[%s610_s4] sm:$0xf] %vm330_vm1, %v386_v41  ;;  %339 = vst.msk [vmem:[%s610_s4 + $0x20] sm:$0xf] %vm330_vm1, %v394_v42  ;;  %v240_v51 = vadd.f32 %v508_v11, %v217_v43  ;;  %v215_v53 = vmul.f32 %v503_v9, %v157_v49 }
  0xd2   :  { %v248_v52 = vadd.f32 %v508_v11, %v225_v44  ;;  %v223_v54 = vmul.f32 %v503_v9, %v189_v50  ;;  %v389_v55 = vpack.c.bf16 %v253_v45, %v253_v45  ;;  %v397_v56 = vpack.c.bf16 %v261_v46, %v261_v46  ;;  %v420_v59 = vpop.f32.mrf.mxu0  ;;  %v428_v60 = vpop.f32.mrf.mxu1 }
  0xd3   :  { %v251_v57 = vmax.f32 %v235_v47, 0.0  ;;  %v259_v58 = vmax.f32 %v243_v48, 0.0  ;;  %v256_v61 = vmax.f32 %v240_v51, 0.0  ;;  %v238_v63 = vadd.f32 %v508_v11, %v215_v53 }
  0xd4   :  { %v264_v62 = vmax.f32 %v248_v52, 0.0  ;;  %v246_v0 = vadd.f32 %v508_v11, %v223_v54  ;;  %334 = vst.msk [vmem:[%s610_s4 + $0xc] sm:$0xf] %vm330_vm1, %v389_v55  ;;  %342 = vst.msk [vmem:[%s610_s4 + $0x2c] sm:$0xf] %vm330_vm1, %v397_v56  ;;  %v218_v3 = vmul.f32 %v420_v59, %v503_v9  ;;  %v226_v4 = vmul.f32 %v428_v60, %v503_v9  ;;  %v160_v5 = vpop.f32.mrf.mxu0  ;;  %v192_v6 = vpop.f32.mrf.mxu1 }
  0xd5   :  { %v387_v1 = vpack.c.bf16 %v251_v57, %v251_v57  ;;  %v395_v2 = vpack.c.bf16 %v259_v58, %v259_v58  ;;  %v392_v7 = vpack.c.bf16 %v256_v61, %v256_v61  ;;  %v254_v10 = vmax.f32 %v238_v63, 0.0 }
  0xd6   :  { %v400_v8 = vpack.c.bf16 %v264_v62, %v264_v62  ;;  %v262_v12 = vmax.f32 %v246_v0, 0.0  ;;  %v241_v13 = vadd.f32 %v508_v11, %v218_v3  ;;  %v249_v14 = vadd.f32 %v508_v11, %v226_v4 }
  0xd7   :  { %332 = vst.msk [vmem:[%s610_s4 + $0x4] sm:$0xf] %vm330_vm1, %v387_v1  ;;  %340 = vst.msk [vmem:[%s610_s4 + $0x24] sm:$0xf] %vm330_vm1, %v395_v2  ;;  %v216_v15 = vmul.f32 %v503_v9, %v160_v5  ;;  %v224_v16 = vmul.f32 %v503_v9, %v192_v6  ;;  %v390_v17 = vpack.c.bf16 %v254_v10, %v254_v10 }
  0xd8   :  { %337 = vst.msk [vmem:[%s610_s4 + $0x18] sm:$0xf] %vm330_vm1, %v392_v7  ;;  %345 = vst.msk [vmem:[%s610_s4 + $0x38] sm:$0xf] %vm330_vm1, %v400_v8  ;;  %v398_v18 = vpack.c.bf16 %v262_v12, %v262_v12  ;;  %v257_v19 = vmax.f32 %v241_v13, 0.0  ;;  %v265_v20 = vmax.f32 %v249_v14, 0.0 }
  0xd9   :  { %v239_v21 = vadd.f32 %v508_v11, %v216_v15  ;;  %v247_v22 = vadd.f32 %v508_v11, %v224_v16  ;;  %335 = vst.msk [vmem:[%s610_s4 + $0x10] sm:$0xf] %vm330_vm1, %v390_v17 }
  0xda   :  { %343 = vst.msk [vmem:[%s610_s4 + $0x30] sm:$0xf] %vm330_vm1, %v398_v18  ;;  %v393_v9 = vpack.c.bf16 %v257_v19, %v257_v19  ;;  %v401_v23 = vpack.c.bf16 %v265_v20, %v265_v20 }
  0xdb   :  { %v255_v24 = vmax.f32 %v239_v21, 0.0  ;;  %v263_v25 = vmax.f32 %v247_v22, 0.0 }
  0xdc   :  { %338 = vst.msk [vmem:[%s610_s4 + $0x1c] sm:$0xf] %vm330_vm1, %v393_v9  ;;  %346 = vst.msk [vmem:[%s610_s4 + $0x3c] sm:$0xf] %vm330_vm1, %v401_v23 }
  0xdd   :  { %v391_v11 = vpack.c.bf16 %v255_v24, %v255_v24  ;;  %v399_v26 = vpack.c.bf16 %v263_v25, %v263_v25 }
  0xdf   :  { %336 = vst.msk [vmem:[%s610_s4 + $0x14] sm:$0xf] %vm330_vm1, %v391_v11  ;;  %344 = vst.msk [vmem:[%s610_s4 + $0x34] sm:$0xf] %vm330_vm1, %v399_v26 }

</bundles_post_ra>
